<compile_context>
chip_gen: v6e
topology: v6e:2x2x1
jax: 0.10.0
libtpu: 0.0.40
codegen_flags: <defaults>
</compile_context>

<pallas_src>
import functools
import math

import numpy as np

import jax
import jax.numpy as jnp
from jax.experimental import pallas as pl
from jax.experimental.pallas import tpu as pltpu


# ----------------------------------------------------------------------------
# Static bias layout (all chunk starts are multiples of 8 sublanes)
# ----------------------------------------------------------------------------

def _round8(n):
    return ((n + 7) // 8) * 8


def _bias_layout(num_layers, F, num_heads, hsz, num_classes):
    cur = 0

    def take(n):
        nonlocal cur
        o = cur
        cur += _round8(n)
        return o

    off = {}
    off['pg_in_b'] = take(F)
    off['pg_b'] = [take(F) for _ in range(num_layers)]
    off['att'] = []
    for _ in range(num_layers):
        off['att'].append({'ff_b': take(F),
                           'qkv_b': take(num_heads * hsz),
                           'fb': take(F),
                           'mh_b': take(F),
                           'c11_b': take(F)})
    off['out_b'] = take(num_classes)
    return off, _round8(cur)


# ----------------------------------------------------------------------------
# Fused encoder kernel (everything in one pallas_call, whole arrays in VMEM)
# ----------------------------------------------------------------------------

def _encoder_kernel(xf_ref, pm_ref, bias_att_ref, smask_ref, inA_ref, inB_ref,
                    pg_in_w_ref, pg_w_ref, ff_w_ref, qkv_w_ref, fw_ref,
                    c11_w_ref, out_w_ref, bias_ref,
                    out_ref, feat_ref,
                    *, num_layers, num_heads, alpha, cq, cv, dil_idx, bias_off):
    f32 = jnp.float32
    bf16 = jnp.bfloat16

    x = xf_ref[...]                       # (Cin, NL) folded (batch in lanes)
    pm = pm_ref[...]                      # (1, NL)   padding mask
    att_bias = bias_att_ref[...]          # (NL, NL)  log(pm)+cross-batch -inf
    A = inA_ref[...]                      # (NL, 8)   per-batch average
    B = inB_ref[...]                      # (8, NL)   per-batch broadcast-back
    NL = x.shape[-1]
    F = pg_in_w_ref.shape[0]
    nc = out_w_ref.shape[0]
    hsz = 2 * cq + cv

    def bget(off, n):                     # packed-bias slice (n, 1), f32
        return bias_ref[off:off + n]

    def mm(w, z):                         # bf16 MXU operands, f32 accumulate
        return jnp.dot(w.astype(bf16), z.astype(bf16),
                       preferred_element_type=f32)

    def mmf(a, b):                        # tiny exact-ish f32 matmuls (inorm)
        return jnp.dot(a, b, preferred_element_type=f32)

    def dconv_taps(z, d):
        """Stack [z(l-d); z(l); z(l+d)] with Conv1d zero padding per batch."""
        i = dil_idx[d]
        m_lo = smask_ref[2 * i]           # (1, NL): 1 where (l - d) in-batch
        m_hi = smask_ref[2 * i + 1]       # (1, NL): 1 where (l + d) in-batch
        zl = pltpu.roll(z, d, axis=1) * m_lo        # column j <- z[:, j-d]
        zr = pltpu.roll(z, NL - d, axis=1) * m_hi   # column j <- z[:, j+d]
        return jnp.concatenate([zl, z, zr], axis=0)  # (3C, NL)

    def instance_norm(z):                 # per-batch mean/var over L, eps 1e-5
        mu = mmf(mmf(z, A), B)
        zc = z - mu
        var = mmf(mmf(zc * zc, A), B)
        return zc * jax.lax.rsqrt(var + 1e-5)

    # ---- Prediction_Generation ----------------------------------------------
    f = mm(pg_in_w_ref[...], x) + bget(bias_off['pg_in_b'], F)
    for i in range(num_layers):
        # pre-fused (fusion-conv @ dilated-conv) weight, single K=6F matmul
        s = jnp.concatenate([dconv_taps(f, 2 ** (num_layers - 1 - i)),
                             dconv_taps(f, 2 ** i)], axis=0)       # (6F, NL)
        g = jnp.maximum(mm(pg_w_ref[i], s) + bget(bias_off['pg_b'][i], F), 0.0)
        f = g + f
    # NOTE: PG.conv_out output is unused by Encoder.forward -> not computed.

    # ---- Attention layers -----------------------------------------------------
    scale = 1.0 / math.sqrt(cq)
    feat = f
    for li in range(num_layers):
        bo = bias_off['att'][li]
        s = dconv_taps(feat, 2 ** li)                               # (3F, NL)
        ff = jnp.maximum(mm(ff_w_ref[li], s) + bget(bo['ff_b'], F), 0.0)
        xn = instance_norm(ff)
        # one matmul for all heads' q/k/v projections
        qkv = mm(qkv_w_ref[li], xn) + bget(bo['qkv_b'], num_heads * hsz)
        ovs = []
        for h in range(num_heads):
            base = h * hsz
            q = qkv[base:base + cq]
            k = qkv[base + cq:base + 2 * cq]
            v = qkv[base + 2 * cq:base + hsz]
            # energy[i, j] = sum_c q[c, i] * k[c, j]
            e = jax.lax.dot_general(q.astype(bf16), k.astype(bf16),
                                    (((0,), (0,)), ((), ())),
                                    preferred_element_type=f32) * scale
            a = e + att_bias
            a = a - jnp.max(a, axis=-1, keepdims=True)
            p = jnp.exp(a)
            a = p * pl.reciprocal(jnp.sum(p, axis=-1, keepdims=True),
                                  approx=True)
            a = a * pm                       # mask keys (broadcast over rows)
            # out_v[c, i] = sum_j v[c, j] * a[i, j]
            ov = jax.lax.dot_general(v.astype(bf16), a.astype(bf16),
                                     (((1,), (1,)), ((), ())),
                                     preferred_element_type=f32)
            ovs.append(jnp.maximum(ov, 0.0))
        # all heads' fused (mh_w_h @ conv_out_h) in one K = 4*Cv matmul
        stack = jnp.concatenate(ovs, axis=0)                       # (4Cv, NL)
        att = (mm(fw_ref[li], stack) + bget(bo['fb'], F)) * pm \
            + bget(bo['mh_b'], F)
        out = alpha * att + ff
        out = mm(c11_w_ref[li], out) + bget(bo['c11_b'], F)
        feat = (feat + out) * pm

    feat_ref[...] = feat
    out_ref[...] = (mm(out_w_ref[...], feat) + bget(bias_off['out_b'], nc)) * pm


def encoder_forward(packed, x, mask, *, num_layers, alpha, cq, cv, num_heads=4):
    """Fused Pallas Encoder forward.  x: (N, Cin, L), mask: (N, C, L)."""
    N, Cin, L = x.shape
    NL = N * L
    F = packed['pg_in_w'].shape[0]
    nc = packed['out_w'].shape[0]

    # Fold batch into lanes: (C, N*L).
    xf = jnp.transpose(x, (1, 0, 2)).reshape(Cin, NL)
    pm = jnp.transpose(mask[:, 0:1, :], (1, 0, 2)).reshape(1, NL)

    # Hoisted attention bias: log(pm + 1e-6) on in-batch keys, -1e30 across
    # batch boundaries so the folded (NL, NL) softmax equals the batched one.
    idx = np.arange(NL)
    same_np = (idx[:, None] // L) == (idx[None, :] // L)
    att_bias = jnp.where(jnp.asarray(same_np), jnp.log(pm + 1e-6), -1e30)

    # Precomputed (host/constant) batch-boundary masks for the rolled taps.
    dils = tuple(2 ** i for i in range(num_layers))
    lpos = idx % L
    smask_np = np.zeros((2 * len(dils), 1, NL), np.float32)
    for i, d in enumerate(dils):
        smask_np[2 * i, 0] = (lpos >= d).astype(np.float32)        # l-d valid
        smask_np[2 * i + 1, 0] = (lpos < L - d).astype(np.float32)  # l+d valid
    smask = jnp.asarray(smask_np)

    # Skinny per-batch average / broadcast matrices for InstanceNorm.
    NB = max(8, _round8(N))
    A_np = np.zeros((NL, NB), np.float32)
    B_np = np.zeros((NB, NL), np.float32)
    for b in range(N):
        A_np[b * L:(b + 1) * L, b] = 1.0 / L
        B_np[b, b * L:(b + 1) * L] = 1.0
    inA, inB = jnp.asarray(A_np), jnp.asarray(B_np)

    bias_off, _ = _bias_layout(num_layers, F, num_heads, 2 * cq + cv, nc)

    kern = functools.partial(
        _encoder_kernel, num_layers=num_layers, num_heads=num_heads,
        alpha=float(alpha), cq=cq, cv=cv,
        dil_idx={d: i for i, d in enumerate(dils)}, bias_off=bias_off)

    out_f, feat_f = pl.pallas_call(
        kern,
        out_shape=(jax.ShapeDtypeStruct((nc, NL), jnp.float32),
                   jax.ShapeDtypeStruct((F, NL), jnp.float32)),
    )(xf, pm, att_bias, smask, inA, inB,
      packed['pg_in_w'], packed['pg_w'], packed['ff_w'], packed['qkv_w'],
      packed['fw'], packed['c11_w'], packed['out_w'], packed['biases'])

    out = jnp.transpose(out_f.reshape(nc, N, L), (1, 0, 2))
    feat = jnp.transpose(feat_f.reshape(F, N, L), (1, 0, 2))
    return out, feat


# ----------------------------------------------------------------------------
# Parameter init (PyTorch-like uniform) and host-side packing / pre-fusion
# ----------------------------------------------------------------------------

def init_encoder_params(key, num_layers, r1, r2, F, input_dim, num_classes):
    keys = iter(jax.random.split(key, 4096))

    def conv(cout, cin, k):
        k1, k2 = jax.random.split(next(keys))
        bound = 1.0 / math.sqrt(cin * k)
        w = jax.random.uniform(k1, (cout, cin, k), jnp.float32, -bound, bound)
        b = jax.random.uniform(k2, (cout, 1), jnp.float32, -bound, bound)
        if k == 1:
            w = w[:, :, 0]
        return w, b

    params = {}
    pg = {}
    pg["in_w"], pg["in_b"] = conv(F, input_dim, 1)
    pg["d1"] = [conv(F, F, 3) for _ in range(num_layers)]
    pg["d2"] = [conv(F, F, 3) for _ in range(num_layers)]
    pg["fu"] = [conv(F, 2 * F, 1) for _ in range(num_layers)]
    pg["out_w"], pg["out_b"] = conv(num_classes, F, 1)   # unused by forward
    params["pg"] = pg

    layers = []
    for _ in range(num_layers):
        lp = {}
        lp["ff_w"], lp["ff_b"] = conv(F, F, 3)
        heads = []
        for _h in range(4):
            hp = {}
            hp["qw"], hp["qb"] = conv(F // r1, F, 1)
            hp["kw"], hp["kb"] = conv(F // r1, F, 1)
            hp["vw"], hp["vb"] = conv(F // r2, F, 1)
            hp["ow"], hp["ob"] = conv(F, F // r2, 1)
            heads.append(hp)
        lp["heads"] = heads
        lp["mh_w"], lp["mh_b"] = conv(F, 4 * F, 1)
        lp["c11_w"], lp["c11_b"] = conv(F, F, 1)
        layers.append(lp)
    params["layers"] = layers

    params["out_w"], params["out_b"] = conv(num_classes, F, 1)
    return params


def pack_params(params, num_layers, num_heads=4):
    """Pre-fuse / stack parameters for the megakernel (pure XLA, once)."""
    hi = jax.lax.Precision.HIGHEST
    bf16 = jnp.bfloat16
    pg = params['pg']
    F = pg['in_w'].shape[0]
    cq = params['layers'][0]['heads'][0]['qw'].shape[0]
    cv = params['layers'][0]['heads'][0]['vw'].shape[0]
    nc = params['out_w'].shape[0]
    hsz = 2 * cq + cv

    bias_off, total = _bias_layout(num_layers, F, num_heads, hsz, nc)
    biases = jnp.zeros((total, 1), jnp.float32)

    def put(b, off, val):
        return b.at[off:off + val.shape[0]].set(val)

    def taps(w):  # (F, F, 3) -> (F, 3F) as [w0 | w1 | w2]
        return jnp.concatenate([w[:, :, 0], w[:, :, 1], w[:, :, 2]], axis=1)

    biases = put(biases, bias_off['pg_in_b'], pg['in_b'])

    pg_w = []
    for i in range(num_layers):
        d1w, d1b = pg['d1'][i]
        d2w, d2b = pg['d2'][i]
        fuw, fub = pg['fu'][i]
        w1 = jnp.matmul(fuw[:, :F], taps(d1w), precision=hi)
        w2 = jnp.matmul(fuw[:, F:], taps(d2w), precision=hi)
        pg_w.append(jnp.concatenate([w1, w2], axis=1))            # (F, 6F)
        b = (jnp.matmul(fuw[:, :F], d1b, precision=hi)
             + jnp.matmul(fuw[:, F:], d2b, precision=hi) + fub)
        biases = put(biases, bias_off['pg_b'][i], b)

    ff_w, qkv_w, fw, c11_w = [], [], [], []
    for li, lp in enumerate(params['layers']):
        bo = bias_off['att'][li]
        ff_w.append(taps(lp['ff_w']))
        biases = put(biases, bo['ff_b'], lp['ff_b'])
        heads = lp['heads']
        qkv_w.append(jnp.concatenate(
            [jnp.concatenate([h['qw'], h['kw'], h['vw']], axis=0)
             for h in heads], axis=0))
        qkv_b = jnp.concatenate(
            [jnp.concatenate([h['qb'], h['kb'], h['vb']], axis=0)
             for h in heads], axis=0)
        biases = put(biases, bo['qkv_b'], qkv_b)
        mh_w, mh_b = lp['mh_w'], lp['mh_b']
        # fuse each head's conv_out with its slice of the multi-head fuse conv
        fw.append(jnp.concatenate(
            [jnp.matmul(mh_w[:, h * F:(h + 1) * F], heads[h]['ow'], precision=hi)
             for h in range(num_heads)], axis=1))                 # (F, 4*Cv)
        fb = sum(jnp.matmul(mh_w[:, h * F:(h + 1) * F], heads[h]['ob'],
                            precision=hi) for h in range(num_heads))
        biases = put(biases, bo['fb'], fb)
        biases = put(biases, bo['mh_b'], mh_b)
        c11_w.append(lp['c11_w'])
        biases = put(biases, bo['c11_b'], lp['c11_b'])
    biases = put(biases, bias_off['out_b'], params['out_b'])

    return {
        'pg_in_w': pg['in_w'].astype(bf16),
        'pg_w': jnp.stack(pg_w).astype(bf16),
        'ff_w': jnp.stack(ff_w).astype(bf16),
        'qkv_w': jnp.stack(qkv_w).astype(bf16),
        'fw': jnp.stack(fw).astype(bf16),
        'c11_w': jnp.stack(c11_w).astype(bf16),
        'out_w': params['out_w'].astype(bf16),
        'biases': biases,
    }


# ----------------------------------------------------------------------------
# Plain-JAX (XLA) reference mirroring the PyTorch module, for validation only
# ----------------------------------------------------------------------------

def encoder_forward_reference(params, x, mask, *, num_layers, alpha):
    hi = jax.lax.Precision.HIGHEST

    def conv1x1(z, w, b):
        return jnp.einsum('oc,ncl->nol', w, z, precision=hi) + b[None]

    def dconv3(z, w, b, d):
        L = z.shape[-1]
        zp = jnp.pad(z, ((0, 0), (0, 0), (d, d)))
        return (jnp.einsum('oc,ncl->nol', w[:, :, 0], zp[:, :, 0:L], precision=hi)
                + jnp.einsum('oc,ncl->nol', w[:, :, 1], zp[:, :, d:d + L], precision=hi)
                + jnp.einsum('oc,ncl->nol', w[:, :, 2], zp[:, :, 2 * d:2 * d + L], precision=hi)
                + b[None])

    def inorm(z):
        mu = jnp.mean(z, axis=-1, keepdims=True)
        var = jnp.mean((z - mu) ** 2, axis=-1, keepdims=True)
        return (z - mu) * jax.lax.rsqrt(var + 1e-5)

    pm = mask[:, 0:1, :]
    pg = params['pg']
    f = conv1x1(x, pg['in_w'], pg['in_b'])
    for i in range(num_layers):
        f_in = f
        d1 = dconv3(f, pg['d1'][i][0], pg['d1'][i][1], 2 ** (num_layers - 1 - i))
        d2 = dconv3(f, pg['d2'][i][0], pg['d2'][i][1], 2 ** i)
        f = jax.nn.relu(conv1x1(jnp.concatenate([d1, d2], axis=1),
                                pg['fu'][i][0], pg['fu'][i][1]))
        f = f + f_in
    feature = f
    for li, lp in enumerate(params['layers']):
        d = 2 ** li
        ff = jax.nn.relu(dconv3(feature, lp['ff_w'], lp['ff_b'], d))
        xn = inorm(ff)
        heads = []
        for hp in lp['heads']:
            q = conv1x1(xn, hp['qw'], hp['qb'])
            k = conv1x1(xn, hp['kw'], hp['kb'])
            v = conv1x1(xn, hp['vw'], hp['vb'])
            e = jnp.einsum('nci,ncj->nij', q, k, precision=hi) / math.sqrt(q.shape[1])
            a = e + jnp.log(pm + 1e-6)
            a = jax.nn.softmax(a, axis=-1)
            a = a * pm
            o = jnp.einsum('ncj,nij->nci', v, a, precision=hi)
            head = conv1x1(jax.nn.relu(o), hp['ow'], hp['ob'])
            heads.append(head * pm)
        mh = jnp.concatenate(heads, axis=1)
        att = conv1x1(mh, lp['mh_w'], lp['mh_b'])
        out = alpha * att + ff
        out = conv1x1(out, lp['c11_w'], lp['c11_b'])
        feature = (feature + out) * pm
    out = conv1x1(feature, params['out_w'], params['out_b']) * pm
    return out, feature


# ----------------------------------------------------------------------------
# Main
# ----------------------------------------------------------------------------

if __name__ == "__main__":
    NUM_LAYERS = 2
    R1, R2 = 2, 2
    NUM_F_MAPS = 32
    INPUT_DIM = 16
    NUM_CLASSES = 8
    ALPHA = 1.0
    N, L = 2, 64                      # N*L = 128 -> one full lane width

    key = jax.random.PRNGKey(0)
    kp, kx = jax.random.split(key)
    params = init_encoder_params(kp, NUM_LAYERS, R1, R2, NUM_F_MAPS,
                                 INPUT_DIM, NUM_CLASSES)
    packed = pack_params(params, NUM_LAYERS)

    x = jax.random.normal(kx, (N, INPUT_DIM, L), dtype=jnp.float32)
    mask = jnp.ones((N, NUM_CLASSES, L), dtype=jnp.float32)
    mask = mask.at[1, :, 48:].set(0.0)   # second element padded after frame 48

    fwd = jax.jit(functools.partial(encoder_forward, num_layers=NUM_LAYERS,
                                    alpha=ALPHA, cq=NUM_F_MAPS // R1,
                                    cv=NUM_F_MAPS // R2))
    out, feature = fwd(packed, x, mask)
    jax.block_until_ready((out, feature))

    assert out.shape == (N, NUM_CLASSES, L)
    assert feature.shape == (N, NUM_F_MAPS, L)
    assert bool(jnp.all(jnp.isfinite(out))) and bool(jnp.all(jnp.isfinite(feature)))

    # Validate against the plain-JAX (f32, HIGHEST precision) reference.
    ref_fn = jax.jit(functools.partial(encoder_forward_reference,
                                       num_layers=NUM_LAYERS, alpha=ALPHA))
    ref_out, ref_feat = ref_fn(params, x, mask)
    jax.block_until_ready((ref_out, ref_feat))

    out_np, feat_np = np.asarray(out), np.asarray(feature)
    ro, rf = np.asarray(ref_out), np.asarray(ref_feat)
    # Tolerances sized for bf16 MXU operands / f32 accumulation.
    np.testing.assert_allclose(out_np, ro, rtol=1e-1, atol=1e-1)
    np.testing.assert_allclose(feat_np, rf, rtol=1e-1, atol=1e-1)
    assert float(np.mean(np.abs(out_np - ro))) < 5e-2
    assert float(np.mean(np.abs(feat_np - rf))) < 5e-2

    print("KERNEL_OK")
</pallas_src>

<mosaic_0001>
module attributes {stable_mosaic.version = 11 : i64} {
  func.func @_encoder_kernel(%arg0: memref<16x128xf32, #tpu.memory_space<vmem>>, %arg1: memref<1x128xf32, #tpu.memory_space<vmem>>, %arg2: memref<128x128xf32, #tpu.memory_space<vmem>>, %arg3: memref<4x1x128xf32, #tpu.memory_space<vmem>>, %arg4: memref<128x8xf32, #tpu.memory_space<vmem>>, %arg5: memref<8x128xf32, #tpu.memory_space<vmem>>, %arg6: memref<32x16xbf16, #tpu.memory_space<vmem>>, %arg7: memref<2x32x192xbf16, #tpu.memory_space<vmem>>, %arg8: memref<2x32x96xbf16, #tpu.memory_space<vmem>>, %arg9: memref<2x192x32xbf16, #tpu.memory_space<vmem>>, %arg10: memref<2x32x64xbf16, #tpu.memory_space<vmem>>, %arg11: memref<2x32x32xbf16, #tpu.memory_space<vmem>>, %arg12: memref<8x32xbf16, #tpu.memory_space<vmem>>, %arg13: memref<744x1xf32, #tpu.memory_space<vmem>>, %arg14: memref<8x128xf32, #tpu.memory_space<vmem>>, %arg15: memref<32x128xf32, #tpu.memory_space<vmem>>) attributes {dimension_semantics = [], scalar_prefetch = 0 : i64, scratch_operands = 0 : i64, tpu.core_type = #tpu.core_type<tc>} {
    %c0 = arith.constant 0 : index
    %c0_0 = arith.constant 0 : index
    %0 = vector.load %arg0[%c0, %c0_0] : memref<16x128xf32, #tpu.memory_space<vmem>>, vector<16x128xf32>
    %c0_1 = arith.constant 0 : index
    %c0_2 = arith.constant 0 : index
    %1 = vector.load %arg1[%c0_1, %c0_2] : memref<1x128xf32, #tpu.memory_space<vmem>>, vector<1x128xf32>
    %c0_3 = arith.constant 0 : index
    %c0_4 = arith.constant 0 : index
    %2 = vector.load %arg2[%c0_3, %c0_4] : memref<128x128xf32, #tpu.memory_space<vmem>>, vector<128x128xf32>
    %c0_5 = arith.constant 0 : index
    %c0_6 = arith.constant 0 : index
    %3 = vector.load %arg4[%c0_5, %c0_6] : memref<128x8xf32, #tpu.memory_space<vmem>>, vector<128x8xf32>
    %c0_7 = arith.constant 0 : index
    %c0_8 = arith.constant 0 : index
    %4 = vector.load %arg5[%c0_7, %c0_8] : memref<8x128xf32, #tpu.memory_space<vmem>>, vector<8x128xf32>
    %c0_9 = arith.constant 0 : index
    %c0_10 = arith.constant 0 : index
    %5 = vector.load %arg6[%c0_9, %c0_10] : memref<32x16xbf16, #tpu.memory_space<vmem>>, vector<32x16xbf16>
    %6 = arith.truncf %0 : vector<16x128xf32> to vector<16x128xbf16>
    %cst = arith.constant dense<0.000000e+00> : vector<32x128xf32>
    %7 = tpu.matmul %5, %6, %cst {dimension_numbers = #tpu.dot_dimension_numbers<[1], [0], [0], [1], [0, 0, 1, 1], [], []>} : vector<32x16xbf16>, vector<16x128xbf16>, vector<32x128xf32> -> vector<32x128xf32>
    %c0_11 = arith.constant 0 : index
    %c0_12 = arith.constant 0 : index
    %8 = vector.load %arg13[%c0_11, %c0_12] : memref<744x1xf32, #tpu.memory_space<vmem>>, vector<32x1xf32>
    %9 = vector.broadcast %8 : vector<32x1xf32> to vector<32x128xf32>
    %10 = arith.addf %7, %9 : vector<32x128xf32>
    %c2 = arith.constant 2 : index
    %c0_13 = arith.constant 0 : index
    %c0_14 = arith.constant 0 : index
    %11 = vector.load %arg3[%c2, %c0_13, %c0_14] : memref<4x1x128xf32, #tpu.memory_space<vmem>>, vector<1x1x128xf32>
    %12 = vector.shape_cast %11 : vector<1x1x128xf32> to vector<1x128xf32>
    %c3 = arith.constant 3 : index
    %c0_15 = arith.constant 0 : index
    %c0_16 = arith.constant 0 : index
    %13 = vector.load %arg3[%c3, %c0_15, %c0_16] : memref<4x1x128xf32, #tpu.memory_space<vmem>>, vector<1x1x128xf32>
    %14 = vector.shape_cast %13 : vector<1x1x128xf32> to vector<1x128xf32>
    %c2_i32 = arith.constant 2 : i32
    %15 = tpu.dynamic_rotate %10 by %c2_i32 dim 1 : vector<32x128xf32>, i32 -> vector<32x128xf32>
    %16 = vector.broadcast %12 : vector<1x128xf32> to vector<32x128xf32>
    %17 = arith.mulf %15, %16 : vector<32x128xf32>
    %c126_i32 = arith.constant 126 : i32
    %18 = tpu.dynamic_rotate %10 by %c126_i32 dim 1 : vector<32x128xf32>, i32 -> vector<32x128xf32>
    %19 = vector.broadcast %14 : vector<1x128xf32> to vector<32x128xf32>
    %20 = arith.mulf %18, %19 : vector<32x128xf32>
    %21 = tpu.concatenate %17, %10, %20 in 0 : vector<32x128xf32>, vector<32x128xf32>, vector<32x128xf32> -> vector<96x128xf32>
    %c0_17 = arith.constant 0 : index
    %c0_18 = arith.constant 0 : index
    %c0_19 = arith.constant 0 : index
    %22 = vector.load %arg3[%c0_17, %c0_18, %c0_19] : memref<4x1x128xf32, #tpu.memory_space<vmem>>, vector<1x1x128xf32>
    %23 = vector.shape_cast %22 : vector<1x1x128xf32> to vector<1x128xf32>
    %c1 = arith.constant 1 : index
    %c0_20 = arith.constant 0 : index
    %c0_21 = arith.constant 0 : index
    %24 = vector.load %arg3[%c1, %c0_20, %c0_21] : memref<4x1x128xf32, #tpu.memory_space<vmem>>, vector<1x1x128xf32>
    %25 = vector.shape_cast %24 : vector<1x1x128xf32> to vector<1x128xf32>
    %c1_i32 = arith.constant 1 : i32
    %26 = tpu.dynamic_rotate %10 by %c1_i32 dim 1 : vector<32x128xf32>, i32 -> vector<32x128xf32>
    %27 = vector.broadcast %23 : vector<1x128xf32> to vector<32x128xf32>
    %28 = arith.mulf %26, %27 : vector<32x128xf32>
    %c127_i32 = arith.constant 127 : i32
    %29 = tpu.dynamic_rotate %10 by %c127_i32 dim 1 : vector<32x128xf32>, i32 -> vector<32x128xf32>
    %30 = vector.broadcast %25 : vector<1x128xf32> to vector<32x128xf32>
    %31 = arith.mulf %29, %30 : vector<32x128xf32>
    %32 = tpu.concatenate %28, %10, %31 in 0 : vector<32x128xf32>, vector<32x128xf32>, vector<32x128xf32> -> vector<96x128xf32>
    %33 = tpu.concatenate %21, %32 in 0 : vector<96x128xf32>, vector<96x128xf32> -> vector<192x128xf32>
    %c0_22 = arith.constant 0 : index
    %c0_23 = arith.constant 0 : index
    %c0_24 = arith.constant 0 : index
    %34 = vector.load %arg7[%c0_22, %c0_23, %c0_24] : memref<2x32x192xbf16, #tpu.memory_space<vmem>>, vector<1x32x192xbf16>
    %35 = vector.shape_cast %34 : vector<1x32x192xbf16> to vector<32x192xbf16>
    %36 = arith.truncf %33 : vector<192x128xf32> to vector<192x128xbf16>
    %cst_25 = arith.constant dense<0.000000e+00> : vector<32x128xf32>
    %37 = tpu.matmul %35, %36, %cst_25 {dimension_numbers = #tpu.dot_dimension_numbers<[1], [0], [0], [1], [0, 0, 1, 1], [], []>} : vector<32x192xbf16>, vector<192x128xbf16>, vector<32x128xf32> -> vector<32x128xf32>
    %c32 = arith.constant 32 : index
    %c0_26 = arith.constant 0 : index
    %38 = vector.load %arg13[%c32, %c0_26] : memref<744x1xf32, #tpu.memory_space<vmem>>, vector<32x1xf32>
    %39 = vector.broadcast %38 : vector<32x1xf32> to vector<32x128xf32>
    %40 = arith.addf %37, %39 : vector<32x128xf32>
    %cst_27 = arith.constant 0.000000e+00 : f32
    %41 = vector.broadcast %cst_27 : f32 to vector<32x128xf32>
    %42 = arith.maximumf %40, %41 : vector<32x128xf32>
    %43 = arith.addf %42, %10 : vector<32x128xf32>
    %c0_28 = arith.constant 0 : index
    %c0_29 = arith.constant 0 : index
    %c0_30 = arith.constant 0 : index
    %44 = vector.load %arg3[%c0_28, %c0_29, %c0_30] : memref<4x1x128xf32, #tpu.memory_space<vmem>>, vector<1x1x128xf32>
    %45 = vector.shape_cast %44 : vector<1x1x128xf32> to vector<1x128xf32>
    %c1_31 = arith.constant 1 : index
    %c0_32 = arith.constant 0 : index
    %c0_33 = arith.constant 0 : index
    %46 = vector.load %arg3[%c1_31, %c0_32, %c0_33] : memref<4x1x128xf32, #tpu.memory_space<vmem>>, vector<1x1x128xf32>
    %47 = vector.shape_cast %46 : vector<1x1x128xf32> to vector<1x128xf32>
    %c1_i32_34 = arith.constant 1 : i32
    %48 = tpu.dynamic_rotate %43 by %c1_i32_34 dim 1 : vector<32x128xf32>, i32 -> vector<32x128xf32>
    %49 = vector.broadcast %45 : vector<1x128xf32> to vector<32x128xf32>
    %50 = arith.mulf %48, %49 : vector<32x128xf32>
    %c127_i32_35 = arith.constant 127 : i32
    %51 = tpu.dynamic_rotate %43 by %c127_i32_35 dim 1 : vector<32x128xf32>, i32 -> vector<32x128xf32>
    %52 = vector.broadcast %47 : vector<1x128xf32> to vector<32x128xf32>
    %53 = arith.mulf %51, %52 : vector<32x128xf32>
    %54 = tpu.concatenate %50, %43, %53 in 0 : vector<32x128xf32>, vector<32x128xf32>, vector<32x128xf32> -> vector<96x128xf32>
    %c2_36 = arith.constant 2 : index
    %c0_37 = arith.constant 0 : index
    %c0_38 = arith.constant 0 : index
    %55 = vector.load %arg3[%c2_36, %c0_37, %c0_38] : memref<4x1x128xf32, #tpu.memory_space<vmem>>, vector<1x1x128xf32>
    %56 = vector.shape_cast %55 : vector<1x1x128xf32> to vector<1x128xf32>
    %c3_39 = arith.constant 3 : index
    %c0_40 = arith.constant 0 : index
    %c0_41 = arith.constant 0 : index
    %57 = vector.load %arg3[%c3_39, %c0_40, %c0_41] : memref<4x1x128xf32, #tpu.memory_space<vmem>>, vector<1x1x128xf32>
    %58 = vector.shape_cast %57 : vector<1x1x128xf32> to vector<1x128xf32>
    %c2_i32_42 = arith.constant 2 : i32
    %59 = tpu.dynamic_rotate %43 by %c2_i32_42 dim 1 : vector<32x128xf32>, i32 -> vector<32x128xf32>
    %60 = vector.broadcast %56 : vector<1x128xf32> to vector<32x128xf32>
    %61 = arith.mulf %59, %60 : vector<32x128xf32>
    %c126_i32_43 = arith.constant 126 : i32
    %62 = tpu.dynamic_rotate %43 by %c126_i32_43 dim 1 : vector<32x128xf32>, i32 -> vector<32x128xf32>
    %63 = vector.broadcast %58 : vector<1x128xf32> to vector<32x128xf32>
    %64 = arith.mulf %62, %63 : vector<32x128xf32>
    %65 = tpu.concatenate %61, %43, %64 in 0 : vector<32x128xf32>, vector<32x128xf32>, vector<32x128xf32> -> vector<96x128xf32>
    %66 = tpu.concatenate %54, %65 in 0 : vector<96x128xf32>, vector<96x128xf32> -> vector<192x128xf32>
    %c1_44 = arith.constant 1 : index
    %c0_45 = arith.constant 0 : index
    %c0_46 = arith.constant 0 : index
    %67 = vector.load %arg7[%c1_44, %c0_45, %c0_46] : memref<2x32x192xbf16, #tpu.memory_space<vmem>>, vector<1x32x192xbf16>
    %68 = vector.shape_cast %67 : vector<1x32x192xbf16> to vector<32x192xbf16>
    %69 = arith.truncf %66 : vector<192x128xf32> to vector<192x128xbf16>
    %cst_47 = arith.constant dense<0.000000e+00> : vector<32x128xf32>
    %70 = tpu.matmul %68, %69, %cst_47 {dimension_numbers = #tpu.dot_dimension_numbers<[1], [0], [0], [1], [0, 0, 1, 1], [], []>} : vector<32x192xbf16>, vector<192x128xbf16>, vector<32x128xf32> -> vector<32x128xf32>
    %c64 = arith.constant 64 : index
    %c0_48 = arith.constant 0 : index
    %71 = vector.load %arg13[%c64, %c0_48] : memref<744x1xf32, #tpu.memory_space<vmem>>, vector<32x1xf32>
    %72 = vector.broadcast %71 : vector<32x1xf32> to vector<32x128xf32>
    %73 = arith.addf %70, %72 : vector<32x128xf32>
    %cst_49 = arith.constant 0.000000e+00 : f32
    %74 = vector.broadcast %cst_49 : f32 to vector<32x128xf32>
    %75 = arith.maximumf %73, %74 : vector<32x128xf32>
    %76 = arith.addf %75, %43 : vector<32x128xf32>
    %c0_50 = arith.constant 0 : index
    %c0_51 = arith.constant 0 : index
    %c0_52 = arith.constant 0 : index
    %77 = vector.load %arg3[%c0_50, %c0_51, %c0_52] : memref<4x1x128xf32, #tpu.memory_space<vmem>>, vector<1x1x128xf32>
    %78 = vector.shape_cast %77 : vector<1x1x128xf32> to vector<1x128xf32>
    %c1_53 = arith.constant 1 : index
    %c0_54 = arith.constant 0 : index
    %c0_55 = arith.constant 0 : index
    %79 = vector.load %arg3[%c1_53, %c0_54, %c0_55] : memref<4x1x128xf32, #tpu.memory_space<vmem>>, vector<1x1x128xf32>
    %80 = vector.shape_cast %79 : vector<1x1x128xf32> to vector<1x128xf32>
    %c1_i32_56 = arith.constant 1 : i32
    %81 = tpu.dynamic_rotate %76 by %c1_i32_56 dim 1 : vector<32x128xf32>, i32 -> vector<32x128xf32>
    %82 = vector.broadcast %78 : vector<1x128xf32> to vector<32x128xf32>
    %83 = arith.mulf %81, %82 : vector<32x128xf32>
    %c127_i32_57 = arith.constant 127 : i32
    %84 = tpu.dynamic_rotate %76 by %c127_i32_57 dim 1 : vector<32x128xf32>, i32 -> vector<32x128xf32>
    %85 = vector.broadcast %80 : vector<1x128xf32> to vector<32x128xf32>
    %86 = arith.mulf %84, %85 : vector<32x128xf32>
    %87 = tpu.concatenate %83, %76, %86 in 0 : vector<32x128xf32>, vector<32x128xf32>, vector<32x128xf32> -> vector<96x128xf32>
    %c0_58 = arith.constant 0 : index
    %c0_59 = arith.constant 0 : index
    %c0_60 = arith.constant 0 : index
    %88 = vector.load %arg8[%c0_58, %c0_59, %c0_60] : memref<2x32x96xbf16, #tpu.memory_space<vmem>>, vector<1x32x96xbf16>
    %89 = vector.shape_cast %88 : vector<1x32x96xbf16> to vector<32x96xbf16>
    %90 = arith.truncf %87 : vector<96x128xf32> to vector<96x128xbf16>
    %cst_61 = arith.constant dense<0.000000e+00> : vector<32x128xf32>
    %91 = tpu.matmul %89, %90, %cst_61 {dimension_numbers = #tpu.dot_dimension_numbers<[1], [0], [0], [1], [0, 0, 1, 1], [], []>} : vector<32x96xbf16>, vector<96x128xbf16>, vector<32x128xf32> -> vector<32x128xf32>
    %c96 = arith.constant 96 : index
    %c0_62 = arith.constant 0 : index
    %92 = vector.load %arg13[%c96, %c0_62] : memref<744x1xf32, #tpu.memory_space<vmem>>, vector<32x1xf32>
    %93 = vector.broadcast %92 : vector<32x1xf32> to vector<32x128xf32>
    %94 = arith.addf %91, %93 : vector<32x128xf32>
    %cst_63 = arith.constant 0.000000e+00 : f32
    %95 = vector.broadcast %cst_63 : f32 to vector<32x128xf32>
    %96 = arith.maximumf %94, %95 : vector<32x128xf32>
    %cst_64 = arith.constant dense<0.000000e+00> : vector<32x8xf32>
    %97 = tpu.matmul %96, %3, %cst_64 {dimension_numbers = #tpu.dot_dimension_numbers<[1], [0], [0], [1], [0, 0, 1, 1], [], []>} : vector<32x128xf32>, vector<128x8xf32>, vector<32x8xf32> -> vector<32x8xf32>
    %cst_65 = arith.constant dense<0.000000e+00> : vector<32x128xf32>
    %98 = tpu.matmul %97, %4, %cst_65 {dimension_numbers = #tpu.dot_dimension_numbers<[1], [0], [0], [1], [0, 0, 1, 1], [], []>} : vector<32x8xf32>, vector<8x128xf32>, vector<32x128xf32> -> vector<32x128xf32>
    %99 = arith.subf %96, %98 : vector<32x128xf32>
    %100 = arith.mulf %99, %99 : vector<32x128xf32>
    %cst_66 = arith.constant dense<0.000000e+00> : vector<32x8xf32>
    %101 = tpu.matmul %100, %3, %cst_66 {dimension_numbers = #tpu.dot_dimension_numbers<[1], [0], [0], [1], [0, 0, 1, 1], [], []>} : vector<32x128xf32>, vector<128x8xf32>, vector<32x8xf32> -> vector<32x8xf32>
    %cst_67 = arith.constant dense<0.000000e+00> : vector<32x128xf32>
    %102 = tpu.matmul %101, %4, %cst_67 {dimension_numbers = #tpu.dot_dimension_numbers<[1], [0], [0], [1], [0, 0, 1, 1], [], []>} : vector<32x8xf32>, vector<8x128xf32>, vector<32x128xf32> -> vector<32x128xf32>
    %cst_68 = arith.constant 9.99999974E-6 : f32
    %103 = vector.broadcast %cst_68 : f32 to vector<32x128xf32>
    %104 = arith.addf %102, %103 : vector<32x128xf32>
    %105 = math.rsqrt %104 : vector<32x128xf32>
    %106 = arith.mulf %99, %105 : vector<32x128xf32>
    %c0_69 = arith.constant 0 : index
    %c0_70 = arith.constant 0 : index
    %c0_71 = arith.constant 0 : index
    %107 = vector.load %arg9[%c0_69, %c0_70, %c0_71] : memref<2x192x32xbf16, #tpu.memory_space<vmem>>, vector<1x192x32xbf16>
    %108 = vector.shape_cast %107 : vector<1x192x32xbf16> to vector<192x32xbf16>
    %109 = arith.truncf %106 : vector<32x128xf32> to vector<32x128xbf16>
    %cst_72 = arith.constant dense<0.000000e+00> : vector<192x128xf32>
    %110 = tpu.matmul %108, %109, %cst_72 {dimension_numbers = #tpu.dot_dimension_numbers<[1], [0], [0], [1], [0, 0, 1, 1], [], []>} : vector<192x32xbf16>, vector<32x128xbf16>, vector<192x128xf32> -> vector<192x128xf32>
    %c128 = arith.constant 128 : index
    %c0_73 = arith.constant 0 : index
    %111 = vector.load %arg13[%c128, %c0_73] : memref<744x1xf32, #tpu.memory_space<vmem>>, vector<192x1xf32>
    %112 = vector.broadcast %111 : vector<192x1xf32> to vector<192x128xf32>
    %113 = arith.addf %110, %112 : vector<192x128xf32>
    %114 = vector.extract_strided_slice %113 {offsets = [0, 0], sizes = [16, 128], strides = [1, 1]} : vector<192x128xf32> to vector<16x128xf32>
    %115 = vector.extract_strided_slice %113 {offsets = [16, 0], sizes = [16, 128], strides = [1, 1]} : vector<192x128xf32> to vector<16x128xf32>
    %116 = vector.extract_strided_slice %113 {offsets = [32, 0], sizes = [16, 128], strides = [1, 1]} : vector<192x128xf32> to vector<16x128xf32>
    %117 = arith.truncf %114 : vector<16x128xf32> to vector<16x128xbf16>
    %118 = arith.truncf %115 : vector<16x128xf32> to vector<16x128xbf16>
    %cst_74 = arith.constant dense<0.000000e+00> : vector<128x128xf32>
    %119 = tpu.matmul %117, %118, %cst_74 {dimension_numbers = #tpu.dot_dimension_numbers<[0], [0], [1], [1], [0, 1, 1, 1], [], []>} : vector<16x128xbf16>, vector<16x128xbf16>, vector<128x128xf32> -> vector<128x128xf32>
    %cst_75 = arith.constant 2.500000e-01 : f32
    %120 = vector.broadcast %cst_75 : f32 to vector<128x128xf32>
    %121 = arith.mulf %119, %120 : vector<128x128xf32>
    %122 = arith.addf %121, %2 : vector<128x128xf32>
    %cst_76 = arith.constant dense<0xFF800000> : vector<128xf32>
    %123 = vector.multi_reduction <maximumf>, %122, %cst_76 [1] : vector<128x128xf32> to vector<128xf32>
    %124 = vector.shape_cast %123 : vector<128xf32> to vector<128x1xf32>
    %125 = vector.broadcast %124 : vector<128x1xf32> to vector<128x128xf32>
    %126 = arith.subf %122, %125 : vector<128x128xf32>
    %127 = math.exp %126 : vector<128x128xf32>
    %cst_77 = arith.constant dense<0.000000e+00> : vector<128xf32>
    %128 = vector.multi_reduction <add>, %127, %cst_77 [1] : vector<128x128xf32> to vector<128xf32>
    %129 = vector.shape_cast %128 : vector<128xf32> to vector<128x1xf32>
    %130 = tpu.reciprocal %129 {approx = true} : vector<128x1xf32> -> vector<128x1xf32>
    %131 = vector.broadcast %130 : vector<128x1xf32> to vector<128x128xf32>
    %132 = arith.mulf %127, %131 : vector<128x128xf32>
    %133 = vector.broadcast %1 : vector<1x128xf32> to vector<128x128xf32>
    %134 = arith.mulf %132, %133 : vector<128x128xf32>
    %135 = arith.truncf %116 : vector<16x128xf32> to vector<16x128xbf16>
    %136 = arith.truncf %134 : vector<128x128xf32> to vector<128x128xbf16>
    %cst_78 = arith.constant dense<0.000000e+00> : vector<16x128xf32>
    %137 = tpu.matmul %135, %136, %cst_78 {dimension_numbers = #tpu.dot_dimension_numbers<[1], [1], [0], [0], [0, 0, 1, 0], [], []>} : vector<16x128xbf16>, vector<128x128xbf16>, vector<16x128xf32> -> vector<16x128xf32>
    %cst_79 = arith.constant 0.000000e+00 : f32
    %138 = vector.broadcast %cst_79 : f32 to vector<16x128xf32>
    %139 = arith.maximumf %137, %138 : vector<16x128xf32>
    %140 = vector.extract_strided_slice %113 {offsets = [48, 0], sizes = [16, 128], strides = [1, 1]} : vector<192x128xf32> to vector<16x128xf32>
    %141 = vector.extract_strided_slice %113 {offsets = [64, 0], sizes = [16, 128], strides = [1, 1]} : vector<192x128xf32> to vector<16x128xf32>
    %142 = vector.extract_strided_slice %113 {offsets = [80, 0], sizes = [16, 128], strides = [1, 1]} : vector<192x128xf32> to vector<16x128xf32>
    %143 = arith.truncf %140 : vector<16x128xf32> to vector<16x128xbf16>
    %144 = arith.truncf %141 : vector<16x128xf32> to vector<16x128xbf16>
    %cst_80 = arith.constant dense<0.000000e+00> : vector<128x128xf32>
    %145 = tpu.matmul %143, %144, %cst_80 {dimension_numbers = #tpu.dot_dimension_numbers<[0], [0], [1], [1], [0, 1, 1, 1], [], []>} : vector<16x128xbf16>, vector<16x128xbf16>, vector<128x128xf32> -> vector<128x128xf32>
    %cst_81 = arith.constant 2.500000e-01 : f32
    %146 = vector.broadcast %cst_81 : f32 to vector<128x128xf32>
    %147 = arith.mulf %145, %146 : vector<128x128xf32>
    %148 = arith.addf %147, %2 : vector<128x128xf32>
    %cst_82 = arith.constant dense<0xFF800000> : vector<128xf32>
    %149 = vector.multi_reduction <maximumf>, %148, %cst_82 [1] : vector<128x128xf32> to vector<128xf32>
    %150 = vector.shape_cast %149 : vector<128xf32> to vector<128x1xf32>
    %151 = vector.broadcast %150 : vector<128x1xf32> to vector<128x128xf32>
    %152 = arith.subf %148, %151 : vector<128x128xf32>
    %153 = math.exp %152 : vector<128x128xf32>
    %cst_83 = arith.constant dense<0.000000e+00> : vector<128xf32>
    %154 = vector.multi_reduction <add>, %153, %cst_83 [1] : vector<128x128xf32> to vector<128xf32>
    %155 = vector.shape_cast %154 : vector<128xf32> to vector<128x1xf32>
    %156 = tpu.reciprocal %155 {approx = true} : vector<128x1xf32> -> vector<128x1xf32>
    %157 = vector.broadcast %156 : vector<128x1xf32> to vector<128x128xf32>
    %158 = arith.mulf %153, %157 : vector<128x128xf32>
    %159 = vector.broadcast %1 : vector<1x128xf32> to vector<128x128xf32>
    %160 = arith.mulf %158, %159 : vector<128x128xf32>
    %161 = arith.truncf %142 : vector<16x128xf32> to vector<16x128xbf16>
    %162 = arith.truncf %160 : vector<128x128xf32> to vector<128x128xbf16>
    %cst_84 = arith.constant dense<0.000000e+00> : vector<16x128xf32>
    %163 = tpu.matmul %161, %162, %cst_84 {dimension_numbers = #tpu.dot_dimension_numbers<[1], [1], [0], [0], [0, 0, 1, 0], [], []>} : vector<16x128xbf16>, vector<128x128xbf16>, vector<16x128xf32> -> vector<16x128xf32>
    %cst_85 = arith.constant 0.000000e+00 : f32
    %164 = vector.broadcast %cst_85 : f32 to vector<16x128xf32>
    %165 = arith.maximumf %163, %164 : vector<16x128xf32>
    %166 = vector.extract_strided_slice %113 {offsets = [96, 0], sizes = [16, 128], strides = [1, 1]} : vector<192x128xf32> to vector<16x128xf32>
    %167 = vector.extract_strided_slice %113 {offsets = [112, 0], sizes = [16, 128], strides = [1, 1]} : vector<192x128xf32> to vector<16x128xf32>
    %168 = vector.extract_strided_slice %113 {offsets = [128, 0], sizes = [16, 128], strides = [1, 1]} : vector<192x128xf32> to vector<16x128xf32>
    %169 = arith.truncf %166 : vector<16x128xf32> to vector<16x128xbf16>
    %170 = arith.truncf %167 : vector<16x128xf32> to vector<16x128xbf16>
    %cst_86 = arith.constant dense<0.000000e+00> : vector<128x128xf32>
    %171 = tpu.matmul %169, %170, %cst_86 {dimension_numbers = #tpu.dot_dimension_numbers<[0], [0], [1], [1], [0, 1, 1, 1], [], []>} : vector<16x128xbf16>, vector<16x128xbf16>, vector<128x128xf32> -> vector<128x128xf32>
    %cst_87 = arith.constant 2.500000e-01 : f32
    %172 = vector.broadcast %cst_87 : f32 to vector<128x128xf32>
    %173 = arith.mulf %171, %172 : vector<128x128xf32>
    %174 = arith.addf %173, %2 : vector<128x128xf32>
    %cst_88 = arith.constant dense<0xFF800000> : vector<128xf32>
    %175 = vector.multi_reduction <maximumf>, %174, %cst_88 [1] : vector<128x128xf32> to vector<128xf32>
    %176 = vector.shape_cast %175 : vector<128xf32> to vector<128x1xf32>
    %177 = vector.broadcast %176 : vector<128x1xf32> to vector<128x128xf32>
    %178 = arith.subf %174, %177 : vector<128x128xf32>
    %179 = math.exp %178 : vector<128x128xf32>
    %cst_89 = arith.constant dense<0.000000e+00> : vector<128xf32>
    %180 = vector.multi_reduction <add>, %179, %cst_89 [1] : vector<128x128xf32> to vector<128xf32>
    %181 = vector.shape_cast %180 : vector<128xf32> to vector<128x1xf32>
    %182 = tpu.reciprocal %181 {approx = true} : vector<128x1xf32> -> vector<128x1xf32>
    %183 = vector.broadcast %182 : vector<128x1xf32> to vector<128x128xf32>
    %184 = arith.mulf %179, %183 : vector<128x128xf32>
    %185 = vector.broadcast %1 : vector<1x128xf32> to vector<128x128xf32>
    %186 = arith.mulf %184, %185 : vector<128x128xf32>
    %187 = arith.truncf %168 : vector<16x128xf32> to vector<16x128xbf16>
    %188 = arith.truncf %186 : vector<128x128xf32> to vector<128x128xbf16>
    %cst_90 = arith.constant dense<0.000000e+00> : vector<16x128xf32>
    %189 = tpu.matmul %187, %188, %cst_90 {dimension_numbers = #tpu.dot_dimension_numbers<[1], [1], [0], [0], [0, 0, 1, 0], [], []>} : vector<16x128xbf16>, vector<128x128xbf16>, vector<16x128xf32> -> vector<16x128xf32>
    %cst_91 = arith.constant 0.000000e+00 : f32
    %190 = vector.broadcast %cst_91 : f32 to vector<16x128xf32>
    %191 = arith.maximumf %189, %190 : vector<16x128xf32>
    %192 = vector.extract_strided_slice %113 {offsets = [144, 0], sizes = [16, 128], strides = [1, 1]} : vector<192x128xf32> to vector<16x128xf32>
    %193 = vector.extract_strided_slice %113 {offsets = [160, 0], sizes = [16, 128], strides = [1, 1]} : vector<192x128xf32> to vector<16x128xf32>
    %194 = vector.extract_strided_slice %113 {offsets = [176, 0], sizes = [16, 128], strides = [1, 1]} : vector<192x128xf32> to vector<16x128xf32>
    %195 = arith.truncf %192 : vector<16x128xf32> to vector<16x128xbf16>
    %196 = arith.truncf %193 : vector<16x128xf32> to vector<16x128xbf16>
    %cst_92 = arith.constant dense<0.000000e+00> : vector<128x128xf32>
    %197 = tpu.matmul %195, %196, %cst_92 {dimension_numbers = #tpu.dot_dimension_numbers<[0], [0], [1], [1], [0, 1, 1, 1], [], []>} : vector<16x128xbf16>, vector<16x128xbf16>, vector<128x128xf32> -> vector<128x128xf32>
    %cst_93 = arith.constant 2.500000e-01 : f32
    %198 = vector.broadcast %cst_93 : f32 to vector<128x128xf32>
    %199 = arith.mulf %197, %198 : vector<128x128xf32>
    %200 = arith.addf %199, %2 : vector<128x128xf32>
    %cst_94 = arith.constant dense<0xFF800000> : vector<128xf32>
    %201 = vector.multi_reduction <maximumf>, %200, %cst_94 [1] : vector<128x128xf32> to vector<128xf32>
    %202 = vector.shape_cast %201 : vector<128xf32> to vector<128x1xf32>
    %203 = vector.broadcast %202 : vector<128x1xf32> to vector<128x128xf32>
    %204 = arith.subf %200, %203 : vector<128x128xf32>
    %205 = math.exp %204 : vector<128x128xf32>
    %cst_95 = arith.constant dense<0.000000e+00> : vector<128xf32>
    %206 = vector.multi_reduction <add>, %205, %cst_95 [1] : vector<128x128xf32> to vector<128xf32>
    %207 = vector.shape_cast %206 : vector<128xf32> to vector<128x1xf32>
    %208 = tpu.reciprocal %207 {approx = true} : vector<128x1xf32> -> vector<128x1xf32>
    %209 = vector.broadcast %208 : vector<128x1xf32> to vector<128x128xf32>
    %210 = arith.mulf %205, %209 : vector<128x128xf32>
    %211 = vector.broadcast %1 : vector<1x128xf32> to vector<128x128xf32>
    %212 = arith.mulf %210, %211 : vector<128x128xf32>
    %213 = arith.truncf %194 : vector<16x128xf32> to vector<16x128xbf16>
    %214 = arith.truncf %212 : vector<128x128xf32> to vector<128x128xbf16>
    %cst_96 = arith.constant dense<0.000000e+00> : vector<16x128xf32>
    %215 = tpu.matmul %213, %214, %cst_96 {dimension_numbers = #tpu.dot_dimension_numbers<[1], [1], [0], [0], [0, 0, 1, 0], [], []>} : vector<16x128xbf16>, vector<128x128xbf16>, vector<16x128xf32> -> vector<16x128xf32>
    %cst_97 = arith.constant 0.000000e+00 : f32
    %216 = vector.broadcast %cst_97 : f32 to vector<16x128xf32>
    %217 = arith.maximumf %215, %216 : vector<16x128xf32>
    %218 = tpu.concatenate %139, %165, %191, %217 in 0 : vector<16x128xf32>, vector<16x128xf32>, vector<16x128xf32>, vector<16x128xf32> -> vector<64x128xf32>
    %c0_98 = arith.constant 0 : index
    %c0_99 = arith.constant 0 : index
    %c0_100 = arith.constant 0 : index
    %219 = vector.load %arg10[%c0_98, %c0_99, %c0_100] : memref<2x32x64xbf16, #tpu.memory_space<vmem>>, vector<1x32x64xbf16>
    %220 = vector.shape_cast %219 : vector<1x32x64xbf16> to vector<32x64xbf16>
    %221 = arith.truncf %218 : vector<64x128xf32> to vector<64x128xbf16>
    %cst_101 = arith.constant dense<0.000000e+00> : vector<32x128xf32>
    %222 = tpu.matmul %220, %221, %cst_101 {dimension_numbers = #tpu.dot_dimension_numbers<[1], [0], [0], [1], [0, 0, 1, 1], [], []>} : vector<32x64xbf16>, vector<64x128xbf16>, vector<32x128xf32> -> vector<32x128xf32>
    %c320 = arith.constant 320 : index
    %c0_102 = arith.constant 0 : index
    %223 = vector.load %arg13[%c320, %c0_102] : memref<744x1xf32, #tpu.memory_space<vmem>>, vector<32x1xf32>
    %224 = vector.broadcast %223 : vector<32x1xf32> to vector<32x128xf32>
    %225 = arith.addf %222, %224 : vector<32x128xf32>
    %226 = vector.broadcast %1 : vector<1x128xf32> to vector<32x128xf32>
    %227 = arith.mulf %225, %226 : vector<32x128xf32>
    %c352 = arith.constant 352 : index
    %c0_103 = arith.constant 0 : index
    %228 = vector.load %arg13[%c352, %c0_103] : memref<744x1xf32, #tpu.memory_space<vmem>>, vector<32x1xf32>
    %229 = vector.broadcast %228 : vector<32x1xf32> to vector<32x128xf32>
    %230 = arith.addf %227, %229 : vector<32x128xf32>
    %cst_104 = arith.constant 1.000000e+00 : f32
    %231 = vector.broadcast %cst_104 : f32 to vector<32x128xf32>
    %232 = arith.mulf %231, %230 : vector<32x128xf32>
    %233 = arith.addf %232, %96 : vector<32x128xf32>
    %c0_105 = arith.constant 0 : index
    %c0_106 = arith.constant 0 : index
    %c0_107 = arith.constant 0 : index
    %234 = vector.load %arg11[%c0_105, %c0_106, %c0_107] : memref<2x32x32xbf16, #tpu.memory_space<vmem>>, vector<1x32x32xbf16>
    %235 = vector.shape_cast %234 : vector<1x32x32xbf16> to vector<32x32xbf16>
    %236 = arith.truncf %233 : vector<32x128xf32> to vector<32x128xbf16>
    %cst_108 = arith.constant dense<0.000000e+00> : vector<32x128xf32>
    %237 = tpu.matmul %235, %236, %cst_108 {dimension_numbers = #tpu.dot_dimension_numbers<[1], [0], [0], [1], [0, 0, 1, 1], [], []>} : vector<32x32xbf16>, vector<32x128xbf16>, vector<32x128xf32> -> vector<32x128xf32>
    %c384 = arith.constant 384 : index
    %c0_109 = arith.constant 0 : index
    %238 = vector.load %arg13[%c384, %c0_109] : memref<744x1xf32, #tpu.memory_space<vmem>>, vector<32x1xf32>
    %239 = vector.broadcast %238 : vector<32x1xf32> to vector<32x128xf32>
    %240 = arith.addf %237, %239 : vector<32x128xf32>
    %241 = arith.addf %76, %240 : vector<32x128xf32>
    %242 = vector.broadcast %1 : vector<1x128xf32> to vector<32x128xf32>
    %243 = arith.mulf %241, %242 : vector<32x128xf32>
    %c2_110 = arith.constant 2 : index
    %c0_111 = arith.constant 0 : index
    %c0_112 = arith.constant 0 : index
    %244 = vector.load %arg3[%c2_110, %c0_111, %c0_112] : memref<4x1x128xf32, #tpu.memory_space<vmem>>, vector<1x1x128xf32>
    %245 = vector.shape_cast %244 : vector<1x1x128xf32> to vector<1x128xf32>
    %c3_113 = arith.constant 3 : index
    %c0_114 = arith.constant 0 : index
    %c0_115 = arith.constant 0 : index
    %246 = vector.load %arg3[%c3_113, %c0_114, %c0_115] : memref<4x1x128xf32, #tpu.memory_space<vmem>>, vector<1x1x128xf32>
    %247 = vector.shape_cast %246 : vector<1x1x128xf32> to vector<1x128xf32>
    %c2_i32_116 = arith.constant 2 : i32
    %248 = tpu.dynamic_rotate %243 by %c2_i32_116 dim 1 : vector<32x128xf32>, i32 -> vector<32x128xf32>
    %249 = vector.broadcast %245 : vector<1x128xf32> to vector<32x128xf32>
    %250 = arith.mulf %248, %249 : vector<32x128xf32>
    %c126_i32_117 = arith.constant 126 : i32
    %251 = tpu.dynamic_rotate %243 by %c126_i32_117 dim 1 : vector<32x128xf32>, i32 -> vector<32x128xf32>
    %252 = vector.broadcast %247 : vector<1x128xf32> to vector<32x128xf32>
    %253 = arith.mulf %251, %252 : vector<32x128xf32>
    %254 = tpu.concatenate %250, %243, %253 in 0 : vector<32x128xf32>, vector<32x128xf32>, vector<32x128xf32> -> vector<96x128xf32>
    %c1_118 = arith.constant 1 : index
    %c0_119 = arith.constant 0 : index
    %c0_120 = arith.constant 0 : index
    %255 = vector.load %arg8[%c1_118, %c0_119, %c0_120] : memref<2x32x96xbf16, #tpu.memory_space<vmem>>, vector<1x32x96xbf16>
    %256 = vector.shape_cast %255 : vector<1x32x96xbf16> to vector<32x96xbf16>
    %257 = arith.truncf %254 : vector<96x128xf32> to vector<96x128xbf16>
    %cst_121 = arith.constant dense<0.000000e+00> : vector<32x128xf32>
    %258 = tpu.matmul %256, %257, %cst_121 {dimension_numbers = #tpu.dot_dimension_numbers<[1], [0], [0], [1], [0, 0, 1, 1], [], []>} : vector<32x96xbf16>, vector<96x128xbf16>, vector<32x128xf32> -> vector<32x128xf32>
    %c416 = arith.constant 416 : index
    %c0_122 = arith.constant 0 : index
    %259 = vector.load %arg13[%c416, %c0_122] : memref<744x1xf32, #tpu.memory_space<vmem>>, vector<32x1xf32>
    %260 = vector.broadcast %259 : vector<32x1xf32> to vector<32x128xf32>
    %261 = arith.addf %258, %260 : vector<32x128xf32>
    %cst_123 = arith.constant 0.000000e+00 : f32
    %262 = vector.broadcast %cst_123 : f32 to vector<32x128xf32>
    %263 = arith.maximumf %261, %262 : vector<32x128xf32>
    %cst_124 = arith.constant dense<0.000000e+00> : vector<32x8xf32>
    %264 = tpu.matmul %263, %3, %cst_124 {dimension_numbers = #tpu.dot_dimension_numbers<[1], [0], [0], [1], [0, 0, 1, 1], [], []>} : vector<32x128xf32>, vector<128x8xf32>, vector<32x8xf32> -> vector<32x8xf32>
    %cst_125 = arith.constant dense<0.000000e+00> : vector<32x128xf32>
    %265 = tpu.matmul %264, %4, %cst_125 {dimension_numbers = #tpu.dot_dimension_numbers<[1], [0], [0], [1], [0, 0, 1, 1], [], []>} : vector<32x8xf32>, vector<8x128xf32>, vector<32x128xf32> -> vector<32x128xf32>
    %266 = arith.subf %263, %265 : vector<32x128xf32>
    %267 = arith.mulf %266, %266 : vector<32x128xf32>
    %cst_126 = arith.constant dense<0.000000e+00> : vector<32x8xf32>
    %268 = tpu.matmul %267, %3, %cst_126 {dimension_numbers = #tpu.dot_dimension_numbers<[1], [0], [0], [1], [0, 0, 1, 1], [], []>} : vector<32x128xf32>, vector<128x8xf32>, vector<32x8xf32> -> vector<32x8xf32>
    %cst_127 = arith.constant dense<0.000000e+00> : vector<32x128xf32>
    %269 = tpu.matmul %268, %4, %cst_127 {dimension_numbers = #tpu.dot_dimension_numbers<[1], [0], [0], [1], [0, 0, 1, 1], [], []>} : vector<32x8xf32>, vector<8x128xf32>, vector<32x128xf32> -> vector<32x128xf32>
    %cst_128 = arith.constant 9.99999974E-6 : f32
    %270 = vector.broadcast %cst_128 : f32 to vector<32x128xf32>
    %271 = arith.addf %269, %270 : vector<32x128xf32>
    %272 = math.rsqrt %271 : vector<32x128xf32>
    %273 = arith.mulf %266, %272 : vector<32x128xf32>
    %c1_129 = arith.constant 1 : index
    %c0_130 = arith.constant 0 : index
    %c0_131 = arith.constant 0 : index
    %274 = vector.load %arg9[%c1_129, %c0_130, %c0_131] : memref<2x192x32xbf16, #tpu.memory_space<vmem>>, vector<1x192x32xbf16>
    %275 = vector.shape_cast %274 : vector<1x192x32xbf16> to vector<192x32xbf16>
    %276 = arith.truncf %273 : vector<32x128xf32> to vector<32x128xbf16>
    %cst_132 = arith.constant dense<0.000000e+00> : vector<192x128xf32>
    %277 = tpu.matmul %275, %276, %cst_132 {dimension_numbers = #tpu.dot_dimension_numbers<[1], [0], [0], [1], [0, 0, 1, 1], [], []>} : vector<192x32xbf16>, vector<32x128xbf16>, vector<192x128xf32> -> vector<192x128xf32>
    %c448 = arith.constant 448 : index
    %c0_133 = arith.constant 0 : index
    %278 = vector.load %arg13[%c448, %c0_133] : memref<744x1xf32, #tpu.memory_space<vmem>>, vector<192x1xf32>
    %279 = vector.broadcast %278 : vector<192x1xf32> to vector<192x128xf32>
    %280 = arith.addf %277, %279 : vector<192x128xf32>
    %281 = vector.extract_strided_slice %280 {offsets = [0, 0], sizes = [16, 128], strides = [1, 1]} : vector<192x128xf32> to vector<16x128xf32>
    %282 = vector.extract_strided_slice %280 {offsets = [16, 0], sizes = [16, 128], strides = [1, 1]} : vector<192x128xf32> to vector<16x128xf32>
    %283 = vector.extract_strided_slice %280 {offsets = [32, 0], sizes = [16, 128], strides = [1, 1]} : vector<192x128xf32> to vector<16x128xf32>
    %284 = arith.truncf %281 : vector<16x128xf32> to vector<16x128xbf16>
    %285 = arith.truncf %282 : vector<16x128xf32> to vector<16x128xbf16>
    %cst_134 = arith.constant dense<0.000000e+00> : vector<128x128xf32>
    %286 = tpu.matmul %284, %285, %cst_134 {dimension_numbers = #tpu.dot_dimension_numbers<[0], [0], [1], [1], [0, 1, 1, 1], [], []>} : vector<16x128xbf16>, vector<16x128xbf16>, vector<128x128xf32> -> vector<128x128xf32>
    %cst_135 = arith.constant 2.500000e-01 : f32
    %287 = vector.broadcast %cst_135 : f32 to vector<128x128xf32>
    %288 = arith.mulf %286, %287 : vector<128x128xf32>
    %289 = arith.addf %288, %2 : vector<128x128xf32>
    %cst_136 = arith.constant dense<0xFF800000> : vector<128xf32>
    %290 = vector.multi_reduction <maximumf>, %289, %cst_136 [1] : vector<128x128xf32> to vector<128xf32>
    %291 = vector.shape_cast %290 : vector<128xf32> to vector<128x1xf32>
    %292 = vector.broadcast %291 : vector<128x1xf32> to vector<128x128xf32>
    %293 = arith.subf %289, %292 : vector<128x128xf32>
    %294 = math.exp %293 : vector<128x128xf32>
    %cst_137 = arith.constant dense<0.000000e+00> : vector<128xf32>
    %295 = vector.multi_reduction <add>, %294, %cst_137 [1] : vector<128x128xf32> to vector<128xf32>
    %296 = vector.shape_cast %295 : vector<128xf32> to vector<128x1xf32>
    %297 = tpu.reciprocal %296 {approx = true} : vector<128x1xf32> -> vector<128x1xf32>
    %298 = vector.broadcast %297 : vector<128x1xf32> to vector<128x128xf32>
    %299 = arith.mulf %294, %298 : vector<128x128xf32>
    %300 = vector.broadcast %1 : vector<1x128xf32> to vector<128x128xf32>
    %301 = arith.mulf %299, %300 : vector<128x128xf32>
    %302 = arith.truncf %283 : vector<16x128xf32> to vector<16x128xbf16>
    %303 = arith.truncf %301 : vector<128x128xf32> to vector<128x128xbf16>
    %cst_138 = arith.constant dense<0.000000e+00> : vector<16x128xf32>
    %304 = tpu.matmul %302, %303, %cst_138 {dimension_numbers = #tpu.dot_dimension_numbers<[1], [1], [0], [0], [0, 0, 1, 0], [], []>} : vector<16x128xbf16>, vector<128x128xbf16>, vector<16x128xf32> -> vector<16x128xf32>
    %cst_139 = arith.constant 0.000000e+00 : f32
    %305 = vector.broadcast %cst_139 : f32 to vector<16x128xf32>
    %306 = arith.maximumf %304, %305 : vector<16x128xf32>
    %307 = vector.extract_strided_slice %280 {offsets = [48, 0], sizes = [16, 128], strides = [1, 1]} : vector<192x128xf32> to vector<16x128xf32>
    %308 = vector.extract_strided_slice %280 {offsets = [64, 0], sizes = [16, 128], strides = [1, 1]} : vector<192x128xf32> to vector<16x128xf32>
    %309 = vector.extract_strided_slice %280 {offsets = [80, 0], sizes = [16, 128], strides = [1, 1]} : vector<192x128xf32> to vector<16x128xf32>
    %310 = arith.truncf %307 : vector<16x128xf32> to vector<16x128xbf16>
    %311 = arith.truncf %308 : vector<16x128xf32> to vector<16x128xbf16>
    %cst_140 = arith.constant dense<0.000000e+00> : vector<128x128xf32>
    %312 = tpu.matmul %310, %311, %cst_140 {dimension_numbers = #tpu.dot_dimension_numbers<[0], [0], [1], [1], [0, 1, 1, 1], [], []>} : vector<16x128xbf16>, vector<16x128xbf16>, vector<128x128xf32> -> vector<128x128xf32>
    %cst_141 = arith.constant 2.500000e-01 : f32
    %313 = vector.broadcast %cst_141 : f32 to vector<128x128xf32>
    %314 = arith.mulf %312, %313 : vector<128x128xf32>
    %315 = arith.addf %314, %2 : vector<128x128xf32>
    %cst_142 = arith.constant dense<0xFF800000> : vector<128xf32>
    %316 = vector.multi_reduction <maximumf>, %315, %cst_142 [1] : vector<128x128xf32> to vector<128xf32>
    %317 = vector.shape_cast %316 : vector<128xf32> to vector<128x1xf32>
    %318 = vector.broadcast %317 : vector<128x1xf32> to vector<128x128xf32>
    %319 = arith.subf %315, %318 : vector<128x128xf32>
    %320 = math.exp %319 : vector<128x128xf32>
    %cst_143 = arith.constant dense<0.000000e+00> : vector<128xf32>
    %321 = vector.multi_reduction <add>, %320, %cst_143 [1] : vector<128x128xf32> to vector<128xf32>
    %322 = vector.shape_cast %321 : vector<128xf32> to vector<128x1xf32>
    %323 = tpu.reciprocal %322 {approx = true} : vector<128x1xf32> -> vector<128x1xf32>
    %324 = vector.broadcast %323 : vector<128x1xf32> to vector<128x128xf32>
    %325 = arith.mulf %320, %324 : vector<128x128xf32>
    %326 = vector.broadcast %1 : vector<1x128xf32> to vector<128x128xf32>
    %327 = arith.mulf %325, %326 : vector<128x128xf32>
    %328 = arith.truncf %309 : vector<16x128xf32> to vector<16x128xbf16>
    %329 = arith.truncf %327 : vector<128x128xf32> to vector<128x128xbf16>
    %cst_144 = arith.constant dense<0.000000e+00> : vector<16x128xf32>
    %330 = tpu.matmul %328, %329, %cst_144 {dimension_numbers = #tpu.dot_dimension_numbers<[1], [1], [0], [0], [0, 0, 1, 0], [], []>} : vector<16x128xbf16>, vector<128x128xbf16>, vector<16x128xf32> -> vector<16x128xf32>
    %cst_145 = arith.constant 0.000000e+00 : f32
    %331 = vector.broadcast %cst_145 : f32 to vector<16x128xf32>
    %332 = arith.maximumf %330, %331 : vector<16x128xf32>
    %333 = vector.extract_strided_slice %280 {offsets = [96, 0], sizes = [16, 128], strides = [1, 1]} : vector<192x128xf32> to vector<16x128xf32>
    %334 = vector.extract_strided_slice %280 {offsets = [112, 0], sizes = [16, 128], strides = [1, 1]} : vector<192x128xf32> to vector<16x128xf32>
    %335 = vector.extract_strided_slice %280 {offsets = [128, 0], sizes = [16, 128], strides = [1, 1]} : vector<192x128xf32> to vector<16x128xf32>
    %336 = arith.truncf %333 : vector<16x128xf32> to vector<16x128xbf16>
    %337 = arith.truncf %334 : vector<16x128xf32> to vector<16x128xbf16>
    %cst_146 = arith.constant dense<0.000000e+00> : vector<128x128xf32>
    %338 = tpu.matmul %336, %337, %cst_146 {dimension_numbers = #tpu.dot_dimension_numbers<[0], [0], [1], [1], [0, 1, 1, 1], [], []>} : vector<16x128xbf16>, vector<16x128xbf16>, vector<128x128xf32> -> vector<128x128xf32>
    %cst_147 = arith.constant 2.500000e-01 : f32
    %339 = vector.broadcast %cst_147 : f32 to vector<128x128xf32>
    %340 = arith.mulf %338, %339 : vector<128x128xf32>
    %341 = arith.addf %340, %2 : vector<128x128xf32>
    %cst_148 = arith.constant dense<0xFF800000> : vector<128xf32>
    %342 = vector.multi_reduction <maximumf>, %341, %cst_148 [1] : vector<128x128xf32> to vector<128xf32>
    %343 = vector.shape_cast %342 : vector<128xf32> to vector<128x1xf32>
    %344 = vector.broadcast %343 : vector<128x1xf32> to vector<128x128xf32>
    %345 = arith.subf %341, %344 : vector<128x128xf32>
    %346 = math.exp %345 : vector<128x128xf32>
    %cst_149 = arith.constant dense<0.000000e+00> : vector<128xf32>
    %347 = vector.multi_reduction <add>, %346, %cst_149 [1] : vector<128x128xf32> to vector<128xf32>
    %348 = vector.shape_cast %347 : vector<128xf32> to vector<128x1xf32>
    %349 = tpu.reciprocal %348 {approx = true} : vector<128x1xf32> -> vector<128x1xf32>
    %350 = vector.broadcast %349 : vector<128x1xf32> to vector<128x128xf32>
    %351 = arith.mulf %346, %350 : vector<128x128xf32>
    %352 = vector.broadcast %1 : vector<1x128xf32> to vector<128x128xf32>
    %353 = arith.mulf %351, %352 : vector<128x128xf32>
    %354 = arith.truncf %335 : vector<16x128xf32> to vector<16x128xbf16>
    %355 = arith.truncf %353 : vector<128x128xf32> to vector<128x128xbf16>
    %cst_150 = arith.constant dense<0.000000e+00> : vector<16x128xf32>
    %356 = tpu.matmul %354, %355, %cst_150 {dimension_numbers = #tpu.dot_dimension_numbers<[1], [1], [0], [0], [0, 0, 1, 0], [], []>} : vector<16x128xbf16>, vector<128x128xbf16>, vector<16x128xf32> -> vector<16x128xf32>
    %cst_151 = arith.constant 0.000000e+00 : f32
    %357 = vector.broadcast %cst_151 : f32 to vector<16x128xf32>
    %358 = arith.maximumf %356, %357 : vector<16x128xf32>
    %359 = vector.extract_strided_slice %280 {offsets = [144, 0], sizes = [16, 128], strides = [1, 1]} : vector<192x128xf32> to vector<16x128xf32>
    %360 = vector.extract_strided_slice %280 {offsets = [160, 0], sizes = [16, 128], strides = [1, 1]} : vector<192x128xf32> to vector<16x128xf32>
    %361 = vector.extract_strided_slice %280 {offsets = [176, 0], sizes = [16, 128], strides = [1, 1]} : vector<192x128xf32> to vector<16x128xf32>
    %362 = arith.truncf %359 : vector<16x128xf32> to vector<16x128xbf16>
    %363 = arith.truncf %360 : vector<16x128xf32> to vector<16x128xbf16>
    %cst_152 = arith.constant dense<0.000000e+00> : vector<128x128xf32>
    %364 = tpu.matmul %362, %363, %cst_152 {dimension_numbers = #tpu.dot_dimension_numbers<[0], [0], [1], [1], [0, 1, 1, 1], [], []>} : vector<16x128xbf16>, vector<16x128xbf16>, vector<128x128xf32> -> vector<128x128xf32>
    %cst_153 = arith.constant 2.500000e-01 : f32
    %365 = vector.broadcast %cst_153 : f32 to vector<128x128xf32>
    %366 = arith.mulf %364, %365 : vector<128x128xf32>
    %367 = arith.addf %366, %2 : vector<128x128xf32>
    %cst_154 = arith.constant dense<0xFF800000> : vector<128xf32>
    %368 = vector.multi_reduction <maximumf>, %367, %cst_154 [1] : vector<128x128xf32> to vector<128xf32>
    %369 = vector.shape_cast %368 : vector<128xf32> to vector<128x1xf32>
    %370 = vector.broadcast %369 : vector<128x1xf32> to vector<128x128xf32>
    %371 = arith.subf %367, %370 : vector<128x128xf32>
    %372 = math.exp %371 : vector<128x128xf32>
    %cst_155 = arith.constant dense<0.000000e+00> : vector<128xf32>
    %373 = vector.multi_reduction <add>, %372, %cst_155 [1] : vector<128x128xf32> to vector<128xf32>
    %374 = vector.shape_cast %373 : vector<128xf32> to vector<128x1xf32>
    %375 = tpu.reciprocal %374 {approx = true} : vector<128x1xf32> -> vector<128x1xf32>
    %376 = vector.broadcast %375 : vector<128x1xf32> to vector<128x128xf32>
    %377 = arith.mulf %372, %376 : vector<128x128xf32>
    %378 = vector.broadcast %1 : vector<1x128xf32> to vector<128x128xf32>
    %379 = arith.mulf %377, %378 : vector<128x128xf32>
    %380 = arith.truncf %361 : vector<16x128xf32> to vector<16x128xbf16>
    %381 = arith.truncf %379 : vector<128x128xf32> to vector<128x128xbf16>
    %cst_156 = arith.constant dense<0.000000e+00> : vector<16x128xf32>
    %382 = tpu.matmul %380, %381, %cst_156 {dimension_numbers = #tpu.dot_dimension_numbers<[1], [1], [0], [0], [0, 0, 1, 0], [], []>} : vector<16x128xbf16>, vector<128x128xbf16>, vector<16x128xf32> -> vector<16x128xf32>
    %cst_157 = arith.constant 0.000000e+00 : f32
    %383 = vector.broadcast %cst_157 : f32 to vector<16x128xf32>
    %384 = arith.maximumf %382, %383 : vector<16x128xf32>
    %385 = tpu.concatenate %306, %332, %358, %384 in 0 : vector<16x128xf32>, vector<16x128xf32>, vector<16x128xf32>, vector<16x128xf32> -> vector<64x128xf32>
    %c1_158 = arith.constant 1 : index
    %c0_159 = arith.constant 0 : index
    %c0_160 = arith.constant 0 : index
    %386 = vector.load %arg10[%c1_158, %c0_159, %c0_160] : memref<2x32x64xbf16, #tpu.memory_space<vmem>>, vector<1x32x64xbf16>
    %387 = vector.shape_cast %386 : vector<1x32x64xbf16> to vector<32x64xbf16>
    %388 = arith.truncf %385 : vector<64x128xf32> to vector<64x128xbf16>
    %cst_161 = arith.constant dense<0.000000e+00> : vector<32x128xf32>
    %389 = tpu.matmul %387, %388, %cst_161 {dimension_numbers = #tpu.dot_dimension_numbers<[1], [0], [0], [1], [0, 0, 1, 1], [], []>} : vector<32x64xbf16>, vector<64x128xbf16>, vector<32x128xf32> -> vector<32x128xf32>
    %c640 = arith.constant 640 : index
    %c0_162 = arith.constant 0 : index
    %390 = vector.load %arg13[%c640, %c0_162] : memref<744x1xf32, #tpu.memory_space<vmem>>, vector<32x1xf32>
    %391 = vector.broadcast %390 : vector<32x1xf32> to vector<32x128xf32>
    %392 = arith.addf %389, %391 : vector<32x128xf32>
    %393 = vector.broadcast %1 : vector<1x128xf32> to vector<32x128xf32>
    %394 = arith.mulf %392, %393 : vector<32x128xf32>
    %c672 = arith.constant 672 : index
    %c0_163 = arith.constant 0 : index
    %395 = vector.load %arg13[%c672, %c0_163] : memref<744x1xf32, #tpu.memory_space<vmem>>, vector<32x1xf32>
    %396 = vector.broadcast %395 : vector<32x1xf32> to vector<32x128xf32>
    %397 = arith.addf %394, %396 : vector<32x128xf32>
    %cst_164 = arith.constant 1.000000e+00 : f32
    %398 = vector.broadcast %cst_164 : f32 to vector<32x128xf32>
    %399 = arith.mulf %398, %397 : vector<32x128xf32>
    %400 = arith.addf %399, %263 : vector<32x128xf32>
    %c1_165 = arith.constant 1 : index
    %c0_166 = arith.constant 0 : index
    %c0_167 = arith.constant 0 : index
    %401 = vector.load %arg11[%c1_165, %c0_166, %c0_167] : memref<2x32x32xbf16, #tpu.memory_space<vmem>>, vector<1x32x32xbf16>
    %402 = vector.shape_cast %401 : vector<1x32x32xbf16> to vector<32x32xbf16>
    %403 = arith.truncf %400 : vector<32x128xf32> to vector<32x128xbf16>
    %cst_168 = arith.constant dense<0.000000e+00> : vector<32x128xf32>
    %404 = tpu.matmul %402, %403, %cst_168 {dimension_numbers = #tpu.dot_dimension_numbers<[1], [0], [0], [1], [0, 0, 1, 1], [], []>} : vector<32x32xbf16>, vector<32x128xbf16>, vector<32x128xf32> -> vector<32x128xf32>
    %c704 = arith.constant 704 : index
    %c0_169 = arith.constant 0 : index
    %405 = vector.load %arg13[%c704, %c0_169] : memref<744x1xf32, #tpu.memory_space<vmem>>, vector<32x1xf32>
    %406 = vector.broadcast %405 : vector<32x1xf32> to vector<32x128xf32>
    %407 = arith.addf %404, %406 : vector<32x128xf32>
    %408 = arith.addf %243, %407 : vector<32x128xf32>
    %409 = vector.broadcast %1 : vector<1x128xf32> to vector<32x128xf32>
    %410 = arith.mulf %408, %409 : vector<32x128xf32>
    %c0_170 = arith.constant 0 : index
    %c0_171 = arith.constant 0 : index
    %411 = vector.load %arg15[%c0_170, %c0_171] : memref<32x128xf32, #tpu.memory_space<vmem>>, vector<32x128xf32>
    tpu.vector_store %arg15[%c0_170, %c0_171], %410 {strides = array<i32>} : memref<32x128xf32, #tpu.memory_space<vmem>>, vector<32x128xf32>,
    %c0_172 = arith.constant 0 : index
    %c0_173 = arith.constant 0 : index
    %412 = vector.load %arg12[%c0_172, %c0_173] : memref<8x32xbf16, #tpu.memory_space<vmem>>, vector<8x32xbf16>
    %413 = arith.truncf %410 : vector<32x128xf32> to vector<32x128xbf16>
    %cst_174 = arith.constant dense<0.000000e+00> : vector<8x128xf32>
    %414 = tpu.matmul %412, %413, %cst_174 {dimension_numbers = #tpu.dot_dimension_numbers<[1], [0], [0], [1], [0, 0, 1, 1], [], []>} : vector<8x32xbf16>, vector<32x128xbf16>, vector<8x128xf32> -> vector<8x128xf32>
    %c736 = arith.constant 736 : index
    %c0_175 = arith.constant 0 : index
    %415 = vector.load %arg13[%c736, %c0_175] : memref<744x1xf32, #tpu.memory_space<vmem>>, vector<8x1xf32>
    %416 = vector.broadcast %415 : vector<8x1xf32> to vector<8x128xf32>
    %417 = arith.addf %414, %416 : vector<8x128xf32>
    %418 = vector.broadcast %1 : vector<1x128xf32> to vector<8x128xf32>
    %419 = arith.mulf %417, %418 : vector<8x128xf32>
    %c0_176 = arith.constant 0 : index
    %c0_177 = arith.constant 0 : index
    %420 = vector.load %arg14[%c0_176, %c0_177] : memref<8x128xf32, #tpu.memory_space<vmem>>, vector<8x128xf32>
    tpu.vector_store %arg14[%c0_176, %c0_177], %419 {strides = array<i32>} : memref<8x128xf32, #tpu.memory_space<vmem>>, vector<8x128xf32>,
    return
  }
}

</mosaic_0001>

<bundles_post_ra>
// kernel: encoder_forward.1
= control target key start
LH: loop header
LB: loop body
LE: loop exit
PB: predicated region body
PF: predicated region fallthrough
CT: control target
= control target key end

     0   :  { %vm125_vm0 = vcmask 130048   ;;  %v7785_v2 = vmov 0   ;;  %s7787_s18 = smov 126   ;;  %s7788_s19 = smov 2   ;;  %vm316_vm1 = vcmask 523264   ;;  %vm616_vm2 = vcmask 785408   ;;  %s10886_s0 = inlined_call_operand.vmem [shape: f32[16,128], index: 0, kind: input, shape index: {}]   ;;  %s10887_s6 = inlined_call_operand.vmem [shape: bf16[32,16], index: 6, kind: input, shape index: {}]   ;;  %s10888_s13 = inlined_call_operand.vmem [shape: f32[744,1], index: 13, kind: input, shape index: {}]   ;;  %s10889_s7 = inlined_call_operand.vmem [shape: bf16[2,32,192], index: 7, kind: input, shape index: {}]   ;;  %s10890_s3 = inlined_call_operand.vmem [shape: f32[4,1,128], index: 3, kind: input, shape index: {}]   ;;  %s10891_s8 = inlined_call_operand.vmem [shape: bf16[2,32,96], index: 8, kind: input, shape index: {}]   ;;  %s10892_s4 = inlined_call_operand.vmem [shape: f32[128,8], index: 4, kind: input, shape index: {}]   ;;  %s10893_s5 = inlined_call_operand.vmem [shape: f32[8,128], index: 5, kind: input, shape index: {}]   ;;  %s10894_s9 = inlined_call_operand.vmem [shape: bf16[2,192,32], index: 9, kind: input, shape index: {}]   ;;  %s10895_s2 = inlined_call_operand.vmem [shape: f32[128,128], index: 2, kind: input, shape index: {}]   ;;  %s10896_s1 = inlined_call_operand.vmem [shape: f32[1,128], index: 1, kind: input, shape index: {}]   ;;  %s10897_s10 = inlined_call_operand.vmem [shape: bf16[2,32,64], index: 10, kind: input, shape index: {}]   ;;  %s10898_s11 = inlined_call_operand.vmem [shape: bf16[2,32,32], index: 11, kind: input, shape index: {}]   ;;  %s10899_s15 = inlined_call_operand.vmem [shape: f32[32,128], index: 15, kind: output, shape index: {1}]   ;;  %s10900_s12 = inlined_call_operand.vmem [shape: bf16[8,32], index: 12, kind: input, shape index: {}]   ;;  %s10901_s14 = inlined_call_operand.vmem [shape: f32[8,128], index: 14, kind: output, shape index: {0}]  }
   0x1   :  { %v50_v0 = vld [vmem:[%s10886_s0] sm:$0xff]  ;;  %v51_v1 = vld [vmem:[%s10886_s0 + $0x8] sm:$0xff]  ;;  %7135 = vset.pattern.permute.xlu0 %v7785_v2  ;;  %7136 = vset.pattern.permute.xlu1 %v7785_v2  ;;  %v93_v5 = vld [vmem:[%s10888_s13 + $0x10] sm:$0xff]  ;;  %s7789_s20 = smov 127   ;;  %vm761_vm3 = vcmask 64512   ;;  %vm1287_vm4 = vcmask 261120  }
   0x2   :  { %v90_v3 = vpack.c.bf16 %v51_v1, %v50_v0  ;;  %v7137_v4 = vld [vmem:[%s10887_s6] sm:$0xff]   ;;  %323 = vmatprep.subr.bf16.mxu1 %v7785_v2  ;;  %v7138_v6 = vld [vmem:[%s10887_s6 + $0x8] sm:$0xff]   ;;  %107 = vperm.xlu0 %7135, %v93_v5   ;;  %v94_v8 = vld [vmem:[%s10888_s13 + $0x18] sm:$0xff]  ;;  %s7786_s6 = smov 1   ;;  %vm7791_vm5 = vmmov 0  }
   0x3   :  { %6500 = vmatprep.mubr.msk.bf16.mxu0 %vm125_vm0, %v7137_v4  ;;  %v91_v7 = vld [vmem:[%s10888_s13] sm:$0xff]  ;;  %v92_v9 = vld [vmem:[%s10888_s13 + $0x8] sm:$0xff]  ;;  %v276_v22 = vld [vmem:[%s10888_s13 + $0x30] sm:$0xff] }
   0x4   :  { %6498 = vmatprep.subr.bf16.mxu0 %v90_v3  ;;  %97 = vperm.xlu1 %7136, %v91_v7   ;;  %v277_v23 = vld [vmem:[%s10888_s13 + $0x38] sm:$0xff]  ;;  %v274_v24 = vld [vmem:[%s10888_s13 + $0x20] sm:$0xff]  ;;  %v275_v25 = vld [vmem:[%s10888_s13 + $0x28] sm:$0xff] }
   0x5   :  { %6499 = vmatpush3.bf16.msra.mxu0 %v90_v3  ;;  %v7141_v26 = vld [vmem:[%s10889_s7 + $0x4] ss:$8 sps:$4 sm:$0xff]   ;;  %v7961_v28 = vld [vmem:[%s10890_s3] ss:$0 sm:$0xff]  ;;  %v7970_v38 = vld [vmem:[%s10890_s3 + $0x3] ss:$0 sm:$0xff] }
   0x6   :  { %491 = vmatprep.subr.bf16.mxu0 %v7785_v2  ;;  %112 = vperm.xlu0 %7135, %v94_v8   ;;  %v7985_v53 = vld [vmem:[%s10890_s3 + $0x2] ss:$0 sm:$0xff]  ;;  %v7998_v63 = vld [vmem:[%s10890_s3 + $0x1] ss:$0 sm:$0xff] }
   0x7   :  { %5982 = vmatprep.mubr.msk.bf16.mxu1 %vm316_vm1, %v7141_v26 }
   0x8   :  { %6501 = vmatmul.mubr.msk.bf16.vlgmr.msra.gmra.mxu0 %vm125_vm0, %v7138_v6  ;;  %102 = vperm.xlu1 %7136, %v92_v9  }
  0x7d   :  { %v108_v10 = vpop.permute.xlu0 %107 }
  0x7f   :  { %v98_v13 = vpop.permute.xlu1 %97 }
  0x81   :  { %v113_v15 = vpop.permute.xlu0 %112 }
  0x83   :  { %v103_v20 = vpop.permute.xlu1 %102 }
  0xc8   :  { %v6502_v11 = vpop.f32.mrf.mxu0 }
  0xc9   :  { %v7902_v12 = vadd.f32 %v6502_v11, %v108_v10  ;;  %v7139_v10 = vld [vmem:[%s10889_s7] ss:$8 sps:$4 sm:$0xff]   ;;  %v7142_v11 = vld [vmem:[%s10889_s7 + $0x14] ss:$8 sps:$4 sm:$0xff]  }
  0xca   :  { %v166_v14 = vpop.f32.mrf.mxu0 }
  0xcb   :  { %228 = vrot.lane.b32.xlu0 %v7902_v12, %s7786_s6  ;;  %v7906_v17 = vadd.f32 %v166_v14, %v98_v13  ;;  %v7144_v13 = vld [vmem:[%s10889_s7 + $0x10] ss:$8 sps:$4 sm:$0xff]  }
  0xcc   :  { %v6503_v16 = vpop.f32.mrf.mxu0 }
  0xcd   :  { %v7908_v18 = vadd.f32 %v6503_v16, %v113_v15 }
  0xce   :  { %v169_v19 = vpop.f32.mrf.mxu0 }
  0xcf   :  { %230 = vrot.lane.b32.xlu1 %v7908_v18, %s7786_s6  ;;  %224 = vrot.lane.b32.xlu0 %v7906_v17, %s7786_s6  ;;  %v7914_v21 = vadd.f32 %v169_v19, %v103_v20  ;;  %v267_v51 = vpack.c.bf16 %v7908_v18, %v7902_v12 }
  0xd1   :  { %v266_v56 = vpack.c.bf16 %v7914_v21, %v7906_v17 }
  0xd3   :  { %226 = vrot.lane.b32.xlu1 %v7914_v21, %s7786_s6  ;;  %207 = vrot.lane.b32.xlu0 %v7902_v12, %s7787_s18 }
  0xd7   :  { %209 = vrot.lane.b32.xlu1 %v7908_v18, %s7787_s18  ;;  %203 = vrot.lane.b32.xlu0 %v7906_v17, %s7787_s18 }
  0xdb   :  { %205 = vrot.lane.b32.xlu1 %v7914_v21, %s7787_s18  ;;  %189 = vrot.lane.b32.xlu0 %v7902_v12, %s7788_s19 }
  0xdf   :  { %191 = vrot.lane.b32.xlu1 %v7908_v18, %s7788_s19  ;;  %185 = vrot.lane.b32.xlu0 %v7906_v17, %s7788_s19 }
  0xe3   :  { %187 = vrot.lane.b32.xlu1 %v7914_v21, %s7788_s19  ;;  %246 = vrot.lane.b32.xlu0 %v7902_v12, %s7789_s20 }
  0xe7   :  { %248 = vrot.lane.b32.xlu1 %v7908_v18, %s7789_s20  ;;  %242 = vrot.lane.b32.xlu0 %v7906_v17, %s7789_s20 }
  0xeb   :  { %244 = vrot.lane.b32.xlu1 %v7914_v21, %s7789_s20  ;;  %290 = vperm.xlu0 %7135, %v276_v22  }
  0xef   :  { %295 = vperm.xlu1 %7136, %v277_v23   ;;  %280 = vperm.xlu0 %7135, %v274_v24  }
  0xf3   :  { %285 = vperm.xlu1 %7136, %v275_v25  }
 0x13d   :  { %v229_v27 = vpop.permute.xlu0 %228 }
 0x13e   :  { %v240_v31 = vmul.f32 %v7961_v28, %v229_v27 }
 0x141   :  { %v231_v29 = vpop.permute.xlu1 %230  ;;  %v225_v30 = vpop.permute.xlu0 %224 }
 0x142   :  { %v241_v32 = vmul.f32 %v7961_v28, %v231_v29  ;;  %v238_v36 = vmul.f32 %v7961_v28, %v225_v30 }
 0x144   :  { %v271_v33 = vpack.c.bf16 %v241_v32, %v240_v31 }
 0x145   :  { %v227_v34 = vpop.permute.xlu1 %226  ;;  %v208_v35 = vpop.permute.xlu0 %207 }
 0x146   :  { %v239_v37 = vmul.f32 %v7961_v28, %v227_v34  ;;  %324 = vmatpush1.bf16.msra.mxu1 %v271_v33  ;;  %v219_v41 = vmul.f32 %v7970_v38, %v208_v35 }
 0x147   :  { %325 = vmatprep.subr.bf16.mxu1 %v7785_v2 }
 0x148   :  { %v270_v39 = vpack.c.bf16 %v239_v37, %v238_v36 }
 0x149   :  { %v210_v40 = vpop.permute.xlu1 %209  ;;  %v204_v43 = vpop.permute.xlu0 %203 }
 0x14a   :  { %v220_v42 = vmul.f32 %v7970_v38, %v210_v40  ;;  %326 = vmatpush1.bf16.msra.mxu1 %v270_v39  ;;  %v217_v46 = vmul.f32 %v7970_v38, %v204_v43  ;;  %v7145_v43 = vld [vmem:[%s10889_s7 + $0x24] ss:$8 sps:$4 sm:$0xff]  }
 0x14b   :  { %327 = vmatprep.subr.bf16.mxu1 %v7785_v2  ;;  %5992 = vmatprep.mubr.msk.bf16.mxu0 %vm316_vm1, %v7145_v43 }
 0x14c   :  { %v269_v44 = vpack.c.bf16 %v220_v42, %v219_v41  ;;  %v444_v42 = vld [vmem:[%s10888_s13 + $0x48] sm:$0xff] }
 0x14d   :  { %v206_v45 = vpop.permute.xlu1 %205  ;;  %v190_v49 = vpop.permute.xlu0 %189 }
 0x14e   :  { %v218_v47 = vmul.f32 %v7970_v38, %v206_v45  ;;  %328 = vmatpush1.bf16.msra.mxu1 %v269_v44  ;;  %v201_v57 = vmul.f32 %v7985_v53, %v190_v49 }
 0x14f   :  { %329 = vmatprep.subr.bf16.mxu1 %v7785_v2 }
 0x150   :  { %v268_v48 = vpack.c.bf16 %v218_v47, %v217_v46 }
 0x151   :  { %v192_v50 = vpop.permute.xlu1 %191  ;;  %v186_v54 = vpop.permute.xlu0 %185 }
 0x152   :  { %330 = vmatpush1.bf16.msra.mxu1 %v268_v48  ;;  %v202_v55 = vmul.f32 %v7985_v53, %v192_v50  ;;  %v199_v62 = vmul.f32 %v7985_v53, %v186_v54 }
 0x153   :  { %331 = vmatprep.subr.bf16.mxu1 %v7785_v2 }
 0x154   :  { %v265_v59 = vpack.c.bf16 %v202_v55, %v201_v57 }
 0x155   :  { %v188_v52 = vpop.permute.xlu1 %187  ;;  %v247_v61 = vpop.permute.xlu0 %246 }
 0x156   :  { %332 = vmatpush1.bf16.msra.mxu1 %v267_v51  ;;  %v200_v60 = vmul.f32 %v7985_v53, %v188_v52  ;;  %v258_v4 = vmul.f32 %v7998_v63, %v247_v61 }
 0x157   :  { %333 = vmatprep.subr.bf16.mxu1 %v7785_v2 }
 0x158   :  { %v264_v0 = vpack.c.bf16 %v200_v60, %v199_v62 }
 0x159   :  { %v249_v58 = vpop.permute.xlu1 %248  ;;  %v243_v5 = vpop.permute.xlu0 %242 }
 0x15a   :  { %334 = vmatpush1.bf16.msra.mxu1 %v266_v56  ;;  %v259_v1 = vmul.f32 %v7998_v63, %v249_v58  ;;  %v256_v8 = vmul.f32 %v7998_v63, %v243_v5 }
 0x15b   :  { %335 = vmatprep.subr.bf16.mxu1 %v7785_v2 }
 0x15c   :  { %v273_v6 = vpack.c.bf16 %v259_v1, %v258_v4 }
 0x15d   :  { %v245_v3 = vpop.permute.xlu1 %244 }
 0x15e   :  { %336 = vmatpush1.bf16.msra.mxu1 %v265_v59  ;;  %v257_v7 = vmul.f32 %v7998_v63, %v245_v3 }
 0x15f   :  { %337 = vmatprep.subr.bf16.mxu1 %v7785_v2 }
 0x160   :  { %v272_v9 = vpack.c.bf16 %v257_v7, %v256_v8 }
 0x162   :  { %338 = vmatpush1.bf16.msra.mxu1 %v264_v0 }
 0x163   :  { %347 = vmatprep.subr.bf16.mxu1 %v7785_v2 }
 0x166   :  { %348 = vmatpush2.bf16.msra.mxu1 %v273_v6  ;;  %v291_v15 = vpop.permute.xlu0 %290 }
 0x167   :  { %349 = vmatprep.subr.bf16.mxu1 %v7785_v2 }
 0x16a   :  { %350 = vmatpush2.bf16.msra.mxu1 %v272_v9  ;;  %v296_v20 = vpop.permute.xlu1 %295  ;;  %v281_v23 = vpop.permute.xlu0 %280 }
 0x16b   :  { %351 = vmatprep.subr.bf16.mxu1 %v7785_v2 }
 0x16e   :  { %352 = vmatpush2.bf16.msra.mxu1 %v267_v51  ;;  %v286_v30 = vpop.permute.xlu1 %285 }
 0x16f   :  { %353 = vmatprep.subr.bf16.mxu1 %v7785_v2 }
 0x172   :  { %354 = vmatpush2.bf16.msra.mxu1 %v266_v56 }
 0x175   :  { %356 = vmatmul.mubr.bf16.vlgmr.msra.gmra.mxu1 %v7139_v10 }
 0x176   :  { %5983 = vmatprep.mubr.msk.bf16.mxu1 %vm316_vm1, %v7142_v11 }
 0x17d   :  { %364 = vmatmul.mubr.bf16.gmra.mxu1 %v7144_v13 }
 0x235   :  { %v357_v14 = vpop.f32.mrf.mxu1 }
 0x236   :  { %v358_v25 = vadd.f32 %v357_v14, %v281_v23 }
 0x237   :  { %v359_v16 = vpop.f32.mrf.mxu1 }
 0x238   :  { %v372_v32 = vmax.f32 %v358_v25, 0.0 }
 0x239   :  { %v360_v19 = vpop.f32.mrf.mxu1 }
 0x23a   :  { %v361_v33 = vadd.f32 %v360_v19, %v286_v30  ;;  %v8025_v39 = vadd.f32 %v372_v32, %v7906_v17  ;;  %v445_v17 = vld [vmem:[%s10888_s13 + $0x50] sm:$0xff] }
 0x23b   :  { %v362_v22 = vpop.f32.mrf.mxu1  ;;  %v7148_v30 = vld [vmem:[%s10889_s7 + $0x34] ss:$8 sps:$4 sm:$0xff]  }
 0x23c   :  { %v373_v40 = vmax.f32 %v361_v33, 0.0 }
 0x23d   :  { %v365_v24 = vpop.f32.mrf.mxu1 }
 0x23e   :  { %v366_v26 = vadd.f32 %v365_v24, %v291_v15 }
 0x23f   :  { %v367_v27 = vpop.f32.mrf.mxu1 }
 0x240   :  { %v374_v29 = vmax.f32 %v366_v26, 0.0 }
 0x241   :  { %v368_v31 = vpop.f32.mrf.mxu1 }
 0x242   :  { %v8020_v34 = vadd.f32 %v374_v29, %v7902_v12  ;;  %v369_v35 = vadd.f32 %v368_v31, %v296_v20  ;;  %v8035_v12 = vadd.f32 %v373_v40, %v7914_v21  ;;  %v443_v21 = vld [vmem:[%s10888_s13 + $0x40] sm:$0xff] }
 0x243   :  { %v370_v36 = vpop.f32.mrf.mxu1  ;;  %v7147_v29 = vld [vmem:[%s10889_s7 + $0x20] ss:$8 sps:$4 sm:$0xff]  }
 0x244   :  { %v375_v37 = vmax.f32 %v369_v35, 0.0  ;;  %408 = vrot.lane.b32.xlu0 %v8020_v34, %s7788_s19  ;;  %v435_v8 = vpack.c.bf16 %v8035_v12, %v8025_v39 }
 0x246   :  { %v8028_v41 = vadd.f32 %v375_v37, %v7908_v18  ;;  %v446_v18 = vld [vmem:[%s10888_s13 + $0x58] sm:$0xff] }
 0x248   :  { %410 = vrot.lane.b32.xlu1 %v8028_v41, %s7788_s19  ;;  %404 = vrot.lane.b32.xlu0 %v8025_v39, %s7788_s19  ;;  %v436_v4 = vpack.c.bf16 %v8028_v41, %v8020_v34 }
 0x24c   :  { %406 = vrot.lane.b32.xlu1 %v8035_v12, %s7788_s19  ;;  %396 = vrot.lane.b32.xlu0 %v8020_v34, %s7789_s20 }
 0x250   :  { %398 = vrot.lane.b32.xlu1 %v8028_v41, %s7789_s20  ;;  %392 = vrot.lane.b32.xlu0 %v8025_v39, %s7789_s20 }
 0x254   :  { %394 = vrot.lane.b32.xlu1 %v8035_v12, %s7789_s20  ;;  %384 = vrot.lane.b32.xlu0 %v8020_v34, %s7786_s6 }
 0x258   :  { %386 = vrot.lane.b32.xlu1 %v8028_v41, %s7786_s6  ;;  %380 = vrot.lane.b32.xlu0 %v8025_v39, %s7786_s6 }
 0x25c   :  { %382 = vrot.lane.b32.xlu1 %v8035_v12, %s7786_s6  ;;  %420 = vrot.lane.b32.xlu0 %v8020_v34, %s7787_s18 }
 0x260   :  { %422 = vrot.lane.b32.xlu1 %v8028_v41, %s7787_s18  ;;  %416 = vrot.lane.b32.xlu0 %v8025_v39, %s7787_s18 }
 0x264   :  { %418 = vrot.lane.b32.xlu1 %v8035_v12, %s7787_s18  ;;  %459 = vperm.xlu0 %7135, %v445_v17  }
 0x268   :  { %464 = vperm.xlu1 %7136, %v446_v18   ;;  %449 = vperm.xlu0 %7135, %v443_v21  }
 0x26c   :  { %454 = vperm.xlu1 %7136, %v444_v42  }
 0x2b6   :  { %v409_v44 = vpop.permute.xlu0 %408 }
 0x2b7   :  { %v414_v47 = vmul.f32 %v7985_v53, %v409_v44 }
 0x2ba   :  { %v411_v45 = vpop.permute.xlu1 %410  ;;  %v405_v46 = vpop.permute.xlu0 %404 }
 0x2bb   :  { %v415_v48 = vmul.f32 %v7985_v53, %v411_v45  ;;  %v412_v52 = vmul.f32 %v7985_v53, %v405_v46 }
 0x2bd   :  { %v440_v49 = vpack.c.bf16 %v415_v48, %v414_v47 }
 0x2be   :  { %v407_v50 = vpop.permute.xlu1 %406  ;;  %v397_v51 = vpop.permute.xlu0 %396 }
 0x2bf   :  { %v413_v54 = vmul.f32 %v7985_v53, %v407_v50  ;;  %492 = vmatpush1.bf16.msra.mxu0 %v440_v49  ;;  %v402_v57 = vmul.f32 %v7998_v63, %v397_v51 }
 0x2c0   :  { %493 = vmatprep.subr.bf16.mxu0 %v7785_v2 }
 0x2c1   :  { %v439_v55 = vpack.c.bf16 %v413_v54, %v412_v52 }
 0x2c2   :  { %v399_v56 = vpop.permute.xlu1 %398  ;;  %v393_v59 = vpop.permute.xlu0 %392 }
 0x2c3   :  { %v403_v58 = vmul.f32 %v7998_v63, %v399_v56  ;;  %494 = vmatpush1.bf16.msra.mxu0 %v439_v55  ;;  %v400_v62 = vmul.f32 %v7998_v63, %v393_v59  ;;  %v584_v55 = vld [vmem:[%s10888_s13 + $0x70] sm:$0xff]  ;;  %v585_v56 = vld [vmem:[%s10888_s13 + $0x78] sm:$0xff] }
 0x2c4   :  { %495 = vmatprep.subr.bf16.mxu0 %v7785_v2  ;;  %v1089_v59 = vld [vmem:[%s10888_s13 + $0xb0] sm:$0xff] }
 0x2c5   :  { %v438_v60 = vpack.c.bf16 %v403_v58, %v402_v57  ;;  %v1083_v57 = vld [vmem:[%s10888_s13 + $0x80] sm:$0xff]  ;;  %v1084_v58 = vld [vmem:[%s10888_s13 + $0x88] sm:$0xff] }
 0x2c6   :  { %v395_v61 = vpop.permute.xlu1 %394  ;;  %v385_v1 = vpop.permute.xlu0 %384 }
 0x2c7   :  { %v401_v0 = vmul.f32 %v7998_v63, %v395_v61  ;;  %496 = vmatpush1.bf16.msra.mxu0 %v438_v60  ;;  %v390_v9 = vmul.f32 %v7961_v28, %v385_v1  ;;  %v1090_v60 = vld [vmem:[%s10888_s13 + $0xb8] sm:$0xff]  ;;  %v1085_v61 = vld [vmem:[%s10888_s13 + $0x90] sm:$0xff] }
 0x2c8   :  { %497 = vmatprep.subr.bf16.mxu0 %v7785_v2  ;;  %v8193_v1 = vld [vmem:[%s10892_s4 + $0x70] sm:$0xff] }
 0x2c9   :  { %v437_v53 = vpack.c.bf16 %v401_v0, %v400_v62  ;;  %v1086_v62 = vld [vmem:[%s10888_s13 + $0x98] sm:$0xff]  ;;  %v1091_v0 = vld [vmem:[%s10888_s13 + $0xc0] sm:$0xff] }
 0x2ca   :  { %v387_v3 = vpop.permute.xlu1 %386  ;;  %v381_v6 = vpop.permute.xlu0 %380 }
 0x2cb   :  { %498 = vmatpush1.bf16.msra.mxu0 %v437_v53  ;;  %v391_v7 = vmul.f32 %v7961_v28, %v387_v3  ;;  %v388_v15 = vmul.f32 %v7961_v28, %v381_v6  ;;  %v8188_v53 = vld [vmem:[%s10892_s4 + $0x78] sm:$0xff]  ;;  %v1092_v3 = vld [vmem:[%s10888_s13 + $0xc8] sm:$0xff] }
 0x2cc   :  { %499 = vmatprep.subr.bf16.mxu0 %v7785_v2  ;;  %v8217_v6 = vld [vmem:[%s10892_s4 + $0x58] sm:$0xff] }
 0x2cd   :  { %v434_v11 = vpack.c.bf16 %v391_v7, %v390_v9  ;;  %v8224_v7 = vld [vmem:[%s10892_s4 + $0x50] sm:$0xff]  ;;  %v8238_v9 = vld [vmem:[%s10892_s4 + $0x40] sm:$0xff] }
 0x2ce   :  { %v383_v5 = vpop.permute.xlu1 %382  ;;  %v421_v14 = vpop.permute.xlu0 %420 }
 0x2cf   :  { %500 = vmatpush1.bf16.msra.mxu0 %v436_v4  ;;  %v389_v13 = vmul.f32 %v7961_v28, %v383_v5  ;;  %v426_v22 = vmul.f32 %v7970_v38, %v421_v14  ;;  %v8210_v5 = vld [vmem:[%s10892_s4 + $0x60] sm:$0xff] }
 0x2d0   :  { %501 = vmatprep.subr.bf16.mxu0 %v7785_v2 }
 0x2d1   :  { %v433_v16 = vpack.c.bf16 %v389_v13, %v388_v15  ;;  %v8259_v13 = vld [vmem:[%s10892_s4 + $0x28] sm:$0xff] }
 0x2d2   :  { %v423_v10 = vpop.permute.xlu1 %422  ;;  %v417_v23 = vpop.permute.xlu0 %416 }
 0x2d3   :  { %502 = vmatpush1.bf16.msra.mxu0 %v435_v8  ;;  %v427_v19 = vmul.f32 %v7970_v38, %v423_v10  ;;  %v424_v26 = vmul.f32 %v7970_v38, %v417_v23  ;;  %v8245_v10 = vld [vmem:[%s10892_s4 + $0x38] sm:$0xff] }
 0x2d4   :  { %503 = vmatprep.subr.bf16.mxu0 %v7785_v2 }
 0x2d5   :  { %v442_v24 = vpack.c.bf16 %v427_v19, %v426_v22 }
 0x2d6   :  { %v419_v20 = vpop.permute.xlu1 %418 }
 0x2d7   :  { %504 = vmatpush1.bf16.msra.mxu0 %v434_v11  ;;  %v425_v25 = vmul.f32 %v7970_v38, %v419_v20  ;;  %v7150_v38 = vld [vmem:[%s10889_s7 + $0x30] ss:$8 sps:$4 sm:$0xff]  }
 0x2d8   :  { %505 = vmatprep.subr.bf16.mxu0 %v7785_v2  ;;  %v8252_v11 = vld [vmem:[%s10892_s4 + $0x30] sm:$0xff] }
 0x2d9   :  { %v441_v27 = vpack.c.bf16 %v425_v25, %v424_v26 }
 0x2db   :  { %506 = vmatpush1.bf16.msra.mxu0 %v433_v16 }
 0x2dc   :  { %515 = vmatprep.subr.bf16.mxu0 %v7785_v2 }
 0x2df   :  { %516 = vmatpush2.bf16.msra.mxu0 %v442_v24  ;;  %v460_v32 = vpop.permute.xlu0 %459 }
 0x2e0   :  { %517 = vmatprep.subr.bf16.mxu0 %v7785_v2 }
 0x2e3   :  { %518 = vmatpush2.bf16.msra.mxu0 %v441_v27  ;;  %v465_v35 = vpop.permute.xlu1 %464  ;;  %v450_v37 = vpop.permute.xlu0 %449 }
 0x2e4   :  { %519 = vmatprep.subr.bf16.mxu0 %v7785_v2 }
 0x2e7   :  { %520 = vmatpush2.bf16.msra.mxu0 %v436_v4  ;;  %v455_v43 = vpop.permute.xlu1 %454  ;;  %v8203_v4 = vld [vmem:[%s10892_s4 + $0x68] sm:$0xff] }
 0x2e8   :  { %521 = vmatprep.subr.bf16.mxu0 %v7785_v2 }
 0x2eb   :  { %522 = vmatpush2.bf16.msra.mxu0 %v435_v8  ;;  %v8231_v8 = vld [vmem:[%s10892_s4 + $0x48] sm:$0xff] }
 0x2ec   :  { %6520 = vmatprep.subr.mxu0 %v8188_v53 }
 0x2ee   :  { %524 = vmatmul.mubr.bf16.vlgmr.msra.gmra.mxu0 %v7147_v29 }
 0x2ef   :  { %5993 = vmatprep.mubr.msk.bf16.mxu0 %vm316_vm1, %v7148_v30  ;;  %6521 = vmatpush3.msra.mxu0 %v8188_v53 }
 0x2f0   :  { %6522 = vmatprep.subr.mxu0 %v8193_v1 }
 0x2f1   :  { %6523 = vmatpush3.msra.mxu0 %v8193_v1 }
 0x2f2   :  { %6524 = vmatprep.subr.mxu0 %v8203_v4 }
 0x2f3   :  { %6525 = vmatpush3.msra.mxu0 %v8203_v4 }
 0x2f4   :  { %6526 = vmatprep.subr.mxu0 %v8210_v5 }
 0x2f5   :  { %6527 = vmatpush3.msra.mxu0 %v8210_v5 }
 0x2f6   :  { %532 = vmatmul.mubr.bf16.gmra.mxu0 %v7150_v38  ;;  %6528 = vmatprep.subr.mxu0 %v8217_v6 }
 0x2f7   :  { %6529 = vmatpush3.msra.mxu0 %v8217_v6 }
 0x2f8   :  { %6530 = vmatprep.subr.mxu0 %v8224_v7 }
 0x2f9   :  { %6531 = vmatpush3.msra.mxu0 %v8224_v7 }
 0x2fa   :  { %6532 = vmatprep.subr.mxu0 %v8231_v8 }
 0x2fb   :  { %6533 = vmatpush3.msra.mxu0 %v8231_v8 }
 0x2fc   :  { %6534 = vmatprep.subr.mxu0 %v8238_v9 }
 0x2fd   :  { %6535 = vmatpush3.msra.mxu0 %v8238_v9 }
 0x2fe   :  { %6536 = vmatprep.subr.mxu0 %v8245_v10 }
 0x2ff   :  { %6537 = vmatpush3.msra.mxu0 %v8245_v10 }
 0x300   :  { %6538 = vmatprep.subr.mxu0 %v8252_v11 }
 0x301   :  { %6539 = vmatpush3.msra.mxu0 %v8252_v11 }
 0x302   :  { %6540 = vmatprep.subr.mxu0 %v8259_v13 }
 0x303   :  { %6541 = vmatpush3.msra.mxu0 %v8259_v13 }
 0x3ae   :  { %v525_v31 = vpop.f32.mrf.mxu0 }
 0x3af   :  { %v526_v17 = vadd.f32 %v525_v31, %v450_v37 }
 0x3b0   :  { %v527_v2 = vpop.f32.mrf.mxu0 }
 0x3b1   :  { %v540_v45 = vmax.f32 %v526_v17, 0.0  ;;  %v8284_v17 = vld [vmem:[%s10892_s4 + $0x20] sm:$0xff] }
 0x3b2   :  { %v528_v33 = vpop.f32.mrf.mxu0  ;;  %6542 = vmatprep.subr.mxu0 %v8284_v17 }
 0x3b3   :  { %v529_v46 = vadd.f32 %v528_v33, %v455_v43  ;;  %v8126_v51 = vadd.f32 %v540_v45, %v8025_v39  ;;  %v582_v39 = vld [vmem:[%s10888_s13 + $0x60] sm:$0xff]  ;;  %6543 = vmatpush3.msra.mxu0 %v8284_v17 }
 0x3b4   :  { %v530_v36 = vpop.f32.mrf.mxu0  ;;  %v85_v43 = vld [vmem:[%s10893_s5] sm:$0xff] }
 0x3b5   :  { %10921 = vst [vmem:[#allocation3_spill] sm:$0xff] %v8126_v51  ;;  %v541_v52 = vmax.f32 %v529_v46, 0.0 }
 0x3b6   :  { %v533_v40 = vpop.f32.mrf.mxu0 }
 0x3b7   :  { %v534_v18 = vadd.f32 %v533_v40, %v460_v32  ;;  %v7152_v40 = vld [vmem:[%s10891_s8 + $0x8] sm:$0xff]  }
 0x3b8   :  { %v535_v21 = vpop.f32.mrf.mxu0 }
 0x3b9   :  { %v542_v42 = vmax.f32 %v534_v18, 0.0  ;;  %v8298_v18 = vld [vmem:[%s10892_s4 + $0x10] sm:$0xff]  ;;  %v8305_v21 = vld [vmem:[%s10892_s4 + $0x8] sm:$0xff] }
 0x3ba   :  { %v536_v44 = vpop.f32.mrf.mxu0 }
 0x3bb   :  { %v8121_v47 = vadd.f32 %v542_v42, %v8020_v34  ;;  %v537_v48 = vadd.f32 %v536_v44, %v465_v35  ;;  %v8136_v34 = vadd.f32 %v541_v52, %v8035_v12  ;;  %v7151_v12 = vld [vmem:[%s10891_s8] sm:$0xff]  }
 0x3bc   :  { %v538_v49 = vpop.f32.mrf.mxu0  ;;  %6516 = vmatprep.mubr.msk.bf16.mxu1 %vm616_vm2, %v7151_v12  ;;  %v8312_v42 = vld [vmem:[%s10892_s4] sm:$0xff] }
 0x3bd   :  { %10920 = vst [vmem:[#allocation2_spill] sm:$0xff] %v8121_v47  ;;  %v543_v50 = vmax.f32 %v537_v48, 0.0  ;;  %564 = vrot.lane.b32.xlu0 %v8121_v47, %s7789_s20  ;;  %10923 = vst [vmem:[#allocation5_spill] sm:$0xff] %v8136_v34  ;;  %v578_v31 = vpack.c.bf16 %v8136_v34, %v8126_v51 }
 0x3bf   :  { %v8129_v54 = vadd.f32 %v543_v50, %v8028_v41  ;;  %v583_v41 = vld [vmem:[%s10888_s13 + $0x68] sm:$0xff] }
 0x3c1   :  { %10922 = vst [vmem:[#allocation4_spill] sm:$0xff] %v8129_v54  ;;  %566 = vrot.lane.b32.xlu1 %v8129_v54, %s7789_s20  ;;  %560 = vrot.lane.b32.xlu0 %v8126_v51, %s7789_s20  ;;  %v579_v29 = vpack.c.bf16 %v8129_v54, %v8121_v47 }
 0x3c5   :  { %562 = vrot.lane.b32.xlu1 %v8136_v34, %s7789_s20  ;;  %552 = vrot.lane.b32.xlu0 %v8121_v47, %s7786_s6 }
 0x3c9   :  { %554 = vrot.lane.b32.xlu1 %v8129_v54, %s7786_s6  ;;  %548 = vrot.lane.b32.xlu0 %v8126_v51, %s7786_s6 }
 0x3cd   :  { %550 = vrot.lane.b32.xlu1 %v8136_v34, %s7786_s6  ;;  %588 = vperm.xlu0 %7135, %v582_v39  }
 0x3d1   :  { %593 = vperm.xlu1 %7136, %v583_v41   ;;  %598 = vperm.xlu0 %7135, %v584_v55  }
 0x3d5   :  { %603 = vperm.xlu1 %7136, %v585_v56   ;;  %1109 = vperm.xlu0 %7135, %v1083_v57  }
 0x3d9   :  { %1114 = vperm.xlu1 %7136, %v1084_v58   ;;  %1139 = vperm.xlu0 %7135, %v1089_v59  }
 0x3dd   :  { %1144 = vperm.xlu1 %7136, %v1090_v60   ;;  %1119 = vperm.xlu0 %7135, %v1085_v61  }
 0x3e1   :  { %1124 = vperm.xlu1 %7136, %v1086_v62   ;;  %1149 = vperm.xlu0 %7135, %v1091_v0  }
 0x3e5   :  { %1154 = vperm.xlu1 %7136, %v1092_v3  }
 0x42f   :  { %v565_v14 = vpop.permute.xlu0 %564 }
 0x430   :  { %v570_v16 = vmul.f32 %v7998_v63, %v565_v14 }
 0x433   :  { %v567_v15 = vpop.permute.xlu1 %566  ;;  %v561_v20 = vpop.permute.xlu0 %560 }
 0x434   :  { %v571_v19 = vmul.f32 %v7998_v63, %v567_v15  ;;  %v568_v24 = vmul.f32 %v7998_v63, %v561_v20 }
 0x436   :  { %v581_v22 = vpack.c.bf16 %v571_v19, %v570_v16 }
 0x437   :  { %v563_v23 = vpop.permute.xlu1 %562  ;;  %v553_v30 = vpop.permute.xlu0 %552 }
 0x438   :  { %v569_v25 = vmul.f32 %v7998_v63, %v563_v23  ;;  %6504 = vmatprep.subr.bf16.mxu1 %v581_v22  ;;  %v558_v63 = vmul.f32 %v7961_v28, %v553_v30 }
 0x439   :  { %6505 = vmatpush3.bf16.msra.mxu1 %v581_v22  ;;  %v7153_v22 = vld [vmem:[%s10894_s9] sm:$0xff]  }
 0x43a   :  { %v580_v26 = vpack.c.bf16 %v569_v25, %v568_v24 }
 0x43b   :  { %v555_v27 = vpop.permute.xlu1 %554  ;;  %v549_v2 = vpop.permute.xlu0 %548 }
 0x43c   :  { %6506 = vmatprep.subr.bf16.mxu1 %v580_v26  ;;  %v559_v38 = vmul.f32 %v7961_v28, %v555_v27  ;;  %v556_v36 = vmul.f32 %v7961_v28, %v549_v2 }
 0x43d   :  { %6507 = vmatpush3.bf16.msra.mxu1 %v580_v26 }
 0x43e   :  { %6508 = vmatprep.subr.bf16.mxu1 %v579_v29  ;;  %v577_v33 = vpack.c.bf16 %v559_v38, %v558_v63 }
 0x43f   :  { %v551_v32 = vpop.permute.xlu1 %550 }
 0x440   :  { %v557_v35 = vmul.f32 %v7961_v28, %v551_v32  ;;  %v8291_v28 = vld [vmem:[%s10892_s4 + $0x18] sm:$0xff] }
 0x441   :  { %6509 = vmatpush3.bf16.msra.mxu1 %v579_v29  ;;  %6544 = vmatprep.subr.mxu0 %v8291_v28 }
 0x442   :  { %6510 = vmatprep.subr.bf16.mxu1 %v578_v31  ;;  %v576_v37 = vpack.c.bf16 %v557_v35, %v556_v36  ;;  %6545 = vmatpush3.msra.mxu0 %v8291_v28 }
 0x443   :  { %6546 = vmatprep.subr.mxu0 %v8298_v18 }
 0x444   :  { %6547 = vmatpush3.msra.mxu0 %v8298_v18 }
 0x445   :  { %6511 = vmatpush3.bf16.msra.mxu1 %v578_v31  ;;  %6548 = vmatprep.subr.mxu0 %v8305_v21 }
 0x446   :  { %6512 = vmatprep.subr.bf16.mxu1 %v577_v33  ;;  %6549 = vmatpush3.msra.mxu0 %v8305_v21 }
 0x447   :  { %6550 = vmatprep.subr.mxu0 %v8312_v42 }
 0x448   :  { %6551 = vmatpush3.msra.mxu0 %v8312_v42  ;;  %v589_v44 = vpop.permute.xlu0 %588 }
 0x449   :  { %6513 = vmatpush3.bf16.msra.mxu1 %v577_v33  ;;  %6604 = vmatprep.subr.mxu0 %v85_v43 }
 0x44a   :  { %6514 = vmatprep.subr.bf16.mxu1 %v576_v37 }
 0x44c   :  { %v594_v46 = vpop.permute.xlu1 %593  ;;  %v599_v52 = vpop.permute.xlu0 %598 }
 0x44d   :  { %6515 = vmatpush3.bf16.msra.mxu1 %v576_v37 }
 0x44e   :  { %6558 = vmatprep.subr.mxu1 %v85_v43 }
 0x450   :  { %6517 = vmatmul.mubr.msk.bf16.vlgmr.msra.gmra.mxu1 %vm616_vm2, %v7152_v40  ;;  %v604_v56 = vpop.permute.xlu1 %603 }
 0x451   :  { %6559 = vmatpush3.msra.mxu1 %v85_v43 }
 0x452   :  { %6566 = vmatprep.subr.mxu1 %v8188_v53 }
 0x510   :  { %v6518_v45 = vpop.f32.mrf.mxu1 }
 0x511   :  { %v666_v41 = vadd.f32 %v6518_v45, %v599_v52  ;;  %v1115_v45 = vpop.permute.xlu1 %1114 }
 0x512   :  { %v657_v48 = vpop.f32.mrf.mxu1 }
 0x513   :  { %v658_v49 = vadd.f32 %v657_v48, %v589_v44  ;;  %v8325_v59 = vmax.f32 %v666_v41, 0.0  ;;  %v1110_v44 = vpop.permute.xlu0 %1109 }
 0x514   :  { %v6519_v50 = vpop.f32.mrf.mxu1 }
 0x515   :  { %v8320_v39 = vmax.f32 %v658_v49, 0.0  ;;  %v669_v57 = vadd.f32 %v6519_v50, %v604_v56  ;;  %10926 = vst [vmem:[#allocation8_spill] sm:$0xff] %v8325_v59  ;;  %v1145_v48 = vpop.permute.xlu1 %1144 }
 0x516   :  { %v660_v12 = vpop.f32.mrf.mxu1 }
 0x517   :  { %10924 = vst [vmem:[#allocation6_spill] sm:$0xff] %v8320_v39  ;;  %v661_v55 = vadd.f32 %v660_v12, %v594_v46  ;;  %6552 = vmatprep.mubr.f32.mxu0 %v8320_v39  ;;  %v8329_v60 = vmax.f32 %v669_v57, 0.0  ;;  %v1140_v46 = vpop.permute.xlu0 %1139 }
 0x519   :  { %v8323_v58 = vmax.f32 %v661_v55, 0.0  ;;  %10927 = vst [vmem:[#allocation9_spill] sm:$0xff] %v8329_v60  ;;  %v1125_v41 = vpop.permute.xlu1 %1124 }
 0x51b   :  { %10925 = vst [vmem:[#allocation7_spill] sm:$0xff] %v8323_v58  ;;  %6553 = vmatmul.mubr.f32.vlgmr.msra.gmra.mxu0 %v8323_v58  ;;  %v1120_v52 = vpop.permute.xlu0 %1119 }
 0x51c   :  { %6555 = vmatprep.mubr.f32.mxu0 %v8325_v59  ;;  %6605 = vmatpush3.msra.mxu0 %v85_v43  ;;  %v7158_v43 = vld [vmem:[%s10894_s9 + $0x28] sm:$0xff]  }
 0x51f   :  { %6556 = vmatmul.mubr.f32.gmra.mxu0 %v8329_v60 }
 0x5db   :  { %v6554_v61 = vpop.f32.mrf.mxu0 }
 0x5dd   :  { %v742_v62 = vpop.f32.mrf.mxu0 }
 0x5de   :  { %6560 = vmatprep.mubr.msk.f32.mxu1 %vm761_vm3, %v742_v62 }
 0x5df   :  { %v6557_v0 = vpop.f32.mrf.mxu0  ;;  %6561 = vmatmul.mubr.msk.f32.vlgmr.msra.gmra.mxu1 %vm761_vm3, %v6554_v61 }
 0x5e0   :  { %6567 = vmatpush3.msra.mxu1 %v8188_v53 }
 0x5e1   :  { %v752_v3 = vpop.f32.mrf.mxu0  ;;  %6568 = vmatprep.subr.mxu1 %v8193_v1 }
 0x5e2   :  { %6563 = vmatprep.mubr.msk.f32.mxu1 %vm761_vm3, %v752_v3  ;;  %6569 = vmatpush3.msra.mxu1 %v8193_v1 }
 0x5e3   :  { %6564 = vmatmul.mubr.msk.f32.gmra.mxu1 %vm761_vm3, %v6557_v0  ;;  %6570 = vmatprep.subr.mxu1 %v8203_v4 }
 0x5e4   :  { %6571 = vmatpush3.msra.mxu1 %v8203_v4 }
 0x5e5   :  { %6572 = vmatprep.subr.mxu1 %v8210_v5 }
 0x5e6   :  { %6573 = vmatpush3.msra.mxu1 %v8210_v5 }
 0x5e7   :  { %6574 = vmatprep.subr.mxu1 %v8217_v6 }
 0x5e8   :  { %6575 = vmatpush3.msra.mxu1 %v8217_v6 }
 0x5e9   :  { %6576 = vmatprep.subr.mxu1 %v8224_v7 }
 0x5ea   :  { %6577 = vmatpush3.msra.mxu1 %v8224_v7 }
 0x5eb   :  { %6578 = vmatprep.subr.mxu1 %v8231_v8 }
 0x5ec   :  { %6579 = vmatpush3.msra.mxu1 %v8231_v8 }
 0x5ed   :  { %6580 = vmatprep.subr.mxu1 %v8238_v9 }
 0x5ee   :  { %6581 = vmatpush3.msra.mxu1 %v8238_v9 }
 0x5ef   :  { %6582 = vmatprep.subr.mxu1 %v8245_v10 }
 0x5f0   :  { %6583 = vmatpush3.msra.mxu1 %v8245_v10 }
 0x5f1   :  { %6584 = vmatprep.subr.mxu1 %v8252_v11 }
 0x5f2   :  { %6585 = vmatpush3.msra.mxu1 %v8252_v11 }
 0x5f3   :  { %6586 = vmatprep.subr.mxu1 %v8259_v13 }
 0x5f4   :  { %6587 = vmatpush3.msra.mxu1 %v8259_v13 }
 0x5f5   :  { %6588 = vmatprep.subr.mxu1 %v8284_v17 }
 0x5f6   :  { %6589 = vmatpush3.msra.mxu1 %v8284_v17 }
 0x5f7   :  { %6590 = vmatprep.subr.mxu1 %v8291_v28 }
 0x5f8   :  { %6591 = vmatpush3.msra.mxu1 %v8291_v28  ;;  %v7154_v28 = vld [vmem:[%s10894_s9 + $0x8] sm:$0xff]  }
 0x5f9   :  { %6592 = vmatprep.subr.mxu1 %v8298_v18 }
 0x5fa   :  { %6593 = vmatpush3.msra.mxu1 %v8298_v18  ;;  %v7155_v18 = vld [vmem:[%s10894_s9 + $0x10] sm:$0xff]  }
 0x5fb   :  { %6594 = vmatprep.subr.mxu1 %v8305_v21 }
 0x5fc   :  { %6595 = vmatpush3.msra.mxu1 %v8305_v21  ;;  %v7156_v21 = vld [vmem:[%s10894_s9 + $0x18] sm:$0xff]  }
 0x5fd   :  { %6596 = vmatprep.subr.mxu1 %v8312_v42 }
 0x5fe   :  { %6597 = vmatpush3.msra.mxu1 %v8312_v42  ;;  %v7157_v42 = vld [vmem:[%s10894_s9 + $0x20] sm:$0xff]  }
 0x69f   :  { %v6562_v53 = vpop.f32.mrf.mxu1 }
 0x6a0   :  { %v860_v1 = vsub.f32 %v8323_v58, %v6562_v53 }
 0x6a1   :  { %v840_v4 = vpop.f32.mrf.mxu1 }
 0x6a2   :  { %v859_v5 = vsub.f32 %v8320_v39, %v840_v4  ;;  %v864_v8 = vmul.f32 %v860_v1, %v860_v1 }
 0x6a3   :  { %v6565_v6 = vpop.f32.mrf.mxu1 }
 0x6a4   :  { %v863_v7 = vmul.f32 %v859_v5, %v859_v5  ;;  %v862_v9 = vsub.f32 %v8329_v60, %v6565_v6 }
 0x6a5   :  { %v850_v10 = vpop.f32.mrf.mxu1 }
 0x6a6   :  { %v861_v11 = vsub.f32 %v8325_v59, %v850_v10  ;;  %6598 = vmatprep.mubr.f32.mxu1 %v863_v7  ;;  %v866_v14 = vmul.f32 %v862_v9, %v862_v9 }
 0x6a7   :  { %6599 = vmatmul.mubr.f32.vlgmr.msra.gmra.mxu1 %v864_v8 }
 0x6a8   :  { %v865_v13 = vmul.f32 %v861_v11, %v861_v11 }
 0x6aa   :  { %6601 = vmatprep.mubr.f32.mxu1 %v865_v13  ;;  %v1150_v13 = vpop.permute.xlu0 %1149 }
 0x6ab   :  { %6602 = vmatmul.mubr.f32.gmra.mxu1 %v866_v14  ;;  %v1155_v14 = vpop.permute.xlu1 %1154 }
 0x767   :  { %v6600_v15 = vpop.f32.mrf.mxu1 }
 0x769   :  { %v933_v16 = vpop.f32.mrf.mxu1 }
 0x76a   :  { %6606 = vmatprep.mubr.msk.f32.mxu0 %vm761_vm3, %v933_v16 }
 0x76b   :  { %v6603_v19 = vpop.f32.mrf.mxu1  ;;  %6607 = vmatmul.mubr.msk.f32.vlgmr.msra.gmra.mxu0 %vm761_vm3, %v6600_v15 }
 0x76d   :  { %v943_v20 = vpop.f32.mrf.mxu1 }
 0x76e   :  { %6609 = vmatprep.mubr.msk.f32.mxu0 %vm761_vm3, %v943_v20 }
 0x76f   :  { %6610 = vmatmul.mubr.msk.f32.gmra.mxu0 %vm761_vm3, %v6603_v19 }
 0x770   :  { %6616 = vmatprep.mubr.msk.bf16.mxu0 %vm1287_vm4, %v7153_v22 }
 0x82b   :  { %v6608_v23 = vpop.f32.mrf.mxu0 }
 0x82c   :  { %v1036_v26 = vadd.f32 1e-05, %v6608_v23 }
 0x82d   :  { %v1030_v24 = vpop.f32.mrf.mxu0 }
 0x82e   :  { %v1031_v25 = vadd.f32 1e-05, %v1030_v24 }
 0x82f   :  { %v6611_v27 = vpop.f32.mrf.mxu0 }
 0x830   :  { %v1046_v29 = vadd.f32 1e-05, %v6611_v27  ;;  %7187 = vrsqrt.f32 %v1031_v25 }
 0x831   :  { %v1040_v30 = vpop.f32.mrf.mxu0 }
 0x832   :  { %7189 = vrsqrt.f32 %v1046_v29  ;;  %v1041_v38 = vadd.f32 1e-05, %v1040_v30 }
 0x833   :  { %7191 = vrsqrt.f32 %v1036_v26 }
 0x834   :  { %7193 = vrsqrt.f32 %v1041_v38 }
 0x83d   :  { %v7188_v31 = vpop.eup %7187 }
 0x83e   :  { %v1053_v36 = vmul.f32 %v7188_v31, %v859_v5 }
 0x83f   :  { %v7190_v32 = vpop.eup %7189 }
 0x840   :  { %v7192_v63 = vpop.eup %7191  ;;  %v1056_v35 = vmul.f32 %v7190_v32, %v862_v9 }
 0x841   :  { %v7194_v2 = vpop.eup %7193  ;;  %v1054_v40 = vmul.f32 %v7192_v63, %v860_v1 }
 0x842   :  { %v1055_v33 = vmul.f32 %v7194_v2, %v861_v11 }
 0x843   :  { %v1081_v17 = vpack.c.bf16 %v1054_v40, %v1053_v36  ;;  %v7160_v40 = vld [vmem:[%s10894_s9 + $0x38] sm:$0xff]  }
 0x844   :  { %v1082_v37 = vpack.c.bf16 %v1056_v35, %v1055_v33 }
 0x846   :  { %6612 = vmatprep.subr.bf16.mxu0 %v1082_v37 }
 0x847   :  { %6613 = vmatpush3.bf16.msra.mxu0 %v1082_v37  ;;  %v7159_v37 = vld [vmem:[%s10894_s9 + $0x30] sm:$0xff]  }
 0x848   :  { %6614 = vmatprep.subr.bf16.mxu0 %v1081_v17 }
 0x84b   :  { %6615 = vmatpush3.bf16.msra.mxu0 %v1081_v17  ;;  %v7161_v17 = vld [vmem:[%s10894_s9 + $0x40] sm:$0xff]  }
 0x84e   :  { %6617 = vmatmul.mubr.msk.bf16.vlgmr.msra.gmra.mxu0 %vm1287_vm4, %v7154_v28  ;;  %v7162_v28 = vld [vmem:[%s10894_s9 + $0x48] sm:$0xff]  }
 0x84f   :  { %6620 = vmatprep.mubr.msk.bf16.mxu0 %vm1287_vm4, %v7155_v18 }
 0x856   :  { %6621 = vmatmul.mubr.msk.bf16.gmra.mxu0 %vm1287_vm4, %v7156_v21  ;;  %v8442_v21 = vld [vmem:[%s10895_s2 + $0x10] sm:$0xff] }
 0x857   :  { %6624 = vmatprep.mubr.msk.bf16.mxu0 %vm1287_vm4, %v7157_v42 }
 0x85e   :  { %6625 = vmatmul.mubr.msk.bf16.gmra.mxu0 %vm1287_vm4, %v7158_v43 }
 0x85f   :  { %6628 = vmatprep.mubr.msk.bf16.mxu0 %vm1287_vm4, %v7159_v37 }
 0x866   :  { %6629 = vmatmul.mubr.msk.bf16.gmra.mxu0 %vm1287_vm4, %v7160_v40  ;;  %v8546_v40 = vld [vmem:[%s10895_s2 + $0x60] sm:$0xff] }
 0x867   :  { %6632 = vmatprep.mubr.msk.bf16.mxu0 %vm1287_vm4, %v7161_v17 }
 0x86e   :  { %6633 = vmatmul.mubr.msk.bf16.gmra.mxu0 %vm1287_vm4, %v7162_v28 }
 0x90e   :  { %v6618_v49 = vpop.f32.mrf.mxu0 }
 0x90f   :  { %v1367_v55 = vadd.f32 %v6618_v49, %v1120_v52  ;;  %v8455_v49 = vld [vmem:[%s10895_s2 + $0x18] sm:$0xff] }
 0x910   :  { %v1358_v50 = vpop.f32.mrf.mxu0 }
 0x911   :  { %v1359_v61 = vadd.f32 %v1358_v50, %v1110_v44 }
 0x912   :  { %v6619_v12 = vpop.f32.mrf.mxu0 }
 0x913   :  { %v1370_v56 = vadd.f32 %v6619_v12, %v1125_v41 }
 0x914   :  { %v1361_v57 = vpop.f32.mrf.mxu0 }
 0x915   :  { %v1454_v62 = vpack.c.bf16 %v1370_v56, %v1367_v55  ;;  %v1362_v0 = vadd.f32 %v1361_v57, %v1115_v45  ;;  %v8467_v57 = vld [vmem:[%s10895_s2 + $0x8] sm:$0xff] }
 0x916   :  { %v6622_v3 = vpop.f32.mrf.mxu0 }
 0x917   :  { %v1453_v53 = vpack.c.bf16 %v1362_v0, %v1359_v61  ;;  %6640 = vmatprep.subr.bf16.mxu1 %v1454_v62  ;;  %v1383_v5 = vadd.f32 %v6622_v3, %v1140_v46  ;;  %v8472_v61 = vld [vmem:[%s10895_s2 + $0x30] sm:$0xff] }
 0x918   :  { %v8399_v1 = vpop.f32.mrf.mxu0  ;;  %6641 = vmatpush3.bf16.msra.mxu1 %v1454_v62 }
 0x919   :  { %10928 = vst [vmem:[#allocation10_spill] sm:$0xff] %v8399_v1  ;;  %1455 = vxpose.xlu0.c.b16.start.end [1/1] (short) %v1453_v53, 128 }
 0x91a   :  { %v6623_v4 = vpop.f32.mrf.mxu0 }
 0x91b   :  { %v1386_v6 = vadd.f32 %v6623_v4, %v1145_v48  ;;  %v8450_v48 = vld [vmem:[%s10895_s2] sm:$0xff] }
 0x91c   :  { %v8401_v7 = vpop.f32.mrf.mxu0 }
 0x91d   :  { %10929 = vst [vmem:[#allocation11_spill] sm:$0xff] %v8401_v7  ;;  %v1842_v8 = vpack.c.bf16 %v1386_v6, %v1383_v5  ;;  %v8485_v6 = vld [vmem:[%s10895_s2 + $0x20] sm:$0xff] }
 0x91e   :  { %v8403_v9 = vpop.f32.mrf.mxu0 }
 0x91f   :  { %10930 = vst [vmem:[#allocation12_spill] sm:$0xff] %v8403_v9  ;;  %1844 = vxpose.xlu1.c.b16.start.end [1/1] (short) %v1842_v8, 128  ;;  %v8490_v8 = vld [vmem:[%s10895_s2 + $0x38] sm:$0xff] }
 0x920   :  { %v1390_v10 = vpop.f32.mrf.mxu0 }
 0x921   :  { %v1391_v16 = vadd.f32 %v1390_v10, %v1150_v13 }
 0x922   :  { %v8405_v11 = vpop.f32.mrf.mxu0 }
 0x923   :  { %10931 = vst [vmem:[#allocation13_spill] sm:$0xff] %v8405_v11 }
 0x924   :  { %v1393_v15 = vpop.f32.mrf.mxu0 }
 0x925   :  { %v1394_v19 = vadd.f32 %v1393_v15, %v1155_v14 }
 0x927   :  { %v1843_v20 = vpack.c.bf16 %v1394_v19, %v1391_v16 }
 0x929   :  { %6678 = vmatprep.subr.bf16.mxu1 %v1843_v20 }
 0x97b   :  { %v1463_v22 = vpop.trf.xlu0 }
 0x97c   :  { %6642 = vmatprep.mubr.msk.bf16.mxu1 %vm125_vm0, %v1463_v22  ;;  %v8508_v22 = vld [vmem:[%s10895_s2 + $0x50] sm:$0xff] }
 0x97f   :  { %v1464_v23 = vpop.trf.xlu0 }
 0x980   :  { %6643 = vmatmul.mubr.msk.bf16.vlgmr.msra.gmra.mxu1 %vm125_vm0, %v1464_v23 }
 0x981   :  { %6679 = vmatpush3.bf16.msra.mxu1 %v1843_v20  ;;  %v1852_v27 = vpop.trf.xlu1  ;;  %v8503_v20 = vld [vmem:[%s10895_s2 + $0x28] sm:$0xff] }
 0x983   :  { %v1465_v24 = vpop.trf.xlu0 }
 0x984   :  { %6646 = vmatprep.mubr.msk.bf16.mxu1 %vm125_vm0, %v1465_v24 }
 0x985   :  { %v1853_v30 = vpop.trf.xlu1 }
 0x987   :  { %v1466_v25 = vpop.trf.xlu0 }
 0x988   :  { %6647 = vmatmul.mubr.msk.bf16.gmra.mxu1 %vm125_vm0, %v1466_v25 }
 0x989   :  { %v1854_v32 = vpop.trf.xlu1 }
 0x98b   :  { %v1467_v26 = vpop.trf.xlu0 }
 0x98c   :  { %6650 = vmatprep.mubr.msk.bf16.mxu1 %vm125_vm0, %v1467_v26 }
 0x98d   :  { %v1855_v63 = vpop.trf.xlu1 }
 0x98f   :  { %v1468_v29 = vpop.trf.xlu0 }
 0x990   :  { %6651 = vmatmul.mubr.msk.bf16.gmra.mxu1 %vm125_vm0, %v1468_v29 }
 0x991   :  { %v1856_v2 = vpop.trf.xlu1 }
 0x993   :  { %v1469_v38 = vpop.trf.xlu0 }
 0x994   :  { %6654 = vmatprep.mubr.msk.bf16.mxu1 %vm125_vm0, %v1469_v38  ;;  %v8526_v38 = vld [vmem:[%s10895_s2 + $0x58] sm:$0xff] }
 0x995   :  { %v1857_v33 = vpop.trf.xlu1 }
 0x997   :  { %v1470_v31 = vpop.trf.xlu0 }
 0x998   :  { %6655 = vmatmul.mubr.msk.bf16.gmra.mxu1 %vm125_vm0, %v1470_v31 }
 0x999   :  { %6680 = vmatprep.mubr.msk.bf16.mxu1 %vm125_vm0, %v1852_v27  ;;  %v1858_v35 = vpop.trf.xlu1 }
 0x99d   :  { %v1859_v36 = vpop.trf.xlu1 }
 0x9a0   :  { %6681 = vmatmul.mubr.msk.bf16.vlgmr.msra.gmra.mxu1 %vm125_vm0, %v1853_v30  ;;  %v8521_v30 = vld [vmem:[%s10895_s2 + $0x40] sm:$0xff] }
 0x9a1   :  { %6684 = vmatprep.mubr.msk.bf16.mxu1 %vm125_vm0, %v1854_v32 }
 0x9a8   :  { %6685 = vmatmul.mubr.msk.bf16.gmra.mxu1 %vm125_vm0, %v1855_v63 }
 0x9a9   :  { %6688 = vmatprep.mubr.msk.bf16.mxu1 %vm125_vm0, %v1856_v2 }
 0x9b0   :  { %6689 = vmatmul.mubr.msk.bf16.gmra.mxu1 %vm125_vm0, %v1857_v33 }
 0x9b1   :  { %6692 = vmatprep.mubr.msk.bf16.mxu1 %vm125_vm0, %v1858_v35 }
 0x9b8   :  { %6693 = vmatmul.mubr.msk.bf16.gmra.mxu1 %vm125_vm0, %v1859_v36  ;;  %v8539_v36 = vld [vmem:[%s10895_s2 + $0x48] sm:$0xff] }
 0xa40   :  { %v6644_v18 = vpop.f32.mrf.mxu1 }
 0xa41   :  { %v1594_v42 = vmul.f32 0.25, %v6644_v18 }
 0xa42   :  { %v1529_v43 = vpop.f32.mrf.mxu1 }
 0xa43   :  { %v1592_v44 = vmul.f32 0.25, %v1529_v43  ;;  %v8445_v45 = vadd.f32 %v1594_v42, %v8442_v21  ;;  %v8554_v43 = vld [vmem:[%s10895_s2 + $0x70] sm:$0xff] }
 0xa44   :  { %v6645_v46 = vpop.f32.mrf.mxu1 }
 0xa45   :  { %v1595_v50 = vmul.f32 0.25, %v6645_v46  ;;  %1628 = vmax.xlane.f32.xlu1 %v8445_v45  ;;  %v8459_v12 = vadd.f32 %v1592_v44, %v8450_v48 }
 0xa46   :  { %v1532_v52 = vpop.f32.mrf.mxu1 }
 0xa47   :  { %v1593_v41 = vmul.f32 0.25, %v1532_v52  ;;  %v8462_v55 = vadd.f32 %v1595_v50, %v8455_v49 }
 0xa48   :  { %v6648_v56 = vpop.f32.mrf.mxu1 }
 0xa49   :  { %v1598_v62 = vmul.f32 0.25, %v6648_v56  ;;  %1624 = vmax.xlane.f32.xlu1 %v8459_v12  ;;  %1630 = vmax.xlane.f32.xlu0 %v8462_v55  ;;  %v8477_v53 = vadd.f32 %v1593_v41, %v8467_v57  ;;  %v8567_v56 = vld [vmem:[%s10895_s2 + $0x78] sm:$0xff] }
 0xa4a   :  { %v1545_v0 = vpop.f32.mrf.mxu1 }
 0xa4b   :  { %v1596_v3 = vmul.f32 0.25, %v1545_v0  ;;  %v8480_v4 = vadd.f32 %v1598_v62, %v8472_v61 }
 0xa4c   :  { %v6649_v5 = vpop.f32.mrf.mxu1 }
 0xa4d   :  { %v1599_v10 = vmul.f32 0.25, %v6649_v5  ;;  %1626 = vmax.xlane.f32.xlu0 %v8477_v53  ;;  %1636 = vmax.xlane.f32.xlu1 %v8480_v4  ;;  %v8495_v15 = vadd.f32 %v1596_v3, %v8485_v6 }
 0xa4e   :  { %v1548_v13 = vpop.f32.mrf.mxu1 }
 0xa4f   :  { %v1597_v14 = vmul.f32 0.25, %v1548_v13  ;;  %v8498_v16 = vadd.f32 %v1599_v10, %v8490_v8 }
 0xa50   :  { %v6652_v19 = vpop.f32.mrf.mxu1 }
 0xa51   :  { %v1602_v23 = vmul.f32 0.25, %v6652_v19  ;;  %1632 = vmax.xlane.f32.xlu1 %v8495_v15  ;;  %1638 = vmax.xlane.f32.xlu0 %v8498_v16  ;;  %v8513_v26 = vadd.f32 %v1597_v14, %v8503_v20  ;;  %v66_v19 = vld [vmem:[%s10895_s2 + $0x68] sm:$0xff] }
 0xa52   :  { %v1561_v24 = vpop.f32.mrf.mxu1 }
 0xa53   :  { %v1600_v25 = vmul.f32 0.25, %v1561_v24  ;;  %v8516_v27 = vadd.f32 %v1602_v23, %v8508_v22 }
 0xa54   :  { %v6653_v29 = vpop.f32.mrf.mxu1 }
 0xa55   :  { %v1603_v31 = vmul.f32 0.25, %v6653_v29  ;;  %1634 = vmax.xlane.f32.xlu0 %v8513_v26  ;;  %1644 = vmax.xlane.f32.xlu1 %v8516_v27  ;;  %v8531_v2 = vadd.f32 %v1600_v25, %v8521_v30 }
 0xa56   :  { %v1564_v32 = vpop.f32.mrf.mxu1 }
 0xa57   :  { %v1601_v63 = vmul.f32 0.25, %v1564_v32  ;;  %v8534_v33 = vadd.f32 %v1603_v31, %v8526_v38 }
 0xa58   :  { %v6656_v35 = vpop.f32.mrf.mxu1 }
 0xa59   :  { %1640 = vmax.xlane.f32.xlu1 %v8531_v2  ;;  %1646 = vmax.xlane.f32.xlu0 %v8534_v33  ;;  %v1606_v17 = vmul.f32 0.25, %v6656_v35  ;;  %v8549_v18 = vadd.f32 %v1601_v63, %v8539_v36 }
 0xa5a   :  { %v1577_v37 = vpop.f32.mrf.mxu1 }
 0xa5b   :  { %v1604_v28 = vmul.f32 0.25, %v1577_v37  ;;  %v8562_v52 = vadd.f32 %v1606_v17, %v8554_v43 }
 0xa5c   :  { %v6657_v42 = vpop.f32.mrf.mxu1 }
 0xa5d   :  { %1642 = vmax.xlane.f32.xlu0 %v8549_v18  ;;  %v8558_v44 = vadd.f32 %v1604_v28, %v8546_v40  ;;  %v1607_v50 = vmul.f32 0.25, %v6657_v42 }
 0xa5e   :  { %v1580_v46 = vpop.f32.mrf.mxu1 }
 0xa5f   :  { %1648 = vmax.xlane.f32.xlu1 %v8558_v44  ;;  %v1605_v3 = vmul.f32 0.25, %v1580_v46  ;;  %v8571_v10 = vadd.f32 %v1607_v50, %v8567_v56 }
 0xa60   :  { %v6682_v41 = vpop.f32.mrf.mxu1 }
 0xa61   :  { %v1983_v62 = vmul.f32 0.25, %v6682_v41  ;;  %1652 = vmax.xlane.f32.xlu0 %v8562_v52  ;;  %v8584_v29 = vadd.f32 %v1605_v3, %v66_v19 }
 0xa62   :  { %v1918_v0 = vpop.f32.mrf.mxu1 }
 0xa63   :  { %v1981_v5 = vmul.f32 0.25, %v1918_v0  ;;  %v8574_v13 = vadd.f32 %v1983_v62, %v8442_v21 }
 0xa64   :  { %v6683_v14 = vpop.f32.mrf.mxu1 }
 0xa65   :  { %1654 = vmax.xlane.f32.xlu0 %v8571_v10  ;;  %2017 = vmax.xlane.f32.xlu1 %v8574_v13  ;;  %v1984_v24 = vmul.f32 0.25, %v6683_v14  ;;  %v8582_v25 = vadd.f32 %v1981_v5, %v8450_v48 }
 0xa66   :  { %v1921_v23 = vpop.f32.mrf.mxu1 }
 0xa67   :  { %v8589_v63 = vadd.f32 %v1984_v24, %v8455_v49  ;;  %v1982_v35 = vmul.f32 0.25, %v1921_v23 }
 0xa68   :  { %v6686_v31 = vpop.f32.mrf.mxu1 }
 0xa69   :  { %v1987_v32 = vmul.f32 0.25, %v6686_v31  ;;  %2013 = vmax.xlane.f32.xlu1 %v8582_v25  ;;  %1650 = vmax.xlane.f32.xlu0 %v8584_v29  ;;  %v8597_v42 = vadd.f32 %v1982_v35, %v8467_v57 }
 0xa6a   :  { %v1934_v21 = vpop.f32.mrf.mxu1 }
 0xa6b   :  { %v8592_v37 = vadd.f32 %v1987_v32, %v8472_v61  ;;  %v1985_v17 = vmul.f32 0.25, %v1934_v21 }
 0xa6c   :  { %v6687_v28 = vpop.f32.mrf.mxu1 }
 0xa6d   :  { %2025 = vmax.xlane.f32.xlu1 %v8592_v37  ;;  %2019 = vmax.xlane.f32.xlu0 %v8589_v63  ;;  %v8600_v46 = vadd.f32 %v1985_v17, %v8485_v6  ;;  %v1988_v50 = vmul.f32 0.25, %v6687_v28 }
 0xa6e   :  { %v1937_v48 = vpop.f32.mrf.mxu1 }
 0xa6f   :  { %v8605_v62 = vadd.f32 %v1988_v50, %v8490_v8  ;;  %v1986_v0 = vmul.f32 0.25, %v1937_v48 }
 0xa70   :  { %v6690_v49 = vpop.f32.mrf.mxu1 }
 0xa71   :  { %v1991_v41 = vmul.f32 0.25, %v6690_v49  ;;  %2021 = vmax.xlane.f32.xlu1 %v8600_v46  ;;  %2015 = vmax.xlane.f32.xlu0 %v8597_v42  ;;  %v8613_v14 = vadd.f32 %v1986_v0, %v8503_v20 }
 0xa72   :  { %v1950_v61 = vpop.f32.mrf.mxu1 }
 0xa73   :  { %v8608_v3 = vadd.f32 %v1991_v41, %v8508_v22  ;;  %v1989_v57 = vmul.f32 0.25, %v1950_v61 }
 0xa74   :  { %v6691_v5 = vpop.f32.mrf.mxu1 }
 0xa75   :  { %2033 = vmax.xlane.f32.xlu1 %v8608_v3  ;;  %2027 = vmax.xlane.f32.xlu0 %v8605_v62  ;;  %v8616_v23 = vadd.f32 %v1989_v57, %v8521_v30  ;;  %v1992_v24 = vmul.f32 0.25, %v6691_v5 }
 0xa76   :  { %v1953_v6 = vpop.f32.mrf.mxu1 }
 0xa77   :  { %v8621_v31 = vadd.f32 %v1992_v24, %v8526_v38  ;;  %v1990_v32 = vmul.f32 0.25, %v1953_v6 }
 0xa78   :  { %v6694_v8 = vpop.f32.mrf.mxu1 }
 0xa79   :  { %2029 = vmax.xlane.f32.xlu1 %v8616_v23  ;;  %2023 = vmax.xlane.f32.xlu0 %v8613_v14  ;;  %v8628_v30 = vadd.f32 %v1990_v32, %v8539_v36  ;;  %v1995_v28 = vmul.f32 0.25, %v6694_v8  ;;  %v1101_v36 = vld [vmem:[%s10888_s13 + $0x110] sm:$0xff] }
 0xa7a   :  { %v1966_v22 = vpop.f32.mrf.mxu1 }
 0xa7b   :  { %v1993_v21 = vmul.f32 0.25, %v1966_v22  ;;  %v8636_v38 = vadd.f32 %v1995_v28, %v8554_v43  ;;  %v7163_v43 = vld [vmem:[%s10894_s9 + $0x50] sm:$0xff]  }
 0xa7c   :  { %v6695_v35 = vpop.f32.mrf.mxu1  ;;  %6636 = vmatprep.mubr.msk.bf16.mxu0 %vm1287_vm4, %v7163_v43 }
 0xa7d   :  { %v8624_v17 = vadd.f32 %v1993_v21, %v8546_v40  ;;  %v1996_v20 = vmul.f32 0.25, %v6695_v35  ;;  %2035 = vmax.xlane.f32.xlu0 %v8621_v31 }
 0xa7e   :  { %v1969_v48 = vpop.f32.mrf.mxu1 }
 0xa7f   :  { %2037 = vmax.xlane.f32.xlu1 %v8624_v17  ;;  %v8632_v50 = vadd.f32 %v1996_v20, %v8567_v56  ;;  %v1994_v40 = vmul.f32 0.25, %v1969_v48  ;;  %v1102_v56 = vld [vmem:[%s10888_s13 + $0x118] sm:$0xff] }
 0xa81   :  { %2031 = vmax.xlane.f32.xlu0 %v8628_v30  ;;  %v8640_v49 = vadd.f32 %v1994_v40, %v66_v19  ;;  %v7164_v19 = vld [vmem:[%s10894_s9 + $0x58] sm:$0xff]  }
 0xa82   :  { %6637 = vmatmul.mubr.msk.bf16.gmra.mxu0 %vm1287_vm4, %v7164_v19 }
 0xa83   :  { %2043 = vmax.xlane.f32.xlu1 %v8632_v50 }
 0xa85   :  { %2041 = vmax.xlane.f32.xlu0 %v8636_v38 }
 0xa89   :  { %2039 = vmax.xlane.f32.xlu0 %v8640_v49 }
 0xa94   :  { %1199 = vperm.xlu1 %7136, %v1101_v36  }
 0xa9f   :  { %1204 = vperm.xlu0 %7135, %v1102_v56  }
 0xace   :  { %v1629_v41 = vpop.xlane.xlu1 %1628 }
 0xacf   :  { %v1658_v61 = vsub.f32 %v8445_v45, %v1629_v41 }
 0xad1   :  { %v1676_v0 = vmul.f32 1.442695, %v1658_v61 }
 0xad2   :  { %v8658_v57 = vpop.xlane.xlu1 %1624  ;;  %v1631_v5 = vpop.xlane.xlu0 %1630 }
 0xad3   :  { %7195 = vpow2.f32 %v1676_v0  ;;  %v1659_v6 = vsub.f32 %v8462_v55, %v1631_v5 }
 0xad5   :  { %v1678_v24 = vmul.f32 1.442695, %v1659_v6 }
 0xad6   :  { %v1637_v8 = vpop.xlane.xlu1 %1636  ;;  %v8661_v22 = vpop.xlane.xlu0 %1626 }
 0xad7   :  { %v1662_v32 = vsub.f32 %v8480_v4, %v1637_v8  ;;  %7197 = vpow2.f32 %v1678_v24 }
 0xad9   :  { %v1684_v21 = vmul.f32 1.442695, %v1662_v32 }
 0xada   :  { %v1633_v35 = vpop.xlane.xlu1 %1632  ;;  %v1639_v20 = vpop.xlane.xlu0 %1638 }
 0xadb   :  { %7199 = vpow2.f32 %v1684_v21  ;;  %v1660_v45 = vsub.f32 %v8495_v15, %v1633_v35  ;;  %v1663_v28 = vsub.f32 %v8498_v16, %v1639_v20 }
 0xadd   :  { %v1680_v48 = vmul.f32 1.442695, %v1660_v45  ;;  %v1686_v40 = vmul.f32 1.442695, %v1663_v28 }
 0xade   :  { %v1645_v36 = vpop.xlane.xlu1 %1644  ;;  %v1635_v56 = vpop.xlane.xlu0 %1634 }
 0xadf   :  { %7201 = vpow2.f32 %v1680_v48  ;;  %v1666_v55 = vsub.f32 %v8516_v27, %v1645_v36  ;;  %v1661_v43 = vsub.f32 %v8513_v26, %v1635_v56 }
 0xae0   :  { %v8668_v19 = vpop.eup %7195  ;;  %7203 = vpow2.f32 %v1686_v40 }
 0xae1   :  { %v1692_v4 = vmul.f32 1.442695, %v1666_v55  ;;  %v1682_v41 = vmul.f32 1.442695, %v1661_v43  ;;  %1708 = vadd.xlane.f32.xlu1 %v8668_v19 }
 0xae2   :  { %v1641_v61 = vpop.xlane.xlu1 %1640  ;;  %v1647_v15 = vpop.xlane.xlu0 %1646 }
 0xae3   :  { %7205 = vpow2.f32 %v1692_v4  ;;  %v1664_v16 = vsub.f32 %v8531_v2, %v1641_v61  ;;  %v1667_v0 = vsub.f32 %v8534_v33, %v1647_v15 }
 0xae4   :  { %7207 = vpow2.f32 %v1682_v41  ;;  %v8673_v5 = vpop.eup %7197 }
 0xae5   :  { %v1688_v27 = vmul.f32 1.442695, %v1664_v16  ;;  %v1694_v6 = vmul.f32 1.442695, %v1667_v0  ;;  %1710 = vadd.xlane.f32.xlu0 %v8673_v5 }
 0xae6   :  { %v1643_v26 = vpop.xlane.xlu0 %1642 }
 0xae7   :  { %7209 = vpow2.f32 %v1688_v27  ;;  %v1665_v24 = vsub.f32 %v8549_v18, %v1643_v26 }
 0xae8   :  { %v8677_v8 = vpop.eup %7199  ;;  %7211 = vpow2.f32 %v1694_v6  ;;  %v1649_v32 = vpop.xlane.xlu1 %1648 }
 0xae9   :  { %v1690_v21 = vmul.f32 1.442695, %v1665_v24  ;;  %1716 = vadd.xlane.f32.xlu1 %v8677_v8  ;;  %v1668_v33 = vsub.f32 %v8558_v44, %v1649_v32 }
 0xaea   :  { %v1653_v2 = vpop.xlane.xlu0 %1652 }
 0xaeb   :  { %7213 = vpow2.f32 %v1690_v21  ;;  %v1670_v35 = vsub.f32 %v8562_v52, %v1653_v2  ;;  %v1696_v40 = vmul.f32 1.442695, %v1668_v33 }
 0xaec   :  { %v8682_v20 = vpop.eup %7201 }
 0xaed   :  { %v8684_v45 = vpop.eup %7203  ;;  %v1700_v28 = vmul.f32 1.442695, %v1670_v35  ;;  %1712 = vadd.xlane.f32.xlu1 %v8682_v20 }
 0xaee   :  { %1718 = vadd.xlane.f32.xlu0 %v8684_v45  ;;  %v2018_v18 = vpop.xlane.xlu1 %2017  ;;  %v1655_v48 = vpop.xlane.xlu0 %1654 }
 0xaef   :  { %7215 = vpow2.f32 %v1700_v28  ;;  %v2047_v36 = vsub.f32 %v8574_v13, %v2018_v18  ;;  %v1671_v56 = vsub.f32 %v8571_v10, %v1655_v48 }
 0xaf0   :  { %v8690_v44 = vpop.eup %7205  ;;  %7217 = vpow2.f32 %v1696_v40 }
 0xaf1   :  { %v8692_v52 = vpop.eup %7207  ;;  %v1702_v55 = vmul.f32 1.442695, %v1671_v56  ;;  %1724 = vadd.xlane.f32.xlu1 %v8690_v44  ;;  %v2065_v41 = vmul.f32 1.442695, %v2047_v36 }
 0xaf2   :  { %1714 = vadd.xlane.f32.xlu0 %v8692_v52  ;;  %v2014_v43 = vpop.xlane.xlu1 %2013  ;;  %v1651_v4 = vpop.xlane.xlu0 %1650 }
 0xaf3   :  { %v2045_v61 = vsub.f32 %v8582_v25, %v2014_v43  ;;  %v1669_v15 = vsub.f32 %v8584_v29, %v1651_v4  ;;  %7219 = vpow2.f32 %v1702_v55 }
 0xaf4   :  { %v8698_v13 = vpop.eup %7209  ;;  %7221 = vpow2.f32 %v2065_v41 }
 0xaf5   :  { %v8700_v10 = vpop.eup %7211  ;;  %v1698_v16 = vmul.f32 1.442695, %v1669_v15  ;;  %1720 = vadd.xlane.f32.xlu1 %v8698_v13  ;;  %v2061_v6 = vmul.f32 1.442695, %v2045_v61 }
 0xaf6   :  { %1726 = vadd.xlane.f32.xlu0 %v8700_v10  ;;  %v2026_v0 = vpop.xlane.xlu1 %2025  ;;  %v2020_v27 = vpop.xlane.xlu0 %2019 }
 0xaf7   :  { %v2051_v26 = vsub.f32 %v8592_v37, %v2026_v0  ;;  %v2048_v25 = vsub.f32 %v8589_v63, %v2020_v27  ;;  %7223 = vpow2.f32 %v1698_v16 }
 0xaf8   :  { %v8706_v24 = vpop.eup %7213  ;;  %7225 = vpow2.f32 %v2061_v6 }
 0xaf9   :  { %v2067_v29 = vmul.f32 1.442695, %v2048_v25  ;;  %v2073_v2 = vmul.f32 1.442695, %v2051_v26 }
 0xafa   :  { %1722 = vadd.xlane.f32.xlu0 %v8706_v24  ;;  %v2022_v32 = vpop.xlane.xlu1 %2021  ;;  %v2016_v21 = vpop.xlane.xlu0 %2015 }
 0xafb   :  { %v2049_v33 = vsub.f32 %v8600_v46, %v2022_v32  ;;  %v2046_v35 = vsub.f32 %v8597_v42, %v2016_v21  ;;  %7227 = vpow2.f32 %v2067_v29 }
 0xafc   :  { %v8711_v28 = vpop.eup %7215  ;;  %7229 = vpow2.f32 %v2073_v2 }
 0xafd   :  { %v2063_v37 = vmul.f32 1.442695, %v2046_v35  ;;  %1732 = vadd.xlane.f32.xlu1 %v8711_v28  ;;  %v2069_v48 = vmul.f32 1.442695, %v2049_v33  ;;  %v8716_v56 = vpop.eup %7217 }
 0xafe   :  { %v2034_v63 = vpop.xlane.xlu1 %2033  ;;  %v2028_v18 = vpop.xlane.xlu0 %2027 }
 0xaff   :  { %v2055_v40 = vsub.f32 %v8608_v3, %v2034_v63  ;;  %v2052_v36 = vsub.f32 %v8605_v62, %v2028_v18  ;;  %7231 = vpow2.f32 %v2063_v37 }
 0xb00   :  { %v8718_v46 = vpop.eup %7219  ;;  %7233 = vpow2.f32 %v2069_v48 }
 0xb01   :  { %v2075_v42 = vmul.f32 1.442695, %v2052_v36  ;;  %1728 = vadd.xlane.f32.xlu1 %v8716_v56  ;;  %1734 = vadd.xlane.f32.xlu0 %v8718_v46  ;;  %v2081_v4 = vmul.f32 1.442695, %v2055_v40  ;;  %v8724_v61 = vpop.eup %7221 }
 0xb02   :  { %v2030_v55 = vpop.xlane.xlu1 %2029  ;;  %v2024_v43 = vpop.xlane.xlu0 %2023 }
 0xb03   :  { %v2053_v41 = vsub.f32 %v8616_v23, %v2030_v55  ;;  %v2050_v3 = vsub.f32 %v8613_v14, %v2024_v43  ;;  %7235 = vpow2.f32 %v2075_v42 }
 0xb04   :  { %v8726_v62 = vpop.eup %7223  ;;  %7237 = vpow2.f32 %v2081_v4 }
 0xb05   :  { %v2071_v15 = vmul.f32 1.442695, %v2050_v3  ;;  %2097 = vadd.xlane.f32.xlu1 %v8724_v61  ;;  %v2077_v16 = vmul.f32 1.442695, %v2053_v41  ;;  %1730 = vadd.xlane.f32.xlu0 %v8726_v62  ;;  %v8731_v6 = vpop.eup %7225  ;;  %v10906_v41 = vmov 0.0  }
 0xb06   :  { %v2036_v0 = vpop.xlane.xlu0 %2035  ;;  %6658 = vmatprep.subr.bf16.mxu0 %v10906_v41  ;;  %6696 = vmatprep.subr.bf16.mxu1 %v10906_v41 }
 0xb07   :  { %v2056_v27 = vsub.f32 %v8621_v31, %v2036_v0  ;;  %7239 = vpow2.f32 %v2071_v15  ;;  %6712 = vmatprep.mubr.msk.bf16.mxu1 %vm7791_vm5, %v10906_v41  ;;  %6674 = vmatprep.mubr.msk.bf16.mxu0 %vm7791_vm5, %v10906_v41 }
 0xb08   :  { %v2038_v23 = vpop.xlane.xlu1 %2037  ;;  %v8733_v14 = vpop.eup %7227  ;;  %7241 = vpow2.f32 %v2077_v16 }
 0xb09   :  { %v2083_v26 = vmul.f32 1.442695, %v2056_v27  ;;  %2093 = vadd.xlane.f32.xlu1 %v8731_v6  ;;  %2099 = vadd.xlane.f32.xlu0 %v8733_v14  ;;  %v8738_v32 = vpop.eup %7229  ;;  %v2057_v35 = vsub.f32 %v8624_v17, %v2038_v23  ;;  %v1095_v27 = vld [vmem:[%s10888_s13 + $0xe0] sm:$0xff]  ;;  %v1096_v23 = vld [vmem:[%s10888_s13 + $0xe8] sm:$0xff] }
 0xb0a   :  { %v2032_v25 = vpop.xlane.xlu0 %2031 }
 0xb0b   :  { %7243 = vpow2.f32 %v2083_v26  ;;  %v2054_v29 = vsub.f32 %v8628_v30, %v2032_v25  ;;  %v2085_v36 = vmul.f32 1.442695, %v2057_v35  ;;  %v1656_v26 = vsub.f32 %v8459_v12, %v8658_v57  ;;  %v1093_v35 = vld [vmem:[%s10888_s13 + $0xd0] sm:$0xff] }
 0xb0c   :  { %v2044_v21 = vpop.xlane.xlu1 %2043  ;;  %v8740_v31 = vpop.eup %7231  ;;  %v1657_v25 = vsub.f32 %v8477_v53, %v8661_v22  ;;  %v1087_v53 = vld [vmem:[%s10888_s13 + $0xa0] sm:$0xff]  ;;  %v1094_v22 = vld [vmem:[%s10888_s13 + $0xd8] sm:$0xff] }
 0xb0d   :  { %v2079_v2 = vmul.f32 1.442695, %v2054_v29  ;;  %v2060_v33 = vsub.f32 %v8632_v50, %v2044_v21  ;;  %2105 = vadd.xlane.f32.xlu1 %v8738_v32  ;;  %2095 = vadd.xlane.f32.xlu0 %v8740_v31  ;;  %v8747_v18 = vpop.eup %7233  ;;  %v1672_v29 = vmul.f32 1.442695, %v1656_v26  ;;  %v1098_v26 = vld [vmem:[%s10888_s13 + $0xf8] sm:$0xff] }
 0xb0e   :  { %v2042_v37 = vpop.xlane.xlu0 %2041  ;;  %v1674_v21 = vmul.f32 1.442695, %v1657_v25 }
 0xb0f   :  { %7245 = vpow2.f32 %v2079_v2  ;;  %v2059_v63 = vsub.f32 %v8636_v38, %v2042_v37  ;;  %v2091_v30 = vmul.f32 1.442695, %v2060_v33 }
 0xb10   :  { %v8749_v48 = vpop.eup %7235  ;;  %v1200_v12 = vpop.permute.xlu1 %1199 }
 0xb11   :  { %v2089_v40 = vmul.f32 1.442695, %v2059_v63  ;;  %2101 = vadd.xlane.f32.xlu1 %v8747_v18  ;;  %2107 = vadd.xlane.f32.xlu0 %v8749_v48  ;;  %v8754_v42 = vpop.eup %7237  ;;  %v1088_v63 = vld [vmem:[%s10888_s13 + $0xa8] sm:$0xff] }
 0xb12   :  { %v2040_v50 = vpop.xlane.xlu0 %2039 }
 0xb13   :  { %7247 = vpow2.f32 %v2089_v40  ;;  %v2058_v17 = vsub.f32 %v8640_v49, %v2040_v50  ;;  %v1103_v40 = vld [vmem:[%s10888_s13 + $0x120] sm:$0xff]  ;;  %v1104_v50 = vld [vmem:[%s10888_s13 + $0x128] sm:$0xff] }
 0xb14   :  { %7249 = vpow2.f32 %v2091_v30  ;;  %v8756_v55 = vpop.eup %7239 }
 0xb15   :  { %v2087_v38 = vmul.f32 1.442695, %v2058_v17  ;;  %2113 = vadd.xlane.f32.xlu1 %v8754_v42  ;;  %7251 = vpow2.f32 %v2085_v36  ;;  %2103 = vadd.xlane.f32.xlu0 %v8756_v55  ;;  %v8760_v43 = vpop.eup %7241 }
 0xb17   :  { %7253 = vpow2.f32 %v2087_v38  ;;  %v1097_v38 = vld [vmem:[%s10888_s13 + $0xf0] sm:$0xff] }
 0xb18   :  { %v8762_v4 = vpop.eup %7243  ;;  %7255 = vpow2.f32 %v1672_v29 }
 0xb19   :  { %2109 = vadd.xlane.f32.xlu1 %v8760_v43  ;;  %2115 = vadd.xlane.f32.xlu0 %v8762_v4  ;;  %7257 = vpow2.f32 %v1674_v21 }
 0xb1a   :  { %v1205_v37 = vpop.permute.xlu0 %1204 }
 0xb1c   :  { %v8766_v49 = vpop.eup %7245 }
 0xb1d   :  { %2111 = vadd.xlane.f32.xlu0 %v8766_v49 }
 0xb20   :  { %v8771_v3 = vpop.eup %7247 }
 0xb21   :  { %v8773_v15 = vpop.eup %7249  ;;  %2121 = vadd.xlane.f32.xlu1 %v8771_v3 }
 0xb22   :  { %2123 = vadd.xlane.f32.xlu0 %v8773_v15  ;;  %v8777_v16 = vpop.eup %7251 }
 0xb24   :  { %v8779_v0 = vpop.eup %7253 }
 0xb25   :  { %2117 = vadd.xlane.f32.xlu1 %v8777_v16  ;;  %v8793_v2 = vpop.eup %7255 }
 0xb26   :  { %2119 = vadd.xlane.f32.xlu0 %v8779_v0  ;;  %v8795_v33 = vpop.eup %7257 }
 0xb36   :  { %1169 = vperm.xlu1 %7136, %v1095_v27  }
 0xb3c   :  { %1174 = vperm.xlu0 %7135, %v1096_v23   ;;  %v8830_v23 = vpop.f32.mrf.mxu0 }
 0xb3e   :  { %v8837_v29 = vpop.f32.mrf.mxu0 }
 0xb5a   :  { %1704 = vadd.xlane.f32.xlu1 %v8793_v2 }
 0xb5b   :  { %1706 = vadd.xlane.f32.xlu0 %v8795_v33 }
 0xb6a   :  { %v8805_v57 = vpop.xlane.xlu1 %1708 }
 0xb6b   :  { %1159 = vperm.xlu1 %7136, %v1093_v35   ;;  %v8843_v35 = vpop.f32.mrf.mxu0 }
 0xb6c   :  { %10932 = vst [vmem:[#allocation14_spill] sm:$0xff] %v8843_v35 }
 0xb6e   :  { %v8818_v36 = vpop.xlane.xlu0 %1710 }
 0xb6f   :  { %1129 = vperm.xlu1 %7136, %v1087_v53  }
 0xb71   :  { %1164 = vperm.xlu0 %7135, %v1094_v22  }
 0xb72   :  { %v8813_v30 = vpop.xlane.xlu1 %1716 }
 0xb73   :  { %1134 = vperm.xlu1 %7136, %v1088_v63   ;;  %v8845_v63 = vpop.f32.mrf.mxu0 }
 0xb75   :  { %1209 = vperm.xlu0 %7135, %v1103_v40  }
 0xb76   :  { %v8823_v17 = vpop.xlane.xlu1 %1712 }
 0xb77   :  { %v8828_v27 = vpop.xlane.xlu0 %1718  ;;  %1214 = vperm.xlu1 %7136, %v1104_v50  }
 0xb79   :  { %1179 = vperm.xlu0 %7135, %v1097_v38   ;;  %v6634_v38 = vpop.f32.mrf.mxu0 }
 0xb7a   :  { %v1725_v21 = vpop.xlane.xlu1 %1724  ;;  %v1431_v60 = vadd.f32 %v6634_v38, %v1200_v12  ;;  %v10934_v38 = vmov 0.0  }
 0xb7b   :  { %v8835_v25 = vpop.xlane.xlu0 %1714  ;;  %1184 = vperm.xlu1 %7136, %v1098_v26   ;;  %v8847_v26 = vpop.f32.mrf.mxu0 }
 0xb7c   :  { %10933 = vst [vmem:[#allocation15_spill] sm:$0xff] %v8847_v26 }
 0xb7d   :  { %v6635_v51 = vpop.f32.mrf.mxu0 }
 0xb7e   :  { %v1721_v22 = vpop.xlane.xlu1 %1720  ;;  %v1434_v58 = vadd.f32 %v6635_v51, %v1205_v37 }
 0xb7f   :  { %v1727_v53 = vpop.xlane.xlu0 %1726 }
 0xb80   :  { %v2608_v9 = vpack.c.bf16 %v1434_v58, %v1431_v60  ;;  %v8868_v58 = vld [vmem:[%s10896_s1] ss:$0 sm:$0xff] }
 0xb83   :  { %v1723_v50 = vpop.xlane.xlu0 %1722 }
 0xb86   :  { %v1733_v40 = vpop.xlane.xlu1 %1732 }
 0xb87   :  { %7259 = vrcp.f32 %v1733_v40 }
 0xb8a   :  { %v1729_v34 = vpop.xlane.xlu1 %1728  ;;  %v1735_v54 = vpop.xlane.xlu0 %1734 }
 0xb8b   :  { %7261 = vrcp.f32 %v1735_v54 }
 0xb8c   :  { %7263 = vrcp.f32 %v1729_v34 }
 0xb8e   :  { %v8849_v47 = vpop.xlane.xlu1 %2097  ;;  %v1731_v41 = vpop.xlane.xlu0 %1730 }
 0xb8f   :  { %7265 = vrcp.f32 %v1731_v41 }
 0xb90   :  { %7267 = vrcp.f32 %v1727_v53 }
 0xb91   :  { %7269 = vrcp.f32 %v1725_v21 }
 0xb92   :  { %v8851_v39 = vpop.xlane.xlu1 %2093  ;;  %v8853_v59 = vpop.xlane.xlu0 %2099  ;;  %7271 = vrcp.f32 %v1723_v50 }
 0xb93   :  { %7273 = vrcp.f32 %v1721_v22 }
 0xb94   :  { %v7260_v1 = vpop.eup %7259  ;;  %7275 = vrcp.f32 %v8828_v27 }
 0xb95   :  { %v1766_v54 = vmul.f32 %v7260_v1, %v8711_v28  ;;  %7277 = vrcp.f32 %v8813_v30 }
 0xb96   :  { %v8855_v40 = vpop.xlane.xlu1 %2105  ;;  %v8857_v26 = vpop.xlane.xlu0 %2095 }
 0xb97   :  { %2610 = vxpose.xlu0.c.b16.start.end [1/1] (short) %v2608_v9, 128  ;;  %v1788_v9 = vmul.f32 %v8868_v58, %v1766_v54 }
 0xb98   :  { %v7262_v34 = vpop.eup %7261 }
 0xb99   :  { %v1767_v51 = vmul.f32 %v7262_v34, %v8718_v46  ;;  %v7264_v60 = vpop.eup %7263 }
 0xb9a   :  { %v8860_v7 = vpop.xlane.xlu1 %2101  ;;  %v8863_v41 = vpop.xlane.xlu0 %2107  ;;  %v1764_v53 = vmul.f32 %v7264_v60, %v8716_v56 }
 0xb9b   :  { %v1789_v12 = vmul.f32 %v8868_v58, %v1767_v51 }
 0xb9c   :  { %v7266_v37 = vpop.eup %7265  ;;  %v1786_v51 = vmul.f32 %v8868_v58, %v1764_v53 }
 0xb9d   :  { %v1798_v1 = vpack.c.bf16 %v1789_v12, %v1788_v9  ;;  %v1765_v28 = vmul.f32 %v7266_v37, %v8726_v62  ;;  %v7268_v11 = vpop.eup %7267 }
 0xb9e   :  { %v8873_v21 = vpop.xlane.xlu0 %2103  ;;  %v2114_v46 = vpop.xlane.xlu1 %2113  ;;  %v1763_v22 = vmul.f32 %v7268_v11, %v8700_v10 }
 0xb9f   :  { %6659 = vmatpush3.bf16.xpose.msra.mxu0 %v1798_v1  ;;  %v1787_v34 = vmul.f32 %v8868_v58, %v1765_v28  ;;  %v7270_v35 = vpop.eup %7269 }
 0xba0   :  { %6660 = vmatprep.subr.bf16.mxu0 %v10934_v38  ;;  %v1762_v56 = vmul.f32 %v7270_v35, %v8690_v44  ;;  %v1785_v12 = vmul.f32 %v8868_v58, %v1763_v22  ;;  %v7272_v37 = vpop.eup %7271 }
 0xba1   :  { %v1797_v62 = vpack.c.bf16 %v1787_v34, %v1786_v51  ;;  %v7274_v28 = vpop.eup %7273  ;;  %v1761_v44 = vmul.f32 %v7272_v37, %v8706_v24 }
 0xba2   :  { %v2116_v54 = vpop.xlane.xlu0 %2115  ;;  %v8880_v50 = vpop.xlane.xlu1 %2109  ;;  %v1784_v27 = vmul.f32 %v8868_v58, %v1762_v56  ;;  %v1760_v35 = vmul.f32 %v7274_v28, %v8698_v13 }
 0xba3   :  { %v7276_v53 = vpop.eup %7275  ;;  %v1783_v34 = vmul.f32 %v8868_v58, %v1761_v44 }
 0xba4   :  { %v1796_v10 = vpack.c.bf16 %v1785_v12, %v1784_v27  ;;  %v7278_v51 = vpop.eup %7277 }
 0xba5   :  { %v1758_v13 = vmul.f32 %v7278_v51, %v8677_v8 }
 0xba6   :  { %v2112_v9 = vpop.xlane.xlu0 %2111 }
 0xba7   :  { %6661 = vmatpush3.bf16.xpose.msra.mxu0 %v1797_v62  ;;  %v1759_v62 = vmul.f32 %v7276_v53, %v8684_v45  ;;  %v1780_v8 = vmul.f32 %v8868_v58, %v1758_v13 }
 0xba8   :  { %6662 = vmatprep.subr.bf16.mxu0 %v10934_v38 }
 0xbaa   :  { %v2122_v60 = vpop.xlane.xlu1 %2121 }
 0xbab   :  { %7279 = vrcp.f32 %v2122_v60  ;;  %v2124_v1 = vpop.xlane.xlu0 %2123 }
 0xbac   :  { %7281 = vrcp.f32 %v2124_v1 }
 0xbad   :  { %7283 = vrcp.f32 %v8835_v25  ;;  %v1782_v25 = vmul.f32 %v8868_v58, %v1760_v35 }
 0xbae   :  { %7285 = vrcp.f32 %v8823_v17  ;;  %v2118_v11 = vpop.xlane.xlu1 %2117 }
 0xbaf   :  { %7287 = vrcp.f32 %v2118_v11  ;;  %v2120_v30 = vpop.xlane.xlu0 %2119  ;;  %6663 = vmatpush3.bf16.xpose.msra.mxu0 %v1796_v10  ;;  %v1795_v24 = vpack.c.bf16 %v1783_v34, %v1782_v25 }
 0xbb0   :  { %7289 = vrcp.f32 %v2120_v30  ;;  %6664 = vmatprep.subr.bf16.mxu0 %v10934_v38 }
 0xbb1   :  { %7291 = vrcp.f32 %v8818_v36  ;;  %v1781_v36 = vmul.f32 %v8868_v58, %v1759_v62 }
 0xbb2   :  { %v1170_v17 = vpop.permute.xlu1 %1169  ;;  %7293 = vrcp.f32 %v2116_v54 }
 0xbb3   :  { %7295 = vrcp.f32 %v8805_v57  ;;  %v1407_v60 = vadd.f32 %v8837_v29, %v1170_v17  ;;  %v1794_v11 = vpack.c.bf16 %v1781_v36, %v1780_v8  ;;  %v8952_v8 = vpop.f32.mrf.mxu0 }
 0xbb4   :  { %7297 = vrcp.f32 %v2114_v46 }
 0xbb5   :  { %7299 = vrcp.f32 %v2112_v9 }
 0xbb6   :  { %7301 = vrcp.f32 %v8880_v50 }
 0xbb7   :  { %v1175_v22 = vpop.permute.xlu0 %1174  ;;  %6665 = vmatpush3.bf16.xpose.msra.mxu0 %v1795_v24  ;;  %7303 = vrcp.f32 %v8863_v41 }
 0xbb8   :  { %v7280_v56 = vpop.eup %7279  ;;  %v1410_v12 = vadd.f32 %v8845_v63, %v1175_v22  ;;  %6666 = vmatprep.subr.bf16.mxu0 %v10934_v38  ;;  %7305 = vrcp.f32 %v8855_v40 }
 0xbb9   :  { %v7282_v37 = vpop.eup %7281  ;;  %v2155_v45 = vmul.f32 %v7280_v56, %v8771_v3  ;;  %7307 = vrcp.f32 %v8873_v21 }
 0xbba   :  { %v7284_v54 = vpop.eup %7283  ;;  %v2225_v1 = vpack.c.bf16 %v1410_v12, %v1407_v60  ;;  %v2156_v57 = vmul.f32 %v7282_v37, %v8773_v15  ;;  %7309 = vrcp.f32 %v8860_v7 }
 0xbbb   :  { %v7286_v27 = vpop.eup %7285  ;;  %v2171_v46 = vmul.f32 %v8868_v58, %v2155_v45  ;;  %v1757_v10 = vmul.f32 %v7284_v54, %v8692_v52  ;;  %7311 = vrcp.f32 %v8853_v59 }
 0xbbc   :  { %v7288_v29 = vpop.eup %7287  ;;  %2227 = vxpose.xlu1.c.b16.start.end [1/1] (short) %v2225_v1, 128  ;;  %v2172_v63 = vmul.f32 %v8868_v58, %v2156_v57  ;;  %v1756_v15 = vmul.f32 %v7286_v27, %v8682_v20  ;;  %7313 = vrcp.f32 %v8849_v47 }
 0xbbd   :  { %v7290_v28 = vpop.eup %7289  ;;  %v2153_v3 = vmul.f32 %v7288_v29, %v8777_v16  ;;  %v1779_v53 = vmul.f32 %v8868_v58, %v1757_v10  ;;  %7315 = vrcp.f32 %v8857_v26 }
 0xbbe   :  { %v2181_v44 = vpack.c.bf16 %v2172_v63, %v2171_v46  ;;  %v2154_v30 = vmul.f32 %v7290_v28, %v8779_v0  ;;  %v7292_v35 = vpop.eup %7291  ;;  %v1778_v0 = vmul.f32 %v8868_v58, %v1756_v15  ;;  %7317 = vrcp.f32 %v8851_v39 }
 0xbbf   :  { %6667 = vmatpush3.bf16.xpose.msra.mxu0 %v1794_v11  ;;  %v2169_v52 = vmul.f32 %v8868_v58, %v2153_v3  ;;  %v7294_v16 = vpop.eup %7293  ;;  %v1755_v51 = vmul.f32 %v7292_v35, %v8673_v5 }
 0xbc0   :  { %6697 = vmatpush3.bf16.xpose.msra.mxu1 %v2181_v44  ;;  %6668 = vmatprep.subr.bf16.mxu0 %v10934_v38  ;;  %v2170_v9 = vmul.f32 %v8868_v58, %v2154_v30  ;;  %v7296_v34 = vpop.eup %7295  ;;  %v1793_v20 = vpack.c.bf16 %v1779_v53, %v1778_v0  ;;  %v2152_v17 = vmul.f32 %v7294_v16, %v8762_v4 }
 0xbc1   :  { %6698 = vmatprep.subr.bf16.mxu1 %v10934_v38  ;;  %v7298_v50 = vpop.eup %7297  ;;  %v1754_v62 = vmul.f32 %v7296_v34, %v8668_v19  ;;  %v1777_v5 = vmul.f32 %v8868_v58, %v1755_v51 }
 0xbc2   :  { %v2180_v25 = vpack.c.bf16 %v2170_v9, %v2169_v52  ;;  %v2151_v24 = vmul.f32 %v7298_v50, %v8754_v42  ;;  %v2168_v41 = vmul.f32 %v8868_v58, %v2152_v17  ;;  %v7300_v22 = vpop.eup %7299 }
 0xbc3   :  { %v1776_v13 = vmul.f32 %v8868_v58, %v1754_v62  ;;  %v7302_v40 = vpop.eup %7301  ;;  %v2150_v42 = vmul.f32 %v7300_v22, %v8766_v49 }
 0xbc4   :  { %v2167_v4 = vmul.f32 %v8868_v58, %v2151_v24  ;;  %v2149_v60 = vmul.f32 %v7302_v40, %v8760_v43  ;;  %v7304_v37 = vpop.eup %7303 }
 0xbc5   :  { %v1792_v56 = vpack.c.bf16 %v1777_v5, %v1776_v13  ;;  %v2166_v12 = vmul.f32 %v8868_v58, %v2150_v42  ;;  %v7306_v21 = vpop.eup %7305  ;;  %v2148_v49 = vmul.f32 %v7304_v37, %v8749_v48  ;;  %v10935_v42 = vld [vmem:[#allocation14_spill] sm:$0xff]  ;;  %v10937_v37 = vld [vmem:[#allocation11_spill] sm:$0xff] }
 0xbc6   :  { %v2179_v19 = vpack.c.bf16 %v2168_v41, %v2167_v4  ;;  %v2165_v36 = vmul.f32 %v8868_v58, %v2149_v60  ;;  %v2147_v7 = vmul.f32 %v7306_v21, %v8738_v32  ;;  %v7308_v54 = vpop.eup %7307  ;;  %v10936_v60 = vld [vmem:[#allocation13_spill] sm:$0xff] }
 0xbc7   :  { %6669 = vmatpush3.bf16.xpose.msra.mxu0 %v1793_v20  ;;  %v2164_v43 = vmul.f32 %v8868_v58, %v2148_v49  ;;  %v7310_v57 = vpop.eup %7309  ;;  %v2146_v59 = vmul.f32 %v7308_v54, %v8756_v55  ;;  %v8955_v55 = vpop.f32.mrf.mxu0 }
 0xbc8   :  { %6699 = vmatpush3.bf16.xpose.msra.mxu1 %v2180_v25  ;;  %6670 = vmatprep.subr.bf16.mxu0 %v10934_v38  ;;  %v2178_v45 = vpack.c.bf16 %v2166_v12, %v2165_v36  ;;  %v2163_v1 = vmul.f32 %v8868_v58, %v2147_v7  ;;  %v2145_v47 = vmul.f32 %v7310_v57, %v8747_v18  ;;  %v7312_v48 = vpop.eup %7311 }
 0xbc9   :  { %6700 = vmatprep.subr.bf16.mxu1 %v10934_v38  ;;  %v2162_v32 = vmul.f32 %v8868_v58, %v2146_v59  ;;  %v7314_v63 = vpop.eup %7313  ;;  %v2144_v28 = vmul.f32 %v7312_v48, %v8733_v14  ;;  %v1438_v10 = vpop.f32.mrf.mxu0 }
 0xbca   :  { %v2177_v27 = vpack.c.bf16 %v2164_v43, %v2163_v1  ;;  %v2161_v26 = vmul.f32 %v8868_v58, %v2145_v47  ;;  %v2143_v11 = vmul.f32 %v7314_v63, %v8724_v61  ;;  %v7316_v3 = vpop.eup %7315 }
 0xbcb   :  { %v2160_v44 = vmul.f32 %v8868_v58, %v2144_v28  ;;  %v7318_v53 = vpop.eup %7317  ;;  %v8962_v52 = vpop.f32.mrf.mxu0  ;;  %v2142_v14 = vmul.f32 %v7316_v3, %v8740_v31 }
 0xbcc   :  { %v2176_v39 = vpack.c.bf16 %v2162_v32, %v2161_v26  ;;  %v2159_v35 = vmul.f32 %v8868_v58, %v2143_v11  ;;  %v2141_v61 = vmul.f32 %v7318_v53, %v8731_v6 }
 0xbcd   :  { %v1441_v50 = vpop.f32.mrf.mxu0  ;;  %v2158_v20 = vmul.f32 %v8868_v58, %v2142_v14 }
 0xbce   :  { %v2175_v9 = vpack.c.bf16 %v2160_v44, %v2159_v35  ;;  %v2157_v31 = vmul.f32 %v8868_v58, %v2141_v61 }
 0xbcf   :  { %6671 = vmatpush3.bf16.xpose.msra.mxu0 %v1792_v56 }
 0xbd0   :  { %6701 = vmatpush3.bf16.xpose.msra.mxu1 %v2179_v19  ;;  %6672 = vmatprep.subr.bf16.mxu0 %v10934_v38  ;;  %v2174_v4 = vpack.c.bf16 %v2158_v20, %v2157_v31 }
 0xbd1   :  { %6702 = vmatprep.subr.bf16.mxu1 %v10934_v38 }
 0xbd8   :  { %6703 = vmatpush3.bf16.xpose.msra.mxu1 %v2178_v45  ;;  %v10938_v45 = vld [vmem:[#allocation12_spill] sm:$0xff] }
 0xbd9   :  { %6704 = vmatprep.subr.bf16.mxu1 %v10934_v38 }
 0xbe0   :  { %6705 = vmatpush3.bf16.xpose.msra.mxu1 %v2177_v27 }
 0xbe1   :  { %6706 = vmatprep.subr.bf16.mxu1 %v10934_v38 }
 0xbe3   :  { %v1705_v46 = vpop.xlane.xlu1 %1704 }
 0xbe4   :  { %7319 = vrcp.f32 %v1705_v46  ;;  %v1707_v29 = vpop.xlane.xlu0 %1706 }
 0xbe5   :  { %7321 = vrcp.f32 %v1707_v29 }
 0xbe7   :  { %v1160_v18 = vpop.permute.xlu1 %1159 }
 0xbe8   :  { %6707 = vmatpush3.bf16.xpose.msra.mxu1 %v2176_v39  ;;  %v1399_v49 = vadd.f32 %v10938_v45, %v1160_v18  ;;  %v7717_v45 = vld [vmem:[%s10895_s2 + $0x60] sm:$0xff] }
 0xbe9   :  { %6708 = vmatprep.subr.bf16.mxu1 %v10934_v38 }
 0xbeb   :  { %v1130_v30 = vpop.permute.xlu1 %1129 }
 0xbec   :  { %v1165_v15 = vpop.permute.xlu0 %1164 }
 0xbef   :  { %v1135_v16 = vpop.permute.xlu1 %1134 }
 0xbf0   :  { %6709 = vmatpush3.bf16.xpose.msra.mxu1 %v2175_v9  ;;  %v1210_v34 = vpop.permute.xlu0 %1209  ;;  %v1378_v36 = vadd.f32 %v10937_v37, %v1135_v16  ;;  %v7716_v37 = vld [vmem:[%s10895_s2 + $0x78] sm:$0xff] }
 0xbf1   :  { %v7320_v0 = vpop.eup %7319  ;;  %6710 = vmatprep.subr.bf16.mxu1 %v10934_v38  ;;  %v1439_v24 = vadd.f32 %v1438_v10, %v1210_v34 }
 0xbf2   :  { %v7322_v51 = vpop.eup %7321  ;;  %v1752_v25 = vmul.f32 %v7320_v0, %v8793_v2 }
 0xbf3   :  { %v1215_v17 = vpop.permute.xlu1 %1214  ;;  %v1753_v62 = vmul.f32 %v7322_v51, %v8795_v33  ;;  %v1402_v33 = vadd.f32 %v10936_v60, %v1165_v15 }
 0xbf4   :  { %v1442_v5 = vadd.f32 %v1441_v50, %v1215_v17  ;;  %v1774_v41 = vmul.f32 %v8868_v58, %v1752_v25  ;;  %v1180_v22 = vpop.permute.xlu0 %1179 }
 0xbf5   :  { %v1775_v6 = vmul.f32 %v8868_v58, %v1753_v62  ;;  %v1415_v19 = vadd.f32 %v8830_v23, %v1180_v22  ;;  %v10939_v58 = vld [vmem:[#allocation10_spill] sm:$0xff]  ;;  %v2173_v43 = vpack.c.bf16 %v1402_v33, %v1399_v49 }
 0xbf6   :  { %v2609_v13 = vpack.c.bf16 %v1442_v5, %v1439_v24  ;;  %v1375_v7 = vadd.f32 %v10939_v58, %v1130_v30 }
 0xbf7   :  { %v1185_v40 = vpop.permute.xlu1 %1184  ;;  %v1791_v56 = vpack.c.bf16 %v1775_v6, %v1774_v41 }
 0xbf8   :  { %v1418_v2 = vadd.f32 %v10935_v42, %v1185_v40  ;;  %6711 = vmatpush3.bf16.xpose.msra.mxu1 %v2174_v4  ;;  %v1790_v1 = vpack.c.bf16 %v1378_v36, %v1375_v7 }
 0xbf9   :  { %6673 = vmatpush3.bf16.xpose.msra.mxu0 %v1791_v56  ;;  %6754 = vmatprep.subr.bf16.mxu1 %v2609_v13  ;;  %v2618_v12 = vpop.trf.xlu0  ;;  %v7715_v56 = vld [vmem:[%s10895_s2 + $0x70] sm:$0xff] }
 0xbfa   :  { %v2226_v21 = vpack.c.bf16 %v1418_v2, %v1415_v19 }
 0xbfc   :  { %6716 = vmatprep.subr.bf16.mxu0 %v2226_v21 }
 0xbfd   :  { %v2619_v54 = vpop.trf.xlu0 }
 0xbff   :  { %6713 = vmatmul.mubr.bf16.vlgmr.msra.gmra.mxu1 %v2173_v43 }
 0xc00   :  { %6675 = vmatmul.mubr.bf16.vlgmr.msra.gmra.mxu0 %v1790_v1  ;;  %6755 = vmatpush3.bf16.msra.mxu1 %v2609_v13 }
 0xc01   :  { %6717 = vmatpush3.bf16.msra.mxu0 %v2226_v21  ;;  %6756 = vmatprep.mubr.msk.bf16.mxu1 %vm125_vm0, %v2618_v12  ;;  %v2620_v23 = vpop.trf.xlu0 }
 0xc02   :  { %6734 = vmatprep.subr.bf16.mxu0 %v10934_v38  ;;  %6772 = vmatprep.subr.bf16.mxu1 %v10934_v38 }
 0xc05   :  { %v2621_v57 = vpop.trf.xlu0 }
 0xc07   :  { %6757 = vmatmul.mubr.msk.bf16.vlgmr.msra.gmra.mxu1 %vm125_vm0, %v2619_v54 }
 0xc08   :  { %6760 = vmatprep.mubr.msk.bf16.mxu1 %vm125_vm0, %v2620_v23 }
 0xc09   :  { %v2622_v27 = vpop.trf.xlu0 }
 0xc0d   :  { %v2623_v59 = vpop.trf.xlu0 }
 0xc0f   :  { %6761 = vmatmul.mubr.msk.bf16.gmra.mxu1 %vm125_vm0, %v2621_v57 }
 0xc10   :  { %6764 = vmatprep.mubr.msk.bf16.mxu1 %vm125_vm0, %v2622_v27 }
 0xc11   :  { %v2624_v47 = vpop.trf.xlu0 }
 0xc15   :  { %v2625_v32 = vpop.trf.xlu0 }
 0xc17   :  { %6765 = vmatmul.mubr.msk.bf16.gmra.mxu1 %vm125_vm0, %v2623_v59 }
 0xc18   :  { %6768 = vmatprep.mubr.msk.bf16.mxu1 %vm125_vm0, %v2624_v47 }
 0xc1e   :  { %v2235_v48 = vpop.trf.xlu1 }
 0xc1f   :  { %6718 = vmatprep.mubr.msk.bf16.mxu0 %vm125_vm0, %v2235_v48  ;;  %6769 = vmatmul.mubr.msk.bf16.gmra.mxu1 %vm125_vm0, %v2625_v32 }
 0xc20   :  { %6788 = vmatprep.mubr.msk.bf16.mxu1 %vm7791_vm5, %v10934_v38 }
 0xc22   :  { %v2236_v46 = vpop.trf.xlu1 }
 0xc23   :  { %6719 = vmatmul.mubr.msk.bf16.vlgmr.msra.gmra.mxu0 %vm125_vm0, %v2236_v46 }
 0xc26   :  { %v2237_v29 = vpop.trf.xlu1 }
 0xc27   :  { %6722 = vmatprep.mubr.msk.bf16.mxu0 %vm125_vm0, %v2237_v29 }
 0xc2a   :  { %v2238_v26 = vpop.trf.xlu1 }
 0xc2b   :  { %6723 = vmatmul.mubr.msk.bf16.gmra.mxu0 %vm125_vm0, %v2238_v26 }
 0xc2e   :  { %v2239_v63 = vpop.trf.xlu1 }
 0xc2f   :  { %6726 = vmatprep.mubr.msk.bf16.mxu0 %vm125_vm0, %v2239_v63 }
 0xc32   :  { %v2240_v39 = vpop.trf.xlu1 }
 0xc33   :  { %6727 = vmatmul.mubr.msk.bf16.gmra.mxu0 %vm125_vm0, %v2240_v39 }
 0xc36   :  { %v2241_v28 = vpop.trf.xlu1 }
 0xc37   :  { %6730 = vmatprep.mubr.msk.bf16.mxu0 %vm125_vm0, %v2241_v28 }
 0xc3a   :  { %v2242_v18 = vpop.trf.xlu1 }
 0xc3b   :  { %6731 = vmatmul.mubr.msk.bf16.gmra.mxu0 %vm125_vm0, %v2242_v18 }
 0xc3c   :  { %6750 = vmatprep.mubr.msk.bf16.mxu0 %vm7791_vm5, %v10934_v38 }
 0xcbf   :  { %v2216_v11 = vpop.f32.mrf.mxu1 }
 0xcc0   :  { %v1833_v10 = vpop.f32.mrf.mxu0  ;;  %v2223_v15 = vmax.f32 %v2216_v11, 0.0 }
 0xcc1   :  { %v6714_v44 = vpop.f32.mrf.mxu1  ;;  %v1840_v9 = vmax.f32 %v1833_v10, 0.0 }
 0xcc2   :  { %v6676_v3 = vpop.f32.mrf.mxu0 }
 0xcc3   :  { %v2219_v30 = vpop.f32.mrf.mxu1  ;;  %v7718_v3 = vld [vmem:[%s10895_s2 + $0x50] sm:$0xff] }
 0xcc4   :  { %v2224_v35 = vmax.f32 %v2219_v30, 0.0  ;;  %v1836_v53 = vpop.f32.mrf.mxu0 }
 0xcc5   :  { %v1841_v14 = vmax.f32 %v1836_v53, 0.0  ;;  %v6715_v16 = vpop.f32.mrf.mxu1 }
 0xcc6   :  { %v9001_v34 = vpack.c.bf16 %v2224_v35, %v2223_v15  ;;  %v6677_v61 = vpop.f32.mrf.mxu0  ;;  %v7719_v35 = vld [vmem:[%s10895_s2 + $0x68] sm:$0xff] }
 0xcc7   :  { %v9003_v0 = vpack.c.bf16 %v1841_v14, %v1840_v9  ;;  %v9005_v50 = vpop.f32.mrf.mxu1 }
 0xcc9   :  { %v9007_v51 = vpop.f32.mrf.mxu1 }
 0xccb   :  { %v9009_v20 = vpop.f32.mrf.mxu1 }
 0xccd   :  { %v9011_v25 = vpop.f32.mrf.mxu1 }
 0xccf   :  { %v9013_v17 = vpop.f32.mrf.mxu1 }
 0xcd1   :  { %v9015_v62 = vpop.f32.mrf.mxu1 }
 0xcd3   :  { %v9017_v24 = vpop.f32.mrf.mxu1 }
 0xcd5   :  { %v9019_v5 = vpop.f32.mrf.mxu1 }
 0xcd7   :  { %v6766_v31 = vpop.f32.mrf.mxu1 }
 0xcd8   :  { %v2757_v39 = vmul.f32 0.25, %v6766_v31 }
 0xcd9   :  { %v2716_v41 = vpop.f32.mrf.mxu1 }
 0xcda   :  { %v9066_v30 = vadd.f32 %v7718_v3, %v2757_v39  ;;  %v2755_v14 = vmul.f32 0.25, %v2716_v41  ;;  %v7721_v41 = vld [vmem:[%s10895_s2 + $0x58] sm:$0xff]  ;;  %v2749_v39 = vmul.f32 0.25, %v9005_v50  ;;  %v7727_v50 = vld [vmem:[%s10895_s2 + $0x28] sm:$0xff] }
 0xcdb   :  { %v6767_v22 = vpop.f32.mrf.mxu1 }
 0xcdc   :  { %v2758_v61 = vmul.f32 0.25, %v6767_v22 }
 0xcdd   :  { %v9021_v6 = vpop.f32.mrf.mxu1 }
 0xcdf   :  { %v6770_v13 = vpop.f32.mrf.mxu1 }
 0xce0   :  { %v2761_v4 = vmul.f32 0.25, %v6770_v13  ;;  %v7720_v13 = vld [vmem:[%s10895_s2 + $0x40] sm:$0xff] }
 0xce1   :  { %v2732_v40 = vpop.f32.mrf.mxu1 }
 0xce2   :  { %v9026_v19 = vadd.f32 %v7715_v56, %v2761_v4  ;;  %v2759_v60 = vmul.f32 0.25, %v2732_v40  ;;  %v9084_v4 = vadd.f32 %v7720_v13, %v2755_v14 }
 0xce3   :  { %v9028_v42 = vpop.f32.mrf.mxu0  ;;  %v6771_v2 = vpop.f32.mrf.mxu1 }
 0xce4   :  { %v2762_v33 = vmul.f32 0.25, %v6771_v2  ;;  %2807 = vmax.xlane.f32.xlu0 %v9026_v19  ;;  %v9043_v49 = vadd.f32 %v7717_v45, %v2759_v60  ;;  %v2753_v2 = vmul.f32 0.25, %v9013_v17  ;;  %v7723_v17 = vld [vmem:[%s10895_s2 + $0x48] sm:$0xff] }
 0xce5   :  { %v9031_v12 = vpop.f32.mrf.mxu0  ;;  %v2735_v26 = vpop.f32.mrf.mxu1 }
 0xce6   :  { %v9036_v36 = vadd.f32 %v7716_v37, %v2762_v33  ;;  %v2760_v11 = vmul.f32 0.25, %v2735_v26  ;;  %v2756_v33 = vmul.f32 0.25, %v9021_v6 }
 0xce7   :  { %v9038_v21 = vpop.f32.mrf.mxu0 }
 0xce8   :  { %2809 = vmax.xlane.f32.xlu1 %v9036_v36  ;;  %v9072_v53 = vadd.f32 %v7719_v35, %v2760_v11 }
 0xce9   :  { %v9046_v58 = vpop.f32.mrf.mxu0 }
 0xceb   :  { %v6724_v7 = vpop.f32.mrf.mxu0 }
 0xcec   :  { %2803 = vmax.xlane.f32.xlu1 %v9043_v49 }
 0xced   :  { %v9049_v43 = vpop.f32.mrf.mxu0 }
 0xcef   :  { %v9051_v54 = vpop.f32.mrf.mxu0 }
 0xcf1   :  { %v9053_v1 = vpop.f32.mrf.mxu0 }
 0xcf3   :  { %v6728_v23 = vpop.f32.mrf.mxu0 }
 0xcf4   :  { %v2374_v15 = vmul.f32 0.25, %v6728_v23 }
 0xcf5   :  { %v2333_v57 = vpop.f32.mrf.mxu0 }
 0xcf6   :  { %v9075_v16 = vadd.f32 %v7718_v3, %v2374_v15  ;;  %v2372_v40 = vmul.f32 0.25, %v2333_v57  ;;  %v2370_v57 = vmul.f32 0.25, %v6724_v7 }
 0xcf7   :  { %v6729_v27 = vpop.f32.mrf.mxu0 }
 0xcf8   :  { %v2375_v22 = vmul.f32 0.25, %v6729_v27  ;;  %v9094_v60 = vadd.f32 %v7720_v13, %v2372_v40  ;;  %v9110_v27 = vadd.f32 %v7723_v17, %v2756_v33 }
 0xcf9   :  { %v2336_v59 = vpop.f32.mrf.mxu0 }
 0xcfa   :  { %v2373_v6 = vmul.f32 0.25, %v2336_v59  ;;  %v2368_v59 = vmul.f32 0.25, %v9049_v43  ;;  %v2752_v43 = vmul.f32 0.25, %v9019_v5  ;;  %v2369_v5 = vmul.f32 0.25, %v9053_v1 }
 0xcfb   :  { %v6732_v47 = vpop.f32.mrf.mxu0  ;;  %v2364_v1 = vmul.f32 0.25, %v9031_v12  ;;  %v7730_v12 = vld [vmem:[%s10895_s2 + $0x8] sm:$0xff] }
 0xcfc   :  { %v2378_v32 = vmul.f32 0.25, %v6732_v47  ;;  %v2751_v47 = vmul.f32 0.25, %v9015_v62  ;;  %v9118_v7 = vadd.f32 %v7723_v17, %v2373_v6  ;;  %v7725_v62 = vld [vmem:[%s10895_s2 + $0x38] sm:$0xff]  ;;  %v9153_v15 = vadd.f32 %v7727_v50, %v2752_v43 }
 0xcfd   :  { %v2349_v48 = vpop.f32.mrf.mxu0  ;;  %v9162_v14 = vadd.f32 %v7727_v50, %v2369_v5 }
 0xcfe   :  { %v9055_v46 = vadd.f32 %v7715_v56, %v2378_v32  ;;  %v2376_v29 = vmul.f32 0.25, %v2349_v48  ;;  %v9090_v56 = vadd.f32 %v7721_v41, %v2758_v61  ;;  %v2754_v48 = vmul.f32 0.25, %v9017_v24  ;;  %v7728_v61 = vld [vmem:[%s10895_s2] sm:$0xff] }
 0xcff   :  { %v6733_v63 = vpop.f32.mrf.mxu0  ;;  %v2371_v24 = vmul.f32 0.25, %v9051_v54  ;;  %v2366_v54 = vmul.f32 0.25, %v9028_v42  ;;  %v2750_v42 = vmul.f32 0.25, %v9009_v20  ;;  %v2367_v20 = vmul.f32 0.25, %v9038_v21 }
 0xd00   :  { %v9057_v28 = vadd.f32 %v7717_v45, %v2376_v29  ;;  %v2379_v18 = vmul.f32 0.25, %v6733_v63  ;;  %2424 = vmax.xlane.f32.xlu0 %v9055_v46  ;;  %v7722_v45 = vld [vmem:[%s10895_s2 + $0x30] sm:$0xff]  ;;  %v7724_v29 = vld [vmem:[%s10895_s2 + $0x20] sm:$0xff]  ;;  %v9131_v63 = vadd.f32 %v7725_v62, %v2754_v48  ;;  %v2365_v21 = vmul.f32 0.25, %v9046_v58 }
 0xd01   :  { %v2352_v44 = vpop.f32.mrf.mxu0  ;;  %v9104_v23 = vadd.f32 %v7722_v45, %v2753_v2  ;;  %v9114_v32 = vadd.f32 %v7722_v45, %v2370_v57  ;;  %v9124_v26 = vadd.f32 %v7724_v29, %v2751_v47  ;;  %v9140_v11 = vadd.f32 %v7725_v62, %v2371_v24 }
 0xd02   :  { %v9060_v10 = vadd.f32 %v7716_v37, %v2379_v18  ;;  %2420 = vmax.xlane.f32.xlu1 %v9057_v28  ;;  %v2377_v9 = vmul.f32 0.25, %v2352_v44  ;;  %v9098_v37 = vadd.f32 %v7721_v41, %v2375_v22  ;;  %v9136_v18 = vadd.f32 %v7724_v29, %v2368_v59  ;;  %v7726_v44 = vld [vmem:[%s10895_s2 + $0x10] sm:$0xff] }
 0xd03   :  { %v9146_v3 = vadd.f32 %v7726_v44, %v2749_v39  ;;  %v9179_v41 = vadd.f32 %v7728_v61, %v2364_v1  ;;  %v2748_v22 = vmul.f32 0.25, %v9011_v25  ;;  %v9194_v45 = vadd.f32 %v7730_v12, %v2365_v21 }
 0xd04   :  { %2426 = vmax.xlane.f32.xlu0 %v9060_v10  ;;  %v9078_v31 = vadd.f32 %v7719_v35, %v2377_v9  ;;  %v2747_v35 = vmul.f32 0.25, %v9007_v51  ;;  %v9158_v9 = vadd.f32 %v7726_v44, %v2366_v54  ;;  %v7729_v51 = vld [vmem:[%s10895_s2 + $0x18] sm:$0xff] }
 0xd05   :  { %v9175_v40 = vadd.f32 %v7729_v51, %v2750_v42  ;;  %v9183_v2 = vadd.f32 %v7729_v51, %v2367_v20  ;;  %v9190_v33 = vadd.f32 %v7730_v12, %v2748_v22 }
 0xd06   :  { %2799 = vmax.xlane.f32.xlu1 %v9066_v30  ;;  %v9168_v13 = vadd.f32 %v7728_v61, %v2747_v35 }
 0xd08   :  { %2805 = vmax.xlane.f32.xlu0 %v9072_v53 }
 0xd0a   :  { %2416 = vmax.xlane.f32.xlu1 %v9075_v16 }
 0xd0c   :  { %2422 = vmax.xlane.f32.xlu0 %v9078_v31 }
 0xd0e   :  { %2795 = vmax.xlane.f32.xlu1 %v9084_v4 }
 0xd10   :  { %2801 = vmax.xlane.f32.xlu0 %v9090_v56 }
 0xd12   :  { %2412 = vmax.xlane.f32.xlu1 %v9094_v60 }
 0xd14   :  { %2418 = vmax.xlane.f32.xlu0 %v9098_v37 }
 0xd16   :  { %2791 = vmax.xlane.f32.xlu1 %v9104_v23 }
 0xd18   :  { %2797 = vmax.xlane.f32.xlu0 %v9110_v27 }
 0xd1a   :  { %2408 = vmax.xlane.f32.xlu1 %v9114_v32 }
 0xd1c   :  { %2414 = vmax.xlane.f32.xlu0 %v9118_v7 }
 0xd1e   :  { %2787 = vmax.xlane.f32.xlu1 %v9124_v26 }
 0xd20   :  { %2793 = vmax.xlane.f32.xlu0 %v9131_v63 }
 0xd22   :  { %2404 = vmax.xlane.f32.xlu1 %v9136_v18 }
 0xd24   :  { %2410 = vmax.xlane.f32.xlu0 %v9140_v11 }
 0xd26   :  { %2783 = vmax.xlane.f32.xlu1 %v9146_v3 }
 0xd28   :  { %2789 = vmax.xlane.f32.xlu0 %v9153_v15 }
 0xd2a   :  { %2400 = vmax.xlane.f32.xlu1 %v9158_v9 }
 0xd2c   :  { %2406 = vmax.xlane.f32.xlu0 %v9162_v14 }
 0xd2e   :  { %2779 = vmax.xlane.f32.xlu1 %v9168_v13 }
 0xd30   :  { %2785 = vmax.xlane.f32.xlu0 %v9175_v40 }
 0xd32   :  { %2396 = vmax.xlane.f32.xlu1 %v9179_v41 }
 0xd34   :  { %2402 = vmax.xlane.f32.xlu0 %v9183_v2 }
 0xd38   :  { %2781 = vmax.xlane.f32.xlu0 %v9190_v33 }
 0xd3c   :  { %2398 = vmax.xlane.f32.xlu0 %v9194_v45 }
 0xd6d   :  { %v2808_v57 = vpop.xlane.xlu0 %2807 }
 0xd6e   :  { %v2825_v62 = vsub.f32 %v9026_v19, %v2808_v57 }
 0xd70   :  { %v2855_v50 = vmul.f32 1.442695, %v2825_v62 }
 0xd71   :  { %v2810_v25 = vpop.xlane.xlu1 %2809 }
 0xd72   :  { %v2826_v58 = vsub.f32 %v9036_v36, %v2810_v25 }
 0xd74   :  { %v2857_v35 = vmul.f32 1.442695, %v2826_v58 }
 0xd75   :  { %v2804_v17 = vpop.xlane.xlu1 %2803 }
 0xd76   :  { %v2823_v5 = vsub.f32 %v9043_v49, %v2804_v17 }
 0xd89   :  { %v2425_v6 = vpop.xlane.xlu0 %2424 }
 0xd8a   :  { %v2442_v47 = vsub.f32 %v9055_v46, %v2425_v6 }
 0xd8b   :  { %v2421_v48 = vpop.xlane.xlu1 %2420 }
 0xd8c   :  { %v2472_v29 = vmul.f32 1.442695, %v2442_v47  ;;  %v2440_v59 = vsub.f32 %v9057_v28, %v2421_v48  ;;  %v2851_v28 = vmul.f32 1.442695, %v2823_v5 }
 0xd8d   :  { %v2427_v24 = vpop.xlane.xlu0 %2426 }
 0xd8e   :  { %7323 = vpow2.f32 %v2472_v29  ;;  %v2468_v39 = vmul.f32 1.442695, %v2440_v59  ;;  %v2443_v43 = vsub.f32 %v9060_v10, %v2427_v24 }
 0xd8f   :  { %v2800_v44 = vpop.xlane.xlu1 %2799 }
 0xd90   :  { %v2474_v54 = vmul.f32 1.442695, %v2443_v43  ;;  %7325 = vpow2.f32 %v2468_v39  ;;  %v2821_v19 = vsub.f32 %v9066_v30, %v2800_v44 }
 0xd91   :  { %v2806_v46 = vpop.xlane.xlu0 %2805 }
 0xd92   :  { %7327 = vpow2.f32 %v2474_v54  ;;  %v2824_v36 = vsub.f32 %v9072_v53, %v2806_v46  ;;  %v2847_v20 = vmul.f32 1.442695, %v2821_v19 }
 0xd93   :  { %v2417_v42 = vpop.xlane.xlu1 %2416  ;;  %7329 = vpow2.f32 %v2855_v50 }
 0xd94   :  { %7331 = vpow2.f32 %v2857_v35  ;;  %v2438_v49 = vsub.f32 %v9075_v16, %v2417_v42  ;;  %v2853_v12 = vmul.f32 1.442695, %v2824_v36 }
 0xd95   :  { %v2423_v61 = vpop.xlane.xlu0 %2422  ;;  %7333 = vpow2.f32 %v2851_v28 }
 0xd96   :  { %v2441_v10 = vsub.f32 %v9078_v31, %v2423_v61  ;;  %v2464_v53 = vmul.f32 1.442695, %v2438_v49 }
 0xd97   :  { %v2796_v1 = vpop.xlane.xlu1 %2795 }
 0xd98   :  { %v2470_v51 = vmul.f32 1.442695, %v2441_v10  ;;  %v2819_v31 = vsub.f32 %v9084_v4, %v2796_v1 }
 0xd99   :  { %v2802_v22 = vpop.xlane.xlu0 %2801 }
 0xd9a   :  { %7335 = vpow2.f32 %v2470_v51  ;;  %v2822_v21 = vsub.f32 %v9090_v56, %v2802_v22  ;;  %v2843_v56 = vmul.f32 1.442695, %v2819_v31 }
 0xd9b   :  { %v9208_v25 = vpop.eup %7323  ;;  %v2413_v30 = vpop.xlane.xlu1 %2412  ;;  %7337 = vpow2.f32 %v2847_v20 }
 0xd9c   :  { %2504 = vadd.xlane.f32.xlu1 %v9208_v25  ;;  %7339 = vpow2.f32 %v2853_v12  ;;  %v2849_v6 = vmul.f32 1.442695, %v2822_v21  ;;  %v2436_v29 = vsub.f32 %v9094_v60, %v2413_v30 }
 0xd9d   :  { %v2419_v57 = vpop.xlane.xlu0 %2418  ;;  %v9212_v17 = vpop.eup %7325  ;;  %7341 = vpow2.f32 %v2464_v53 }
 0xd9e   :  { %v2439_v16 = vsub.f32 %v9098_v37, %v2419_v57  ;;  %7343 = vpow2.f32 %v2849_v6  ;;  %v2460_v39 = vmul.f32 1.442695, %v2436_v29 }
 0xd9f   :  { %v9215_v47 = vpop.eup %7327  ;;  %v2792_v48 = vpop.xlane.xlu1 %2791  ;;  %7345 = vpow2.f32 %v2843_v56 }
 0xda0   :  { %2500 = vadd.xlane.f32.xlu1 %v9212_v17  ;;  %2506 = vadd.xlane.f32.xlu0 %v9215_v47  ;;  %v9220_v4 = vpop.eup %7329  ;;  %v2466_v62 = vmul.f32 1.442695, %v2439_v16  ;;  %v2817_v43 = vsub.f32 %v9104_v23, %v2792_v48 }
 0xda1   :  { %v2798_v59 = vpop.xlane.xlu0 %2797  ;;  %v9223_v58 = vpop.eup %7331 }
 0xda2   :  { %v2820_v24 = vsub.f32 %v9110_v27, %v2798_v59  ;;  %v9228_v60 = vpop.eup %7333  ;;  %7347 = vpow2.f32 %v2466_v62  ;;  %v2839_v46 = vmul.f32 1.442695, %v2817_v43 }
 0xda3   :  { %v2409_v37 = vpop.xlane.xlu1 %2408  ;;  %7349 = vpow2.f32 %v2460_v39 }
 0xda4   :  { %2887 = vadd.xlane.f32.xlu1 %v9220_v4  ;;  %2889 = vadd.xlane.f32.xlu0 %v9223_v58  ;;  %v2845_v54 = vmul.f32 1.442695, %v2820_v24  ;;  %v2434_v35 = vsub.f32 %v9114_v32, %v2409_v37 }
 0xda5   :  { %v2415_v44 = vpop.xlane.xlu0 %2414 }
 0xda6   :  { %v2437_v50 = vsub.f32 %v9118_v7, %v2415_v44  ;;  %7351 = vpow2.f32 %v2845_v54  ;;  %v2456_v36 = vmul.f32 1.442695, %v2434_v35 }
 0xda7   :  { %v9231_v5 = vpop.eup %7335  ;;  %v2788_v27 = vpop.xlane.xlu1 %2787  ;;  %7353 = vpow2.f32 %v2839_v46 }
 0xda8   :  { %2883 = vadd.xlane.f32.xlu1 %v9228_v60  ;;  %2502 = vadd.xlane.f32.xlu0 %v9231_v5  ;;  %v9236_v23 = vpop.eup %7337  ;;  %v2462_v28 = vmul.f32 1.442695, %v2437_v50  ;;  %v2815_v10 = vsub.f32 %v9124_v26, %v2788_v27 }
 0xda9   :  { %v2794_v42 = vpop.xlane.xlu0 %2793  ;;  %v9239_v61 = vpop.eup %7339 }
 0xdaa   :  { %v2818_v19 = vsub.f32 %v9131_v63, %v2794_v42  ;;  %v9244_v32 = vpop.eup %7341  ;;  %7355 = vpow2.f32 %v2462_v28  ;;  %v2835_v22 = vmul.f32 1.442695, %v2815_v10 }
 0xdab   :  { %v2405_v7 = vpop.xlane.xlu1 %2404  ;;  %v9247_v49 = vpop.eup %7343  ;;  %7357 = vpow2.f32 %v2456_v36 }
 0xdac   :  { %2879 = vadd.xlane.f32.xlu1 %v9236_v23  ;;  %2885 = vadd.xlane.f32.xlu0 %v9239_v61  ;;  %v2841_v51 = vmul.f32 1.442695, %v2818_v19  ;;  %v2432_v12 = vsub.f32 %v9136_v18, %v2405_v7  ;;  %v9252_v26 = vpop.eup %7345 }
 0xdad   :  { %v2411_v1 = vpop.xlane.xlu0 %2410 }
 0xdae   :  { %v2435_v20 = vsub.f32 %v9140_v11, %v2411_v1  ;;  %7359 = vpow2.f32 %v2841_v51  ;;  %v2452_v57 = vmul.f32 1.442695, %v2432_v12 }
 0xdaf   :  { %v2784_v63 = vpop.xlane.xlu1 %2783  ;;  %v9255_v31 = vpop.eup %7347  ;;  %7361 = vpow2.f32 %v2835_v22 }
 0xdb0   :  { %2496 = vadd.xlane.f32.xlu1 %v9244_v32  ;;  %2881 = vadd.xlane.f32.xlu0 %v9247_v49  ;;  %v2458_v30 = vmul.f32 1.442695, %v2435_v20  ;;  %v2813_v6 = vsub.f32 %v9146_v3, %v2784_v63  ;;  %v9260_v18 = vpop.eup %7349 }
 0xdb1   :  { %v2790_v21 = vpop.xlane.xlu0 %2789 }
 0xdb2   :  { %v2816_v53 = vsub.f32 %v9153_v15, %v2790_v21  ;;  %7363 = vpow2.f32 %v2458_v30  ;;  %v2831_v59 = vmul.f32 1.442695, %v2813_v6  ;;  %v1105_v6 = vld [vmem:[%s10888_s13 + $0x130] sm:$0xff] }
 0xdb3   :  { %v2401_v11 = vpop.xlane.xlu1 %2400  ;;  %v9263_v29 = vpop.eup %7351  ;;  %7365 = vpow2.f32 %v2452_v57 }
 0xdb4   :  { %2875 = vadd.xlane.f32.xlu1 %v9252_v26  ;;  %2498 = vadd.xlane.f32.xlu0 %v9255_v31  ;;  %v2837_v48 = vmul.f32 1.442695, %v2816_v53  ;;  %v2430_v62 = vsub.f32 %v9158_v9, %v2401_v11  ;;  %v9268_v3 = vpop.eup %7353 }
 0xdb5   :  { %v2407_v16 = vpop.xlane.xlu0 %2406 }
 0xdb6   :  { %v2433_v56 = vsub.f32 %v9162_v14, %v2407_v16  ;;  %7367 = vpow2.f32 %v2837_v48  ;;  %v2448_v14 = vmul.f32 1.442695, %v2430_v62  ;;  %v1099_v16 = vld [vmem:[%s10888_s13 + $0x100] sm:$0xff]  ;;  %v1100_v48 = vld [vmem:[%s10888_s13 + $0x108] sm:$0xff] }
 0xdb7   :  { %v2780_v15 = vpop.xlane.xlu1 %2779  ;;  %v9271_v43 = vpop.eup %7355  ;;  %7369 = vpow2.f32 %v2831_v59  ;;  %v3001_v59 = vld [vmem:[%s10888_s13 + $0x150] sm:$0xff]  ;;  %v3000_v62 = vld [vmem:[%s10888_s13 + $0x148] sm:$0xff] }
 0xdb8   :  { %2492 = vadd.xlane.f32.xlu1 %v9260_v18  ;;  %2877 = vadd.xlane.f32.xlu0 %v9263_v29  ;;  %v2454_v37 = vmul.f32 1.442695, %v2433_v56  ;;  %v2811_v44 = vsub.f32 %v9168_v13, %v2780_v15  ;;  %v9276_v50 = vpop.eup %7357  ;;  %v1106_v56 = vld [vmem:[%s10888_s13 + $0x138] sm:$0xff] }
 0xdb9   :  { %v2786_v24 = vpop.xlane.xlu0 %2785  ;;  %v3002_v15 = vld [vmem:[%s10888_s13 + $0x158] sm:$0xff] }
 0xdba   :  { %v2814_v39 = vsub.f32 %v9175_v40, %v2786_v24  ;;  %7371 = vpow2.f32 %v2454_v37  ;;  %v2827_v40 = vmul.f32 1.442695, %v2811_v44  ;;  %v2999_v24 = vld [vmem:[%s10888_s13 + $0x140] sm:$0xff]  ;;  %v3095_v37 = vld [vmem:[%s10888_s13 + $0x178] sm:$0xff] }
 0xdbb   :  { %v2397_v27 = vpop.xlane.xlu1 %2396  ;;  %v9279_v35 = vpop.eup %7359  ;;  %7373 = vpow2.f32 %v2448_v14  ;;  %v3093_v14 = vld [vmem:[%s10888_s13 + $0x168] sm:$0xff]  ;;  %v3092_v44 = vld [vmem:[%s10888_s13 + $0x160] sm:$0xff] }
 0xdbc   :  { %2871 = vadd.xlane.f32.xlu1 %v9268_v3  ;;  %2494 = vadd.xlane.f32.xlu0 %v9271_v43  ;;  %v2833_v9 = vmul.f32 1.442695, %v2814_v39  ;;  %v2428_v42 = vsub.f32 %v9179_v41, %v2397_v27  ;;  %v9284_v13 = vpop.eup %7361  ;;  %v3094_v39 = vld [vmem:[%s10888_s13 + $0x170] sm:$0xff]  ;;  %v3131_v27 = vld [vmem:[%s10888_s13 + $0x188] sm:$0xff] }
 0xdbd   :  { %v2403_v54 = vpop.xlane.xlu0 %2402 }
 0xdbe   :  { %v2431_v46 = vsub.f32 %v9183_v2, %v2403_v54  ;;  %7375 = vpow2.f32 %v2833_v9  ;;  %v2444_v2 = vmul.f32 1.442695, %v2428_v42  ;;  %v3133_v54 = vld [vmem:[%s10888_s13 + $0x198] sm:$0xff]  ;;  %v3132_v9 = vld [vmem:[%s10888_s13 + $0x190] sm:$0xff] }
 0xdbf   :  { %v9287_v36 = vpop.eup %7363  ;;  %7377 = vpow2.f32 %v2827_v40 }
 0xdc0   :  { %2488 = vadd.xlane.f32.xlu1 %v9276_v50  ;;  %2873 = vadd.xlane.f32.xlu0 %v9279_v35  ;;  %v2450_v19 = vmul.f32 1.442695, %v2431_v46  ;;  %v9291_v1 = vpop.eup %7365  ;;  %v3130_v46 = vld [vmem:[%s10888_s13 + $0x180] sm:$0xff] }
 0xdc1   :  { %v2782_v28 = vpop.xlane.xlu0 %2781 }
 0xdc2   :  { %v2812_v7 = vsub.f32 %v9190_v33, %v2782_v28  ;;  %7379 = vpow2.f32 %v2450_v19 }
 0xdc3   :  { %v9294_v20 = vpop.eup %7367  ;;  %7381 = vpow2.f32 %v2444_v2 }
 0xdc4   :  { %2867 = vadd.xlane.f32.xlu1 %v9284_v13  ;;  %2490 = vadd.xlane.f32.xlu0 %v9287_v36  ;;  %v2829_v41 = vmul.f32 1.442695, %v2812_v7  ;;  %v9298_v33 = vpop.eup %7369 }
 0xdc5   :  { %v2399_v10 = vpop.xlane.xlu0 %2398 }
 0xdc6   :  { %v2429_v51 = vsub.f32 %v9194_v45, %v2399_v10  ;;  %7383 = vpow2.f32 %v2829_v41 }
 0xdc7   :  { %v9300_v22 = vpop.eup %7371 }
 0xdc8   :  { %2484 = vadd.xlane.f32.xlu1 %v9291_v1  ;;  %2869 = vadd.xlane.f32.xlu0 %v9294_v20  ;;  %v2446_v63 = vmul.f32 1.442695, %v2429_v51  ;;  %v9304_v12 = vpop.eup %7373 }
 0xdca   :  { %7385 = vpow2.f32 %v2446_v63 }
 0xdcb   :  { %v9306_v45 = vpop.eup %7375 }
 0xdcc   :  { %2863 = vadd.xlane.f32.xlu1 %v9298_v33  ;;  %2486 = vadd.xlane.f32.xlu0 %v9300_v22  ;;  %v9310_v21 = vpop.eup %7377 }
 0xdcf   :  { %v9312_v30 = vpop.eup %7379 }
 0xdd0   :  { %2480 = vadd.xlane.f32.xlu1 %v9304_v12  ;;  %2865 = vadd.xlane.f32.xlu0 %v9306_v45  ;;  %v9316_v53 = vpop.eup %7381 }
 0xdd3   :  { %v9318_v11 = vpop.eup %7383 }
 0xdd4   :  { %2859 = vadd.xlane.f32.xlu1 %v9310_v21  ;;  %2482 = vadd.xlane.f32.xlu0 %v9312_v30 }
 0xdd7   :  { %v9322_v57 = vpop.eup %7385 }
 0xdd8   :  { %2476 = vadd.xlane.f32.xlu1 %v9316_v53  ;;  %2861 = vadd.xlane.f32.xlu0 %v9318_v11 }
 0xddc   :  { %2478 = vadd.xlane.f32.xlu0 %v9322_v57 }
 0xde9   :  { %1219 = vperm.xlu1 %7136, %v1105_v6  }
 0xded   :  { %1189 = vperm.xlu1 %7136, %v1099_v16  }
 0xdf1   :  { %1194 = vperm.xlu1 %7136, %v1100_v48  }
 0xdf2   :  { %1224 = vperm.xlu0 %7135, %v1106_v56  }
 0xdf5   :  { %3020 = vperm.xlu1 %7136, %v3002_v15  }
 0xdf6   :  { %3015 = vperm.xlu0 %7135, %v3001_v59  }
 0xdf9   :  { %3010 = vperm.xlu1 %7136, %v3000_v62  }
 0xdfa   :  { %3005 = vperm.xlu0 %7135, %v2999_v24   ;;  %v9378_v24 = vld [vmem:[%s10896_s1] ss:$0 sm:$0xff] }
 0xdfd   :  { %3113 = vperm.xlu1 %7136, %v3095_v37  }
 0xdfe   :  { %3108 = vperm.xlu0 %7135, %v3094_v39  }
 0xe01   :  { %3103 = vperm.xlu1 %7136, %v3093_v14  }
 0xe02   :  { %3098 = vperm.xlu0 %7135, %v3092_v44  }
 0xe05   :  { %3151 = vperm.xlu1 %7136, %v3133_v54  }
 0xe06   :  { %3146 = vperm.xlu0 %7135, %v3132_v9  }
 0xe09   :  { %3141 = vperm.xlu1 %7136, %v3131_v27  }
 0xe0a   :  { %3136 = vperm.xlu0 %7135, %v3130_v46  }
 0xe25   :  { %v2505_v40 = vpop.xlane.xlu1 %2504 }
 0xe26   :  { %7387 = vrcp.f32 %v2505_v40 }
 0xe29   :  { %v2501_v42 = vpop.xlane.xlu1 %2500  ;;  %v2507_v28 = vpop.xlane.xlu0 %2506 }
 0xe2a   :  { %7389 = vrcp.f32 %v2507_v28 }
 0xe2b   :  { %7391 = vrcp.f32 %v2501_v42 }
 0xe2d   :  { %v2888_v19 = vpop.xlane.xlu1 %2887  ;;  %v2890_v7 = vpop.xlane.xlu0 %2889 }
 0xe2e   :  { %7393 = vrcp.f32 %v2888_v19 }
 0xe2f   :  { %7395 = vrcp.f32 %v2890_v7 }
 0xe31   :  { %v2884_v2 = vpop.xlane.xlu1 %2883  ;;  %v2503_v10 = vpop.xlane.xlu0 %2502 }
 0xe32   :  { %7397 = vrcp.f32 %v2884_v2 }
 0xe33   :  { %7399 = vrcp.f32 %v2503_v10  ;;  %v7388_v41 = vpop.eup %7387 }
 0xe34   :  { %v2538_v6 = vmul.f32 %v7388_v41, %v9208_v25 }
 0xe35   :  { %v2880_v51 = vpop.xlane.xlu1 %2879  ;;  %v2886_v63 = vpop.xlane.xlu0 %2885 }
 0xe36   :  { %7401 = vrcp.f32 %v2886_v63  ;;  %v2554_v37 = vmul.f32 %v9378_v24, %v2538_v6 }
 0xe37   :  { %v7390_v16 = vpop.eup %7389  ;;  %7403 = vrcp.f32 %v2880_v51 }
 0xe38   :  { %v2539_v15 = vmul.f32 %v7390_v16, %v9215_v47  ;;  %v7392_v59 = vpop.eup %7391 }
 0xe39   :  { %v2497_v48 = vpop.xlane.xlu1 %2496  ;;  %v2882_v56 = vpop.xlane.xlu0 %2881  ;;  %v2536_v42 = vmul.f32 %v7392_v59, %v9212_v17 }
 0xe3a   :  { %7405 = vrcp.f32 %v2497_v48  ;;  %v2555_v39 = vmul.f32 %v9378_v24, %v2539_v15 }
 0xe3b   :  { %v7394_v62 = vpop.eup %7393  ;;  %7407 = vrcp.f32 %v2882_v56 }
 0xe3c   :  { %v7396_v25 = vpop.eup %7395  ;;  %v2921_v14 = vmul.f32 %v7394_v62, %v9220_v4  ;;  %v2564_v9 = vpack.c.bf16 %v2555_v39, %v2554_v37 }
 0xe3d   :  { %v2876_v44 = vpop.xlane.xlu1 %2875  ;;  %v2499_v54 = vpop.xlane.xlu0 %2498  ;;  %v2922_v47 = vmul.f32 %v7396_v25, %v9223_v58  ;;  %v2552_v58 = vmul.f32 %v9378_v24, %v2536_v42 }
 0xe3e   :  { %v2937_v27 = vmul.f32 %v9378_v24, %v2921_v14  ;;  %7409 = vrcp.f32 %v2499_v54  ;;  %6735 = vmatpush3.bf16.xpose.msra.mxu0 %v2564_v9 }
 0xe3f   :  { %v7398_v46 = vpop.eup %7397  ;;  %v2938_v40 = vmul.f32 %v9378_v24, %v2922_v47  ;;  %6736 = vmatprep.subr.bf16.mxu0 %v10934_v38  ;;  %7411 = vrcp.f32 %v2876_v44 }
 0xe40   :  { %v7400_v28 = vpop.eup %7399  ;;  %v2919_v41 = vmul.f32 %v7398_v46, %v9228_v60 }
 0xe41   :  { %v2493_v19 = vpop.xlane.xlu1 %2492  ;;  %v2878_v4 = vpop.xlane.xlu0 %2877  ;;  %v2947_v7 = vpack.c.bf16 %v2938_v40, %v2937_v27  ;;  %v2537_v2 = vmul.f32 %v7400_v28, %v9231_v5 }
 0xe42   :  { %7413 = vrcp.f32 %v2493_v19  ;;  %v2935_v5 = vmul.f32 %v9378_v24, %v2919_v41 }
 0xe43   :  { %7415 = vrcp.f32 %v2878_v4  ;;  %6773 = vmatpush3.bf16.xpose.msra.mxu1 %v2947_v7  ;;  %v2553_v10 = vmul.f32 %v9378_v24, %v2537_v2  ;;  %v7402_v51 = vpop.eup %7401 }
 0xe44   :  { %6774 = vmatprep.subr.bf16.mxu1 %v10934_v38  ;;  %v2920_v16 = vmul.f32 %v7402_v51, %v9239_v61  ;;  %v7404_v48 = vpop.eup %7403 }
 0xe45   :  { %v2872_v17 = vpop.xlane.xlu1 %2871  ;;  %v2495_v63 = vpop.xlane.xlu0 %2494  ;;  %v2563_v6 = vpack.c.bf16 %v2553_v10, %v2552_v58  ;;  %v2917_v25 = vmul.f32 %v7404_v48, %v9236_v23 }
 0xe46   :  { %7417 = vrcp.f32 %v2495_v63  ;;  %v2936_v15 = vmul.f32 %v9378_v24, %v2920_v16 }
 0xe47   :  { %v7406_v56 = vpop.eup %7405  ;;  %6737 = vmatpush3.bf16.xpose.msra.mxu0 %v2563_v6  ;;  %7419 = vrcp.f32 %v2872_v17 }
 0xe48   :  { %v7408_v59 = vpop.eup %7407  ;;  %6738 = vmatprep.subr.bf16.mxu0 %v10934_v38  ;;  %v2946_v37 = vpack.c.bf16 %v2936_v15, %v2935_v5  ;;  %v2534_v61 = vmul.f32 %v7406_v56, %v9244_v32  ;;  %v2933_v32 = vmul.f32 %v9378_v24, %v2917_v25 }
 0xe49   :  { %v2489_v60 = vpop.xlane.xlu1 %2488  ;;  %v2874_v62 = vpop.xlane.xlu0 %2873  ;;  %v2918_v39 = vmul.f32 %v7408_v59, %v9247_v49 }
 0xe4a   :  { %7421 = vrcp.f32 %v2489_v60  ;;  %v2550_v49 = vmul.f32 %v9378_v24, %v2534_v61 }
 0xe4b   :  { %7423 = vrcp.f32 %v2874_v62  ;;  %6775 = vmatpush3.bf16.xpose.msra.mxu1 %v2946_v37  ;;  %v7410_v14 = vpop.eup %7409  ;;  %v2934_v47 = vmul.f32 %v9378_v24, %v2918_v39 }
 0xe4c   :  { %6776 = vmatprep.subr.bf16.mxu1 %v10934_v38  ;;  %v2535_v9 = vmul.f32 %v7410_v14, %v9255_v31  ;;  %v7412_v27 = vpop.eup %7411 }
 0xe4d   :  { %v2868_v44 = vpop.xlane.xlu1 %2867  ;;  %v2491_v54 = vpop.xlane.xlu0 %2490  ;;  %v2945_v4 = vpack.c.bf16 %v2934_v47, %v2933_v32  ;;  %v2915_v2 = vmul.f32 %v7412_v27, %v9252_v26 }
 0xe4e   :  { %7425 = vrcp.f32 %v2491_v54  ;;  %v2551_v40 = vmul.f32 %v9378_v24, %v2535_v9 }
 0xe4f   :  { %v7414_v46 = vpop.eup %7413  ;;  %7427 = vrcp.f32 %v2868_v44  ;;  %v2931_v26 = vmul.f32 %v9378_v24, %v2915_v2 }
 0xe50   :  { %v7416_v42 = vpop.eup %7415  ;;  %v2562_v19 = vpack.c.bf16 %v2551_v40, %v2550_v49  ;;  %v2532_v31 = vmul.f32 %v7414_v46, %v9260_v18 }
 0xe51   :  { %v2485_v23 = vpop.xlane.xlu1 %2484  ;;  %v2870_v28 = vpop.xlane.xlu0 %2869  ;;  %v2916_v7 = vmul.f32 %v7416_v42, %v9263_v29 }
 0xe52   :  { %7429 = vrcp.f32 %v2485_v23  ;;  %6739 = vmatpush3.bf16.xpose.msra.mxu0 %v2562_v19  ;;  %v2548_v6 = vmul.f32 %v9378_v24, %v2532_v31 }
 0xe53   :  { %7431 = vrcp.f32 %v2870_v28  ;;  %6777 = vmatpush3.bf16.xpose.msra.mxu1 %v2945_v4  ;;  %v7418_v58 = vpop.eup %7417  ;;  %6740 = vmatprep.subr.bf16.mxu0 %v10934_v38  ;;  %v2932_v17 = vmul.f32 %v9378_v24, %v2916_v7 }
 0xe54   :  { %6778 = vmatprep.subr.bf16.mxu1 %v10934_v38  ;;  %v2533_v51 = vmul.f32 %v7418_v58, %v9271_v43  ;;  %v7420_v29 = vpop.eup %7419 }
 0xe55   :  { %v2864_v10 = vpop.xlane.xlu1 %2863  ;;  %v2487_v41 = vpop.xlane.xlu0 %2486  ;;  %v2944_v15 = vpack.c.bf16 %v2932_v17, %v2931_v26  ;;  %v2913_v60 = vmul.f32 %v7420_v29, %v9268_v3 }
 0xe56   :  { %7433 = vrcp.f32 %v2487_v41  ;;  %v2549_v18 = vmul.f32 %v9378_v24, %v2533_v51 }
 0xe57   :  { %v7422_v63 = vpop.eup %7421  ;;  %7435 = vrcp.f32 %v2864_v10  ;;  %v2929_v3 = vmul.f32 %v9378_v24, %v2913_v60 }
 0xe58   :  { %v7424_v16 = vpop.eup %7423  ;;  %v2561_v5 = vpack.c.bf16 %v2549_v18, %v2548_v6  ;;  %v2530_v43 = vmul.f32 %v7422_v63, %v9276_v50 }
 0xe59   :  { %v2481_v48 = vpop.xlane.xlu1 %2480  ;;  %v2866_v56 = vpop.xlane.xlu0 %2865  ;;  %v2914_v59 = vmul.f32 %v7424_v16, %v9279_v35 }
 0xe5a   :  { %7437 = vrcp.f32 %v2481_v48  ;;  %6741 = vmatpush3.bf16.xpose.msra.mxu0 %v2561_v5  ;;  %v2546_v44 = vmul.f32 %v9378_v24, %v2530_v43 }
 0xe5b   :  { %7439 = vrcp.f32 %v2866_v56  ;;  %6779 = vmatpush3.bf16.xpose.msra.mxu1 %v2944_v15  ;;  %v7426_v62 = vpop.eup %7425  ;;  %6742 = vmatprep.subr.bf16.mxu0 %v10934_v38  ;;  %v2930_v25 = vmul.f32 %v9378_v24, %v2914_v59 }
 0xe5c   :  { %6780 = vmatprep.subr.bf16.mxu1 %v10934_v38  ;;  %v2531_v61 = vmul.f32 %v7426_v62, %v9287_v36  ;;  %v7428_v35 = vpop.eup %7427 }
 0xe5d   :  { %v2860_v37 = vpop.xlane.xlu1 %2859  ;;  %v2483_v39 = vpop.xlane.xlu0 %2482  ;;  %v2943_v46 = vpack.c.bf16 %v2930_v25, %v2929_v3  ;;  %v2911_v40 = vmul.f32 %v7428_v35, %v9284_v13 }
 0xe5e   :  { %7441 = vrcp.f32 %v2483_v39  ;;  %v2547_v50 = vmul.f32 %v9378_v24, %v2531_v61 }
 0xe5f   :  { %v7430_v14 = vpop.eup %7429  ;;  %7443 = vrcp.f32 %v2860_v37 }
 0xe60   :  { %v7432_v54 = vpop.eup %7431  ;;  %v2560_v27 = vpack.c.bf16 %v2547_v50, %v2546_v44  ;;  %v2528_v36 = vmul.f32 %v7430_v14, %v9291_v1  ;;  %v2927_v1 = vmul.f32 %v9378_v24, %v2911_v40  ;;  %v10940_v14 = vld [vmem:[#allocation15_spill] sm:$0xff] }
 0xe61   :  { %v2477_v9 = vpop.xlane.xlu1 %2476  ;;  %v2862_v47 = vpop.xlane.xlu0 %2861  ;;  %v2912_v49 = vmul.f32 %v7432_v54, %v9294_v20 }
 0xe62   :  { %7445 = vrcp.f32 %v2477_v9  ;;  %6743 = vmatpush3.bf16.xpose.msra.mxu0 %v2560_v27  ;;  %v2544_v4 = vmul.f32 %v9378_v24, %v2528_v36 }
 0xe63   :  { %7447 = vrcp.f32 %v2862_v47  ;;  %6781 = vmatpush3.bf16.xpose.msra.mxu1 %v2943_v46  ;;  %v7434_v32 = vpop.eup %7433  ;;  %6744 = vmatprep.subr.bf16.mxu0 %v10934_v38  ;;  %v2928_v28 = vmul.f32 %v9378_v24, %v2912_v49 }
 0xe64   :  { %6782 = vmatprep.subr.bf16.mxu1 %v10934_v38  ;;  %v2529_v23 = vmul.f32 %v7434_v32, %v9300_v22  ;;  %v7436_v19 = vpop.eup %7435 }
 0xe65   :  { %v2479_v42 = vpop.xlane.xlu0 %2478  ;;  %v2942_v2 = vpack.c.bf16 %v2928_v28, %v2927_v1  ;;  %v2909_v10 = vmul.f32 %v7436_v19, %v9298_v33  ;;  %v1220_v51 = vpop.permute.xlu1 %1219 }
 0xe66   :  { %7449 = vrcp.f32 %v2479_v42  ;;  %v2545_v7 = vmul.f32 %v9378_v24, %v2529_v23  ;;  %v1447_v35 = vadd.f32 %v8955_v55, %v1220_v51 }
 0xe67   :  { %v7438_v20 = vpop.eup %7437 }
 0xe68   :  { %v7440_v13 = vpop.eup %7439  ;;  %v2559_v31 = vpack.c.bf16 %v2545_v7, %v2544_v4  ;;  %v2526_v22 = vmul.f32 %v7438_v20, %v9304_v12  ;;  %v2925_v12 = vmul.f32 %v9378_v24, %v2909_v10  ;;  %v7166_v20 = vld [vmem:[%s10897_s10 + $0x8] sm:$0xff]   ;;  %v7167_v4 = vld [vmem:[%s10898_s11] sm:$0xff]  }
 0xe69   :  { %v2910_v58 = vmul.f32 %v7440_v13, %v9306_v45  ;;  %v1190_v15 = vpop.permute.xlu1 %1189 }
 0xe6a   :  { %6745 = vmatpush3.bf16.xpose.msra.mxu0 %v2559_v31  ;;  %v2542_v45 = vmul.f32 %v9378_v24, %v2526_v22  ;;  %v1423_v44 = vadd.f32 %v10940_v14, %v1190_v15 }
 0xe6b   :  { %6783 = vmatpush3.bf16.xpose.msra.mxu1 %v2942_v2  ;;  %v7442_v41 = vpop.eup %7441  ;;  %6746 = vmatprep.subr.bf16.mxu0 %v10934_v38  ;;  %v2926_v29 = vmul.f32 %v9378_v24, %v2910_v58 }
 0xe6c   :  { %6784 = vmatprep.subr.bf16.mxu1 %v10934_v38  ;;  %v2527_v17 = vmul.f32 %v7442_v41, %v9312_v30  ;;  %v7444_v63 = vpop.eup %7443 }
 0xe6d   :  { %v2941_v16 = vpack.c.bf16 %v2926_v29, %v2925_v12  ;;  %v2907_v30 = vmul.f32 %v7444_v63, %v9310_v21  ;;  %v1195_v37 = vpop.permute.xlu1 %1194  ;;  %v1225_v39 = vpop.permute.xlu0 %1224 }
 0xe6e   :  { %v2543_v18 = vmul.f32 %v9378_v24, %v2527_v17  ;;  %v1426_v21 = vadd.f32 %v8952_v8, %v1195_v37  ;;  %v1450_v25 = vadd.f32 %v8962_v52, %v1225_v39  ;;  %v9470_v8 = vld [vmem:[%s10892_s4 + $0x78] sm:$0xff]  ;;  %v7165_v52 = vld [vmem:[%s10897_s10] sm:$0xff]   ;;  %v7168_v39 = vld [vmem:[%s10898_s11 + $0x8] sm:$0xff]  }
 0xe6f   :  { %v7446_v6 = vpop.eup %7445 }
 0xe70   :  { %v7448_v26 = vpop.eup %7447  ;;  %v2558_v33 = vpack.c.bf16 %v2543_v18, %v2542_v45  ;;  %v2524_v56 = vmul.f32 %v7446_v6, %v9316_v53  ;;  %v2923_v53 = vmul.f32 %v9378_v24, %v2907_v30  ;;  %v2556_v50 = vpack.c.bf16 %v1426_v21, %v1423_v44  ;;  %v10942_v30 = vld [vmem:[#allocation9_spill] sm:$0xff] }
 0xe71   :  { %v2908_v48 = vmul.f32 %v7448_v26, %v9318_v11  ;;  %v2939_v3 = vpack.c.bf16 %v1450_v25, %v1447_v35  ;;  %v3016_v7 = vpop.permute.xlu0 %3015  ;;  %v3021_v1 = vpop.permute.xlu1 %3020 }
 0xe72   :  { %6747 = vmatpush3.bf16.xpose.msra.mxu0 %v2558_v33  ;;  %v2540_v60 = vmul.f32 %v9378_v24, %v2524_v56 }
 0xe73   :  { %v7450_v5 = vpop.eup %7449  ;;  %6785 = vmatpush3.bf16.xpose.msra.mxu1 %v2941_v16  ;;  %6748 = vmatprep.subr.bf16.mxu0 %v10934_v38  ;;  %v2924_v43 = vmul.f32 %v9378_v24, %v2908_v48 }
 0xe74   :  { %6786 = vmatprep.subr.bf16.mxu1 %v10934_v38  ;;  %v2525_v59 = vmul.f32 %v7450_v5, %v9322_v57  ;;  %v9461_v57 = vld [vmem:[%s10893_s5] sm:$0xff]  ;;  %v10941_v5 = vld [vmem:[#allocation8_spill] sm:$0xff] }
 0xe75   :  { %v2940_v61 = vpack.c.bf16 %v2924_v43, %v2923_v53  ;;  %v3006_v13 = vpop.permute.xlu0 %3005  ;;  %v10944_v53 = vld [vmem:[#allocation7_spill] sm:$0xff] }
 0xe76   :  { %v2541_v11 = vmul.f32 %v9378_v24, %v2525_v59 }
 0xe78   :  { %v2557_v62 = vpack.c.bf16 %v2541_v11, %v2540_v60  ;;  %v10943_v60 = vld [vmem:[#allocation6_spill] sm:$0xff] }
 0xe79   :  { %v3109_v58 = vpop.permute.xlu0 %3108 }
 0xe7a   :  { %6749 = vmatpush3.bf16.xpose.msra.mxu0 %v2557_v62 }
 0xe7b   :  { %6787 = vmatpush3.bf16.xpose.msra.mxu1 %v2940_v61 }
 0xe7c   :  { %6866 = vmatprep.subr.mxu1 %v9461_v57 }
 0xe7d   :  { %v3099_v12 = vpop.permute.xlu0 %3098 }
 0xe81   :  { %6751 = vmatmul.mubr.bf16.vlgmr.msra.gmra.mxu0 %v2556_v50  ;;  %v3147_v61 = vpop.permute.xlu0 %3146  ;;  %v10945_v50 = vld [vmem:[#allocation2_spill] sm:$0xff] }
 0xe82   :  { %6789 = vmatmul.mubr.bf16.vlgmr.msra.gmra.mxu1 %v2939_v3  ;;  %6800 = vmatprep.mubr.msk.bf16.mxu0 %vm316_vm1, %v7165_v52 }
 0xe83   :  { %6867 = vmatpush3.msra.mxu1 %v9461_v57 }
 0xe84   :  { %6874 = vmatprep.subr.mxu1 %v9470_v8 }
 0xe85   :  { %v3137_v14 = vpop.permute.xlu0 %3136 }
 0xf41   :  { %v2599_v55 = vpop.f32.mrf.mxu0 }
 0xf42   :  { %v2982_v54 = vpop.f32.mrf.mxu1  ;;  %v2606_v23 = vmax.f32 %v2599_v55, 0.0 }
 0xf43   :  { %v6752_v9 = vpop.f32.mrf.mxu0  ;;  %v2989_v49 = vmax.f32 %v2982_v54, 0.0 }
 0xf44   :  { %v6790_v47 = vpop.f32.mrf.mxu1  ;;  %v10947_v9 = vld [vmem:[#allocation3_spill] sm:$0xff] }
 0xf45   :  { %v2602_v27 = vpop.f32.mrf.mxu0 }
 0xf46   :  { %v2985_v46 = vpop.f32.mrf.mxu1  ;;  %v2607_v36 = vmax.f32 %v2602_v27, 0.0 }
 0xf47   :  { %v2990_v40 = vmax.f32 %v2985_v46, 0.0  ;;  %v6753_v32 = vpop.f32.mrf.mxu0 }
 0xf48   :  { %v6791_v42 = vpop.f32.mrf.mxu1  ;;  %v2997_v19 = vpack.c.bf16 %v2607_v36, %v2606_v23  ;;  %v10948_v36 = vld [vmem:[#allocation4_spill] sm:$0xff] }
 0xf49   :  { %v2998_v28 = vpack.c.bf16 %v2990_v40, %v2989_v49 }
 0xf4b   :  { %6792 = vmatprep.subr.bf16.mxu0 %v2998_v28 }
 0xf4c   :  { %6793 = vmatpush3.bf16.msra.mxu0 %v2998_v28  ;;  %v10951_v28 = vld [vmem:[#allocation5_spill] sm:$0xff] }
 0xf4d   :  { %6794 = vmatprep.subr.bf16.mxu0 %v2997_v19 }
 0xf50   :  { %6795 = vmatpush3.bf16.msra.mxu0 %v2997_v19 }
 0xf51   :  { %6796 = vmatprep.subr.bf16.mxu0 %v9001_v34 }
 0xf54   :  { %6797 = vmatpush3.bf16.msra.mxu0 %v9001_v34  ;;  %v3011_v34 = vpop.permute.xlu1 %3010 }
 0xf55   :  { %6798 = vmatprep.subr.bf16.mxu0 %v9003_v0 }
 0xf58   :  { %6799 = vmatpush3.bf16.msra.mxu0 %v9003_v0  ;;  %v3114_v0 = vpop.permute.xlu1 %3113 }
 0xf5b   :  { %6801 = vmatmul.mubr.msk.bf16.vlgmr.msra.gmra.mxu0 %vm316_vm1, %v7166_v20 }
 0xf5c   :  { %6808 = vmatprep.mubr.msk.bf16.mxu0 %vm1287_vm4, %v7167_v4  ;;  %v3104_v48 = vpop.permute.xlu1 %3103  ;;  %v3262_v4 = vld [vmem:[%s10888_s13 + $0x1a0] sm:$0xff] }
 0xf60   :  { %v3152_v21 = vpop.permute.xlu1 %3151 }
 0xf64   :  { %v3142_v46 = vpop.permute.xlu1 %3141 }
0x101b   :  { %v6802_v31 = vpop.f32.mrf.mxu0 }
0x101c   :  { %v3082_v2 = vadd.f32 %v6802_v31, %v3016_v7  ;;  %v3263_v7 = vld [vmem:[%s10888_s13 + $0x1a8] sm:$0xff] }
0x101d   :  { %v3073_v22 = vpop.f32.mrf.mxu0  ;;  %v3763_v31 = vld [vmem:[%s10888_s13 + $0x1c8] sm:$0xff] }
0x101e   :  { %v3090_v10 = vmul.f32 %v9378_v24, %v3082_v2  ;;  %v3074_v41 = vadd.f32 %v3073_v22, %v3006_v13  ;;  %v3265_v13 = vld [vmem:[%s10888_s13 + $0x1b8] sm:$0xff]  ;;  %v3768_v2 = vld [vmem:[%s10888_s13 + $0x1f0] sm:$0xff] }
0x101f   :  { %v6803_v51 = vpop.f32.mrf.mxu0  ;;  %v3764_v22 = vld [vmem:[%s10888_s13 + $0x1d0] sm:$0xff] }
0x1020   :  { %v3088_v17 = vmul.f32 %v9378_v24, %v3074_v41  ;;  %v3085_v29 = vadd.f32 %v6803_v51, %v3021_v1  ;;  %v3118_v6 = vadd.f32 %v3109_v58, %v3090_v10  ;;  %v3264_v1 = vld [vmem:[%s10888_s13 + $0x1b0] sm:$0xff]  ;;  %v3769_v58 = vld [vmem:[%s10888_s13 + $0x1f8] sm:$0xff]  ;;  %v3770_v41 = vld [vmem:[%s10888_s13 + $0x200] sm:$0xff] }
0x1021   :  { %v3076_v63 = vpop.f32.mrf.mxu0  ;;  %v3765_v10 = vld [vmem:[%s10888_s13 + $0x1d8] sm:$0xff] }
0x1022   :  { %v3091_v45 = vmul.f32 %v9378_v24, %v3085_v29  ;;  %v3077_v18 = vadd.f32 %v3076_v63, %v3011_v34  ;;  %v3116_v26 = vadd.f32 %v3099_v12, %v3088_v17  ;;  %v3122_v15 = vadd.f32 %v3118_v6, %v10941_v5  ;;  %v3762_v34 = vld [vmem:[%s10888_s13 + $0x1c0] sm:$0xff] }
0x1023   :  { %v7734_v29 = vld [vmem:[%s10890_s3 + $0x3] ss:$0 sm:$0xff] }
0x1024   :  { %v3119_v33 = vadd.f32 %v3114_v0, %v3091_v45  ;;  %v3089_v16 = vmul.f32 %v9378_v24, %v3077_v18  ;;  %v3120_v11 = vadd.f32 %v3116_v26, %v10943_v60  ;;  %v3771_v0 = vld [vmem:[%s10888_s13 + $0x208] sm:$0xff] }
0x1026   :  { %v3117_v56 = vadd.f32 %v3104_v48, %v3089_v16  ;;  %v3123_v59 = vadd.f32 %v3119_v33, %v10942_v30 }
0x1028   :  { %v3129_v43 = vpack.c.bf16 %v3123_v59, %v3122_v15  ;;  %v3121_v62 = vadd.f32 %v3117_v56, %v10944_v53  ;;  %v7735_v15 = vld [vmem:[%s10890_s3 + $0x2] ss:$0 sm:$0xff] }
0x102a   :  { %6804 = vmatprep.subr.bf16.mxu0 %v3129_v43  ;;  %v3128_v37 = vpack.c.bf16 %v3121_v62, %v3120_v11 }
0x102b   :  { %6805 = vmatpush3.bf16.msra.mxu0 %v3129_v43 }
0x102c   :  { %6806 = vmatprep.subr.bf16.mxu0 %v3128_v37 }
0x102f   :  { %6807 = vmatpush3.bf16.msra.mxu0 %v3128_v37 }
0x1032   :  { %6809 = vmatmul.mubr.msk.bf16.vlgmr.msra.gmra.mxu0 %vm1287_vm4, %v7168_v39 }
0x10f2   :  { %v6810_v25 = vpop.f32.mrf.mxu0 }
0x10f3   :  { %v3213_v35 = vadd.f32 %v6810_v25, %v3147_v61  ;;  %v7170_v61 = vld [vmem:[%s10891_s8 + $0x18] sm:$0xff]   ;;  %v9599_v25 = vld [vmem:[%s10892_s4 + $0x68] sm:$0xff] }
0x10f4   :  { %v3204_v44 = vpop.f32.mrf.mxu0 }
0x10f5   :  { %v3221_v3 = vadd.f32 %v3213_v35, %v10945_v50  ;;  %v3205_v52 = vadd.f32 %v3204_v44, %v3137_v14  ;;  %v9606_v35 = vld [vmem:[%s10892_s4 + $0x60] sm:$0xff]  ;;  %v9613_v14 = vld [vmem:[%s10892_s4 + $0x58] sm:$0xff]  ;;  %v9620_v44 = vld [vmem:[%s10892_s4 + $0x50] sm:$0xff] }
0x10f6   :  { %v6811_v55 = vpop.f32.mrf.mxu0  ;;  %v9627_v50 = vld [vmem:[%s10892_s4 + $0x48] sm:$0xff] }
0x10f7   :  { %v9503_v54 = vmul.f32 %v9378_v24, %v3221_v3  ;;  %v3219_v47 = vadd.f32 %v3205_v52, %v10947_v9  ;;  %v3216_v27 = vadd.f32 %v6811_v55, %v3152_v21  ;;  %v9592_v21 = vld [vmem:[%s10892_s4 + $0x70] sm:$0xff]  ;;  %v9634_v3 = vld [vmem:[%s10892_s4 + $0x40] sm:$0xff]  ;;  %v9641_v52 = vld [vmem:[%s10892_s4 + $0x38] sm:$0xff] }
0x10f8   :  { %v3207_v49 = vpop.f32.mrf.mxu0  ;;  %v9648_v55 = vld [vmem:[%s10892_s4 + $0x30] sm:$0xff]  ;;  %v9655_v9 = vld [vmem:[%s10892_s4 + $0x28] sm:$0xff] }
0x10f9   :  { %10946 = vst [vmem:[#allocation14_spill] sm:$0xff] %v9503_v54  ;;  %v3222_v40 = vadd.f32 %v3216_v27, %v10948_v36  ;;  %v3208_v32 = vadd.f32 %v3207_v49, %v3142_v46  ;;  %3243 = vrot.lane.b32.xlu0 %v9503_v54, %s7787_s18  ;;  %v9510_v42 = vmul.f32 %v9378_v24, %v3219_v47  ;;  %v9662_v47 = vld [vmem:[%s10892_s4 + $0x20] sm:$0xff]  ;;  %v9669_v27 = vld [vmem:[%s10892_s4 + $0x18] sm:$0xff]  ;;  %v9676_v46 = vld [vmem:[%s10892_s4 + $0x10] sm:$0xff] }
0x10fa   :  { %v9683_v49 = vld [vmem:[%s10892_s4 + $0x8] sm:$0xff]  ;;  %v7750_v36 = vld [vmem:[%s10892_s4] sm:$0xff] }
0x10fb   :  { %10949 = vst [vmem:[#allocation13_spill] sm:$0xff] %v9510_v42  ;;  %v9513_v23 = vmul.f32 %v9378_v24, %v3222_v40  ;;  %v3220_v19 = vadd.f32 %v3208_v32, %v10951_v28 }
0x10fd   :  { %10950 = vst [vmem:[#allocation11_spill] sm:$0xff] %v9513_v23  ;;  %3245 = vrot.lane.b32.xlu1 %v9513_v23, %s7787_s18  ;;  %3239 = vrot.lane.b32.xlu0 %v9510_v42, %s7787_s18  ;;  %v9521_v20 = vmul.f32 %v9378_v24, %v3220_v19  ;;  %v7169_v24 = vld [vmem:[%s10891_s8 + $0x10] sm:$0xff]   ;;  %v3259_v56 = vpack.c.bf16 %v9513_v23, %v9503_v54 }
0x10fe   :  { %6824 = vmatprep.mubr.msk.bf16.mxu0 %vm616_vm2, %v7169_v24 }
0x10ff   :  { %10952 = vst [vmem:[#allocation12_spill] sm:$0xff] %v9521_v20  ;;  %v3258_v59 = vpack.c.bf16 %v9521_v20, %v9510_v42 }
0x1101   :  { %3241 = vrot.lane.b32.xlu1 %v9521_v20, %s7787_s18  ;;  %3231 = vrot.lane.b32.xlu0 %v9503_v54, %s7788_s19 }
0x1105   :  { %3233 = vrot.lane.b32.xlu1 %v9513_v23, %s7788_s19  ;;  %3227 = vrot.lane.b32.xlu0 %v9510_v42, %s7788_s19 }
0x1109   :  { %3229 = vrot.lane.b32.xlu1 %v9521_v20, %s7788_s19  ;;  %3268 = vperm.xlu0 %7135, %v3262_v4  }
0x110d   :  { %3273 = vperm.xlu1 %7136, %v3263_v7   ;;  %3278 = vperm.xlu0 %7135, %v3264_v1  }
0x1111   :  { %3283 = vperm.xlu1 %7136, %v3265_v13   ;;  %3788 = vperm.xlu0 %7135, %v3762_v34  }
0x1115   :  { %3793 = vperm.xlu1 %7136, %v3763_v31   ;;  %3818 = vperm.xlu0 %7135, %v3768_v2  }
0x1119   :  { %3823 = vperm.xlu1 %7136, %v3769_v58   ;;  %3798 = vperm.xlu0 %7135, %v3764_v22  }
0x111d   :  { %3803 = vperm.xlu1 %7136, %v3765_v10   ;;  %3828 = vperm.xlu0 %7135, %v3770_v41  }
0x1121   :  { %3833 = vperm.xlu1 %7136, %v3771_v0  }
0x116b   :  { %v3244_v51 = vpop.permute.xlu0 %3243 }
0x116c   :  { %v3249_v63 = vmul.f32 %v7734_v29, %v3244_v51 }
0x116f   :  { %v3246_v17 = vpop.permute.xlu1 %3245  ;;  %v3240_v45 = vpop.permute.xlu0 %3239 }
0x1170   :  { %v3250_v6 = vmul.f32 %v7734_v29, %v3246_v17  ;;  %v3247_v26 = vmul.f32 %v7734_v29, %v3240_v45 }
0x1172   :  { %v3261_v18 = vpack.c.bf16 %v3250_v6, %v3249_v63 }
0x1173   :  { %v3242_v12 = vpop.permute.xlu1 %3241  ;;  %v3232_v5 = vpop.permute.xlu0 %3231 }
0x1174   :  { %v3248_v33 = vmul.f32 %v7734_v29, %v3242_v12  ;;  %6812 = vmatprep.subr.bf16.mxu0 %v3261_v18  ;;  %v3237_v60 = vmul.f32 %v7735_v15, %v3232_v5 }
0x1175   :  { %6813 = vmatpush3.bf16.msra.mxu0 %v3261_v18 }
0x1176   :  { %v3260_v16 = vpack.c.bf16 %v3248_v33, %v3247_v26 }
0x1177   :  { %v3234_v48 = vpop.permute.xlu1 %3233  ;;  %v3228_v11 = vpop.permute.xlu0 %3227 }
0x1178   :  { %6814 = vmatprep.subr.bf16.mxu0 %v3260_v16  ;;  %v3238_v30 = vmul.f32 %v7735_v15, %v3234_v48  ;;  %v3235_v37 = vmul.f32 %v7735_v15, %v3228_v11 }
0x1179   :  { %6815 = vmatpush3.bf16.msra.mxu0 %v3260_v16 }
0x117a   :  { %6816 = vmatprep.subr.bf16.mxu0 %v3259_v56  ;;  %v3257_v53 = vpack.c.bf16 %v3238_v30, %v3237_v60 }
0x117b   :  { %v3230_v43 = vpop.permute.xlu1 %3229 }
0x117c   :  { %v3236_v62 = vmul.f32 %v7735_v15, %v3230_v43  ;;  %v7171_v43 = vld [vmem:[%s10894_s9 + $0x60] sm:$0xff]  }
0x117d   :  { %6817 = vmatpush3.bf16.msra.mxu0 %v3259_v56 }
0x117e   :  { %6818 = vmatprep.subr.bf16.mxu0 %v3258_v59  ;;  %v3256_v39 = vpack.c.bf16 %v3236_v62, %v3235_v37 }
0x1181   :  { %6819 = vmatpush3.bf16.msra.mxu0 %v3258_v59 }
0x1182   :  { %6820 = vmatprep.subr.bf16.mxu0 %v3257_v53 }
0x1184   :  { %v3269_v40 = vpop.permute.xlu0 %3268 }
0x1185   :  { %6821 = vmatpush3.bf16.msra.mxu0 %v3257_v53 }
0x1186   :  { %6822 = vmatprep.subr.bf16.mxu0 %v3256_v39 }
0x1188   :  { %v3274_v28 = vpop.permute.xlu1 %3273  ;;  %v3279_v7 = vpop.permute.xlu0 %3278 }
0x1189   :  { %6823 = vmatpush3.bf16.msra.mxu0 %v3256_v39 }
0x118a   :  { %6828 = vmatprep.subr.mxu0 %v9470_v8 }
0x118c   :  { %6825 = vmatmul.mubr.msk.bf16.vlgmr.msra.gmra.mxu0 %vm616_vm2, %v7170_v61  ;;  %v3284_v2 = vpop.permute.xlu1 %3283 }
0x118d   :  { %6829 = vmatpush3.msra.mxu0 %v9470_v8 }
0x118e   :  { %6830 = vmatprep.subr.mxu0 %v9592_v21 }
0x118f   :  { %6831 = vmatpush3.msra.mxu0 %v9592_v21 }
0x1190   :  { %6832 = vmatprep.subr.mxu0 %v9599_v25 }
0x1191   :  { %6833 = vmatpush3.msra.mxu0 %v9599_v25 }
0x1192   :  { %6834 = vmatprep.subr.mxu0 %v9606_v35 }
0x1193   :  { %6835 = vmatpush3.msra.mxu0 %v9606_v35 }
0x1194   :  { %6836 = vmatprep.subr.mxu0 %v9613_v14 }
0x1195   :  { %6837 = vmatpush3.msra.mxu0 %v9613_v14 }
0x1196   :  { %6838 = vmatprep.subr.mxu0 %v9620_v44 }
0x1197   :  { %6839 = vmatpush3.msra.mxu0 %v9620_v44 }
0x1198   :  { %6840 = vmatprep.subr.mxu0 %v9627_v50 }
0x1199   :  { %6841 = vmatpush3.msra.mxu0 %v9627_v50 }
0x119a   :  { %6842 = vmatprep.subr.mxu0 %v9634_v3 }
0x119b   :  { %6843 = vmatpush3.msra.mxu0 %v9634_v3 }
0x119c   :  { %6844 = vmatprep.subr.mxu0 %v9641_v52 }
0x119d   :  { %6845 = vmatpush3.msra.mxu0 %v9641_v52 }
0x119e   :  { %6846 = vmatprep.subr.mxu0 %v9648_v55 }
0x119f   :  { %6847 = vmatpush3.msra.mxu0 %v9648_v55 }
0x11a0   :  { %6848 = vmatprep.subr.mxu0 %v9655_v9 }
0x11a1   :  { %6849 = vmatpush3.msra.mxu0 %v9655_v9 }
0x11a2   :  { %6850 = vmatprep.subr.mxu0 %v9662_v47 }
0x11a3   :  { %6851 = vmatpush3.msra.mxu0 %v9662_v47 }
0x11a4   :  { %6852 = vmatprep.subr.mxu0 %v9669_v27 }
0x11a5   :  { %6853 = vmatpush3.msra.mxu0 %v9669_v27 }
0x11a6   :  { %6854 = vmatprep.subr.mxu0 %v9676_v46 }
0x11a7   :  { %6855 = vmatpush3.msra.mxu0 %v9676_v46 }
0x11a8   :  { %6856 = vmatprep.subr.mxu0 %v9683_v49 }
0x11a9   :  { %6857 = vmatpush3.msra.mxu0 %v9683_v49 }
0x11aa   :  { %6858 = vmatprep.subr.mxu0 %v7750_v36 }
0x11ab   :  { %6859 = vmatpush3.msra.mxu0 %v7750_v36 }
0x11ac   :  { %6912 = vmatprep.subr.mxu0 %v9461_v57 }
0x124c   :  { %v6826_v32 = vpop.f32.mrf.mxu0 }
0x124d   :  { %v3345_v13 = vadd.f32 %v6826_v32, %v3279_v7  ;;  %v3789_v32 = vpop.permute.xlu0 %3788 }
0x124e   :  { %v3336_v19 = vpop.f32.mrf.mxu0 }
0x124f   :  { %v3337_v4 = vadd.f32 %v3336_v19, %v3269_v40  ;;  %v9696_v10 = vmax.f32 %v3345_v13, 0.0  ;;  %v7176_v40 = vld [vmem:[%s10894_s9 + $0x88] sm:$0xff]  }
0x1250   :  { %v6827_v24 = vpop.f32.mrf.mxu0 }
0x1251   :  { %v9691_v1 = vmax.f32 %v3337_v4, 0.0  ;;  %v3348_v58 = vadd.f32 %v6827_v24, %v3284_v2  ;;  %10955 = vst [vmem:[#allocation8_spill] sm:$0xff] %v9696_v10  ;;  %v3819_v19 = vpop.permute.xlu0 %3818 }
0x1252   :  { %v3339_v34 = vpop.f32.mrf.mxu0 }
0x1253   :  { %10953 = vst [vmem:[#allocation10_spill] sm:$0xff] %v9691_v1  ;;  %v3340_v31 = vadd.f32 %v3339_v34, %v3274_v28  ;;  %6860 = vmatprep.mubr.f32.mxu0 %v9691_v1  ;;  %v9701_v41 = vmax.f32 %v3348_v58, 0.0  ;;  %v3794_v28 = vpop.permute.xlu1 %3793 }
0x1255   :  { %v9694_v22 = vmax.f32 %v3340_v31, 0.0  ;;  %10956 = vst [vmem:[#allocation9_spill] sm:$0xff] %v9701_v41  ;;  %v3799_v13 = vpop.permute.xlu0 %3798 }
0x1257   :  { %10954 = vst [vmem:[#allocation15_spill] sm:$0xff] %v9694_v22  ;;  %6861 = vmatmul.mubr.f32.vlgmr.msra.gmra.mxu0 %v9694_v22  ;;  %v3824_v4 = vpop.permute.xlu1 %3823 }
0x1258   :  { %6863 = vmatprep.mubr.f32.mxu0 %v9696_v10  ;;  %6913 = vmatpush3.msra.mxu0 %v9461_v57 }
0x125b   :  { %6864 = vmatmul.mubr.f32.gmra.mxu0 %v9701_v41  ;;  %v3804_v34 = vpop.permute.xlu1 %3803 }
0x1317   :  { %v6862_v0 = vpop.f32.mrf.mxu0 }
0x1319   :  { %v3421_v51 = vpop.f32.mrf.mxu0 }
0x131a   :  { %6868 = vmatprep.mubr.msk.f32.mxu1 %vm761_vm3, %v3421_v51 }
0x131b   :  { %v6865_v17 = vpop.f32.mrf.mxu0  ;;  %6869 = vmatmul.mubr.msk.f32.vlgmr.msra.gmra.mxu1 %vm761_vm3, %v6862_v0 }
0x131c   :  { %6875 = vmatpush3.msra.mxu1 %v9470_v8 }
0x131d   :  { %v3431_v29 = vpop.f32.mrf.mxu0  ;;  %6876 = vmatprep.subr.mxu1 %v9592_v21 }
0x131e   :  { %6871 = vmatprep.mubr.msk.f32.mxu1 %vm761_vm3, %v3431_v29  ;;  %6877 = vmatpush3.msra.mxu1 %v9592_v21 }
0x131f   :  { %6872 = vmatmul.mubr.msk.f32.gmra.mxu1 %vm761_vm3, %v6865_v17  ;;  %6878 = vmatprep.subr.mxu1 %v9599_v25 }
0x1320   :  { %6879 = vmatpush3.msra.mxu1 %v9599_v25 }
0x1321   :  { %6880 = vmatprep.subr.mxu1 %v9606_v35 }
0x1322   :  { %6881 = vmatpush3.msra.mxu1 %v9606_v35 }
0x1323   :  { %6882 = vmatprep.subr.mxu1 %v9613_v14 }
0x1324   :  { %6883 = vmatpush3.msra.mxu1 %v9613_v14 }
0x1325   :  { %6884 = vmatprep.subr.mxu1 %v9620_v44 }
0x1326   :  { %6885 = vmatpush3.msra.mxu1 %v9620_v44 }
0x1327   :  { %6886 = vmatprep.subr.mxu1 %v9627_v50 }
0x1328   :  { %6887 = vmatpush3.msra.mxu1 %v9627_v50 }
0x1329   :  { %6888 = vmatprep.subr.mxu1 %v9634_v3 }
0x132a   :  { %6889 = vmatpush3.msra.mxu1 %v9634_v3 }
0x132b   :  { %6890 = vmatprep.subr.mxu1 %v9641_v52 }
0x132c   :  { %6891 = vmatpush3.msra.mxu1 %v9641_v52 }
0x132d   :  { %6892 = vmatprep.subr.mxu1 %v9648_v55 }
0x132e   :  { %6893 = vmatpush3.msra.mxu1 %v9648_v55 }
0x132f   :  { %6894 = vmatprep.subr.mxu1 %v9655_v9 }
0x1330   :  { %6895 = vmatpush3.msra.mxu1 %v9655_v9 }
0x1331   :  { %6896 = vmatprep.subr.mxu1 %v9662_v47 }
0x1332   :  { %6897 = vmatpush3.msra.mxu1 %v9662_v47 }
0x1333   :  { %6898 = vmatprep.subr.mxu1 %v9669_v27 }
0x1334   :  { %6899 = vmatpush3.msra.mxu1 %v9669_v27  ;;  %v7172_v27 = vld [vmem:[%s10894_s9 + $0x68] sm:$0xff]  }
0x1335   :  { %6900 = vmatprep.subr.mxu1 %v9676_v46 }
0x1336   :  { %6901 = vmatpush3.msra.mxu1 %v9676_v46  ;;  %v7173_v46 = vld [vmem:[%s10894_s9 + $0x70] sm:$0xff]  }
0x1337   :  { %6902 = vmatprep.subr.mxu1 %v9683_v49 }
0x1338   :  { %6903 = vmatpush3.msra.mxu1 %v9683_v49  ;;  %v7174_v49 = vld [vmem:[%s10894_s9 + $0x78] sm:$0xff]  }
0x1339   :  { %6904 = vmatprep.subr.mxu1 %v7750_v36 }
0x133a   :  { %6905 = vmatpush3.msra.mxu1 %v7750_v36  ;;  %v7175_v36 = vld [vmem:[%s10894_s9 + $0x80] sm:$0xff]  }
0x13db   :  { %v6870_v57 = vpop.f32.mrf.mxu1 }
0x13dc   :  { %v3538_v8 = vsub.f32 %v9694_v22, %v6870_v57 }
0x13dd   :  { %v3518_v63 = vpop.f32.mrf.mxu1 }
0x13de   :  { %v3537_v6 = vsub.f32 %v9691_v1, %v3518_v63  ;;  %v3542_v12 = vmul.f32 %v3538_v8, %v3538_v8 }
0x13df   :  { %v6873_v45 = vpop.f32.mrf.mxu1 }
0x13e0   :  { %v3541_v18 = vmul.f32 %v3537_v6, %v3537_v6  ;;  %v3540_v26 = vsub.f32 %v9701_v41, %v6873_v45 }
0x13e1   :  { %v3528_v33 = vpop.f32.mrf.mxu1 }
0x13e2   :  { %v3539_v16 = vsub.f32 %v9696_v10, %v3528_v33  ;;  %6906 = vmatprep.mubr.f32.mxu1 %v3541_v18  ;;  %v3544_v56 = vmul.f32 %v3540_v26, %v3540_v26 }
0x13e3   :  { %6907 = vmatmul.mubr.f32.vlgmr.msra.gmra.mxu1 %v3542_v12 }
0x13e4   :  { %v3543_v48 = vmul.f32 %v3539_v16, %v3539_v16 }
0x13e6   :  { %6909 = vmatprep.mubr.f32.mxu1 %v3543_v48 }
0x13e7   :  { %6910 = vmatmul.mubr.f32.gmra.mxu1 %v3544_v56  ;;  %v3829_v56 = vpop.permute.xlu0 %3828 }
0x14a3   :  { %v6908_v5 = vpop.f32.mrf.mxu1 }
0x14a5   :  { %v3611_v15 = vpop.f32.mrf.mxu1 }
0x14a6   :  { %6914 = vmatprep.mubr.msk.f32.mxu0 %vm761_vm3, %v3611_v15 }
0x14a7   :  { %v6911_v30 = vpop.f32.mrf.mxu1  ;;  %6915 = vmatmul.mubr.msk.f32.vlgmr.msra.gmra.mxu0 %vm761_vm3, %v6908_v5  ;;  %v3834_v5 = vpop.permute.xlu1 %3833 }
0x14a9   :  { %v3621_v59 = vpop.f32.mrf.mxu1 }
0x14aa   :  { %6917 = vmatprep.mubr.msk.f32.mxu0 %vm761_vm3, %v3621_v59 }
0x14ab   :  { %6918 = vmatmul.mubr.msk.f32.gmra.mxu0 %vm761_vm3, %v6911_v30 }
0x14ac   :  { %6924 = vmatprep.mubr.msk.bf16.mxu0 %vm1287_vm4, %v7171_v43 }
0x1567   :  { %v6916_v60 = vpop.f32.mrf.mxu0 }
0x1568   :  { %v3714_v62 = vadd.f32 1e-05, %v6916_v60 }
0x1569   :  { %v3708_v11 = vpop.f32.mrf.mxu0 }
0x156a   :  { %v3709_v53 = vadd.f32 1e-05, %v3708_v11 }
0x156b   :  { %v6919_v37 = vpop.f32.mrf.mxu0 }
0x156c   :  { %v3724_v39 = vadd.f32 1e-05, %v6919_v37  ;;  %7451 = vrsqrt.f32 %v3709_v53 }
0x156d   :  { %v3718_v61 = vpop.f32.mrf.mxu0 }
0x156e   :  { %7453 = vrsqrt.f32 %v3724_v39  ;;  %v3719_v21 = vadd.f32 1e-05, %v3718_v61 }
0x156f   :  { %7455 = vrsqrt.f32 %v3714_v62 }
0x1570   :  { %7457 = vrsqrt.f32 %v3719_v21 }
0x1579   :  { %v7452_v25 = vpop.eup %7451 }
0x157a   :  { %v3731_v52 = vmul.f32 %v7452_v25, %v3537_v6 }
0x157b   :  { %v7454_v35 = vpop.eup %7453 }
0x157c   :  { %v7456_v14 = vpop.eup %7455  ;;  %v3734_v3 = vmul.f32 %v7454_v35, %v3540_v26 }
0x157d   :  { %v7458_v44 = vpop.eup %7457  ;;  %v3732_v9 = vmul.f32 %v7456_v14, %v3538_v8 }
0x157e   :  { %v3733_v50 = vmul.f32 %v7458_v44, %v3539_v16 }
0x157f   :  { %v3760_v47 = vpack.c.bf16 %v3732_v9, %v3731_v52  ;;  %v7177_v9 = vld [vmem:[%s10894_s9 + $0x90] sm:$0xff]  }
0x1580   :  { %v3761_v55 = vpack.c.bf16 %v3734_v3, %v3733_v50 }
0x1582   :  { %6920 = vmatprep.subr.bf16.mxu0 %v3761_v55 }
0x1583   :  { %6921 = vmatpush3.bf16.msra.mxu0 %v3761_v55 }
0x1584   :  { %6922 = vmatprep.subr.bf16.mxu0 %v3760_v47 }
0x1587   :  { %6923 = vmatpush3.bf16.msra.mxu0 %v3760_v47  ;;  %v7178_v47 = vld [vmem:[%s10894_s9 + $0x98] sm:$0xff]  }
0x1588   :  { %6966 = vmatprep.subr.bf16.mxu0 %v10934_v38 }
0x158a   :  { %6925 = vmatmul.mubr.msk.bf16.vlgmr.msra.gmra.mxu0 %vm1287_vm4, %v7172_v27  ;;  %v7179_v27 = vld [vmem:[%s10894_s9 + $0xa0] sm:$0xff]  }
0x158b   :  { %6928 = vmatprep.mubr.msk.bf16.mxu0 %vm1287_vm4, %v7173_v46  ;;  %v7180_v46 = vld [vmem:[%s10894_s9 + $0xa8] sm:$0xff]  }
0x1592   :  { %6929 = vmatmul.mubr.msk.bf16.gmra.mxu0 %vm1287_vm4, %v7174_v49 }
0x1593   :  { %6932 = vmatprep.mubr.msk.bf16.mxu0 %vm1287_vm4, %v7175_v36 }
0x159a   :  { %6933 = vmatmul.mubr.msk.bf16.gmra.mxu0 %vm1287_vm4, %v7176_v40 }
0x159b   :  { %6936 = vmatprep.mubr.msk.bf16.mxu0 %vm1287_vm4, %v7177_v9 }
0x15a2   :  { %6937 = vmatmul.mubr.msk.bf16.gmra.mxu0 %vm1287_vm4, %v7178_v47  ;;  %v9915_v47 = vld [vmem:[%s10895_s2 + $0x48] sm:$0xff] }
0x15a3   :  { %6940 = vmatprep.mubr.msk.bf16.mxu0 %vm1287_vm4, %v7179_v27 }
0x15aa   :  { %6941 = vmatmul.mubr.msk.bf16.gmra.mxu0 %vm1287_vm4, %v7180_v46 }
0x164a   :  { %v6926_v24 = vpop.f32.mrf.mxu0 }
0x164b   :  { %v4045_v2 = vadd.f32 %v6926_v24, %v3799_v13  ;;  %v9825_v13 = vld [vmem:[%s10895_s2] sm:$0xff] }
0x164c   :  { %v4036_v7 = vpop.f32.mrf.mxu0 }
0x164d   :  { %v4037_v51 = vadd.f32 %v4036_v7, %v3789_v32  ;;  %v9816_v32 = vld [vmem:[%s10895_s2 + $0x10] sm:$0xff] }
0x164e   :  { %v6927_v31 = vpop.f32.mrf.mxu0 }
0x164f   :  { %v4048_v58 = vadd.f32 %v6927_v31, %v3804_v34  ;;  %v9833_v31 = vld [vmem:[%s10895_s2 + $0x18] sm:$0xff] }
0x1650   :  { %v4039_v0 = vpop.f32.mrf.mxu0 }
0x1651   :  { %v4132_v17 = vpack.c.bf16 %v4048_v58, %v4045_v2  ;;  %v4040_v29 = vadd.f32 %v4039_v0, %v3794_v28 }
0x1652   :  { %v6930_v57 = vpop.f32.mrf.mxu0 }
0x1653   :  { %v4131_v8 = vpack.c.bf16 %v4040_v29, %v4037_v51  ;;  %6948 = vmatprep.subr.bf16.mxu1 %v4132_v17  ;;  %v4061_v45 = vadd.f32 %v6930_v57, %v3819_v19  ;;  %v9843_v29 = vld [vmem:[%s10895_s2 + $0x8] sm:$0xff] }
0x1654   :  { %v9770_v63 = vpop.f32.mrf.mxu0  ;;  %6949 = vmatpush3.bf16.msra.mxu1 %v4132_v17 }
0x1655   :  { %10957 = vst [vmem:[#allocation6_spill] sm:$0xff] %v9770_v63  ;;  %4133 = vxpose.xlu0.c.b16.start.end [1/1] (short) %v4131_v8, 128  ;;  %v9851_v8 = vld [vmem:[%s10895_s2 + $0x30] sm:$0xff] }
0x1656   :  { %v6931_v6 = vpop.f32.mrf.mxu0 }
0x1657   :  { %v4064_v18 = vadd.f32 %v6931_v6, %v3824_v4 }
0x1658   :  { %v9772_v12 = vpop.f32.mrf.mxu0 }
0x1659   :  { %10958 = vst [vmem:[#allocation7_spill] sm:$0xff] %v9772_v12  ;;  %v4514_v26 = vpack.c.bf16 %v4064_v18, %v4061_v45 }
0x165a   :  { %v9774_v33 = vpop.f32.mrf.mxu0 }
0x165b   :  { %10959 = vst [vmem:[#allocation2_spill] sm:$0xff] %v9774_v33  ;;  %4516 = vxpose.xlu1.c.b16.start.end [1/1] (short) %v4514_v26, 128 }
0x165c   :  { %v4068_v16 = vpop.f32.mrf.mxu0 }
0x165d   :  { %v4069_v30 = vadd.f32 %v4068_v16, %v3829_v56  ;;  %v9861_v56 = vld [vmem:[%s10895_s2 + $0x20] sm:$0xff] }
0x165e   :  { %v9776_v48 = vpop.f32.mrf.mxu0 }
0x165f   :  { %10960 = vst [vmem:[#allocation3_spill] sm:$0xff] %v9776_v48 }
0x1660   :  { %v4071_v15 = vpop.f32.mrf.mxu0 }
0x1661   :  { %v4072_v59 = vadd.f32 %v4071_v15, %v3834_v5  ;;  %v9869_v15 = vld [vmem:[%s10895_s2 + $0x38] sm:$0xff] }
0x1663   :  { %v4515_v43 = vpack.c.bf16 %v4072_v59, %v4069_v30 }
0x1665   :  { %6986 = vmatprep.subr.bf16.mxu1 %v4515_v43 }
0x16b7   :  { %v4141_v60 = vpop.trf.xlu0 }
0x16b8   :  { %6950 = vmatprep.mubr.msk.bf16.mxu1 %vm125_vm0, %v4141_v60 }
0x16bb   :  { %v4142_v11 = vpop.trf.xlu0 }
0x16bc   :  { %6951 = vmatmul.mubr.msk.bf16.vlgmr.msra.gmra.mxu1 %vm125_vm0, %v4142_v11 }
0x16bd   :  { %6987 = vmatpush3.bf16.msra.mxu1 %v4515_v43  ;;  %v4524_v39 = vpop.trf.xlu1 }
0x16be   :  { %7004 = vmatprep.subr.bf16.mxu1 %v10934_v38 }
0x16bf   :  { %v4143_v53 = vpop.trf.xlu0 }
0x16c0   :  { %6954 = vmatprep.mubr.msk.bf16.mxu1 %vm125_vm0, %v4143_v53  ;;  %v9879_v53 = vld [vmem:[%s10895_s2 + $0x28] sm:$0xff] }
0x16c1   :  { %v4525_v21 = vpop.trf.xlu1 }
0x16c3   :  { %v4144_v62 = vpop.trf.xlu0 }
0x16c4   :  { %6955 = vmatmul.mubr.msk.bf16.gmra.mxu1 %vm125_vm0, %v4144_v62 }
0x16c5   :  { %v4526_v14 = vpop.trf.xlu1 }
0x16c7   :  { %v4145_v37 = vpop.trf.xlu0 }
0x16c8   :  { %6958 = vmatprep.mubr.msk.bf16.mxu1 %vm125_vm0, %v4145_v37  ;;  %v9887_v37 = vld [vmem:[%s10895_s2 + $0x50] sm:$0xff] }
0x16c9   :  { %v4527_v44 = vpop.trf.xlu1 }
0x16cb   :  { %v4146_v61 = vpop.trf.xlu0 }
0x16cc   :  { %6959 = vmatmul.mubr.msk.bf16.gmra.mxu1 %vm125_vm0, %v4146_v61 }
0x16cd   :  { %v4528_v50 = vpop.trf.xlu1 }
0x16cf   :  { %v4147_v25 = vpop.trf.xlu0 }
0x16d0   :  { %6962 = vmatprep.mubr.msk.bf16.mxu1 %vm125_vm0, %v4147_v25 }
0x16d1   :  { %v4529_v3 = vpop.trf.xlu1 }
0x16d3   :  { %v4148_v35 = vpop.trf.xlu0 }
0x16d4   :  { %6963 = vmatmul.mubr.msk.bf16.gmra.mxu1 %vm125_vm0, %v4148_v35 }
0x16d5   :  { %6988 = vmatprep.mubr.msk.bf16.mxu1 %vm125_vm0, %v4524_v39  ;;  %v4530_v52 = vpop.trf.xlu1 }
0x16d9   :  { %v4531_v55 = vpop.trf.xlu1 }
0x16dc   :  { %6989 = vmatmul.mubr.msk.bf16.vlgmr.msra.gmra.mxu1 %vm125_vm0, %v4525_v21 }
0x16dd   :  { %6992 = vmatprep.mubr.msk.bf16.mxu1 %vm125_vm0, %v4526_v14  ;;  %v9897_v14 = vld [vmem:[%s10895_s2 + $0x40] sm:$0xff] }
0x16e4   :  { %6993 = vmatmul.mubr.msk.bf16.gmra.mxu1 %vm125_vm0, %v4527_v44 }
0x16e5   :  { %6996 = vmatprep.mubr.msk.bf16.mxu1 %vm125_vm0, %v4528_v50  ;;  %v9905_v50 = vld [vmem:[%s10895_s2 + $0x58] sm:$0xff] }
0x16ec   :  { %6997 = vmatmul.mubr.msk.bf16.gmra.mxu1 %vm125_vm0, %v4529_v3 }
0x16ed   :  { %7000 = vmatprep.mubr.msk.bf16.mxu1 %vm125_vm0, %v4530_v52 }
0x16f4   :  { %7001 = vmatmul.mubr.msk.bf16.gmra.mxu1 %vm125_vm0, %v4531_v55 }
0x16f5   :  { %7020 = vmatprep.mubr.msk.bf16.mxu1 %vm7791_vm5, %v10934_v38 }
0x177c   :  { %v6952_v49 = vpop.f32.mrf.mxu1 }
0x177d   :  { %v4272_v36 = vmul.f32 0.25, %v6952_v49 }
0x177e   :  { %v4207_v40 = vpop.f32.mrf.mxu1 }
0x177f   :  { %v9819_v28 = vadd.f32 %v9816_v32, %v4272_v36  ;;  %v4270_v19 = vmul.f32 0.25, %v4207_v40  ;;  %v9923_v40 = vld [vmem:[%s10895_s2 + $0x60] sm:$0xff] }
0x1780   :  { %v6953_v4 = vpop.f32.mrf.mxu1 }
0x1781   :  { %v4273_v24 = vmul.f32 0.25, %v6953_v4  ;;  %4306 = vmax.xlane.f32.xlu1 %v9819_v28  ;;  %v9828_v34 = vadd.f32 %v9825_v13, %v4270_v19 }
0x1782   :  { %v4210_v7 = vpop.f32.mrf.mxu1 }
0x1783   :  { %v9836_v2 = vadd.f32 %v9833_v31, %v4273_v24  ;;  %v4271_v58 = vmul.f32 0.25, %v4210_v7  ;;  %v9932_v24 = vld [vmem:[%s10895_s2 + $0x70] sm:$0xff] }
0x1784   :  { %v6956_v0 = vpop.f32.mrf.mxu1 }
0x1785   :  { %v4276_v51 = vmul.f32 0.25, %v6956_v0  ;;  %4302 = vmax.xlane.f32.xlu1 %v9828_v34  ;;  %4308 = vmax.xlane.f32.xlu0 %v9836_v2  ;;  %v9846_v57 = vadd.f32 %v9843_v29, %v4271_v58 }
0x1786   :  { %v4223_v17 = vpop.f32.mrf.mxu1 }
0x1787   :  { %v9854_v6 = vadd.f32 %v9851_v8, %v4276_v51  ;;  %v4274_v45 = vmul.f32 0.25, %v4223_v17 }
0x1788   :  { %v6957_v18 = vpop.f32.mrf.mxu1 }
0x1789   :  { %v4277_v26 = vmul.f32 0.25, %v6957_v18  ;;  %4304 = vmax.xlane.f32.xlu0 %v9846_v57  ;;  %4314 = vmax.xlane.f32.xlu1 %v9854_v6  ;;  %v9864_v5 = vadd.f32 %v9861_v56, %v4274_v45  ;;  %v7765_v45 = vld [vmem:[%s10895_s2 + $0x78] sm:$0xff] }
0x178a   :  { %v4226_v16 = vpop.f32.mrf.mxu1 }
0x178b   :  { %v9872_v30 = vadd.f32 %v9869_v15, %v4277_v26  ;;  %v4275_v59 = vmul.f32 0.25, %v4226_v16 }
0x178c   :  { %v6960_v43 = vpop.f32.mrf.mxu1 }
0x178d   :  { %v4280_v60 = vmul.f32 0.25, %v6960_v43  ;;  %4310 = vmax.xlane.f32.xlu1 %v9864_v5  ;;  %4316 = vmax.xlane.f32.xlu0 %v9872_v30  ;;  %v9882_v62 = vadd.f32 %v9879_v53, %v4275_v59 }
0x178e   :  { %v4239_v11 = vpop.f32.mrf.mxu1 }
0x178f   :  { %v9890_v39 = vadd.f32 %v9887_v37, %v4280_v60  ;;  %v4278_v61 = vmul.f32 0.25, %v4239_v11  ;;  %v7766_v11 = vld [vmem:[%s10895_s2 + $0x68] sm:$0xff] }
0x1790   :  { %v6961_v21 = vpop.f32.mrf.mxu1 }
0x1791   :  { %v4281_v25 = vmul.f32 0.25, %v6961_v21  ;;  %4312 = vmax.xlane.f32.xlu0 %v9882_v62  ;;  %4322 = vmax.xlane.f32.xlu1 %v9890_v39  ;;  %v9900_v44 = vadd.f32 %v9897_v14, %v4278_v61 }
0x1792   :  { %v4242_v35 = vpop.f32.mrf.mxu1 }
0x1793   :  { %v9908_v3 = vadd.f32 %v9905_v50, %v4281_v25  ;;  %v4279_v52 = vmul.f32 0.25, %v4242_v35 }
0x1794   :  { %v6964_v55 = vpop.f32.mrf.mxu1 }
0x1795   :  { %4318 = vmax.xlane.f32.xlu1 %v9900_v44  ;;  %4324 = vmax.xlane.f32.xlu0 %v9908_v3  ;;  %v9918_v27 = vadd.f32 %v9915_v47, %v4279_v52  ;;  %v4284_v46 = vmul.f32 0.25, %v6964_v55 }
0x1796   :  { %v4255_v9 = vpop.f32.mrf.mxu1 }
0x1797   :  { %v4282_v49 = vmul.f32 0.25, %v4255_v9  ;;  %v9935_v7 = vadd.f32 %v9932_v24, %v4284_v46 }
0x1798   :  { %v6965_v36 = vpop.f32.mrf.mxu1 }
0x1799   :  { %v9926_v19 = vadd.f32 %v9923_v40, %v4282_v49  ;;  %4320 = vmax.xlane.f32.xlu0 %v9918_v27  ;;  %v4285_v58 = vmul.f32 0.25, %v6965_v36 }
0x179a   :  { %v4258_v4 = vpop.f32.mrf.mxu1 }
0x179b   :  { %4326 = vmax.xlane.f32.xlu1 %v9926_v19  ;;  %v9942_v18 = vadd.f32 %v7765_v45, %v4285_v58  ;;  %v4283_v26 = vmul.f32 0.25, %v4258_v4 }
0x179c   :  { %v6990_v0 = vpop.f32.mrf.mxu1 }
0x179d   :  { %v4655_v51 = vmul.f32 0.25, %v6990_v0  ;;  %4330 = vmax.xlane.f32.xlu0 %v9935_v7  ;;  %v9952_v61 = vadd.f32 %v7766_v11, %v4283_v26 }
0x179e   :  { %v4590_v17 = vpop.f32.mrf.mxu1 }
0x179f   :  { %v9945_v16 = vadd.f32 %v9816_v32, %v4655_v51  ;;  %v4653_v59 = vmul.f32 0.25, %v4590_v17 }
0x17a0   :  { %v6991_v43 = vpop.f32.mrf.mxu1 }
0x17a1   :  { %4332 = vmax.xlane.f32.xlu0 %v9942_v18  ;;  %4689 = vmax.xlane.f32.xlu1 %v9945_v16  ;;  %v9955_v21 = vadd.f32 %v9825_v13, %v4653_v59  ;;  %v4656_v25 = vmul.f32 0.25, %v6991_v43 }
0x17a2   :  { %v4593_v60 = vpop.f32.mrf.mxu1 }
0x17a3   :  { %v9960_v55 = vadd.f32 %v9833_v31, %v4656_v25  ;;  %v4654_v9 = vmul.f32 0.25, %v4593_v60 }
0x17a4   :  { %v6994_v35 = vpop.f32.mrf.mxu1 }
0x17a5   :  { %v4659_v32 = vmul.f32 0.25, %v6994_v35  ;;  %4685 = vmax.xlane.f32.xlu1 %v9955_v21  ;;  %4328 = vmax.xlane.f32.xlu0 %v9952_v61  ;;  %v9968_v4 = vadd.f32 %v9843_v29, %v4654_v9 }
0x17a6   :  { %v4606_v52 = vpop.f32.mrf.mxu1 }
0x17a7   :  { %v9963_v46 = vadd.f32 %v9851_v8, %v4659_v32  ;;  %v4657_v49 = vmul.f32 0.25, %v4606_v52 }
0x17a8   :  { %v6995_v36 = vpop.f32.mrf.mxu1 }
0x17a9   :  { %4697 = vmax.xlane.f32.xlu1 %v9963_v46  ;;  %4691 = vmax.xlane.f32.xlu0 %v9960_v55  ;;  %v9971_v58 = vadd.f32 %v9861_v56, %v4657_v49  ;;  %v4660_v0 = vmul.f32 0.25, %v6995_v36 }
0x17aa   :  { %v4609_v13 = vpop.f32.mrf.mxu1 }
0x17ab   :  { %v9976_v17 = vadd.f32 %v9869_v15, %v4660_v0  ;;  %v4658_v26 = vmul.f32 0.25, %v4609_v13 }
0x17ac   :  { %v6998_v31 = vpop.f32.mrf.mxu1 }
0x17ad   :  { %v4663_v51 = vmul.f32 0.25, %v6998_v31  ;;  %4693 = vmax.xlane.f32.xlu1 %v9971_v58  ;;  %4687 = vmax.xlane.f32.xlu0 %v9968_v4  ;;  %v9984_v60 = vadd.f32 %v9879_v53, %v4658_v26 }
0x17ae   :  { %v4622_v8 = vpop.f32.mrf.mxu1 }
0x17af   :  { %v9979_v59 = vadd.f32 %v9887_v37, %v4663_v51  ;;  %v4661_v29 = vmul.f32 0.25, %v4622_v8 }
0x17b0   :  { %v6999_v43 = vpop.f32.mrf.mxu1 }
0x17b1   :  { %4705 = vmax.xlane.f32.xlu1 %v9979_v59  ;;  %4699 = vmax.xlane.f32.xlu0 %v9976_v17  ;;  %v9987_v25 = vadd.f32 %v9897_v14, %v4661_v29  ;;  %v4664_v35 = vmul.f32 0.25, %v6999_v43 }
0x17b2   :  { %v4625_v56 = vpop.f32.mrf.mxu1 }
0x17b3   :  { %v9992_v32 = vadd.f32 %v9905_v50, %v4664_v35  ;;  %v4662_v52 = vmul.f32 0.25, %v4625_v56 }
0x17b4   :  { %v7002_v15 = vpop.f32.mrf.mxu1 }
0x17b5   :  { %4701 = vmax.xlane.f32.xlu1 %v9987_v25  ;;  %4695 = vmax.xlane.f32.xlu0 %v9984_v60  ;;  %v9999_v14 = vadd.f32 %v9915_v47, %v4662_v52  ;;  %v4667_v13 = vmul.f32 0.25, %v7002_v15  ;;  %v3780_v47 = vld [vmem:[%s10888_s13 + $0x250] sm:$0xff] }
0x17b6   :  { %v4638_v37 = vpop.f32.mrf.mxu1 }
0x17b7   :  { %v4665_v9 = vmul.f32 0.25, %v4638_v37  ;;  %v10006_v50 = vadd.f32 %v9932_v24, %v4667_v13  ;;  %v7181_v24 = vld [vmem:[%s10894_s9 + $0xb0] sm:$0xff]  }
0x17b8   :  { %v7003_v49 = vpop.f32.mrf.mxu1  ;;  %6944 = vmatprep.mubr.msk.bf16.mxu0 %vm1287_vm4, %v7181_v24 }
0x17b9   :  { %v9995_v36 = vadd.f32 %v9923_v40, %v4665_v9  ;;  %v4668_v53 = vmul.f32 0.25, %v7003_v49  ;;  %4707 = vmax.xlane.f32.xlu0 %v9992_v32 }
0x17ba   :  { %v4641_v0 = vpop.f32.mrf.mxu1 }
0x17bb   :  { %4709 = vmax.xlane.f32.xlu1 %v9995_v36  ;;  %v10002_v31 = vadd.f32 %v7765_v45, %v4668_v53  ;;  %v4666_v51 = vmul.f32 0.25, %v4641_v0  ;;  %v3781_v45 = vld [vmem:[%s10888_s13 + $0x258] sm:$0xff] }
0x17bd   :  { %4703 = vmax.xlane.f32.xlu0 %v9999_v14  ;;  %v10010_v40 = vadd.f32 %v7766_v11, %v4666_v51  ;;  %v7182_v11 = vld [vmem:[%s10894_s9 + $0xb8] sm:$0xff]  }
0x17be   :  { %6945 = vmatmul.mubr.msk.bf16.gmra.mxu0 %vm1287_vm4, %v7182_v11 }
0x17bf   :  { %4715 = vmax.xlane.f32.xlu1 %v10002_v31  ;;  %6982 = vmatprep.mubr.msk.bf16.mxu0 %vm7791_vm5, %v10934_v38 }
0x17c1   :  { %4713 = vmax.xlane.f32.xlu0 %v10006_v50 }
0x17c5   :  { %4711 = vmax.xlane.f32.xlu0 %v10010_v40 }
0x17d0   :  { %3878 = vperm.xlu1 %7136, %v3780_v47  }
0x17db   :  { %3883 = vperm.xlu0 %7135, %v3781_v45  }
0x180a   :  { %v4307_v8 = vpop.xlane.xlu1 %4306 }
0x180b   :  { %v4336_v26 = vsub.f32 %v9819_v28, %v4307_v8 }
0x180d   :  { %v4354_v29 = vmul.f32 1.442695, %v4336_v26 }
0x180e   :  { %v10030_v43 = vpop.xlane.xlu1 %4302  ;;  %v4309_v56 = vpop.xlane.xlu0 %4308 }
0x180f   :  { %7459 = vpow2.f32 %v4354_v29  ;;  %v4337_v35 = vsub.f32 %v9836_v2, %v4309_v56 }
0x1811   :  { %v4356_v15 = vmul.f32 1.442695, %v4337_v35 }
0x1812   :  { %v4315_v37 = vpop.xlane.xlu1 %4314  ;;  %v10033_v52 = vpop.xlane.xlu0 %4304 }
0x1813   :  { %v4340_v9 = vsub.f32 %v9854_v6, %v4315_v37  ;;  %7461 = vpow2.f32 %v4356_v15 }
0x1815   :  { %v4362_v49 = vmul.f32 1.442695, %v4340_v9 }
0x1816   :  { %v4311_v53 = vpop.xlane.xlu1 %4310  ;;  %v4317_v13 = vpop.xlane.xlu0 %4316 }
0x1817   :  { %7463 = vpow2.f32 %v4362_v49  ;;  %v4338_v28 = vsub.f32 %v9864_v5, %v4311_v53  ;;  %v4341_v0 = vsub.f32 %v9872_v30, %v4317_v13 }
0x1819   :  { %v4358_v51 = vmul.f32 1.442695, %v4338_v28  ;;  %v4364_v47 = vmul.f32 1.442695, %v4341_v0 }
0x181a   :  { %v4323_v45 = vpop.xlane.xlu1 %4322  ;;  %v4313_v24 = vpop.xlane.xlu0 %4312 }
0x181b   :  { %7465 = vpow2.f32 %v4358_v51  ;;  %v4344_v2 = vsub.f32 %v9890_v39, %v4323_v45  ;;  %v4339_v11 = vsub.f32 %v9882_v62, %v4313_v24 }
0x181c   :  { %v10040_v8 = vpop.eup %7459  ;;  %7467 = vpow2.f32 %v4364_v47 }
0x181d   :  { %v4370_v6 = vmul.f32 1.442695, %v4344_v2  ;;  %v4360_v26 = vmul.f32 1.442695, %v4339_v11  ;;  %4386 = vadd.xlane.f32.xlu1 %v10040_v8 }
0x181e   :  { %v4319_v29 = vpop.xlane.xlu1 %4318  ;;  %v4325_v5 = vpop.xlane.xlu0 %4324 }
0x181f   :  { %7469 = vpow2.f32 %v4370_v6  ;;  %v4342_v30 = vsub.f32 %v9900_v44, %v4319_v29  ;;  %v4345_v56 = vsub.f32 %v9908_v3, %v4325_v5 }
0x1820   :  { %7471 = vpow2.f32 %v4360_v26  ;;  %v10045_v35 = vpop.eup %7461 }
0x1821   :  { %v4366_v39 = vmul.f32 1.442695, %v4342_v30  ;;  %v4372_v15 = vmul.f32 1.442695, %v4345_v56  ;;  %4388 = vadd.xlane.f32.xlu0 %v10045_v35 }
0x1822   :  { %v4321_v62 = vpop.xlane.xlu0 %4320 }
0x1823   :  { %7473 = vpow2.f32 %v4366_v39  ;;  %v4343_v37 = vsub.f32 %v9918_v27, %v4321_v62 }
0x1824   :  { %v10049_v9 = vpop.eup %7463  ;;  %7475 = vpow2.f32 %v4372_v15  ;;  %v4327_v49 = vpop.xlane.xlu1 %4326 }
0x1825   :  { %v4368_v53 = vmul.f32 1.442695, %v4343_v37  ;;  %4394 = vadd.xlane.f32.xlu1 %v10049_v9  ;;  %v4346_v3 = vsub.f32 %v9926_v19, %v4327_v49 }
0x1826   :  { %v4331_v44 = vpop.xlane.xlu0 %4330 }
0x1827   :  { %7477 = vpow2.f32 %v4368_v53  ;;  %v4348_v13 = vsub.f32 %v9935_v7, %v4331_v44  ;;  %v4374_v45 = vmul.f32 1.442695, %v4346_v3 }
0x1828   :  { %v10054_v28 = vpop.eup %7465 }
0x1829   :  { %v10056_v0 = vpop.eup %7467  ;;  %v4378_v51 = vmul.f32 1.442695, %v4348_v13  ;;  %4390 = vadd.xlane.f32.xlu1 %v10054_v28 }
0x182a   :  { %4396 = vadd.xlane.f32.xlu0 %v10056_v0  ;;  %v4690_v27 = vpop.xlane.xlu1 %4689  ;;  %v4333_v47 = vpop.xlane.xlu0 %4332 }
0x182b   :  { %7479 = vpow2.f32 %v4378_v51  ;;  %v4719_v24 = vsub.f32 %v9945_v16, %v4690_v27  ;;  %v4349_v2 = vsub.f32 %v9942_v18, %v4333_v47 }
0x182c   :  { %v10062_v19 = vpop.eup %7469  ;;  %7481 = vpow2.f32 %v4374_v45 }
0x182d   :  { %v10064_v7 = vpop.eup %7471  ;;  %v4380_v11 = vmul.f32 1.442695, %v4349_v2  ;;  %4402 = vadd.xlane.f32.xlu1 %v10062_v19  ;;  %v4737_v29 = vmul.f32 1.442695, %v4719_v24 }
0x182e   :  { %4392 = vadd.xlane.f32.xlu0 %v10064_v7  ;;  %v4686_v6 = vpop.xlane.xlu1 %4685  ;;  %v4329_v26 = vpop.xlane.xlu0 %4328 }
0x182f   :  { %v4717_v5 = vsub.f32 %v9955_v21, %v4686_v6  ;;  %v4347_v30 = vsub.f32 %v9952_v61, %v4329_v26  ;;  %7483 = vpow2.f32 %v4380_v11 }
0x1830   :  { %v10070_v16 = vpop.eup %7473  ;;  %7485 = vpow2.f32 %v4737_v29 }
0x1831   :  { %v10072_v18 = vpop.eup %7475  ;;  %v4376_v56 = vmul.f32 1.442695, %v4347_v30  ;;  %4398 = vadd.xlane.f32.xlu1 %v10070_v16  ;;  %v4733_v62 = vmul.f32 1.442695, %v4717_v5 }
0x1832   :  { %4404 = vadd.xlane.f32.xlu0 %v10072_v18  ;;  %v4698_v39 = vpop.xlane.xlu1 %4697  ;;  %v4692_v15 = vpop.xlane.xlu0 %4691 }
0x1833   :  { %v4723_v37 = vsub.f32 %v9963_v46, %v4698_v39  ;;  %v4720_v21 = vsub.f32 %v9960_v55, %v4692_v15  ;;  %7487 = vpow2.f32 %v4376_v56 }
0x1834   :  { %v10078_v49 = vpop.eup %7477  ;;  %7489 = vpow2.f32 %v4733_v62 }
0x1835   :  { %v4739_v61 = vmul.f32 1.442695, %v4720_v21  ;;  %v4745_v3 = vmul.f32 1.442695, %v4723_v37 }
0x1836   :  { %4400 = vadd.xlane.f32.xlu0 %v10078_v49  ;;  %v4694_v53 = vpop.xlane.xlu1 %4693  ;;  %v4688_v44 = vpop.xlane.xlu0 %4687 }
0x1837   :  { %v4721_v13 = vsub.f32 %v9971_v58, %v4694_v53  ;;  %v4718_v51 = vsub.f32 %v9968_v4, %v4688_v44  ;;  %7491 = vpow2.f32 %v4739_v61 }
0x1838   :  { %v10083_v27 = vpop.eup %7479  ;;  %7493 = vpow2.f32 %v4745_v3 }
0x1839   :  { %v4735_v46 = vmul.f32 1.442695, %v4718_v51  ;;  %4410 = vadd.xlane.f32.xlu1 %v10083_v27  ;;  %v4741_v45 = vmul.f32 1.442695, %v4721_v13  ;;  %v10088_v11 = vpop.eup %7481 }
0x183a   :  { %v4706_v55 = vpop.xlane.xlu1 %4705  ;;  %v4700_v47 = vpop.xlane.xlu0 %4699 }
0x183b   :  { %v4727_v24 = vsub.f32 %v9979_v59, %v4706_v55  ;;  %v4724_v2 = vsub.f32 %v9976_v17, %v4700_v47  ;;  %7495 = vpow2.f32 %v4735_v46 }
0x183c   :  { %v10090_v58 = vpop.eup %7483  ;;  %7497 = vpow2.f32 %v4741_v45 }
0x183d   :  { %v4747_v4 = vmul.f32 1.442695, %v4724_v2  ;;  %4406 = vadd.xlane.f32.xlu1 %v10088_v11  ;;  %4412 = vadd.xlane.f32.xlu0 %v10090_v58  ;;  %v4753_v29 = vmul.f32 1.442695, %v4727_v24  ;;  %v10096_v30 = vpop.eup %7485 }
0x183e   :  { %v4702_v6 = vpop.xlane.xlu1 %4701  ;;  %v4696_v26 = vpop.xlane.xlu0 %4695 }
0x183f   :  { %v4725_v5 = vsub.f32 %v9987_v25, %v4702_v6  ;;  %v4722_v59 = vsub.f32 %v9984_v60, %v4696_v26  ;;  %7499 = vpow2.f32 %v4747_v4 }
0x1840   :  { %v10098_v17 = vpop.eup %7487  ;;  %7501 = vpow2.f32 %v4753_v29 }
0x1841   :  { %v4743_v56 = vmul.f32 1.442695, %v4722_v59  ;;  %4769 = vadd.xlane.f32.xlu1 %v10096_v30  ;;  %v4749_v39 = vmul.f32 1.442695, %v4725_v5  ;;  %4408 = vadd.xlane.f32.xlu0 %v10098_v17  ;;  %v10103_v37 = vpop.eup %7489 }
0x1842   :  { %v4708_v15 = vpop.xlane.xlu0 %4707 }
0x1843   :  { %v4728_v62 = vsub.f32 %v9992_v32, %v4708_v15  ;;  %7503 = vpow2.f32 %v4743_v56 }
0x1844   :  { %v4710_v25 = vpop.xlane.xlu1 %4709  ;;  %v10105_v60 = vpop.eup %7491  ;;  %7505 = vpow2.f32 %v4749_v39 }
0x1845   :  { %v4755_v21 = vmul.f32 1.442695, %v4728_v62  ;;  %4765 = vadd.xlane.f32.xlu1 %v10103_v37  ;;  %4771 = vadd.xlane.f32.xlu0 %v10105_v60  ;;  %v10110_v44 = vpop.eup %7493  ;;  %v4729_v46 = vsub.f32 %v9995_v36, %v4710_v25  ;;  %v3774_v62 = vld [vmem:[%s10888_s13 + $0x220] sm:$0xff]  ;;  %v3775_v25 = vld [vmem:[%s10888_s13 + $0x228] sm:$0xff] }
0x1846   :  { %v4704_v61 = vpop.xlane.xlu0 %4703 }
0x1847   :  { %7507 = vpow2.f32 %v4755_v21  ;;  %v4726_v53 = vsub.f32 %v9999_v14, %v4704_v61  ;;  %v4757_v4 = vmul.f32 1.442695, %v4729_v46  ;;  %v4334_v21 = vsub.f32 %v9828_v34, %v10030_v43  ;;  %v3772_v46 = vld [vmem:[%s10888_s13 + $0x210] sm:$0xff] }
0x1848   :  { %v4716_v3 = vpop.xlane.xlu1 %4715  ;;  %v10112_v32 = vpop.eup %7495  ;;  %v4335_v61 = vsub.f32 %v9846_v57, %v10033_v52  ;;  %v3766_v57 = vld [vmem:[%s10888_s13 + $0x1e0] sm:$0xff]  ;;  %v3773_v52 = vld [vmem:[%s10888_s13 + $0x218] sm:$0xff] }
0x1849   :  { %v4751_v13 = vmul.f32 1.442695, %v4726_v53  ;;  %v4732_v51 = vsub.f32 %v10002_v31, %v4716_v3  ;;  %4777 = vadd.xlane.f32.xlu1 %v10110_v44  ;;  %4767 = vadd.xlane.f32.xlu0 %v10112_v32  ;;  %v10119_v45 = vpop.eup %7497  ;;  %v4350_v53 = vmul.f32 1.442695, %v4334_v21  ;;  %v3777_v21 = vld [vmem:[%s10888_s13 + $0x238] sm:$0xff] }
0x184a   :  { %v4714_v55 = vpop.xlane.xlu0 %4713  ;;  %v4352_v3 = vmul.f32 1.442695, %v4335_v61 }
0x184b   :  { %7509 = vpow2.f32 %v4751_v13  ;;  %v4731_v47 = vsub.f32 %v10006_v50, %v4714_v55  ;;  %v4763_v14 = vmul.f32 1.442695, %v4732_v51 }
0x184c   :  { %v10121_v24 = vpop.eup %7499  ;;  %v3879_v34 = vpop.permute.xlu1 %3878 }
0x184d   :  { %v4761_v2 = vmul.f32 1.442695, %v4731_v47  ;;  %4773 = vadd.xlane.f32.xlu1 %v10119_v45  ;;  %4779 = vadd.xlane.f32.xlu0 %v10121_v24  ;;  %v10126_v6 = vpop.eup %7501  ;;  %v3767_v47 = vld [vmem:[%s10888_s13 + $0x1e8] sm:$0xff] }
0x184e   :  { %v4712_v31 = vpop.xlane.xlu0 %4711 }
0x184f   :  { %7511 = vpow2.f32 %v4761_v2  ;;  %v4730_v36 = vsub.f32 %v10010_v40, %v4712_v31  ;;  %v3782_v2 = vld [vmem:[%s10888_s13 + $0x260] sm:$0xff]  ;;  %v3783_v31 = vld [vmem:[%s10888_s13 + $0x268] sm:$0xff] }
0x1850   :  { %7513 = vpow2.f32 %v4763_v14  ;;  %v10128_v26 = vpop.eup %7503 }
0x1851   :  { %v4759_v50 = vmul.f32 1.442695, %v4730_v36  ;;  %4785 = vadd.xlane.f32.xlu1 %v10126_v6  ;;  %7515 = vpow2.f32 %v4757_v4  ;;  %4775 = vadd.xlane.f32.xlu0 %v10128_v26  ;;  %v10132_v29 = vpop.eup %7505 }
0x1853   :  { %7517 = vpow2.f32 %v4759_v50  ;;  %v3776_v50 = vld [vmem:[%s10888_s13 + $0x230] sm:$0xff] }
0x1854   :  { %v10134_v5 = vpop.eup %7507  ;;  %7519 = vpow2.f32 %v4350_v53 }
0x1855   :  { %4781 = vadd.xlane.f32.xlu1 %v10132_v29  ;;  %4787 = vadd.xlane.f32.xlu0 %v10134_v5  ;;  %7521 = vpow2.f32 %v4352_v3 }
0x1856   :  { %v3884_v55 = vpop.permute.xlu0 %3883 }
0x1858   :  { %v10138_v40 = vpop.eup %7509 }
0x1859   :  { %4783 = vadd.xlane.f32.xlu0 %v10138_v40 }
0x185c   :  { %v10141_v59 = vpop.eup %7511 }
0x185d   :  { %v10143_v56 = vpop.eup %7513  ;;  %4793 = vadd.xlane.f32.xlu1 %v10141_v59 }
0x185e   :  { %4795 = vadd.xlane.f32.xlu0 %v10143_v56  ;;  %v10147_v39 = vpop.eup %7515 }
0x1860   :  { %v10149_v15 = vpop.eup %7517 }
0x1861   :  { %4789 = vadd.xlane.f32.xlu1 %v10147_v39  ;;  %v10163_v13 = vpop.eup %7519 }
0x1862   :  { %4791 = vadd.xlane.f32.xlu0 %v10149_v15  ;;  %v10165_v51 = vpop.eup %7521 }
0x1872   :  { %3848 = vperm.xlu1 %7136, %v3774_v62  }
0x1878   :  { %3853 = vperm.xlu0 %7135, %v3775_v25   ;;  %v10198_v25 = vpop.f32.mrf.mxu0 }
0x187a   :  { %v10205_v53 = vpop.f32.mrf.mxu0 }
0x1896   :  { %4382 = vadd.xlane.f32.xlu1 %v10163_v13 }
0x1897   :  { %4384 = vadd.xlane.f32.xlu0 %v10165_v51 }
0x18a6   :  { %v10175_v43 = vpop.xlane.xlu1 %4386 }
0x18a7   :  { %3838 = vperm.xlu1 %7136, %v3772_v46   ;;  %v10207_v46 = vpop.f32.mrf.mxu0 }
0x18a8   :  { %10961 = vst [vmem:[#allocation4_spill] sm:$0xff] %v10207_v46 }
0x18aa   :  { %v10188_v4 = vpop.xlane.xlu0 %4388 }
0x18ab   :  { %3808 = vperm.xlu1 %7136, %v3766_v57  }
0x18ad   :  { %3843 = vperm.xlu0 %7135, %v3773_v52  }
0x18ae   :  { %v10183_v14 = vpop.xlane.xlu1 %4394 }
0x18af   :  { %3813 = vperm.xlu1 %7136, %v3767_v47   ;;  %v10209_v47 = vpop.f32.mrf.mxu0 }
0x18b1   :  { %3888 = vperm.xlu0 %7135, %v3782_v2   ;;  %v6942_v20 = vpop.f32.mrf.mxu0 }
0x18b2   :  { %v10193_v36 = vpop.xlane.xlu1 %4390  ;;  %v4109_v10 = vadd.f32 %v6942_v20, %v3879_v34 }
0x18b3   :  { %v4397_v62 = vpop.xlane.xlu0 %4396  ;;  %3893 = vperm.xlu1 %7136, %v3783_v31   ;;  %v10211_v23 = vpop.f32.mrf.mxu0 }
0x18b4   :  { %10962 = vst [vmem:[#allocation5_spill] sm:$0xff] %v10211_v23 }
0x18b5   :  { %3858 = vperm.xlu0 %7135, %v3776_v50   ;;  %v6943_v54 = vpop.f32.mrf.mxu0 }
0x18b6   :  { %v4403_v3 = vpop.xlane.xlu1 %4402  ;;  %v4112_v1 = vadd.f32 %v6943_v54, %v3884_v55 }
0x18b7   :  { %v10203_v61 = vpop.xlane.xlu0 %4392  ;;  %3863 = vperm.xlu1 %7136, %v3777_v21  }
0x18b8   :  { %v5280_v12 = vpack.c.bf16 %v4112_v1, %v4109_v10  ;;  %v10232_v1 = vld [vmem:[%s10896_s1] ss:$0 sm:$0xff] }
0x18ba   :  { %v4399_v52 = vpop.xlane.xlu1 %4398 }
0x18bb   :  { %v4405_v57 = vpop.xlane.xlu0 %4404 }
0x18bf   :  { %v4401_v31 = vpop.xlane.xlu0 %4400 }
0x18c2   :  { %v4411_v2 = vpop.xlane.xlu1 %4410 }
0x18c3   :  { %7523 = vrcp.f32 %v4411_v2 }
0x18c6   :  { %v4407_v42 = vpop.xlane.xlu1 %4406  ;;  %v4413_v50 = vpop.xlane.xlu0 %4412 }
0x18c7   :  { %7525 = vrcp.f32 %v4413_v50 }
0x18c8   :  { %7527 = vrcp.f32 %v4407_v42 }
0x18ca   :  { %v10213_v21 = vpop.xlane.xlu1 %4769  ;;  %v4409_v22 = vpop.xlane.xlu0 %4408 }
0x18cb   :  { %7529 = vrcp.f32 %v4409_v22 }
0x18cc   :  { %7531 = vrcp.f32 %v4405_v57 }
0x18cd   :  { %7533 = vrcp.f32 %v4403_v3 }
0x18ce   :  { %v10215_v41 = vpop.xlane.xlu1 %4765  ;;  %v10217_v63 = vpop.xlane.xlu0 %4771  ;;  %7535 = vrcp.f32 %v4401_v31 }
0x18cf   :  { %7537 = vrcp.f32 %v4399_v52 }
0x18d0   :  { %v7524_v33 = vpop.eup %7523  ;;  %7539 = vrcp.f32 %v4397_v62 }
0x18d1   :  { %v4444_v50 = vmul.f32 %v7524_v33, %v10083_v27  ;;  %7541 = vrcp.f32 %v10183_v14 }
0x18d2   :  { %v10219_v2 = vpop.xlane.xlu1 %4777  ;;  %v10221_v23 = vpop.xlane.xlu0 %4767 }
0x18d3   :  { %5282 = vxpose.xlu0.c.b16.start.end [1/1] (short) %v5280_v12, 128  ;;  %v4460_v10 = vmul.f32 %v10232_v1, %v4444_v50 }
0x18d4   :  { %v7526_v42 = vpop.eup %7525 }
0x18d5   :  { %v4445_v54 = vmul.f32 %v7526_v42, %v10090_v58  ;;  %v7528_v20 = vpop.eup %7527 }
0x18d6   :  { %v10224_v48 = vpop.xlane.xlu1 %4773  ;;  %v10227_v22 = vpop.xlane.xlu0 %4779  ;;  %v4442_v3 = vmul.f32 %v7528_v20, %v10088_v11 }
0x18d7   :  { %v4461_v12 = vmul.f32 %v10232_v1, %v4445_v54 }
0x18d8   :  { %v7530_v34 = vpop.eup %7529  ;;  %v4458_v54 = vmul.f32 %v10232_v1, %v4442_v3 }
0x18d9   :  { %v4470_v33 = vpack.c.bf16 %v4461_v12, %v4460_v10  ;;  %v4443_v27 = vmul.f32 %v7530_v34, %v10098_v17  ;;  %v7532_v42 = vpop.eup %7531 }
0x18da   :  { %v10237_v55 = vpop.xlane.xlu0 %4775  ;;  %v4786_v58 = vpop.xlane.xlu1 %4785  ;;  %v4441_v10 = vmul.f32 %v7532_v42, %v10072_v18 }
0x18db   :  { %6967 = vmatpush3.bf16.xpose.msra.mxu0 %v4470_v33  ;;  %v4459_v57 = vmul.f32 %v10232_v1, %v4443_v27  ;;  %v7534_v46 = vpop.eup %7533 }
0x18dc   :  { %6968 = vmatprep.subr.bf16.mxu0 %v10934_v38  ;;  %v4440_v11 = vmul.f32 %v7534_v46, %v10062_v19  ;;  %v4457_v12 = vmul.f32 %v10232_v1, %v4441_v10  ;;  %v7536_v34 = vpop.eup %7535 }
0x18dd   :  { %v4469_v17 = vpack.c.bf16 %v4459_v57, %v4458_v54  ;;  %v7538_v27 = vpop.eup %7537  ;;  %v4439_v19 = vmul.f32 %v7536_v34, %v10078_v49 }
0x18de   :  { %v4788_v50 = vpop.xlane.xlu0 %4787  ;;  %v10243_v31 = vpop.xlane.xlu1 %4781  ;;  %v4456_v62 = vmul.f32 %v10232_v1, %v4440_v11  ;;  %v4438_v3 = vmul.f32 %v7538_v27, %v10070_v16 }
0x18df   :  { %v7540_v57 = vpop.eup %7539  ;;  %v4455_v42 = vmul.f32 %v10232_v1, %v4439_v19 }
0x18e0   :  { %v4468_v14 = vpack.c.bf16 %v4457_v12, %v4456_v62  ;;  %v7542_v54 = vpop.eup %7541 }
0x18e1   :  { %v4436_v16 = vmul.f32 %v7542_v54, %v10049_v9 }
0x18e2   :  { %v4784_v52 = vpop.xlane.xlu0 %4783 }
0x18e3   :  { %6969 = vmatpush3.bf16.xpose.msra.mxu0 %v4469_v17  ;;  %v4437_v17 = vmul.f32 %v7540_v57, %v10056_v0  ;;  %v4452_v9 = vmul.f32 %v10232_v1, %v4436_v16 }
0x18e4   :  { %6970 = vmatprep.subr.bf16.mxu0 %v10934_v38 }
0x18e6   :  { %v4794_v20 = vpop.xlane.xlu1 %4793 }
0x18e7   :  { %7543 = vrcp.f32 %v4794_v20  ;;  %v4796_v33 = vpop.xlane.xlu0 %4795 }
0x18e8   :  { %7545 = vrcp.f32 %v4796_v33 }
0x18e9   :  { %7547 = vrcp.f32 %v10203_v61  ;;  %v4454_v61 = vmul.f32 %v10232_v1, %v4438_v3 }
0x18ea   :  { %7549 = vrcp.f32 %v10193_v36  ;;  %v4790_v18 = vpop.xlane.xlu1 %4789 }
0x18eb   :  { %7551 = vrcp.f32 %v4790_v18  ;;  %v4792_v46 = vpop.xlane.xlu0 %4791  ;;  %6971 = vmatpush3.bf16.xpose.msra.mxu0 %v4468_v14  ;;  %v4467_v49 = vpack.c.bf16 %v4455_v42, %v4454_v61 }
0x18ec   :  { %7553 = vrcp.f32 %v4792_v46  ;;  %6972 = vmatprep.subr.bf16.mxu0 %v10934_v38 }
0x18ed   :  { %7555 = vrcp.f32 %v10188_v4  ;;  %v4453_v4 = vmul.f32 %v10232_v1, %v4437_v17 }
0x18ee   :  { %v3849_v36 = vpop.permute.xlu1 %3848  ;;  %7557 = vrcp.f32 %v4788_v50 }
0x18ef   :  { %7559 = vrcp.f32 %v10175_v43  ;;  %v4085_v20 = vadd.f32 %v10205_v53, %v3849_v36  ;;  %v4466_v18 = vpack.c.bf16 %v4453_v4, %v4452_v9  ;;  %v10315_v9 = vpop.f32.mrf.mxu0 }
0x18f0   :  { %7561 = vrcp.f32 %v4786_v58 }
0x18f1   :  { %7563 = vrcp.f32 %v4784_v52 }
0x18f2   :  { %7565 = vrcp.f32 %v10243_v31 }
0x18f3   :  { %v3854_v10 = vpop.permute.xlu0 %3853  ;;  %6973 = vmatpush3.bf16.xpose.msra.mxu0 %v4467_v49  ;;  %7567 = vrcp.f32 %v10227_v22 }
0x18f4   :  { %v7544_v11 = vpop.eup %7543  ;;  %v4088_v12 = vadd.f32 %v10209_v47, %v3854_v10  ;;  %6974 = vmatprep.subr.bf16.mxu0 %v10934_v38  ;;  %7569 = vrcp.f32 %v10219_v2 }
0x18f5   :  { %v7546_v34 = vpop.eup %7545  ;;  %v4827_v0 = vmul.f32 %v7544_v11, %v10141_v59  ;;  %7571 = vrcp.f32 %v10237_v55 }
0x18f6   :  { %v7548_v50 = vpop.eup %7547  ;;  %v4897_v33 = vpack.c.bf16 %v4088_v12, %v4085_v20  ;;  %v4828_v43 = vmul.f32 %v7546_v34, %v10143_v56  ;;  %7573 = vrcp.f32 %v10224_v48 }
0x18f7   :  { %v7550_v62 = vpop.eup %7549  ;;  %v4843_v58 = vmul.f32 %v10232_v1, %v4827_v0  ;;  %v4435_v14 = vmul.f32 %v7548_v50, %v10064_v7  ;;  %7575 = vrcp.f32 %v10217_v63 }
0x18f8   :  { %v7552_v53 = vpop.eup %7551  ;;  %4899 = vxpose.xlu1.c.b16.start.end [1/1] (short) %v4897_v33, 128  ;;  %v4844_v47 = vmul.f32 %v10232_v1, %v4828_v43  ;;  %v4434_v56 = vmul.f32 %v7550_v62, %v10054_v28  ;;  %7577 = vrcp.f32 %v10213_v21 }
0x18f9   :  { %v7554_v27 = vpop.eup %7553  ;;  %v4825_v59 = vmul.f32 %v7552_v53, %v10147_v39  ;;  %v4451_v57 = vmul.f32 %v10232_v1, %v4435_v14  ;;  %7579 = vrcp.f32 %v10221_v23 }
0x18fa   :  { %v4853_v19 = vpack.c.bf16 %v4844_v47, %v4843_v58  ;;  %v4826_v46 = vmul.f32 %v7554_v27, %v10149_v15  ;;  %v7556_v3 = vpop.eup %7555  ;;  %v4450_v15 = vmul.f32 %v10232_v1, %v4434_v56  ;;  %7581 = vrcp.f32 %v10215_v41 }
0x18fb   :  { %6975 = vmatpush3.bf16.xpose.msra.mxu0 %v4466_v18  ;;  %v4841_v7 = vmul.f32 %v10232_v1, %v4825_v59  ;;  %v7558_v39 = vpop.eup %7557  ;;  %v4433_v54 = vmul.f32 %v7556_v3, %v10045_v35 }
0x18fc   :  { %7005 = vmatpush3.bf16.xpose.msra.mxu1 %v4853_v19  ;;  %6976 = vmatprep.subr.bf16.mxu0 %v10934_v38  ;;  %v4842_v52 = vmul.f32 %v10232_v1, %v4826_v46  ;;  %v7560_v42 = vpop.eup %7559  ;;  %v4465_v28 = vpack.c.bf16 %v4451_v57, %v4450_v15  ;;  %v4824_v36 = vmul.f32 %v7558_v39, %v10134_v5 }
0x18fd   :  { %7006 = vmatprep.subr.bf16.mxu1 %v10934_v38  ;;  %v7562_v31 = vpop.eup %7561  ;;  %v4432_v17 = vmul.f32 %v7560_v42, %v10040_v8  ;;  %v4449_v35 = vmul.f32 %v10232_v1, %v4433_v54 }
0x18fe   :  { %v4852_v61 = vpack.c.bf16 %v4842_v52, %v4841_v7  ;;  %v4823_v49 = vmul.f32 %v7562_v31, %v10126_v6  ;;  %v4840_v22 = vmul.f32 %v10232_v1, %v4824_v36  ;;  %v7564_v10 = vpop.eup %7563 }
0x18ff   :  { %v4448_v16 = vmul.f32 %v10232_v1, %v4432_v17  ;;  %v7566_v2 = vpop.eup %7565  ;;  %v4822_v6 = vmul.f32 %v7564_v10, %v10138_v40 }
0x1900   :  { %v4839_v5 = vmul.f32 %v10232_v1, %v4823_v49  ;;  %v4821_v20 = vmul.f32 %v7566_v2, %v10132_v29  ;;  %v7568_v34 = vpop.eup %7567 }
0x1901   :  { %v4464_v11 = vpack.c.bf16 %v4449_v35, %v4448_v16  ;;  %v4838_v12 = vmul.f32 %v10232_v1, %v4822_v6  ;;  %v7570_v55 = vpop.eup %7569  ;;  %v4820_v40 = vmul.f32 %v7568_v34, %v10121_v24  ;;  %v10963_v6 = vld [vmem:[#allocation4_spill] sm:$0xff]  ;;  %v10965_v34 = vld [vmem:[#allocation7_spill] sm:$0xff] }
0x1902   :  { %v4851_v8 = vpack.c.bf16 %v4840_v22, %v4839_v5  ;;  %v4837_v4 = vmul.f32 %v10232_v1, %v4821_v20  ;;  %v4819_v48 = vmul.f32 %v7570_v55, %v10110_v44  ;;  %v7572_v50 = vpop.eup %7571  ;;  %v10964_v20 = vld [vmem:[#allocation3_spill] sm:$0xff] }
0x1903   :  { %6977 = vmatpush3.bf16.xpose.msra.mxu0 %v4465_v28  ;;  %v4836_v29 = vmul.f32 %v10232_v1, %v4820_v40  ;;  %v7574_v43 = vpop.eup %7573  ;;  %v4818_v63 = vmul.f32 %v7572_v50, %v10128_v26  ;;  %v10318_v26 = vpop.f32.mrf.mxu0 }
0x1904   :  { %7007 = vmatpush3.bf16.xpose.msra.mxu1 %v4852_v61  ;;  %6978 = vmatprep.subr.bf16.mxu0 %v10934_v38  ;;  %v4850_v0 = vpack.c.bf16 %v4838_v12, %v4837_v4  ;;  %v4835_v33 = vmul.f32 %v10232_v1, %v4819_v48  ;;  %v4817_v24 = vmul.f32 %v7574_v43, %v10119_v45  ;;  %v7576_v21 = vpop.eup %7575 }
0x1905   :  { %7008 = vmatprep.subr.bf16.mxu1 %v10934_v38  ;;  %v4834_v44 = vmul.f32 %v10232_v1, %v4818_v63  ;;  %v7578_v47 = vpop.eup %7577  ;;  %v4816_v27 = vmul.f32 %v7576_v21, %v10105_v60  ;;  %v4116_v14 = vpop.f32.mrf.mxu0 }
0x1906   :  { %v4849_v62 = vpack.c.bf16 %v4836_v29, %v4835_v33  ;;  %v4833_v23 = vmul.f32 %v10232_v1, %v4817_v24  ;;  %v4815_v18 = vmul.f32 %v7578_v47, %v10096_v30  ;;  %v7580_v59 = vpop.eup %7579 }
0x1907   :  { %v4832_v19 = vmul.f32 %v10232_v1, %v4816_v27  ;;  %v7582_v57 = vpop.eup %7581  ;;  %v10325_v7 = vpop.f32.mrf.mxu0  ;;  %v4814_v60 = vmul.f32 %v7580_v59, %v10112_v32 }
0x1908   :  { %v4848_v41 = vpack.c.bf16 %v4834_v44, %v4833_v23  ;;  %v4831_v3 = vmul.f32 %v10232_v1, %v4815_v18  ;;  %v4813_v30 = vmul.f32 %v7582_v57, %v10103_v37 }
0x1909   :  { %v4119_v31 = vpop.f32.mrf.mxu0  ;;  %v4830_v28 = vmul.f32 %v10232_v1, %v4814_v60 }
0x190a   :  { %v4847_v52 = vpack.c.bf16 %v4832_v19, %v4831_v3  ;;  %v4829_v32 = vmul.f32 %v10232_v1, %v4813_v30 }
0x190b   :  { %6979 = vmatpush3.bf16.xpose.msra.mxu0 %v4464_v11 }
0x190c   :  { %7009 = vmatpush3.bf16.xpose.msra.mxu1 %v4851_v8  ;;  %6980 = vmatprep.subr.bf16.mxu0 %v10934_v38  ;;  %v4846_v5 = vpack.c.bf16 %v4830_v28, %v4829_v32 }
0x190d   :  { %7010 = vmatprep.subr.bf16.mxu1 %v10934_v38 }
0x1914   :  { %7011 = vmatpush3.bf16.xpose.msra.mxu1 %v4850_v0  ;;  %v10966_v0 = vld [vmem:[#allocation2_spill] sm:$0xff] }
0x1915   :  { %7012 = vmatprep.subr.bf16.mxu1 %v10934_v38 }
0x191c   :  { %7013 = vmatpush3.bf16.xpose.msra.mxu1 %v4849_v62 }
0x191d   :  { %7014 = vmatprep.subr.bf16.mxu1 %v10934_v38 }
0x191f   :  { %v4383_v58 = vpop.xlane.xlu1 %4382 }
0x1920   :  { %7583 = vrcp.f32 %v4383_v58  ;;  %v4385_v53 = vpop.xlane.xlu0 %4384 }
0x1921   :  { %7585 = vrcp.f32 %v4385_v53 }
0x1923   :  { %v3839_v45 = vpop.permute.xlu1 %3838 }
0x1924   :  { %7015 = vmatpush3.bf16.xpose.msra.mxu1 %v4848_v41  ;;  %v4077_v40 = vadd.f32 %v10966_v0, %v3839_v45  ;;  %v7770_v0 = vld [vmem:[%s10895_s2 + $0x60] sm:$0xff] }
0x1925   :  { %7016 = vmatprep.subr.bf16.mxu1 %v10934_v38 }
0x1927   :  { %v3809_v46 = vpop.permute.xlu1 %3808 }
0x1928   :  { %v3844_v56 = vpop.permute.xlu0 %3843 }
0x192b   :  { %v3814_v39 = vpop.permute.xlu1 %3813 }
0x192c   :  { %7017 = vmatpush3.bf16.xpose.msra.mxu1 %v4847_v52  ;;  %v3889_v42 = vpop.permute.xlu0 %3888  ;;  %v4056_v4 = vadd.f32 %v10965_v34, %v3814_v39  ;;  %v7769_v34 = vld [vmem:[%s10895_s2 + $0x78] sm:$0xff] }
0x192d   :  { %v7584_v15 = vpop.eup %7583  ;;  %7018 = vmatprep.subr.bf16.mxu1 %v10934_v38  ;;  %v4117_v49 = vadd.f32 %v4116_v14, %v3889_v42 }
0x192e   :  { %v7586_v54 = vpop.eup %7585  ;;  %v4430_v61 = vmul.f32 %v7584_v15, %v10163_v13 }
0x192f   :  { %v3894_v36 = vpop.permute.xlu1 %3893  ;;  %v4431_v17 = vmul.f32 %v7586_v54, %v10165_v51  ;;  %v4080_v51 = vadd.f32 %v10964_v20, %v3844_v56 }
0x1930   :  { %v4120_v35 = vadd.f32 %v4119_v31, %v3894_v36  ;;  %v4446_v22 = vmul.f32 %v10232_v1, %v4430_v61  ;;  %v3859_v10 = vpop.permute.xlu0 %3858 }
0x1931   :  { %v4447_v37 = vmul.f32 %v10232_v1, %v4431_v17  ;;  %v4093_v8 = vadd.f32 %v10198_v25, %v3859_v10  ;;  %v10967_v1 = vld [vmem:[#allocation6_spill] sm:$0xff]  ;;  %v4845_v29 = vpack.c.bf16 %v4080_v51, %v4077_v40 }
0x1932   :  { %v5281_v16 = vpack.c.bf16 %v4120_v35, %v4117_v49  ;;  %v4053_v48 = vadd.f32 %v10967_v1, %v3809_v46 }
0x1933   :  { %v3864_v2 = vpop.permute.xlu1 %3863  ;;  %v4463_v11 = vpack.c.bf16 %v4447_v37, %v4446_v22 }
0x1934   :  { %v4096_v13 = vadd.f32 %v10963_v6, %v3864_v2  ;;  %7019 = vmatpush3.bf16.xpose.msra.mxu1 %v4846_v5  ;;  %v4462_v33 = vpack.c.bf16 %v4056_v4, %v4053_v48 }
0x1935   :  { %6981 = vmatpush3.bf16.xpose.msra.mxu0 %v4463_v11  ;;  %7062 = vmatprep.subr.bf16.mxu1 %v5281_v16  ;;  %v5290_v12 = vpop.trf.xlu0  ;;  %v7768_v11 = vld [vmem:[%s10895_s2 + $0x70] sm:$0xff] }
0x1936   :  { %v4898_v55 = vpack.c.bf16 %v4096_v13, %v4093_v8 }
0x1938   :  { %7024 = vmatprep.subr.bf16.mxu0 %v4898_v55 }
0x1939   :  { %v5291_v50 = vpop.trf.xlu0 }
0x193b   :  { %7021 = vmatmul.mubr.bf16.vlgmr.msra.gmra.mxu1 %v4845_v29 }
0x193c   :  { %6983 = vmatmul.mubr.bf16.vlgmr.msra.gmra.mxu0 %v4462_v33  ;;  %7063 = vmatpush3.bf16.msra.mxu1 %v5281_v16 }
0x193d   :  { %7025 = vmatpush3.bf16.msra.mxu0 %v4898_v55  ;;  %7064 = vmatprep.mubr.msk.bf16.mxu1 %vm125_vm0, %v5290_v12  ;;  %v5292_v25 = vpop.trf.xlu0 }
0x193e   :  { %7042 = vmatprep.subr.bf16.mxu0 %v10934_v38  ;;  %7080 = vmatprep.subr.bf16.mxu1 %v10934_v38 }
0x1941   :  { %v5293_v43 = vpop.trf.xlu0 }
0x1943   :  { %7065 = vmatmul.mubr.msk.bf16.vlgmr.msra.gmra.mxu1 %vm125_vm0, %v5291_v50 }
0x1944   :  { %7068 = vmatprep.mubr.msk.bf16.mxu1 %vm125_vm0, %v5292_v25 }
0x1945   :  { %v5294_v62 = vpop.trf.xlu0 }
0x1949   :  { %v5295_v63 = vpop.trf.xlu0 }
0x194b   :  { %7069 = vmatmul.mubr.msk.bf16.gmra.mxu1 %vm125_vm0, %v5293_v43 }
0x194c   :  { %7072 = vmatprep.mubr.msk.bf16.mxu1 %vm125_vm0, %v5294_v62 }
0x194d   :  { %v5296_v24 = vpop.trf.xlu0 }
0x1951   :  { %v5297_v44 = vpop.trf.xlu0 }
0x1953   :  { %7073 = vmatmul.mubr.msk.bf16.gmra.mxu1 %vm125_vm0, %v5295_v63 }
0x1954   :  { %7076 = vmatprep.mubr.msk.bf16.mxu1 %vm125_vm0, %v5296_v24 }
0x195a   :  { %v4907_v21 = vpop.trf.xlu1 }
0x195b   :  { %7026 = vmatprep.mubr.msk.bf16.mxu0 %vm125_vm0, %v4907_v21  ;;  %7077 = vmatmul.mubr.msk.bf16.gmra.mxu1 %vm125_vm0, %v5297_v44 }
0x195c   :  { %7096 = vmatprep.mubr.msk.bf16.mxu1 %vm7791_vm5, %v10934_v38 }
0x195e   :  { %v4908_v58 = vpop.trf.xlu1 }
0x195f   :  { %7027 = vmatmul.mubr.msk.bf16.vlgmr.msra.gmra.mxu0 %vm125_vm0, %v4908_v58 }
0x1962   :  { %v4909_v53 = vpop.trf.xlu1 }
0x1963   :  { %7030 = vmatprep.mubr.msk.bf16.mxu0 %vm125_vm0, %v4909_v53 }
0x1966   :  { %v4910_v23 = vpop.trf.xlu1 }
0x1967   :  { %7031 = vmatmul.mubr.msk.bf16.gmra.mxu0 %vm125_vm0, %v4910_v23 }
0x196a   :  { %v4911_v47 = vpop.trf.xlu1 }
0x196b   :  { %7034 = vmatprep.mubr.msk.bf16.mxu0 %vm125_vm0, %v4911_v47 }
0x196e   :  { %v4912_v41 = vpop.trf.xlu1 }
0x196f   :  { %7035 = vmatmul.mubr.msk.bf16.gmra.mxu0 %vm125_vm0, %v4912_v41 }
0x1972   :  { %v4913_v27 = vpop.trf.xlu1 }
0x1973   :  { %7038 = vmatprep.mubr.msk.bf16.mxu0 %vm125_vm0, %v4913_v27 }
0x1976   :  { %v4914_v45 = vpop.trf.xlu1 }
0x1977   :  { %7039 = vmatmul.mubr.msk.bf16.gmra.mxu0 %vm125_vm0, %v4914_v45 }
0x1978   :  { %7058 = vmatprep.mubr.msk.bf16.mxu0 %vm7791_vm5, %v10934_v38 }
0x19fb   :  { %v4888_v18 = vpop.f32.mrf.mxu1 }
0x19fc   :  { %v4505_v14 = vpop.f32.mrf.mxu0  ;;  %v4895_v56 = vmax.f32 %v4888_v18, 0.0 }
0x19fd   :  { %v7022_v19 = vpop.f32.mrf.mxu1  ;;  %v4512_v52 = vmax.f32 %v4505_v14, 0.0 }
0x19fe   :  { %v6984_v59 = vpop.f32.mrf.mxu0 }
0x19ff   :  { %v4891_v46 = vpop.f32.mrf.mxu1  ;;  %v7771_v59 = vld [vmem:[%s10895_s2 + $0x50] sm:$0xff] }
0x1a00   :  { %v4896_v3 = vmax.f32 %v4891_v46, 0.0  ;;  %v4508_v57 = vpop.f32.mrf.mxu0 }
0x1a01   :  { %v4513_v60 = vmax.f32 %v4508_v57, 0.0  ;;  %v7023_v39 = vpop.f32.mrf.mxu1 }
0x1a02   :  { %v10364_v42 = vpack.c.bf16 %v4896_v3, %v4895_v56  ;;  %v6985_v30 = vpop.f32.mrf.mxu0  ;;  %v7772_v3 = vld [vmem:[%s10895_s2 + $0x68] sm:$0xff] }
0x1a03   :  { %v10366_v15 = vpack.c.bf16 %v4513_v60, %v4512_v52  ;;  %v10368_v31 = vpop.f32.mrf.mxu1 }
0x1a05   :  { %v10370_v54 = vpop.f32.mrf.mxu1 }
0x1a07   :  { %v10372_v28 = vpop.f32.mrf.mxu1 }
0x1a09   :  { %v10374_v61 = vpop.f32.mrf.mxu1 }
0x1a0b   :  { %v10376_v36 = vpop.f32.mrf.mxu1 }
0x1a0d   :  { %v10378_v17 = vpop.f32.mrf.mxu1 }
0x1a0f   :  { %v10380_v49 = vpop.f32.mrf.mxu1 }
0x1a11   :  { %v10382_v35 = vpop.f32.mrf.mxu1 }
0x1a13   :  { %v7074_v32 = vpop.f32.mrf.mxu1 }
0x1a14   :  { %v5429_v41 = vmul.f32 0.25, %v7074_v32 }
0x1a15   :  { %v5388_v22 = vpop.f32.mrf.mxu1 }
0x1a16   :  { %v10429_v46 = vadd.f32 %v7771_v59, %v5429_v41  ;;  %v5427_v60 = vmul.f32 0.25, %v5388_v22  ;;  %v7774_v22 = vld [vmem:[%s10895_s2 + $0x58] sm:$0xff]  ;;  %v5421_v41 = vmul.f32 0.25, %v10368_v31  ;;  %v7780_v31 = vld [vmem:[%s10895_s2 + $0x28] sm:$0xff] }
0x1a17   :  { %v7075_v10 = vpop.f32.mrf.mxu1 }
0x1a18   :  { %v5430_v30 = vmul.f32 0.25, %v7075_v10 }
0x1a19   :  { %v10384_v37 = vpop.f32.mrf.mxu1 }
0x1a1b   :  { %v7078_v16 = vpop.f32.mrf.mxu1 }
0x1a1c   :  { %v5433_v5 = vmul.f32 0.25, %v7078_v16  ;;  %v7773_v16 = vld [vmem:[%s10895_s2 + $0x40] sm:$0xff] }
0x1a1d   :  { %v5404_v2 = vpop.f32.mrf.mxu1 }
0x1a1e   :  { %v10389_v8 = vadd.f32 %v7768_v11, %v5433_v5  ;;  %v5431_v20 = vmul.f32 0.25, %v5404_v2  ;;  %v10447_v5 = vadd.f32 %v7773_v16, %v5427_v60 }
0x1a1f   :  { %v10391_v6 = vpop.f32.mrf.mxu0  ;;  %v7079_v13 = vpop.f32.mrf.mxu1 }
0x1a20   :  { %v5434_v51 = vmul.f32 0.25, %v7079_v13  ;;  %5479 = vmax.xlane.f32.xlu0 %v10389_v8  ;;  %v10406_v40 = vadd.f32 %v7770_v0, %v5431_v20  ;;  %v5425_v13 = vmul.f32 0.25, %v10376_v36  ;;  %v7776_v36 = vld [vmem:[%s10895_s2 + $0x48] sm:$0xff] }
0x1a21   :  { %v10394_v12 = vpop.f32.mrf.mxu0  ;;  %v5407_v23 = vpop.f32.mrf.mxu1 }
0x1a22   :  { %v10399_v4 = vadd.f32 %v7769_v34, %v5434_v51  ;;  %v5432_v18 = vmul.f32 0.25, %v5407_v23  ;;  %v5428_v51 = vmul.f32 0.25, %v10384_v37 }
0x1a23   :  { %v10401_v55 = vpop.f32.mrf.mxu0 }
0x1a24   :  { %5481 = vmax.xlane.f32.xlu1 %v10399_v4  ;;  %v10435_v57 = vadd.f32 %v7772_v3, %v5432_v18 }
0x1a25   :  { %v10409_v1 = vpop.f32.mrf.mxu0 }
0x1a27   :  { %v7032_v48 = vpop.f32.mrf.mxu0 }
0x1a28   :  { %5475 = vmax.xlane.f32.xlu1 %v10406_v40 }
0x1a29   :  { %v10412_v29 = vpop.f32.mrf.mxu0 }
0x1a2b   :  { %v10414_v50 = vpop.f32.mrf.mxu0 }
0x1a2d   :  { %v10416_v33 = vpop.f32.mrf.mxu0 }
0x1a2f   :  { %v7036_v25 = vpop.f32.mrf.mxu0 }
0x1a30   :  { %v5046_v56 = vmul.f32 0.25, %v7036_v25 }
0x1a31   :  { %v5005_v43 = vpop.f32.mrf.mxu0 }
0x1a32   :  { %v10438_v39 = vadd.f32 %v7771_v59, %v5046_v56  ;;  %v5044_v2 = vmul.f32 0.25, %v5005_v43  ;;  %v5042_v43 = vmul.f32 0.25, %v7032_v48 }
0x1a33   :  { %v7037_v62 = vpop.f32.mrf.mxu0 }
0x1a34   :  { %v5047_v10 = vmul.f32 0.25, %v7037_v62  ;;  %v10457_v20 = vadd.f32 %v7773_v16, %v5044_v2  ;;  %v10473_v62 = vadd.f32 %v7776_v36, %v5428_v51 }
0x1a35   :  { %v5008_v63 = vpop.f32.mrf.mxu0 }
0x1a36   :  { %v5045_v37 = vmul.f32 0.25, %v5008_v63  ;;  %v5040_v63 = vmul.f32 0.25, %v10412_v29  ;;  %v5424_v29 = vmul.f32 0.25, %v10382_v35  ;;  %v5041_v35 = vmul.f32 0.25, %v10416_v33 }
0x1a37   :  { %v7040_v24 = vpop.f32.mrf.mxu0  ;;  %v5036_v33 = vmul.f32 0.25, %v10394_v12  ;;  %v7783_v12 = vld [vmem:[%s10895_s2 + $0x8] sm:$0xff] }
0x1a38   :  { %v5050_v44 = vmul.f32 0.25, %v7040_v24  ;;  %v5423_v24 = vmul.f32 0.25, %v10378_v17  ;;  %v10481_v48 = vadd.f32 %v7776_v36, %v5045_v37  ;;  %v7778_v17 = vld [vmem:[%s10895_s2 + $0x38] sm:$0xff]  ;;  %v10516_v56 = vadd.f32 %v7780_v31, %v5424_v29 }
0x1a39   :  { %v5021_v21 = vpop.f32.mrf.mxu0  ;;  %v10525_v60 = vadd.f32 %v7780_v31, %v5041_v35 }
0x1a3a   :  { %v10418_v58 = vadd.f32 %v7768_v11, %v5050_v44  ;;  %v5048_v53 = vmul.f32 0.25, %v5021_v21  ;;  %v10453_v11 = vadd.f32 %v7774_v22, %v5430_v30  ;;  %v5426_v21 = vmul.f32 0.25, %v10380_v49  ;;  %v7781_v30 = vld [vmem:[%s10895_s2] sm:$0xff] }
0x1a3b   :  { %v7041_v47 = vpop.f32.mrf.mxu0  ;;  %v5043_v49 = vmul.f32 0.25, %v10414_v50  ;;  %v5038_v50 = vmul.f32 0.25, %v10391_v6  ;;  %v5422_v6 = vmul.f32 0.25, %v10372_v28  ;;  %v5039_v28 = vmul.f32 0.25, %v10401_v55 }
0x1a3c   :  { %v10420_v27 = vadd.f32 %v7770_v0, %v5048_v53  ;;  %v5051_v45 = vmul.f32 0.25, %v7041_v47  ;;  %5096 = vmax.xlane.f32.xlu0 %v10418_v58  ;;  %v7775_v0 = vld [vmem:[%s10895_s2 + $0x30] sm:$0xff]  ;;  %v7777_v53 = vld [vmem:[%s10895_s2 + $0x20] sm:$0xff]  ;;  %v10494_v47 = vadd.f32 %v7778_v17, %v5426_v21  ;;  %v5037_v55 = vmul.f32 0.25, %v10409_v1 }
0x1a3d   :  { %v5024_v19 = vpop.f32.mrf.mxu0  ;;  %v10467_v25 = vadd.f32 %v7775_v0, %v5425_v13  ;;  %v10477_v44 = vadd.f32 %v7775_v0, %v5042_v43  ;;  %v10487_v23 = vadd.f32 %v7777_v53, %v5423_v24  ;;  %v10503_v18 = vadd.f32 %v7778_v17, %v5043_v49 }
0x1a3e   :  { %v10423_v14 = vadd.f32 %v7769_v34, %v5051_v45  ;;  %5092 = vmax.xlane.f32.xlu1 %v10420_v27  ;;  %v5049_v52 = vmul.f32 0.25, %v5024_v19  ;;  %v10461_v34 = vadd.f32 %v7774_v22, %v5047_v10  ;;  %v10499_v45 = vadd.f32 %v7777_v53, %v5040_v63  ;;  %v7779_v19 = vld [vmem:[%s10895_s2 + $0x10] sm:$0xff] }
0x1a3f   :  { %v10509_v59 = vadd.f32 %v7779_v19, %v5421_v41  ;;  %v10542_v22 = vadd.f32 %v7781_v30, %v5036_v33  ;;  %v5420_v10 = vmul.f32 0.25, %v10374_v61  ;;  %v10557_v0 = vadd.f32 %v7783_v12, %v5037_v55 }
0x1a40   :  { %5098 = vmax.xlane.f32.xlu0 %v10423_v14  ;;  %v10441_v32 = vadd.f32 %v7772_v3, %v5049_v52  ;;  %v5419_v3 = vmul.f32 0.25, %v10370_v54  ;;  %v10521_v52 = vadd.f32 %v7779_v19, %v5038_v50  ;;  %v7782_v54 = vld [vmem:[%s10895_s2 + $0x18] sm:$0xff] }
0x1a41   :  { %v10538_v2 = vadd.f32 %v7782_v54, %v5422_v6  ;;  %v10546_v13 = vadd.f32 %v7782_v54, %v5039_v28  ;;  %v10553_v51 = vadd.f32 %v7783_v12, %v5420_v10 }
0x1a42   :  { %5471 = vmax.xlane.f32.xlu1 %v10429_v46  ;;  %v10531_v16 = vadd.f32 %v7781_v30, %v5419_v3 }
0x1a44   :  { %5477 = vmax.xlane.f32.xlu0 %v10435_v57 }
0x1a46   :  { %5088 = vmax.xlane.f32.xlu1 %v10438_v39 }
0x1a48   :  { %5094 = vmax.xlane.f32.xlu0 %v10441_v32 }
0x1a4a   :  { %5467 = vmax.xlane.f32.xlu1 %v10447_v5 }
0x1a4c   :  { %5473 = vmax.xlane.f32.xlu0 %v10453_v11 }
0x1a4e   :  { %5084 = vmax.xlane.f32.xlu1 %v10457_v20 }
0x1a50   :  { %5090 = vmax.xlane.f32.xlu0 %v10461_v34 }
0x1a52   :  { %5463 = vmax.xlane.f32.xlu1 %v10467_v25 }
0x1a54   :  { %5469 = vmax.xlane.f32.xlu0 %v10473_v62 }
0x1a56   :  { %5080 = vmax.xlane.f32.xlu1 %v10477_v44 }
0x1a58   :  { %5086 = vmax.xlane.f32.xlu0 %v10481_v48 }
0x1a5a   :  { %5459 = vmax.xlane.f32.xlu1 %v10487_v23 }
0x1a5c   :  { %5465 = vmax.xlane.f32.xlu0 %v10494_v47 }
0x1a5e   :  { %5076 = vmax.xlane.f32.xlu1 %v10499_v45 }
0x1a60   :  { %5082 = vmax.xlane.f32.xlu0 %v10503_v18 }
0x1a62   :  { %5455 = vmax.xlane.f32.xlu1 %v10509_v59 }
0x1a64   :  { %5461 = vmax.xlane.f32.xlu0 %v10516_v56 }
0x1a66   :  { %5072 = vmax.xlane.f32.xlu1 %v10521_v52 }
0x1a68   :  { %5078 = vmax.xlane.f32.xlu0 %v10525_v60 }
0x1a6a   :  { %5451 = vmax.xlane.f32.xlu1 %v10531_v16 }
0x1a6c   :  { %5457 = vmax.xlane.f32.xlu0 %v10538_v2 }
0x1a6e   :  { %5068 = vmax.xlane.f32.xlu1 %v10542_v22 }
0x1a70   :  { %5074 = vmax.xlane.f32.xlu0 %v10546_v13 }
0x1a74   :  { %5453 = vmax.xlane.f32.xlu0 %v10553_v51 }
0x1a78   :  { %5070 = vmax.xlane.f32.xlu0 %v10557_v0 }
0x1aa9   :  { %v5480_v43 = vpop.xlane.xlu0 %5479 }
0x1aaa   :  { %v5497_v17 = vsub.f32 %v10389_v8, %v5480_v43 }
0x1aac   :  { %v5527_v31 = vmul.f32 1.442695, %v5497_v17 }
0x1aad   :  { %v5482_v61 = vpop.xlane.xlu1 %5481 }
0x1aae   :  { %v5498_v1 = vsub.f32 %v10399_v4, %v5482_v61 }
0x1ab0   :  { %v5529_v3 = vmul.f32 1.442695, %v5498_v1 }
0x1ab1   :  { %v5476_v36 = vpop.xlane.xlu1 %5475 }
0x1ab2   :  { %v5495_v35 = vsub.f32 %v10406_v40, %v5476_v36 }
0x1ac5   :  { %v5097_v37 = vpop.xlane.xlu0 %5096 }
0x1ac6   :  { %v5114_v24 = vsub.f32 %v10418_v58, %v5097_v37 }
0x1ac7   :  { %v5093_v21 = vpop.xlane.xlu1 %5092 }
0x1ac8   :  { %v5144_v53 = vmul.f32 1.442695, %v5114_v24  ;;  %v5112_v63 = vsub.f32 %v10420_v27, %v5093_v21  ;;  %v5523_v27 = vmul.f32 1.442695, %v5495_v35 }
0x1ac9   :  { %v5099_v49 = vpop.xlane.xlu0 %5098 }
0x1aca   :  { %7587 = vpow2.f32 %v5144_v53  ;;  %v5140_v41 = vmul.f32 1.442695, %v5112_v63  ;;  %v5115_v29 = vsub.f32 %v10423_v14, %v5099_v49 }
0x1acb   :  { %v5472_v19 = vpop.xlane.xlu1 %5471 }
0x1acc   :  { %v5146_v50 = vmul.f32 1.442695, %v5115_v29  ;;  %7589 = vpow2.f32 %v5140_v41  ;;  %v5493_v8 = vsub.f32 %v10429_v46, %v5472_v19 }
0x1acd   :  { %v5478_v58 = vpop.xlane.xlu0 %5477 }
0x1ace   :  { %7591 = vpow2.f32 %v5146_v50  ;;  %v5496_v4 = vsub.f32 %v10435_v57, %v5478_v58  ;;  %v5519_v28 = vmul.f32 1.442695, %v5493_v8 }
0x1acf   :  { %v5089_v6 = vpop.xlane.xlu1 %5088  ;;  %7593 = vpow2.f32 %v5527_v31 }
0x1ad0   :  { %7595 = vpow2.f32 %v5529_v3  ;;  %v5110_v40 = vsub.f32 %v10438_v39, %v5089_v6  ;;  %v5525_v12 = vmul.f32 1.442695, %v5496_v4 }
0x1ad1   :  { %v5095_v30 = vpop.xlane.xlu0 %5094  ;;  %7597 = vpow2.f32 %v5523_v27 }
0x1ad2   :  { %v5113_v14 = vsub.f32 %v10441_v32, %v5095_v30  ;;  %v5136_v57 = vmul.f32 1.442695, %v5110_v40 }
0x1ad3   :  { %v5468_v33 = vpop.xlane.xlu1 %5467 }
0x1ad4   :  { %v5142_v54 = vmul.f32 1.442695, %v5113_v14  ;;  %v5491_v32 = vsub.f32 %v10447_v5, %v5468_v33 }
0x1ad5   :  { %v5474_v10 = vpop.xlane.xlu0 %5473 }
0x1ad6   :  { %7599 = vpow2.f32 %v5142_v54  ;;  %v5494_v55 = vsub.f32 %v10453_v11, %v5474_v10  ;;  %v5515_v11 = vmul.f32 1.442695, %v5491_v32 }
0x1ad7   :  { %v10571_v61 = vpop.eup %7587  ;;  %v5085_v46 = vpop.xlane.xlu1 %5084  ;;  %7601 = vpow2.f32 %v5519_v28 }
0x1ad8   :  { %5176 = vadd.xlane.f32.xlu1 %v10571_v61  ;;  %7603 = vpow2.f32 %v5525_v12  ;;  %v5521_v37 = vmul.f32 1.442695, %v5494_v55  ;;  %v5108_v53 = vsub.f32 %v10457_v20, %v5085_v46 }
0x1ad9   :  { %v5091_v43 = vpop.xlane.xlu0 %5090  ;;  %v10575_v36 = vpop.eup %7589  ;;  %7605 = vpow2.f32 %v5136_v57 }
0x1ada   :  { %v5111_v39 = vsub.f32 %v10461_v34, %v5091_v43  ;;  %7607 = vpow2.f32 %v5521_v37  ;;  %v5132_v41 = vmul.f32 1.442695, %v5108_v53 }
0x1adb   :  { %v10578_v24 = vpop.eup %7591  ;;  %v5464_v21 = vpop.xlane.xlu1 %5463  ;;  %7609 = vpow2.f32 %v5515_v11 }
0x1adc   :  { %5172 = vadd.xlane.f32.xlu1 %v10575_v36  ;;  %5178 = vadd.xlane.f32.xlu0 %v10578_v24  ;;  %v10583_v5 = vpop.eup %7593  ;;  %v5138_v17 = vmul.f32 1.442695, %v5111_v39  ;;  %v5489_v29 = vsub.f32 %v10467_v25, %v5464_v21 }
0x1add   :  { %v5470_v63 = vpop.xlane.xlu0 %5469  ;;  %v10586_v1 = vpop.eup %7595 }
0x1ade   :  { %v5492_v49 = vsub.f32 %v10473_v62, %v5470_v63  ;;  %v10591_v20 = vpop.eup %7597  ;;  %7611 = vpow2.f32 %v5138_v17  ;;  %v5511_v58 = vmul.f32 1.442695, %v5489_v29 }
0x1adf   :  { %v5081_v34 = vpop.xlane.xlu1 %5080  ;;  %7613 = vpow2.f32 %v5132_v41 }
0x1ae0   :  { %5559 = vadd.xlane.f32.xlu1 %v10583_v5  ;;  %5561 = vadd.xlane.f32.xlu0 %v10586_v1  ;;  %v5517_v50 = vmul.f32 1.442695, %v5492_v49  ;;  %v5106_v3 = vsub.f32 %v10477_v44, %v5081_v34 }
0x1ae1   :  { %v5087_v19 = vpop.xlane.xlu0 %5086 }
0x1ae2   :  { %v5109_v31 = vsub.f32 %v10481_v48, %v5087_v19  ;;  %7615 = vpow2.f32 %v5517_v50  ;;  %v5128_v4 = vmul.f32 1.442695, %v5106_v3 }
0x1ae3   :  { %v10594_v35 = vpop.eup %7599  ;;  %v5460_v62 = vpop.xlane.xlu1 %5459  ;;  %7617 = vpow2.f32 %v5511_v58 }
0x1ae4   :  { %5555 = vadd.xlane.f32.xlu1 %v10591_v20  ;;  %5174 = vadd.xlane.f32.xlu0 %v10594_v35  ;;  %v10599_v25 = vpop.eup %7601  ;;  %v5134_v27 = vmul.f32 1.442695, %v5109_v31  ;;  %v5487_v14 = vsub.f32 %v10487_v23, %v5460_v62 }
0x1ae5   :  { %v5466_v6 = vpop.xlane.xlu0 %5465  ;;  %v10602_v30 = vpop.eup %7603 }
0x1ae6   :  { %v5490_v8 = vsub.f32 %v10494_v47, %v5466_v6  ;;  %v10607_v44 = vpop.eup %7605  ;;  %7619 = vpow2.f32 %v5134_v27  ;;  %v5507_v10 = vmul.f32 1.442695, %v5487_v14 }
0x1ae7   :  { %v5077_v48 = vpop.xlane.xlu1 %5076  ;;  %v10610_v40 = vpop.eup %7607  ;;  %7621 = vpow2.f32 %v5128_v4 }
0x1ae8   :  { %5551 = vadd.xlane.f32.xlu1 %v10599_v25  ;;  %5557 = vadd.xlane.f32.xlu0 %v10602_v30  ;;  %v5513_v54 = vmul.f32 1.442695, %v5490_v8  ;;  %v5104_v12 = vsub.f32 %v10499_v45, %v5077_v48  ;;  %v10615_v23 = vpop.eup %7609 }
0x1ae9   :  { %v5083_v33 = vpop.xlane.xlu0 %5082 }
0x1aea   :  { %v5107_v28 = vsub.f32 %v10503_v18, %v5083_v33  ;;  %7623 = vpow2.f32 %v5513_v54  ;;  %v5124_v43 = vmul.f32 1.442695, %v5104_v12 }
0x1aeb   :  { %v5456_v47 = vpop.xlane.xlu1 %5455  ;;  %v10618_v32 = vpop.eup %7611  ;;  %7625 = vpow2.f32 %v5507_v10 }
0x1aec   :  { %5168 = vadd.xlane.f32.xlu1 %v10607_v44  ;;  %5553 = vadd.xlane.f32.xlu0 %v10610_v40  ;;  %v5130_v46 = vmul.f32 1.442695, %v5107_v28  ;;  %v5485_v37 = vsub.f32 %v10509_v59, %v5456_v47  ;;  %v10623_v45 = vpop.eup %7613 }
0x1aed   :  { %v5462_v55 = vpop.xlane.xlu0 %5461 }
0x1aee   :  { %v5488_v57 = vsub.f32 %v10516_v56, %v5462_v55  ;;  %7627 = vpow2.f32 %v5130_v46  ;;  %v5503_v63 = vmul.f32 1.442695, %v5485_v37  ;;  %v3784_v37 = vld [vmem:[%s10888_s13 + $0x270] sm:$0xff] }
0x1aef   :  { %v5073_v18 = vpop.xlane.xlu1 %5072  ;;  %v10626_v53 = vpop.eup %7615  ;;  %7629 = vpow2.f32 %v5124_v43 }
0x1af0   :  { %5547 = vadd.xlane.f32.xlu1 %v10615_v23  ;;  %5170 = vadd.xlane.f32.xlu0 %v10618_v32  ;;  %v5509_v21 = vmul.f32 1.442695, %v5488_v57  ;;  %v5102_v17 = vsub.f32 %v10521_v52, %v5073_v18  ;;  %v10631_v59 = vpop.eup %7617 }
0x1af1   :  { %v5079_v39 = vpop.xlane.xlu0 %5078 }
0x1af2   :  { %v5105_v11 = vsub.f32 %v10525_v60, %v5079_v39  ;;  %7631 = vpow2.f32 %v5509_v21  ;;  %v5120_v60 = vmul.f32 1.442695, %v5102_v17  ;;  %v3778_v39 = vld [vmem:[%s10888_s13 + $0x240] sm:$0xff]  ;;  %v3779_v21 = vld [vmem:[%s10888_s13 + $0x248] sm:$0xff] }
0x1af3   :  { %v5452_v56 = vpop.xlane.xlu1 %5451  ;;  %v10634_v29 = vpop.eup %7619  ;;  %7633 = vpow2.f32 %v5503_v63  ;;  %v5674_v63 = vld [vmem:[%s10888_s13 + $0x290] sm:$0xff]  ;;  %v5673_v17 = vld [vmem:[%s10888_s13 + $0x288] sm:$0xff] }
0x1af4   :  { %5164 = vadd.xlane.f32.xlu1 %v10623_v45  ;;  %5549 = vadd.xlane.f32.xlu0 %v10626_v53  ;;  %v5126_v34 = vmul.f32 1.442695, %v5105_v11  ;;  %v5483_v19 = vsub.f32 %v10531_v16, %v5452_v56  ;;  %v10639_v31 = vpop.eup %7621  ;;  %v3785_v11 = vld [vmem:[%s10888_s13 + $0x278] sm:$0xff] }
0x1af5   :  { %v5458_v49 = vpop.xlane.xlu0 %5457  ;;  %v5675_v56 = vld [vmem:[%s10888_s13 + $0x298] sm:$0xff] }
0x1af6   :  { %v5486_v41 = vsub.f32 %v10538_v2, %v5458_v49  ;;  %7635 = vpow2.f32 %v5126_v34  ;;  %v5499_v2 = vmul.f32 1.442695, %v5483_v19  ;;  %v5672_v49 = vld [vmem:[%s10888_s13 + $0x280] sm:$0xff]  ;;  %v5768_v34 = vld [vmem:[%s10888_s13 + $0x2b8] sm:$0xff] }
0x1af7   :  { %v5069_v62 = vpop.xlane.xlu1 %5068  ;;  %v10642_v3 = vpop.eup %7623  ;;  %7637 = vpow2.f32 %v5120_v60  ;;  %v5766_v60 = vld [vmem:[%s10888_s13 + $0x2a8] sm:$0xff]  ;;  %v5765_v19 = vld [vmem:[%s10888_s13 + $0x2a0] sm:$0xff] }
0x1af8   :  { %5543 = vadd.xlane.f32.xlu1 %v10631_v59  ;;  %5166 = vadd.xlane.f32.xlu0 %v10634_v29  ;;  %v5505_v52 = vmul.f32 1.442695, %v5486_v41  ;;  %v5100_v6 = vsub.f32 %v10542_v22, %v5069_v62  ;;  %v10647_v16 = vpop.eup %7625  ;;  %v5767_v41 = vld [vmem:[%s10888_s13 + $0x2b0] sm:$0xff]  ;;  %v5805_v62 = vld [vmem:[%s10888_s13 + $0x2c8] sm:$0xff] }
0x1af9   :  { %v5075_v50 = vpop.xlane.xlu0 %5074 }
0x1afa   :  { %v5103_v58 = vsub.f32 %v10546_v13, %v5075_v50  ;;  %7639 = vpow2.f32 %v5505_v52  ;;  %v5116_v13 = vmul.f32 1.442695, %v5100_v6  ;;  %v5807_v50 = vld [vmem:[%s10888_s13 + $0x2d8] sm:$0xff]  ;;  %v5806_v52 = vld [vmem:[%s10888_s13 + $0x2d0] sm:$0xff] }
0x1afb   :  { %v10650_v4 = vpop.eup %7627  ;;  %7641 = vpow2.f32 %v5499_v2  ;;  %v5908_v2 = vld [vmem:[%s10888_s13 + $0x2e0] sm:$0xff] }
0x1afc   :  { %5160 = vadd.xlane.f32.xlu1 %v10639_v31  ;;  %5545 = vadd.xlane.f32.xlu0 %v10642_v3  ;;  %v5122_v8 = vmul.f32 1.442695, %v5103_v58  ;;  %v10654_v33 = vpop.eup %7629  ;;  %v5804_v58 = vld [vmem:[%s10888_s13 + $0x2c0] sm:$0xff] }
0x1afd   :  { %v5454_v27 = vpop.xlane.xlu0 %5453 }
0x1afe   :  { %v5484_v48 = vsub.f32 %v10553_v51, %v5454_v27  ;;  %7643 = vpow2.f32 %v5122_v8 }
0x1aff   :  { %v10657_v28 = vpop.eup %7631  ;;  %7645 = vpow2.f32 %v5116_v13 }
0x1b00   :  { %5539 = vadd.xlane.f32.xlu1 %v10647_v16  ;;  %5162 = vadd.xlane.f32.xlu0 %v10650_v4  ;;  %v5501_v22 = vmul.f32 1.442695, %v5484_v48  ;;  %v10661_v51 = vpop.eup %7633 }
0x1b01   :  { %v5071_v14 = vpop.xlane.xlu0 %5070 }
0x1b02   :  { %v5101_v54 = vsub.f32 %v10557_v0, %v5071_v14  ;;  %7647 = vpow2.f32 %v5501_v22 }
0x1b03   :  { %v10663_v10 = vpop.eup %7635 }
0x1b04   :  { %5156 = vadd.xlane.f32.xlu1 %v10654_v33  ;;  %5541 = vadd.xlane.f32.xlu0 %v10657_v28  ;;  %v5118_v47 = vmul.f32 1.442695, %v5101_v54  ;;  %v10667_v12 = vpop.eup %7637 }
0x1b06   :  { %7649 = vpow2.f32 %v5118_v47 }
0x1b07   :  { %v10669_v0 = vpop.eup %7639 }
0x1b08   :  { %5535 = vadd.xlane.f32.xlu1 %v10661_v51  ;;  %5158 = vadd.xlane.f32.xlu0 %v10663_v10  ;;  %v10673_v55 = vpop.eup %7641 }
0x1b0b   :  { %v10675_v46 = vpop.eup %7643 }
0x1b0c   :  { %5152 = vadd.xlane.f32.xlu1 %v10667_v12  ;;  %5537 = vadd.xlane.f32.xlu0 %v10669_v0  ;;  %v10679_v57 = vpop.eup %7645 }
0x1b0f   :  { %v10681_v18 = vpop.eup %7647 }
0x1b10   :  { %5531 = vadd.xlane.f32.xlu1 %v10673_v55  ;;  %5154 = vadd.xlane.f32.xlu0 %v10675_v46 }
0x1b13   :  { %v10685_v43 = vpop.eup %7649 }
0x1b14   :  { %5148 = vadd.xlane.f32.xlu1 %v10679_v57  ;;  %5533 = vadd.xlane.f32.xlu0 %v10681_v18 }
0x1b18   :  { %5150 = vadd.xlane.f32.xlu0 %v10685_v43 }
0x1b25   :  { %3898 = vperm.xlu1 %7136, %v3784_v37  }
0x1b29   :  { %3868 = vperm.xlu1 %7136, %v3778_v39  }
0x1b2d   :  { %3873 = vperm.xlu1 %7136, %v3779_v21  }
0x1b2e   :  { %3903 = vperm.xlu0 %7135, %v3785_v11  }
0x1b31   :  { %5693 = vperm.xlu1 %7136, %v5675_v56  }
0x1b32   :  { %5688 = vperm.xlu0 %7135, %v5674_v63  }
0x1b35   :  { %5683 = vperm.xlu1 %7136, %v5673_v17  }
0x1b36   :  { %5678 = vperm.xlu0 %7135, %v5672_v49  }
0x1b39   :  { %5786 = vperm.xlu1 %7136, %v5768_v34   ;;  %v10744_v34 = vld [vmem:[%s10896_s1] ss:$0 sm:$0xff] }
0x1b3a   :  { %5781 = vperm.xlu0 %7135, %v5767_v41  }
0x1b3d   :  { %5776 = vperm.xlu1 %7136, %v5766_v60  }
0x1b3e   :  { %5771 = vperm.xlu0 %7135, %v5765_v19  }
0x1b41   :  { %5825 = vperm.xlu1 %7136, %v5807_v50  }
0x1b42   :  { %5820 = vperm.xlu0 %7135, %v5806_v52  }
0x1b45   :  { %5815 = vperm.xlu1 %7136, %v5805_v62  }
0x1b46   :  { %5810 = vperm.xlu0 %7135, %v5804_v58  }
0x1b4a   :  { %5911 = vperm.xlu0 %7135, %v5908_v2  }
0x1b61   :  { %v5177_v6 = vpop.xlane.xlu1 %5176 }
0x1b62   :  { %7651 = vrcp.f32 %v5177_v6 }
0x1b65   :  { %v5173_v27 = vpop.xlane.xlu1 %5172  ;;  %v5179_v8 = vpop.xlane.xlu0 %5178 }
0x1b66   :  { %7653 = vrcp.f32 %v5179_v8 }
0x1b67   :  { %7655 = vrcp.f32 %v5173_v27 }
0x1b69   :  { %v5560_v48 = vpop.xlane.xlu1 %5559  ;;  %v5562_v13 = vpop.xlane.xlu0 %5561 }
0x1b6a   :  { %7657 = vrcp.f32 %v5560_v48 }
0x1b6b   :  { %7659 = vrcp.f32 %v5562_v13 }
0x1b6d   :  { %v5556_v14 = vpop.xlane.xlu1 %5555  ;;  %v5175_v22 = vpop.xlane.xlu0 %5174 }
0x1b6e   :  { %7661 = vrcp.f32 %v5556_v14 }
0x1b6f   :  { %7663 = vrcp.f32 %v5175_v22  ;;  %v7652_v54 = vpop.eup %7651 }
0x1b70   :  { %v5210_v39 = vmul.f32 %v7652_v54, %v10571_v61 }
0x1b71   :  { %v5552_v47 = vpop.xlane.xlu1 %5551  ;;  %v5558_v37 = vpop.xlane.xlu0 %5557 }
0x1b72   :  { %7665 = vrcp.f32 %v5558_v37  ;;  %v5226_v41 = vmul.f32 %v10744_v34, %v5210_v39 }
0x1b73   :  { %v7654_v21 = vpop.eup %7653  ;;  %7667 = vrcp.f32 %v5552_v47 }
0x1b74   :  { %v5211_v63 = vmul.f32 %v7654_v21, %v10578_v24  ;;  %v7656_v17 = vpop.eup %7655 }
0x1b75   :  { %v5169_v11 = vpop.xlane.xlu1 %5168  ;;  %v5554_v56 = vpop.xlane.xlu0 %5553  ;;  %v5208_v27 = vmul.f32 %v7656_v17, %v10575_v36 }
0x1b76   :  { %7669 = vrcp.f32 %v5169_v11  ;;  %v5227_v60 = vmul.f32 %v10744_v34, %v5211_v63 }
0x1b77   :  { %v7658_v49 = vpop.eup %7657  ;;  %7671 = vrcp.f32 %v5554_v56 }
0x1b78   :  { %v7660_v61 = vpop.eup %7659  ;;  %v5593_v19 = vmul.f32 %v7658_v49, %v10583_v5  ;;  %v5236_v62 = vpack.c.bf16 %v5227_v60, %v5226_v41 }
0x1b79   :  { %v5548_v50 = vpop.xlane.xlu1 %5547  ;;  %v5171_v52 = vpop.xlane.xlu0 %5170  ;;  %v5594_v24 = vmul.f32 %v7660_v61, %v10586_v1  ;;  %v5224_v1 = vmul.f32 %v10744_v34, %v5208_v27 }
0x1b7a   :  { %v5609_v58 = vmul.f32 %v10744_v34, %v5593_v19  ;;  %7673 = vrcp.f32 %v5171_v52  ;;  %7043 = vmatpush3.bf16.xpose.msra.mxu0 %v5236_v62 }
0x1b7b   :  { %v7662_v2 = vpop.eup %7661  ;;  %v5610_v6 = vmul.f32 %v10744_v34, %v5594_v24  ;;  %7044 = vmatprep.subr.bf16.mxu0 %v10934_v38  ;;  %7675 = vrcp.f32 %v5548_v50 }
0x1b7c   :  { %v7664_v8 = vpop.eup %7663  ;;  %v5591_v54 = vmul.f32 %v7662_v2, %v10591_v20 }
0x1b7d   :  { %v5165_v48 = vpop.xlane.xlu1 %5164  ;;  %v5550_v5 = vpop.xlane.xlu0 %5549  ;;  %v5619_v13 = vpack.c.bf16 %v5610_v6, %v5609_v58  ;;  %v5209_v14 = vmul.f32 %v7664_v8, %v10594_v35 }
0x1b7e   :  { %7677 = vrcp.f32 %v5165_v48  ;;  %v5607_v35 = vmul.f32 %v10744_v34, %v5591_v54 }
0x1b7f   :  { %7679 = vrcp.f32 %v5550_v5  ;;  %7081 = vmatpush3.bf16.xpose.msra.mxu1 %v5619_v13  ;;  %v5225_v22 = vmul.f32 %v10744_v34, %v5209_v14  ;;  %v7666_v47 = vpop.eup %7665 }
0x1b80   :  { %7082 = vmatprep.subr.bf16.mxu1 %v10934_v38  ;;  %v5592_v21 = vmul.f32 %v7666_v47, %v10602_v30  ;;  %v7668_v11 = vpop.eup %7667 }
0x1b81   :  { %v5544_v36 = vpop.xlane.xlu1 %5543  ;;  %v5167_v37 = vpop.xlane.xlu0 %5166  ;;  %v5235_v39 = vpack.c.bf16 %v5225_v22, %v5224_v1  ;;  %v5589_v61 = vmul.f32 %v7668_v11, %v10599_v25 }
0x1b82   :  { %7681 = vrcp.f32 %v5167_v37  ;;  %v5608_v63 = vmul.f32 %v10744_v34, %v5592_v21 }
0x1b83   :  { %v7670_v56 = vpop.eup %7669  ;;  %7045 = vmatpush3.bf16.xpose.msra.mxu0 %v5235_v39  ;;  %7683 = vrcp.f32 %v5544_v36 }
0x1b84   :  { %v7672_v17 = vpop.eup %7671  ;;  %7046 = vmatprep.subr.bf16.mxu0 %v10934_v38  ;;  %v5618_v41 = vpack.c.bf16 %v5608_v63, %v5607_v35  ;;  %v5206_v30 = vmul.f32 %v7670_v56, %v10607_v44  ;;  %v5605_v44 = vmul.f32 %v10744_v34, %v5589_v61 }
0x1b85   :  { %v5161_v20 = vpop.xlane.xlu1 %5160  ;;  %v5546_v49 = vpop.xlane.xlu0 %5545  ;;  %v5590_v60 = vmul.f32 %v7672_v17, %v10610_v40 }
0x1b86   :  { %7685 = vrcp.f32 %v5161_v20  ;;  %v5222_v40 = vmul.f32 %v10744_v34, %v5206_v30 }
0x1b87   :  { %7687 = vrcp.f32 %v5546_v49  ;;  %7083 = vmatpush3.bf16.xpose.msra.mxu1 %v5618_v41  ;;  %v7674_v19 = vpop.eup %7673  ;;  %v5606_v24 = vmul.f32 %v10744_v34, %v5590_v60 }
0x1b88   :  { %7084 = vmatprep.subr.bf16.mxu1 %v10934_v38  ;;  %v5207_v62 = vmul.f32 %v7674_v19, %v10618_v32  ;;  %v7676_v58 = vpop.eup %7675 }
0x1b89   :  { %v5540_v50 = vpop.xlane.xlu1 %5539  ;;  %v5163_v52 = vpop.xlane.xlu0 %5162  ;;  %v5617_v5 = vpack.c.bf16 %v5606_v24, %v5605_v44  ;;  %v5587_v14 = vmul.f32 %v7676_v58, %v10615_v23 }
0x1b8a   :  { %7689 = vrcp.f32 %v5163_v52  ;;  %v5223_v6 = vmul.f32 %v10744_v34, %v5207_v62 }
0x1b8b   :  { %v7678_v2 = vpop.eup %7677  ;;  %7691 = vrcp.f32 %v5540_v50  ;;  %v5603_v23 = vmul.f32 %v10744_v34, %v5587_v14 }
0x1b8c   :  { %v7680_v27 = vpop.eup %7679  ;;  %v5234_v48 = vpack.c.bf16 %v5223_v6, %v5222_v40  ;;  %v5204_v32 = vmul.f32 %v7678_v2, %v10623_v45 }
0x1b8d   :  { %v5157_v25 = vpop.xlane.xlu1 %5156  ;;  %v5542_v8 = vpop.xlane.xlu0 %5541  ;;  %v5588_v13 = vmul.f32 %v7680_v27, %v10626_v53 }
0x1b8e   :  { %7693 = vrcp.f32 %v5157_v25  ;;  %7047 = vmatpush3.bf16.xpose.msra.mxu0 %v5234_v48  ;;  %v5220_v39 = vmul.f32 %v10744_v34, %v5204_v32 }
0x1b8f   :  { %7695 = vrcp.f32 %v5542_v8  ;;  %7085 = vmatpush3.bf16.xpose.msra.mxu1 %v5617_v5  ;;  %v7682_v1 = vpop.eup %7681  ;;  %7048 = vmatprep.subr.bf16.mxu0 %v10934_v38  ;;  %v5604_v36 = vmul.f32 %v10744_v34, %v5588_v13 }
0x1b90   :  { %7086 = vmatprep.subr.bf16.mxu1 %v10934_v38  ;;  %v5205_v47 = vmul.f32 %v7682_v1, %v10634_v29  ;;  %v7684_v53 = vpop.eup %7683 }
0x1b91   :  { %v5536_v22 = vpop.xlane.xlu1 %5535  ;;  %v5159_v54 = vpop.xlane.xlu0 %5158  ;;  %v5616_v63 = vpack.c.bf16 %v5604_v36, %v5603_v23  ;;  %v5585_v20 = vmul.f32 %v7684_v53, %v10631_v59 }
0x1b92   :  { %7697 = vrcp.f32 %v5159_v54  ;;  %v5221_v45 = vmul.f32 %v10744_v34, %v5205_v47 }
0x1b93   :  { %v7686_v37 = vpop.eup %7685  ;;  %7699 = vrcp.f32 %v5536_v22  ;;  %v5601_v59 = vmul.f32 %v10744_v34, %v5585_v20 }
0x1b94   :  { %v7688_v21 = vpop.eup %7687  ;;  %v5233_v35 = vpack.c.bf16 %v5221_v45, %v5220_v39  ;;  %v5202_v29 = vmul.f32 %v7686_v37, %v10639_v31 }
0x1b95   :  { %v5153_v11 = vpop.xlane.xlu1 %5152  ;;  %v5538_v56 = vpop.xlane.xlu0 %5537  ;;  %v5586_v17 = vmul.f32 %v7688_v21, %v10642_v3 }
0x1b96   :  { %7701 = vrcp.f32 %v5153_v11  ;;  %7049 = vmatpush3.bf16.xpose.msra.mxu0 %v5233_v35  ;;  %v5218_v50 = vmul.f32 %v10744_v34, %v5202_v29 }
0x1b97   :  { %7703 = vrcp.f32 %v5538_v56  ;;  %7087 = vmatpush3.bf16.xpose.msra.mxu1 %v5616_v63  ;;  %v7690_v49 = vpop.eup %7689  ;;  %7050 = vmatprep.subr.bf16.mxu0 %v10934_v38  ;;  %v5602_v61 = vmul.f32 %v10744_v34, %v5586_v17 }
0x1b98   :  { %7088 = vmatprep.subr.bf16.mxu1 %v10934_v38  ;;  %v5203_v30 = vmul.f32 %v7690_v49, %v10650_v4  ;;  %v7692_v3 = vpop.eup %7691 }
0x1b99   :  { %v5532_v41 = vpop.xlane.xlu1 %5531  ;;  %v5155_v60 = vpop.xlane.xlu0 %5154  ;;  %v5615_v2 = vpack.c.bf16 %v5602_v61, %v5601_v59  ;;  %v5583_v6 = vmul.f32 %v7692_v3, %v10647_v16  ;;  %v10968_v3 = vld [vmem:[#allocation5_spill] sm:$0xff]  ;;  %v7183_v59 = vld [vmem:[%s10897_s10 + $0x10] sm:$0xff]  }
0x1b9a   :  { %7705 = vrcp.f32 %v5155_v60  ;;  %v5219_v31 = vmul.f32 %v10744_v34, %v5203_v30 }
0x1b9b   :  { %v7694_v19 = vpop.eup %7693  ;;  %7707 = vrcp.f32 %v5532_v41 }
0x1b9c   :  { %v7696_v52 = vpop.eup %7695  ;;  %v5232_v58 = vpack.c.bf16 %v5219_v31, %v5218_v50  ;;  %v5200_v4 = vmul.f32 %v7694_v19, %v10654_v33  ;;  %v5599_v33 = vmul.f32 %v10744_v34, %v5583_v6 }
0x1b9d   :  { %v5149_v62 = vpop.xlane.xlu1 %5148  ;;  %v5534_v24 = vpop.xlane.xlu0 %5533  ;;  %v5584_v40 = vmul.f32 %v7696_v52, %v10657_v28 }
0x1b9e   :  { %7709 = vrcp.f32 %v5149_v62  ;;  %7051 = vmatpush3.bf16.xpose.msra.mxu0 %v5232_v58  ;;  %v5216_v5 = vmul.f32 %v10744_v34, %v5200_v4 }
0x1b9f   :  { %7711 = vrcp.f32 %v5534_v24  ;;  %7089 = vmatpush3.bf16.xpose.msra.mxu1 %v5615_v2  ;;  %v7698_v44 = vpop.eup %7697  ;;  %7052 = vmatprep.subr.bf16.mxu0 %v10934_v38  ;;  %v5600_v8 = vmul.f32 %v10744_v34, %v5584_v40 }
0x1ba0   :  { %7090 = vmatprep.subr.bf16.mxu1 %v10934_v38  ;;  %v5201_v25 = vmul.f32 %v7698_v44, %v10663_v10  ;;  %v7700_v48 = vpop.eup %7699 }
0x1ba1   :  { %v5151_v27 = vpop.xlane.xlu0 %5150  ;;  %v5614_v14 = vpack.c.bf16 %v5600_v8, %v5599_v33  ;;  %v5581_v22 = vmul.f32 %v7700_v48, %v10661_v51  ;;  %v3899_v47 = vpop.permute.xlu1 %3898  ;;  %v7184_v8 = vld [vmem:[%s10897_s10 + $0x18] sm:$0xff]   ;;  %v7185_v48 = vld [vmem:[%s10898_s11 + $0x10] sm:$0xff]  }
0x1ba2   :  { %7713 = vrcp.f32 %v5151_v27  ;;  %v5217_v13 = vmul.f32 %v10744_v34, %v5201_v25 }
0x1ba3   :  { %v7702_v28 = vpop.eup %7701 }
0x1ba4   :  { %v7704_v16 = vpop.eup %7703  ;;  %v5231_v32 = vpack.c.bf16 %v5217_v13, %v5216_v5  ;;  %v5198_v10 = vmul.f32 %v7702_v28, %v10667_v12  ;;  %v5597_v12 = vmul.f32 %v10744_v34, %v5581_v22 }
0x1ba5   :  { %v5582_v1 = vmul.f32 %v7704_v16, %v10669_v0  ;;  %v3869_v63 = vpop.permute.xlu1 %3868 }
0x1ba6   :  { %7053 = vmatpush3.bf16.xpose.msra.mxu0 %v5231_v32  ;;  %v5214_v0 = vmul.f32 %v10744_v34, %v5198_v10  ;;  %v4101_v19 = vadd.f32 %v10968_v3, %v3869_v63  ;;  %v10973_v3 = vld [vmem:[#allocation14_spill] sm:$0xff] }
0x1ba7   :  { %7091 = vmatpush3.bf16.xpose.msra.mxu1 %v5614_v14  ;;  %v7706_v54 = vpop.eup %7705  ;;  %7054 = vmatprep.subr.bf16.mxu0 %v10934_v38  ;;  %v5598_v53 = vmul.f32 %v10744_v34, %v5582_v1 }
0x1ba8   :  { %7092 = vmatprep.subr.bf16.mxu1 %v10934_v38  ;;  %v5199_v36 = vmul.f32 %v7706_v54, %v10675_v46  ;;  %v7708_v37 = vpop.eup %7707 }
0x1ba9   :  { %v5613_v21 = vpack.c.bf16 %v5598_v53, %v5597_v12  ;;  %v5579_v46 = vmul.f32 %v7708_v37, %v10673_v55  ;;  %v3874_v41 = vpop.permute.xlu1 %3873  ;;  %v3904_v60 = vpop.permute.xlu0 %3903 }
0x1baa   :  { %v5215_v45 = vmul.f32 %v10744_v34, %v5199_v36  ;;  %v4104_v55 = vadd.f32 %v10315_v9, %v3874_v41  ;;  %v4128_v61 = vadd.f32 %v10325_v7, %v3904_v60 }
0x1bab   :  { %v7710_v39 = vpop.eup %7709 }
0x1bac   :  { %v7712_v23 = vpop.eup %7711  ;;  %v5230_v51 = vpack.c.bf16 %v5215_v45, %v5214_v0  ;;  %v5196_v56 = vmul.f32 %v7710_v39, %v10679_v57  ;;  %v5595_v57 = vmul.f32 %v10744_v34, %v5579_v46  ;;  %v5228_v50 = vpack.c.bf16 %v4104_v55, %v4101_v19 }
0x1bad   :  { %v5580_v11 = vmul.f32 %v7712_v23, %v10681_v18  ;;  %v5689_v28 = vpop.permute.xlu0 %5688  ;;  %v5694_v5 = vpop.permute.xlu1 %5693 }
0x1bae   :  { %7055 = vmatpush3.bf16.xpose.msra.mxu0 %v5230_v51  ;;  %v5212_v20 = vmul.f32 %v10744_v34, %v5196_v56 }
0x1baf   :  { %v7714_v35 = vpop.eup %7713  ;;  %7093 = vmatpush3.bf16.xpose.msra.mxu1 %v5613_v21  ;;  %7056 = vmatprep.subr.bf16.mxu0 %v10934_v38  ;;  %v5596_v29 = vmul.f32 %v10744_v34, %v5580_v11  ;;  %v10969_v11 = vld [vmem:[#allocation8_spill] sm:$0xff] }
0x1bb0   :  { %7094 = vmatprep.subr.bf16.mxu1 %v10934_v38  ;;  %v5197_v17 = vmul.f32 %v7714_v35, %v10685_v43  ;;  %v4125_v43 = vadd.f32 %v10318_v26, %v3899_v47  ;;  %v10970_v35 = vld [vmem:[#allocation9_spill] sm:$0xff] }
0x1bb1   :  { %v5612_v30 = vpack.c.bf16 %v5596_v29, %v5595_v57  ;;  %v5679_v13 = vpop.permute.xlu0 %5678 }
0x1bb2   :  { %v5213_v18 = vmul.f32 %v10744_v34, %v5197_v17  ;;  %v5611_v31 = vpack.c.bf16 %v4128_v61, %v4125_v43  ;;  %v10971_v17 = vld [vmem:[#allocation10_spill] sm:$0xff] }
0x1bb4   :  { %v5229_v49 = vpack.c.bf16 %v5213_v18, %v5212_v20  ;;  %v10972_v20 = vld [vmem:[#allocation15_spill] sm:$0xff] }
0x1bb5   :  { %v5782_v32 = vpop.permute.xlu0 %5781 }
0x1bb6   :  { %7057 = vmatpush3.bf16.xpose.msra.mxu0 %v5229_v49  ;;  %v7186_v49 = vld [vmem:[%s10898_s11 + $0x18] sm:$0xff]  }
0x1bb7   :  { %7095 = vmatpush3.bf16.xpose.msra.mxu1 %v5612_v30 }
0x1bb9   :  { %v5772_v0 = vpop.permute.xlu0 %5771 }
0x1bbd   :  { %7059 = vmatmul.mubr.bf16.vlgmr.msra.gmra.mxu0 %v5228_v50  ;;  %v5821_v41 = vpop.permute.xlu0 %5820 }
0x1bbe   :  { %7097 = vmatmul.mubr.bf16.vlgmr.msra.gmra.mxu1 %v5611_v31  ;;  %7108 = vmatprep.mubr.msk.bf16.mxu0 %vm316_vm1, %v7183_v59 }
0x1bc1   :  { %v5811_v61 = vpop.permute.xlu0 %5810 }
0x1c7d   :  { %v5271_v52 = vpop.f32.mrf.mxu0 }
0x1c7e   :  { %v5654_v62 = vpop.f32.mrf.mxu1  ;;  %v5278_v44 = vmax.f32 %v5271_v52, 0.0  ;;  %v10974_v52 = vld [vmem:[#allocation13_spill] sm:$0xff] }
0x1c7f   :  { %v7060_v24 = vpop.f32.mrf.mxu0  ;;  %v5661_v2 = vmax.f32 %v5654_v62, 0.0 }
0x1c80   :  { %v7098_v9 = vpop.f32.mrf.mxu1 }
0x1c81   :  { %v5274_v58 = vpop.f32.mrf.mxu0 }
0x1c82   :  { %v5657_v7 = vpop.f32.mrf.mxu1  ;;  %v5279_v26 = vmax.f32 %v5274_v58, 0.0 }
0x1c83   :  { %v5662_v40 = vmax.f32 %v5657_v7, 0.0  ;;  %v7061_v4 = vpop.f32.mrf.mxu0 }
0x1c84   :  { %v7099_v6 = vpop.f32.mrf.mxu1  ;;  %v5670_v25 = vpack.c.bf16 %v5279_v26, %v5278_v44 }
0x1c85   :  { %v5671_v27 = vpack.c.bf16 %v5662_v40, %v5661_v2  ;;  %v10975_v2 = vld [vmem:[#allocation11_spill] sm:$0xff]  ;;  %v10976_v6 = vld [vmem:[#allocation12_spill] sm:$0xff] }
0x1c87   :  { %7100 = vmatprep.subr.bf16.mxu0 %v5671_v27 }
0x1c88   :  { %7101 = vmatpush3.bf16.msra.mxu0 %v5671_v27 }
0x1c89   :  { %7102 = vmatprep.subr.bf16.mxu0 %v5670_v25 }
0x1c8c   :  { %7103 = vmatpush3.bf16.msra.mxu0 %v5670_v25 }
0x1c8d   :  { %7104 = vmatprep.subr.bf16.mxu0 %v10364_v42 }
0x1c90   :  { %7105 = vmatpush3.bf16.msra.mxu0 %v10364_v42  ;;  %v5684_v42 = vpop.permute.xlu1 %5683 }
0x1c91   :  { %7106 = vmatprep.subr.bf16.mxu0 %v10366_v15 }
0x1c94   :  { %7107 = vmatpush3.bf16.msra.mxu0 %v10366_v15  ;;  %v5787_v15 = vpop.permute.xlu1 %5786 }
0x1c97   :  { %7109 = vmatmul.mubr.msk.bf16.vlgmr.msra.gmra.mxu0 %vm316_vm1, %v7184_v8 }
0x1c98   :  { %7116 = vmatprep.mubr.msk.bf16.mxu0 %vm1287_vm4, %v7185_v48  ;;  %v5777_v51 = vpop.permute.xlu1 %5776  ;;  %v5905_v48 = vld [vmem:[%s10900_s12] sm:$0xf] }
0x1c9c   :  { %v5826_v60 = vpop.permute.xlu1 %5825 }
0x1ca0   :  { %v5816_v9 = vpop.permute.xlu1 %5815 }
0x1d57   :  { %v7110_v33 = vpop.f32.mrf.mxu0 }
0x1d58   :  { %v5755_v16 = vadd.f32 %v7110_v33, %v5689_v28  ;;  %v5912_v28 = vpop.permute.xlu0 %5911 }
0x1d59   :  { %v5746_v14 = vpop.f32.mrf.mxu0 }
0x1d5a   :  { %v5763_v1 = vmul.f32 %v10744_v34, %v5755_v16  ;;  %v5747_v10 = vadd.f32 %v5746_v14, %v5679_v13 }
0x1d5b   :  { %v7111_v22 = vpop.f32.mrf.mxu0 }
0x1d5c   :  { %v5761_v54 = vmul.f32 %v10744_v34, %v5747_v10  ;;  %v5758_v47 = vadd.f32 %v7111_v22, %v5694_v5  ;;  %v5791_v53 = vadd.f32 %v5782_v32, %v5763_v1 }
0x1d5d   :  { %v5749_v36 = vpop.f32.mrf.mxu0 }
0x1d5e   :  { %v5764_v37 = vmul.f32 %v10744_v34, %v5758_v47  ;;  %v5750_v39 = vadd.f32 %v5749_v36, %v5684_v42  ;;  %v5789_v45 = vadd.f32 %v5772_v0, %v5761_v54  ;;  %v5795_v56 = vadd.f32 %v5791_v53, %v10969_v11 }
0x1d60   :  { %v5792_v12 = vadd.f32 %v5787_v15, %v5764_v37  ;;  %v5762_v23 = vmul.f32 %v10744_v34, %v5750_v39  ;;  %v5793_v29 = vadd.f32 %v5789_v45, %v10971_v17 }
0x1d62   :  { %v5790_v21 = vadd.f32 %v5777_v51, %v5762_v23  ;;  %v5796_v63 = vadd.f32 %v5792_v12, %v10970_v35 }
0x1d64   :  { %v5803_v46 = vpack.c.bf16 %v5796_v63, %v5795_v56  ;;  %v5794_v18 = vadd.f32 %v5790_v21, %v10972_v20 }
0x1d66   :  { %7112 = vmatprep.subr.bf16.mxu0 %v5803_v46  ;;  %v5802_v57 = vpack.c.bf16 %v5794_v18, %v5793_v29 }
0x1d67   :  { %7113 = vmatpush3.bf16.msra.mxu0 %v5803_v46 }
0x1d68   :  { %7114 = vmatprep.subr.bf16.mxu0 %v5802_v57 }
0x1d6b   :  { %7115 = vmatpush3.bf16.msra.mxu0 %v5802_v57 }
0x1d6c   :  { %7120 = vmatprep.subr.bf16.mxu0 %v10934_v38 }
0x1d6e   :  { %7117 = vmatmul.mubr.msk.bf16.vlgmr.msra.gmra.mxu0 %vm1287_vm4, %v7186_v49 }
0x1d6f   :  { %7124 = vmatprep.mubr.msk.bf16.mxu0 %vm7791_vm5, %v10934_v38 }
0x1e2e   :  { %v7118_v30 = vpop.f32.mrf.mxu0 }
0x1e2f   :  { %v5887_v55 = vadd.f32 %v7118_v30, %v5821_v41 }
0x1e30   :  { %v5878_v43 = vpop.f32.mrf.mxu0 }
0x1e31   :  { %v5895_v19 = vadd.f32 %v5887_v55, %v10973_v3  ;;  %v5879_v50 = vadd.f32 %v5878_v43, %v5811_v61 }
0x1e32   :  { %v7119_v31 = vpop.f32.mrf.mxu0 }
0x1e33   :  { %v5899_v59 = vmul.f32 %v10744_v34, %v5895_v19  ;;  %v5893_v62 = vadd.f32 %v5879_v50, %v10974_v52  ;;  %v5890_v24 = vadd.f32 %v7119_v31, %v5826_v60 }
0x1e34   :  { %v5881_v58 = vpop.f32.mrf.mxu0 }
0x1e35   :  { %5903 = vst [vmem:[%s10899_s15 + $0x10] sm:$0xff] %v5899_v59  ;;  %v5897_v7 = vmul.f32 %v10744_v34, %v5893_v62  ;;  %v5896_v26 = vadd.f32 %v5890_v24, %v10975_v2  ;;  %v5882_v40 = vadd.f32 %v5881_v58, %v5816_v9 }
0x1e37   :  { %5901 = vst [vmem:[%s10899_s15] sm:$0xff] %v5897_v7  ;;  %v5900_v4 = vmul.f32 %v10744_v34, %v5896_v26  ;;  %v5894_v44 = vadd.f32 %v5882_v40, %v10976_v6 }
0x1e39   :  { %5904 = vst [vmem:[%s10899_s15 + $0x18] sm:$0xff] %v5900_v4  ;;  %v5907_v27 = vpack.c.bf16 %v5900_v4, %v5899_v59  ;;  %v5898_v25 = vmul.f32 %v10744_v34, %v5894_v44 }
0x1e3b   :  { %5902 = vst [vmem:[%s10899_s15 + $0x8] sm:$0xff] %v5898_v25  ;;  %7121 = vmatpush3.bf16.msra.mxu0 %v5907_v27  ;;  %v5906_v8 = vpack.c.bf16 %v5898_v25, %v5897_v7 }
0x1e3c   :  { %7122 = vmatprep.subr.bf16.mxu0 %v10934_v38 }
0x1e3f   :  { %7123 = vmatpush3.bf16.msra.mxu0 %v5906_v8 }
0x1e42   :  { %7125 = vmatmul.mubr.msk.bf16.vlgmr.msra.gmra.mxu0 %vm1287_vm4, %v5905_v48 }
0x1f02   :  { %v5951_v5 = vpop.f32.mrf.mxu0 }
0x1f03   :  { %v5952_v13 = vadd.f32 %v5951_v5, %v5912_v28 }
0x1f04   :  { %v7126_v42 = vpop.f32.mrf.mxu0 }
0x1f05   :  { %v5957_v33 = vmul.f32 %v10744_v34, %v5952_v13 }
0x1f06   :  { %v5954_v16 = vpop.f32.mrf.mxu0 }
0x1f07   :  { %5958 = vst [vmem:[%s10901_s14] sm:$0xff] %v5957_v33 }
0x1f08   :  { %v7127_v38 = vpop.f32.mrf.mxu0 }

</bundles_post_ra>
